<compile_context>
chip_gen: v7x
topology: tpu7x:2x2x1
jax: 0.10.0
libtpu: 0.0.40
codegen_flags: <defaults>
</compile_context>

<pallas_src>
import jax
import jax.numpy as jnp
from jax.experimental import pallas as pl
from jax.experimental.pallas import tpu as pltpu


# ----------------------------------------------------------------------------
# Kernel
# ----------------------------------------------------------------------------
def _conv3x3_relu_pool(p_ref, w_ref, b_ref, H, W):
    """Conv2d(3x3, pad=1) + bias + ReLU + MaxPool2d(2) on a padded VMEM buffer.

    p_ref : (Nb, H+2, W+2, Cin) zero-padded activation (already populated)
    w_ref : (9, Cin, Cout)      conv taps, index = dy*3 + dx
    b_ref : (1, Cout)           bias
    returns value of shape (Nb, H//2, W//2, Cout)
    """
    Nb = p_ref.shape[0]
    Cin = p_ref.shape[-1]
    Cout = w_ref.shape[-1]
    M = Nb * H * W

    # 3x3 conv as 9 whole-slab matmuls accumulated in f32 (M = N*H*W rows).
    acc = jnp.zeros((M, Cout), jnp.float32)
    for dy in range(3):            # small static tap loop; body is one big matmul
        for dx in range(3):
            patch = p_ref[:, pl.ds(dy, H), pl.ds(dx, W), :]        # (Nb, H, W, Cin)
            acc = acc + jnp.dot(patch.reshape(M, Cin),
                                w_ref[dy * 3 + dx],
                                preferred_element_type=jnp.float32)

    # Bias (single broadcast per layer) + ReLU on the full slab.
    y = jnp.maximum(acc + b_ref[...], 0.0)                         # (M, Cout)

    # 2x2 / stride-2 max pool, vectorized: pool along W, then along H.
    # Lane dim (Cout) is preserved by every reshape.
    Hh, Wh = H // 2, W // 2
    y = jnp.max(y.reshape(Nb * H * Wh, 2, Cout), axis=1)           # pool along W
    y = jnp.max(y.reshape(Nb * Hh, 2, Wh, Cout), axis=1)           # pool along H
    return y.reshape(Nb, Hh, Wh, Cout)


def svhn_fused_kernel(x_ref, w1_ref, b1_ref, w2_ref, b2_ref, w3_ref, b3_ref,
                      wc_ref, bc_ref, o_ref, p1_ref, p2_ref, p3_ref):
    """Fused SVHN forward: 3x [conv3x3+ReLU+pool] -> flatten -> linear."""
    Nb, H, W, _ = x_ref.shape

    # ---- layer 1 (zero-pad inside the kernel into VMEM scratch) ----
    p1_ref[...] = jnp.zeros_like(p1_ref)
    p1_ref[:, pl.ds(1, H), pl.ds(1, W), :] = x_ref[...]
    a = _conv3x3_relu_pool(p1_ref, w1_ref, b1_ref, H, W)           # (Nb, H/2, W/2, C1)

    # ---- layer 2 ----
    H, W = H // 2, W // 2
    p2_ref[...] = jnp.zeros_like(p2_ref)
    p2_ref[:, pl.ds(1, H), pl.ds(1, W), :] = a
    a = _conv3x3_relu_pool(p2_ref, w2_ref, b2_ref, H, W)           # (Nb, H/4, W/4, C2)

    # ---- layer 3 ----
    H, W = H // 2, W // 2
    p3_ref[...] = jnp.zeros_like(p3_ref)
    p3_ref[:, pl.ds(1, H), pl.ds(1, W), :] = a
    a = _conv3x3_relu_pool(p3_ref, w3_ref, b3_ref, H, W)           # (Nb, 1, 1, C3)

    # ---- flatten (spatial 1x1 -> matches torch's x.view) + classifier ----
    feat = a.reshape(Nb, -1)                                       # (Nb, C3)
    o_ref[...] = (jnp.dot(feat, wc_ref[...],
                          preferred_element_type=jnp.float32) + bc_ref[...])


# ----------------------------------------------------------------------------
# Wrapper (single pallas_call for the whole forward)
# ----------------------------------------------------------------------------
def svhn_forward(feat_params, cls_params, x_nchw):
    """Pallas implementation of SVHN.forward.  Input is NCHW (PyTorch layout)."""
    (w1, b1), (w2, b2), (w3, b3) = feat_params
    wc_t, bc = cls_params

    x = jnp.transpose(x_nchw, (0, 2, 3, 1)).astype(jnp.float32)    # NCHW -> NHWC
    N, H, W, Cin = x.shape
    C1, C2 = w1.shape[-1], w2.shape[-1]
    num_classes = wc_t.shape[-1]

    # Batch grid: 8-row blocks when possible (sublane-aligned output block),
    # otherwise a single full-batch block.
    block_n = 8 if (N % 8 == 0) else N
    grid = (N // block_n,)

    b1r, b2r, b3r, bcr = (b.reshape(1, -1) for b in (b1, b2, b3, bc))

    def full(a):  # whole-array block, same block every grid step
        return pl.BlockSpec(a.shape, lambda i, _nd=a.ndim: (0,) * _nd)

    return pl.pallas_call(
        svhn_fused_kernel,
        out_shape=jax.ShapeDtypeStruct((N, num_classes), jnp.float32),
        grid=grid,
        in_specs=[
            pl.BlockSpec((block_n, H, W, Cin), lambda i: (i, 0, 0, 0)),
            full(w1), full(b1r), full(w2), full(b2r), full(w3), full(b3r),
            full(wc_t), full(bcr),
        ],
        out_specs=pl.BlockSpec((block_n, num_classes), lambda i: (i, 0)),
        scratch_shapes=[
            pltpu.VMEM((block_n, H + 2, W + 2, Cin), jnp.float32),
            pltpu.VMEM((block_n, H // 2 + 2, W // 2 + 2, C1), jnp.float32),
            pltpu.VMEM((block_n, H // 4 + 2, W // 4 + 2, C2), jnp.float32),
        ],
        compiler_params=pltpu.CompilerParams(
            dimension_semantics=("parallel",)),
    )(x, w1, b1r, w2, b2r, w3, b3r, wc_t, bcr)
    # TODO(synk): cast matmul operands to bf16 on v6e/v7x for the MXU fast path
    # (kept f32 here for exact parity with the f32 reference at these tiny sizes).


# ----------------------------------------------------------------------------
# Pure-JAX reference (correctness check only)
# ----------------------------------------------------------------------------
def reference_forward(feat_torch, cls_torch, x_nchw):
    x = x_nchw
    for w, b in feat_torch:
        x = jax.lax.conv_general_dilated(
            x, w, window_strides=(1, 1), padding=((1, 1), (1, 1)),
            dimension_numbers=("NCHW", "OIHW", "NCHW"))
        x = jnp.maximum(x + b.reshape(1, -1, 1, 1), 0.0)
        x = jax.lax.reduce_window(x, -jnp.inf, jax.lax.max,
                                  (1, 1, 2, 2), (1, 1, 2, 2), "VALID")
    x = x.reshape(x.shape[0], -1)
    wl, bl = cls_torch
    return x @ wl.T + bl


# ----------------------------------------------------------------------------
if __name__ == "__main__":
    key = jax.random.PRNGKey(0)
    N, Cin, H, W = 16, 3, 8, 8                  # small NCHW input (2 grid steps)
    chans = [Cin, 16, 32, 32]                   # conv stack channel plan
    n_channel = chans[-1]                       # flattened feature size (spatial 1x1)
    num_classes = 10

    ks = jax.random.split(key, 1 + 2 * (len(chans) - 1) + 2)
    x = jax.random.normal(ks[0], (N, Cin, H, W), jnp.float32)

    # Deterministic params in PyTorch layout (OIHW conv weights, (out,in) linear).
    feat_torch = []
    ki = 1
    for cin, cout in zip(chans[:-1], chans[1:]):
        w = 0.1 * jax.random.normal(ks[ki], (cout, cin, 3, 3), jnp.float32); ki += 1
        b = 0.1 * jax.random.normal(ks[ki], (cout,), jnp.float32); ki += 1
        feat_torch.append((w, b))
    wl = 0.1 * jax.random.normal(ks[ki], (num_classes, n_channel), jnp.float32); ki += 1
    bl = 0.1 * jax.random.normal(ks[ki], (num_classes,), jnp.float32)

    # Kernel layout: conv (Cout,Cin,3,3) -> taps (9, Cin, Cout); linear W -> W^T.
    feat_kernel = [
        (w.transpose(2, 3, 1, 0).reshape(9, w.shape[1], w.shape[0]), b)
        for (w, b) in feat_torch
    ]
    cls_kernel = (wl.T, bl)

    out = svhn_forward(feat_kernel, cls_kernel, x)
    out = jax.block_until_ready(out)
    assert out.shape == (N, num_classes) and out.dtype == jnp.float32

    ref = reference_forward(feat_torch, (wl, bl), x)
    if not jnp.allclose(out, ref, rtol=2e-2, atol=2e-2):
        raise AssertionError("Pallas SVHN output does not match reference")

    print("KERNEL_OK")
</pallas_src>

<mosaic_0001>
module attributes {stable_mosaic.version = 11 : i64} {
  func.func @svhn_fused_kernel(%arg0: i32, %arg1: memref<8x8x8x3xf32, #tpu.memory_space<vmem>>, %arg2: memref<9x3x16xf32, #tpu.memory_space<vmem>>, %arg3: memref<1x16xf32, #tpu.memory_space<vmem>>, %arg4: memref<9x16x32xf32, #tpu.memory_space<vmem>>, %arg5: memref<1x32xf32, #tpu.memory_space<vmem>>, %arg6: memref<9x32x32xf32, #tpu.memory_space<vmem>>, %arg7: memref<1x32xf32, #tpu.memory_space<vmem>>, %arg8: memref<32x10xf32, #tpu.memory_space<vmem>>, %arg9: memref<1x10xf32, #tpu.memory_space<vmem>>, %arg10: memref<8x10xf32, #tpu.memory_space<vmem>>, %arg11: memref<8x10x10x3xf32, #tpu.memory_space<vmem>>, %arg12: memref<8x6x6x16xf32, #tpu.memory_space<vmem>>, %arg13: memref<8x4x4x32xf32, #tpu.memory_space<vmem>>) attributes {dimension_semantics = [#tpu.dimension_semantics<parallel>], iteration_bounds = array<i64: 2>, scalar_prefetch = 0 : i64, scratch_operands = 3 : i64, tpu.core_type = #tpu.core_type<tc>, window_params = [{transform_indices = @transform_0, window_bounds = array<i64: 8, 8, 8, 3>}, {pipeline_mode = #tpu.pipeline_mode<synchronous>, transform_indices = @transform_1, window_bounds = array<i64: 9, 3, 16>}, {pipeline_mode = #tpu.pipeline_mode<synchronous>, transform_indices = @transform_2, window_bounds = array<i64: 1, 16>}, {pipeline_mode = #tpu.pipeline_mode<synchronous>, transform_indices = @transform_3, window_bounds = array<i64: 9, 16, 32>}, {pipeline_mode = #tpu.pipeline_mode<synchronous>, transform_indices = @transform_4, window_bounds = array<i64: 1, 32>}, {pipeline_mode = #tpu.pipeline_mode<synchronous>, transform_indices = @transform_5, window_bounds = array<i64: 9, 32, 32>}, {pipeline_mode = #tpu.pipeline_mode<synchronous>, transform_indices = @transform_6, window_bounds = array<i64: 1, 32>}, {pipeline_mode = #tpu.pipeline_mode<synchronous>, transform_indices = @transform_7, window_bounds = array<i64: 32, 10>}, {pipeline_mode = #tpu.pipeline_mode<synchronous>, transform_indices = @transform_8, window_bounds = array<i64: 1, 10>}, {transform_indices = @transform_9, window_bounds = array<i64: 8, 10>}]} {
    %cst = arith.constant 0.000000e+00 : f32
    %0 = vector.broadcast %cst : f32 to vector<8x10x10x3xf32>
    %c0 = arith.constant 0 : index
    %c0_0 = arith.constant 0 : index
    %c0_1 = arith.constant 0 : index
    %c0_2 = arith.constant 0 : index
    %1 = vector.load %arg11[%c0, %c0_0, %c0_1, %c0_2] : memref<8x10x10x3xf32, #tpu.memory_space<vmem>>, vector<8x10x10x3xf32>
    tpu.vector_store %arg11[%c0, %c0_0, %c0_1, %c0_2], %0 {strides = array<i32>} : memref<8x10x10x3xf32, #tpu.memory_space<vmem>>, vector<8x10x10x3xf32>,
    %c0_3 = arith.constant 0 : index
    %c0_4 = arith.constant 0 : index
    %c0_5 = arith.constant 0 : index
    %c0_6 = arith.constant 0 : index
    %2 = vector.load %arg1[%c0_3, %c0_4, %c0_5, %c0_6] : memref<8x8x8x3xf32, #tpu.memory_space<vmem>>, vector<8x8x8x3xf32>
    %c0_7 = arith.constant 0 : index
    %c1 = arith.constant 1 : index
    %c1_8 = arith.constant 1 : index
    %c0_9 = arith.constant 0 : index
    %3 = vector.load %arg11[%c0_7, %c1, %c1_8, %c0_9] : memref<8x10x10x3xf32, #tpu.memory_space<vmem>>, vector<8x8x8x3xf32>
    tpu.vector_store %arg11[%c0_7, %c1, %c1_8, %c0_9], %2 {strides = array<i32>} : memref<8x10x10x3xf32, #tpu.memory_space<vmem>>, vector<8x8x8x3xf32>,
    %cst_10 = arith.constant 0.000000e+00 : f32
    %4 = vector.broadcast %cst_10 : f32 to vector<512x16xf32>
    %c0_11 = arith.constant 0 : index
    %c0_12 = arith.constant 0 : index
    %c0_13 = arith.constant 0 : index
    %c0_14 = arith.constant 0 : index
    %5 = vector.load %arg11[%c0_11, %c0_12, %c0_13, %c0_14] : memref<8x10x10x3xf32, #tpu.memory_space<vmem>>, vector<8x8x8x3xf32>
    %6 = vector.shape_cast %5 : vector<8x8x8x3xf32> to vector<512x3xf32>
    %c0_15 = arith.constant 0 : index
    %c0_16 = arith.constant 0 : index
    %c0_17 = arith.constant 0 : index
    %7 = vector.load %arg2[%c0_15, %c0_16, %c0_17] : memref<9x3x16xf32, #tpu.memory_space<vmem>>, vector<1x3x16xf32>
    %8 = vector.shape_cast %7 : vector<1x3x16xf32> to vector<3x16xf32>
    %cst_18 = arith.constant dense<0.000000e+00> : vector<512x16xf32>
    %9 = tpu.matmul %6, %8, %cst_18 {dimension_numbers = #tpu.dot_dimension_numbers<[1], [0], [0], [1], [0, 0, 1, 1], [], []>} : vector<512x3xf32>, vector<3x16xf32>, vector<512x16xf32> -> vector<512x16xf32>
    %10 = arith.addf %4, %9 : vector<512x16xf32>
    %c0_19 = arith.constant 0 : index
    %c0_20 = arith.constant 0 : index
    %c1_21 = arith.constant 1 : index
    %c0_22 = arith.constant 0 : index
    %11 = vector.load %arg11[%c0_19, %c0_20, %c1_21, %c0_22] : memref<8x10x10x3xf32, #tpu.memory_space<vmem>>, vector<8x8x8x3xf32>
    %12 = vector.shape_cast %11 : vector<8x8x8x3xf32> to vector<512x3xf32>
    %c1_23 = arith.constant 1 : index
    %c0_24 = arith.constant 0 : index
    %c0_25 = arith.constant 0 : index
    %13 = vector.load %arg2[%c1_23, %c0_24, %c0_25] : memref<9x3x16xf32, #tpu.memory_space<vmem>>, vector<1x3x16xf32>
    %14 = vector.shape_cast %13 : vector<1x3x16xf32> to vector<3x16xf32>
    %cst_26 = arith.constant dense<0.000000e+00> : vector<512x16xf32>
    %15 = tpu.matmul %12, %14, %cst_26 {dimension_numbers = #tpu.dot_dimension_numbers<[1], [0], [0], [1], [0, 0, 1, 1], [], []>} : vector<512x3xf32>, vector<3x16xf32>, vector<512x16xf32> -> vector<512x16xf32>
    %16 = arith.addf %10, %15 : vector<512x16xf32>
    %c0_27 = arith.constant 0 : index
    %c0_28 = arith.constant 0 : index
    %c2 = arith.constant 2 : index
    %c0_29 = arith.constant 0 : index
    %17 = vector.load %arg11[%c0_27, %c0_28, %c2, %c0_29] : memref<8x10x10x3xf32, #tpu.memory_space<vmem>>, vector<8x8x8x3xf32>
    %18 = vector.shape_cast %17 : vector<8x8x8x3xf32> to vector<512x3xf32>
    %c2_30 = arith.constant 2 : index
    %c0_31 = arith.constant 0 : index
    %c0_32 = arith.constant 0 : index
    %19 = vector.load %arg2[%c2_30, %c0_31, %c0_32] : memref<9x3x16xf32, #tpu.memory_space<vmem>>, vector<1x3x16xf32>
    %20 = vector.shape_cast %19 : vector<1x3x16xf32> to vector<3x16xf32>
    %cst_33 = arith.constant dense<0.000000e+00> : vector<512x16xf32>
    %21 = tpu.matmul %18, %20, %cst_33 {dimension_numbers = #tpu.dot_dimension_numbers<[1], [0], [0], [1], [0, 0, 1, 1], [], []>} : vector<512x3xf32>, vector<3x16xf32>, vector<512x16xf32> -> vector<512x16xf32>
    %22 = arith.addf %16, %21 : vector<512x16xf32>
    %c0_34 = arith.constant 0 : index
    %c1_35 = arith.constant 1 : index
    %c0_36 = arith.constant 0 : index
    %c0_37 = arith.constant 0 : index
    %23 = vector.load %arg11[%c0_34, %c1_35, %c0_36, %c0_37] : memref<8x10x10x3xf32, #tpu.memory_space<vmem>>, vector<8x8x8x3xf32>
    %24 = vector.shape_cast %23 : vector<8x8x8x3xf32> to vector<512x3xf32>
    %c3 = arith.constant 3 : index
    %c0_38 = arith.constant 0 : index
    %c0_39 = arith.constant 0 : index
    %25 = vector.load %arg2[%c3, %c0_38, %c0_39] : memref<9x3x16xf32, #tpu.memory_space<vmem>>, vector<1x3x16xf32>
    %26 = vector.shape_cast %25 : vector<1x3x16xf32> to vector<3x16xf32>
    %cst_40 = arith.constant dense<0.000000e+00> : vector<512x16xf32>
    %27 = tpu.matmul %24, %26, %cst_40 {dimension_numbers = #tpu.dot_dimension_numbers<[1], [0], [0], [1], [0, 0, 1, 1], [], []>} : vector<512x3xf32>, vector<3x16xf32>, vector<512x16xf32> -> vector<512x16xf32>
    %28 = arith.addf %22, %27 : vector<512x16xf32>
    %c0_41 = arith.constant 0 : index
    %c1_42 = arith.constant 1 : index
    %c1_43 = arith.constant 1 : index
    %c0_44 = arith.constant 0 : index
    %29 = vector.load %arg11[%c0_41, %c1_42, %c1_43, %c0_44] : memref<8x10x10x3xf32, #tpu.memory_space<vmem>>, vector<8x8x8x3xf32>
    %30 = vector.shape_cast %29 : vector<8x8x8x3xf32> to vector<512x3xf32>
    %c4 = arith.constant 4 : index
    %c0_45 = arith.constant 0 : index
    %c0_46 = arith.constant 0 : index
    %31 = vector.load %arg2[%c4, %c0_45, %c0_46] : memref<9x3x16xf32, #tpu.memory_space<vmem>>, vector<1x3x16xf32>
    %32 = vector.shape_cast %31 : vector<1x3x16xf32> to vector<3x16xf32>
    %cst_47 = arith.constant dense<0.000000e+00> : vector<512x16xf32>
    %33 = tpu.matmul %30, %32, %cst_47 {dimension_numbers = #tpu.dot_dimension_numbers<[1], [0], [0], [1], [0, 0, 1, 1], [], []>} : vector<512x3xf32>, vector<3x16xf32>, vector<512x16xf32> -> vector<512x16xf32>
    %34 = arith.addf %28, %33 : vector<512x16xf32>
    %c0_48 = arith.constant 0 : index
    %c1_49 = arith.constant 1 : index
    %c2_50 = arith.constant 2 : index
    %c0_51 = arith.constant 0 : index
    %35 = vector.load %arg11[%c0_48, %c1_49, %c2_50, %c0_51] : memref<8x10x10x3xf32, #tpu.memory_space<vmem>>, vector<8x8x8x3xf32>
    %36 = vector.shape_cast %35 : vector<8x8x8x3xf32> to vector<512x3xf32>
    %c5 = arith.constant 5 : index
    %c0_52 = arith.constant 0 : index
    %c0_53 = arith.constant 0 : index
    %37 = vector.load %arg2[%c5, %c0_52, %c0_53] : memref<9x3x16xf32, #tpu.memory_space<vmem>>, vector<1x3x16xf32>
    %38 = vector.shape_cast %37 : vector<1x3x16xf32> to vector<3x16xf32>
    %cst_54 = arith.constant dense<0.000000e+00> : vector<512x16xf32>
    %39 = tpu.matmul %36, %38, %cst_54 {dimension_numbers = #tpu.dot_dimension_numbers<[1], [0], [0], [1], [0, 0, 1, 1], [], []>} : vector<512x3xf32>, vector<3x16xf32>, vector<512x16xf32> -> vector<512x16xf32>
    %40 = arith.addf %34, %39 : vector<512x16xf32>
    %c0_55 = arith.constant 0 : index
    %c2_56 = arith.constant 2 : index
    %c0_57 = arith.constant 0 : index
    %c0_58 = arith.constant 0 : index
    %41 = vector.load %arg11[%c0_55, %c2_56, %c0_57, %c0_58] : memref<8x10x10x3xf32, #tpu.memory_space<vmem>>, vector<8x8x8x3xf32>
    %42 = vector.shape_cast %41 : vector<8x8x8x3xf32> to vector<512x3xf32>
    %c6 = arith.constant 6 : index
    %c0_59 = arith.constant 0 : index
    %c0_60 = arith.constant 0 : index
    %43 = vector.load %arg2[%c6, %c0_59, %c0_60] : memref<9x3x16xf32, #tpu.memory_space<vmem>>, vector<1x3x16xf32>
    %44 = vector.shape_cast %43 : vector<1x3x16xf32> to vector<3x16xf32>
    %cst_61 = arith.constant dense<0.000000e+00> : vector<512x16xf32>
    %45 = tpu.matmul %42, %44, %cst_61 {dimension_numbers = #tpu.dot_dimension_numbers<[1], [0], [0], [1], [0, 0, 1, 1], [], []>} : vector<512x3xf32>, vector<3x16xf32>, vector<512x16xf32> -> vector<512x16xf32>
    %46 = arith.addf %40, %45 : vector<512x16xf32>
    %c0_62 = arith.constant 0 : index
    %c2_63 = arith.constant 2 : index
    %c1_64 = arith.constant 1 : index
    %c0_65 = arith.constant 0 : index
    %47 = vector.load %arg11[%c0_62, %c2_63, %c1_64, %c0_65] : memref<8x10x10x3xf32, #tpu.memory_space<vmem>>, vector<8x8x8x3xf32>
    %48 = vector.shape_cast %47 : vector<8x8x8x3xf32> to vector<512x3xf32>
    %c7 = arith.constant 7 : index
    %c0_66 = arith.constant 0 : index
    %c0_67 = arith.constant 0 : index
    %49 = vector.load %arg2[%c7, %c0_66, %c0_67] : memref<9x3x16xf32, #tpu.memory_space<vmem>>, vector<1x3x16xf32>
    %50 = vector.shape_cast %49 : vector<1x3x16xf32> to vector<3x16xf32>
    %cst_68 = arith.constant dense<0.000000e+00> : vector<512x16xf32>
    %51 = tpu.matmul %48, %50, %cst_68 {dimension_numbers = #tpu.dot_dimension_numbers<[1], [0], [0], [1], [0, 0, 1, 1], [], []>} : vector<512x3xf32>, vector<3x16xf32>, vector<512x16xf32> -> vector<512x16xf32>
    %52 = arith.addf %46, %51 : vector<512x16xf32>
    %c0_69 = arith.constant 0 : index
    %c2_70 = arith.constant 2 : index
    %c2_71 = arith.constant 2 : index
    %c0_72 = arith.constant 0 : index
    %53 = vector.load %arg11[%c0_69, %c2_70, %c2_71, %c0_72] : memref<8x10x10x3xf32, #tpu.memory_space<vmem>>, vector<8x8x8x3xf32>
    %54 = vector.shape_cast %53 : vector<8x8x8x3xf32> to vector<512x3xf32>
    %c8 = arith.constant 8 : index
    %c0_73 = arith.constant 0 : index
    %c0_74 = arith.constant 0 : index
    %55 = vector.load %arg2[%c8, %c0_73, %c0_74] : memref<9x3x16xf32, #tpu.memory_space<vmem>>, vector<1x3x16xf32>
    %56 = vector.shape_cast %55 : vector<1x3x16xf32> to vector<3x16xf32>
    %cst_75 = arith.constant dense<0.000000e+00> : vector<512x16xf32>
    %57 = tpu.matmul %54, %56, %cst_75 {dimension_numbers = #tpu.dot_dimension_numbers<[1], [0], [0], [1], [0, 0, 1, 1], [], []>} : vector<512x3xf32>, vector<3x16xf32>, vector<512x16xf32> -> vector<512x16xf32>
    %58 = arith.addf %52, %57 : vector<512x16xf32>
    %c0_76 = arith.constant 0 : index
    %c0_77 = arith.constant 0 : index
    %59 = vector.load %arg3[%c0_76, %c0_77] : memref<1x16xf32, #tpu.memory_space<vmem>>, vector<1x16xf32>
    %60 = vector.broadcast %59 : vector<1x16xf32> to vector<512x16xf32>
    %61 = arith.addf %58, %60 : vector<512x16xf32>
    %cst_78 = arith.constant 0.000000e+00 : f32
    %62 = vector.broadcast %cst_78 : f32 to vector<512x16xf32>
    %63 = arith.maximumf %61, %62 : vector<512x16xf32>
    %64 = vector.shape_cast %63 : vector<512x16xf32> to vector<256x2x16xf32>
    %cst_79 = arith.constant dense<0xFF800000> : vector<256x16xf32>
    %65 = vector.multi_reduction <maximumf>, %64, %cst_79 [1] : vector<256x2x16xf32> to vector<256x16xf32>
    %66 = vector.shape_cast %65 : vector<256x16xf32> to vector<32x2x4x16xf32>
    %cst_80 = arith.constant dense<0xFF800000> : vector<32x4x16xf32>
    %67 = vector.multi_reduction <maximumf>, %66, %cst_80 [1] : vector<32x2x4x16xf32> to vector<32x4x16xf32>
    %68 = vector.shape_cast %67 : vector<32x4x16xf32> to vector<8x4x4x16xf32>
    %cst_81 = arith.constant 0.000000e+00 : f32
    %69 = vector.broadcast %cst_81 : f32 to vector<8x6x6x16xf32>
    %c0_82 = arith.constant 0 : index
    %c0_83 = arith.constant 0 : index
    %c0_84 = arith.constant 0 : index
    %c0_85 = arith.constant 0 : index
    %70 = vector.load %arg12[%c0_82, %c0_83, %c0_84, %c0_85] : memref<8x6x6x16xf32, #tpu.memory_space<vmem>>, vector<8x6x6x16xf32>
    tpu.vector_store %arg12[%c0_82, %c0_83, %c0_84, %c0_85], %69 {strides = array<i32>} : memref<8x6x6x16xf32, #tpu.memory_space<vmem>>, vector<8x6x6x16xf32>,
    %c0_86 = arith.constant 0 : index
    %c1_87 = arith.constant 1 : index
    %c1_88 = arith.constant 1 : index
    %c0_89 = arith.constant 0 : index
    %71 = vector.load %arg12[%c0_86, %c1_87, %c1_88, %c0_89] : memref<8x6x6x16xf32, #tpu.memory_space<vmem>>, vector<8x4x4x16xf32>
    tpu.vector_store %arg12[%c0_86, %c1_87, %c1_88, %c0_89], %68 {strides = array<i32>} : memref<8x6x6x16xf32, #tpu.memory_space<vmem>>, vector<8x4x4x16xf32>,
    %cst_90 = arith.constant 0.000000e+00 : f32
    %72 = vector.broadcast %cst_90 : f32 to vector<128x32xf32>
    %c0_91 = arith.constant 0 : index
    %c0_92 = arith.constant 0 : index
    %c0_93 = arith.constant 0 : index
    %c0_94 = arith.constant 0 : index
    %73 = vector.load %arg12[%c0_91, %c0_92, %c0_93, %c0_94] : memref<8x6x6x16xf32, #tpu.memory_space<vmem>>, vector<8x4x4x16xf32>
    %74 = vector.shape_cast %73 : vector<8x4x4x16xf32> to vector<128x16xf32>
    %c0_95 = arith.constant 0 : index
    %c0_96 = arith.constant 0 : index
    %c0_97 = arith.constant 0 : index
    %75 = vector.load %arg4[%c0_95, %c0_96, %c0_97] : memref<9x16x32xf32, #tpu.memory_space<vmem>>, vector<1x16x32xf32>
    %76 = vector.shape_cast %75 : vector<1x16x32xf32> to vector<16x32xf32>
    %cst_98 = arith.constant dense<0.000000e+00> : vector<128x32xf32>
    %77 = tpu.matmul %74, %76, %cst_98 {dimension_numbers = #tpu.dot_dimension_numbers<[1], [0], [0], [1], [0, 0, 1, 1], [], []>} : vector<128x16xf32>, vector<16x32xf32>, vector<128x32xf32> -> vector<128x32xf32>
    %78 = arith.addf %72, %77 : vector<128x32xf32>
    %c0_99 = arith.constant 0 : index
    %c0_100 = arith.constant 0 : index
    %c1_101 = arith.constant 1 : index
    %c0_102 = arith.constant 0 : index
    %79 = vector.load %arg12[%c0_99, %c0_100, %c1_101, %c0_102] : memref<8x6x6x16xf32, #tpu.memory_space<vmem>>, vector<8x4x4x16xf32>
    %80 = vector.shape_cast %79 : vector<8x4x4x16xf32> to vector<128x16xf32>
    %c1_103 = arith.constant 1 : index
    %c0_104 = arith.constant 0 : index
    %c0_105 = arith.constant 0 : index
    %81 = vector.load %arg4[%c1_103, %c0_104, %c0_105] : memref<9x16x32xf32, #tpu.memory_space<vmem>>, vector<1x16x32xf32>
    %82 = vector.shape_cast %81 : vector<1x16x32xf32> to vector<16x32xf32>
    %cst_106 = arith.constant dense<0.000000e+00> : vector<128x32xf32>
    %83 = tpu.matmul %80, %82, %cst_106 {dimension_numbers = #tpu.dot_dimension_numbers<[1], [0], [0], [1], [0, 0, 1, 1], [], []>} : vector<128x16xf32>, vector<16x32xf32>, vector<128x32xf32> -> vector<128x32xf32>
    %84 = arith.addf %78, %83 : vector<128x32xf32>
    %c0_107 = arith.constant 0 : index
    %c0_108 = arith.constant 0 : index
    %c2_109 = arith.constant 2 : index
    %c0_110 = arith.constant 0 : index
    %85 = vector.load %arg12[%c0_107, %c0_108, %c2_109, %c0_110] : memref<8x6x6x16xf32, #tpu.memory_space<vmem>>, vector<8x4x4x16xf32>
    %86 = vector.shape_cast %85 : vector<8x4x4x16xf32> to vector<128x16xf32>
    %c2_111 = arith.constant 2 : index
    %c0_112 = arith.constant 0 : index
    %c0_113 = arith.constant 0 : index
    %87 = vector.load %arg4[%c2_111, %c0_112, %c0_113] : memref<9x16x32xf32, #tpu.memory_space<vmem>>, vector<1x16x32xf32>
    %88 = vector.shape_cast %87 : vector<1x16x32xf32> to vector<16x32xf32>
    %cst_114 = arith.constant dense<0.000000e+00> : vector<128x32xf32>
    %89 = tpu.matmul %86, %88, %cst_114 {dimension_numbers = #tpu.dot_dimension_numbers<[1], [0], [0], [1], [0, 0, 1, 1], [], []>} : vector<128x16xf32>, vector<16x32xf32>, vector<128x32xf32> -> vector<128x32xf32>
    %90 = arith.addf %84, %89 : vector<128x32xf32>
    %c0_115 = arith.constant 0 : index
    %c1_116 = arith.constant 1 : index
    %c0_117 = arith.constant 0 : index
    %c0_118 = arith.constant 0 : index
    %91 = vector.load %arg12[%c0_115, %c1_116, %c0_117, %c0_118] : memref<8x6x6x16xf32, #tpu.memory_space<vmem>>, vector<8x4x4x16xf32>
    %92 = vector.shape_cast %91 : vector<8x4x4x16xf32> to vector<128x16xf32>
    %c3_119 = arith.constant 3 : index
    %c0_120 = arith.constant 0 : index
    %c0_121 = arith.constant 0 : index
    %93 = vector.load %arg4[%c3_119, %c0_120, %c0_121] : memref<9x16x32xf32, #tpu.memory_space<vmem>>, vector<1x16x32xf32>
    %94 = vector.shape_cast %93 : vector<1x16x32xf32> to vector<16x32xf32>
    %cst_122 = arith.constant dense<0.000000e+00> : vector<128x32xf32>
    %95 = tpu.matmul %92, %94, %cst_122 {dimension_numbers = #tpu.dot_dimension_numbers<[1], [0], [0], [1], [0, 0, 1, 1], [], []>} : vector<128x16xf32>, vector<16x32xf32>, vector<128x32xf32> -> vector<128x32xf32>
    %96 = arith.addf %90, %95 : vector<128x32xf32>
    %c0_123 = arith.constant 0 : index
    %c1_124 = arith.constant 1 : index
    %c1_125 = arith.constant 1 : index
    %c0_126 = arith.constant 0 : index
    %97 = vector.load %arg12[%c0_123, %c1_124, %c1_125, %c0_126] : memref<8x6x6x16xf32, #tpu.memory_space<vmem>>, vector<8x4x4x16xf32>
    %98 = vector.shape_cast %97 : vector<8x4x4x16xf32> to vector<128x16xf32>
    %c4_127 = arith.constant 4 : index
    %c0_128 = arith.constant 0 : index
    %c0_129 = arith.constant 0 : index
    %99 = vector.load %arg4[%c4_127, %c0_128, %c0_129] : memref<9x16x32xf32, #tpu.memory_space<vmem>>, vector<1x16x32xf32>
    %100 = vector.shape_cast %99 : vector<1x16x32xf32> to vector<16x32xf32>
    %cst_130 = arith.constant dense<0.000000e+00> : vector<128x32xf32>
    %101 = tpu.matmul %98, %100, %cst_130 {dimension_numbers = #tpu.dot_dimension_numbers<[1], [0], [0], [1], [0, 0, 1, 1], [], []>} : vector<128x16xf32>, vector<16x32xf32>, vector<128x32xf32> -> vector<128x32xf32>
    %102 = arith.addf %96, %101 : vector<128x32xf32>
    %c0_131 = arith.constant 0 : index
    %c1_132 = arith.constant 1 : index
    %c2_133 = arith.constant 2 : index
    %c0_134 = arith.constant 0 : index
    %103 = vector.load %arg12[%c0_131, %c1_132, %c2_133, %c0_134] : memref<8x6x6x16xf32, #tpu.memory_space<vmem>>, vector<8x4x4x16xf32>
    %104 = vector.shape_cast %103 : vector<8x4x4x16xf32> to vector<128x16xf32>
    %c5_135 = arith.constant 5 : index
    %c0_136 = arith.constant 0 : index
    %c0_137 = arith.constant 0 : index
    %105 = vector.load %arg4[%c5_135, %c0_136, %c0_137] : memref<9x16x32xf32, #tpu.memory_space<vmem>>, vector<1x16x32xf32>
    %106 = vector.shape_cast %105 : vector<1x16x32xf32> to vector<16x32xf32>
    %cst_138 = arith.constant dense<0.000000e+00> : vector<128x32xf32>
    %107 = tpu.matmul %104, %106, %cst_138 {dimension_numbers = #tpu.dot_dimension_numbers<[1], [0], [0], [1], [0, 0, 1, 1], [], []>} : vector<128x16xf32>, vector<16x32xf32>, vector<128x32xf32> -> vector<128x32xf32>
    %108 = arith.addf %102, %107 : vector<128x32xf32>
    %c0_139 = arith.constant 0 : index
    %c2_140 = arith.constant 2 : index
    %c0_141 = arith.constant 0 : index
    %c0_142 = arith.constant 0 : index
    %109 = vector.load %arg12[%c0_139, %c2_140, %c0_141, %c0_142] : memref<8x6x6x16xf32, #tpu.memory_space<vmem>>, vector<8x4x4x16xf32>
    %110 = vector.shape_cast %109 : vector<8x4x4x16xf32> to vector<128x16xf32>
    %c6_143 = arith.constant 6 : index
    %c0_144 = arith.constant 0 : index
    %c0_145 = arith.constant 0 : index
    %111 = vector.load %arg4[%c6_143, %c0_144, %c0_145] : memref<9x16x32xf32, #tpu.memory_space<vmem>>, vector<1x16x32xf32>
    %112 = vector.shape_cast %111 : vector<1x16x32xf32> to vector<16x32xf32>
    %cst_146 = arith.constant dense<0.000000e+00> : vector<128x32xf32>
    %113 = tpu.matmul %110, %112, %cst_146 {dimension_numbers = #tpu.dot_dimension_numbers<[1], [0], [0], [1], [0, 0, 1, 1], [], []>} : vector<128x16xf32>, vector<16x32xf32>, vector<128x32xf32> -> vector<128x32xf32>
    %114 = arith.addf %108, %113 : vector<128x32xf32>
    %c0_147 = arith.constant 0 : index
    %c2_148 = arith.constant 2 : index
    %c1_149 = arith.constant 1 : index
    %c0_150 = arith.constant 0 : index
    %115 = vector.load %arg12[%c0_147, %c2_148, %c1_149, %c0_150] : memref<8x6x6x16xf32, #tpu.memory_space<vmem>>, vector<8x4x4x16xf32>
    %116 = vector.shape_cast %115 : vector<8x4x4x16xf32> to vector<128x16xf32>
    %c7_151 = arith.constant 7 : index
    %c0_152 = arith.constant 0 : index
    %c0_153 = arith.constant 0 : index
    %117 = vector.load %arg4[%c7_151, %c0_152, %c0_153] : memref<9x16x32xf32, #tpu.memory_space<vmem>>, vector<1x16x32xf32>
    %118 = vector.shape_cast %117 : vector<1x16x32xf32> to vector<16x32xf32>
    %cst_154 = arith.constant dense<0.000000e+00> : vector<128x32xf32>
    %119 = tpu.matmul %116, %118, %cst_154 {dimension_numbers = #tpu.dot_dimension_numbers<[1], [0], [0], [1], [0, 0, 1, 1], [], []>} : vector<128x16xf32>, vector<16x32xf32>, vector<128x32xf32> -> vector<128x32xf32>
    %120 = arith.addf %114, %119 : vector<128x32xf32>
    %c0_155 = arith.constant 0 : index
    %c2_156 = arith.constant 2 : index
    %c2_157 = arith.constant 2 : index
    %c0_158 = arith.constant 0 : index
    %121 = vector.load %arg12[%c0_155, %c2_156, %c2_157, %c0_158] : memref<8x6x6x16xf32, #tpu.memory_space<vmem>>, vector<8x4x4x16xf32>
    %122 = vector.shape_cast %121 : vector<8x4x4x16xf32> to vector<128x16xf32>
    %c8_159 = arith.constant 8 : index
    %c0_160 = arith.constant 0 : index
    %c0_161 = arith.constant 0 : index
    %123 = vector.load %arg4[%c8_159, %c0_160, %c0_161] : memref<9x16x32xf32, #tpu.memory_space<vmem>>, vector<1x16x32xf32>
    %124 = vector.shape_cast %123 : vector<1x16x32xf32> to vector<16x32xf32>
    %cst_162 = arith.constant dense<0.000000e+00> : vector<128x32xf32>
    %125 = tpu.matmul %122, %124, %cst_162 {dimension_numbers = #tpu.dot_dimension_numbers<[1], [0], [0], [1], [0, 0, 1, 1], [], []>} : vector<128x16xf32>, vector<16x32xf32>, vector<128x32xf32> -> vector<128x32xf32>
    %126 = arith.addf %120, %125 : vector<128x32xf32>
    %c0_163 = arith.constant 0 : index
    %c0_164 = arith.constant 0 : index
    %127 = vector.load %arg5[%c0_163, %c0_164] : memref<1x32xf32, #tpu.memory_space<vmem>>, vector<1x32xf32>
    %128 = vector.broadcast %127 : vector<1x32xf32> to vector<128x32xf32>
    %129 = arith.addf %126, %128 : vector<128x32xf32>
    %cst_165 = arith.constant 0.000000e+00 : f32
    %130 = vector.broadcast %cst_165 : f32 to vector<128x32xf32>
    %131 = arith.maximumf %129, %130 : vector<128x32xf32>
    %132 = vector.shape_cast %131 : vector<128x32xf32> to vector<64x2x32xf32>
    %cst_166 = arith.constant dense<0xFF800000> : vector<64x32xf32>
    %133 = vector.multi_reduction <maximumf>, %132, %cst_166 [1] : vector<64x2x32xf32> to vector<64x32xf32>
    %134 = vector.shape_cast %133 : vector<64x32xf32> to vector<16x2x2x32xf32>
    %cst_167 = arith.constant dense<0xFF800000> : vector<16x2x32xf32>
    %135 = vector.multi_reduction <maximumf>, %134, %cst_167 [1] : vector<16x2x2x32xf32> to vector<16x2x32xf32>
    %136 = vector.shape_cast %135 : vector<16x2x32xf32> to vector<8x2x2x32xf32>
    %cst_168 = arith.constant 0.000000e+00 : f32
    %137 = vector.broadcast %cst_168 : f32 to vector<8x4x4x32xf32>
    %c0_169 = arith.constant 0 : index
    %c0_170 = arith.constant 0 : index
    %c0_171 = arith.constant 0 : index
    %c0_172 = arith.constant 0 : index
    %138 = vector.load %arg13[%c0_169, %c0_170, %c0_171, %c0_172] : memref<8x4x4x32xf32, #tpu.memory_space<vmem>>, vector<8x4x4x32xf32>
    tpu.vector_store %arg13[%c0_169, %c0_170, %c0_171, %c0_172], %137 {strides = array<i32>} : memref<8x4x4x32xf32, #tpu.memory_space<vmem>>, vector<8x4x4x32xf32>,
    %c0_173 = arith.constant 0 : index
    %c1_174 = arith.constant 1 : index
    %c1_175 = arith.constant 1 : index
    %c0_176 = arith.constant 0 : index
    %139 = vector.load %arg13[%c0_173, %c1_174, %c1_175, %c0_176] : memref<8x4x4x32xf32, #tpu.memory_space<vmem>>, vector<8x2x2x32xf32>
    tpu.vector_store %arg13[%c0_173, %c1_174, %c1_175, %c0_176], %136 {strides = array<i32>} : memref<8x4x4x32xf32, #tpu.memory_space<vmem>>, vector<8x2x2x32xf32>,
    %cst_177 = arith.constant 0.000000e+00 : f32
    %140 = vector.broadcast %cst_177 : f32 to vector<32x32xf32>
    %c0_178 = arith.constant 0 : index
    %c0_179 = arith.constant 0 : index
    %c0_180 = arith.constant 0 : index
    %c0_181 = arith.constant 0 : index
    %141 = vector.load %arg13[%c0_178, %c0_179, %c0_180, %c0_181] : memref<8x4x4x32xf32, #tpu.memory_space<vmem>>, vector<8x2x2x32xf32>
    %142 = vector.shape_cast %141 : vector<8x2x2x32xf32> to vector<32x32xf32>
    %c0_182 = arith.constant 0 : index
    %c0_183 = arith.constant 0 : index
    %c0_184 = arith.constant 0 : index
    %143 = vector.load %arg6[%c0_182, %c0_183, %c0_184] : memref<9x32x32xf32, #tpu.memory_space<vmem>>, vector<1x32x32xf32>
    %144 = vector.shape_cast %143 : vector<1x32x32xf32> to vector<32x32xf32>
    %cst_185 = arith.constant dense<0.000000e+00> : vector<32x32xf32>
    %145 = tpu.matmul %142, %144, %cst_185 {dimension_numbers = #tpu.dot_dimension_numbers<[1], [0], [0], [1], [0, 0, 1, 1], [], []>} : vector<32x32xf32>, vector<32x32xf32>, vector<32x32xf32> -> vector<32x32xf32>
    %146 = arith.addf %140, %145 : vector<32x32xf32>
    %c0_186 = arith.constant 0 : index
    %c0_187 = arith.constant 0 : index
    %c1_188 = arith.constant 1 : index
    %c0_189 = arith.constant 0 : index
    %147 = vector.load %arg13[%c0_186, %c0_187, %c1_188, %c0_189] : memref<8x4x4x32xf32, #tpu.memory_space<vmem>>, vector<8x2x2x32xf32>
    %148 = vector.shape_cast %147 : vector<8x2x2x32xf32> to vector<32x32xf32>
    %c1_190 = arith.constant 1 : index
    %c0_191 = arith.constant 0 : index
    %c0_192 = arith.constant 0 : index
    %149 = vector.load %arg6[%c1_190, %c0_191, %c0_192] : memref<9x32x32xf32, #tpu.memory_space<vmem>>, vector<1x32x32xf32>
    %150 = vector.shape_cast %149 : vector<1x32x32xf32> to vector<32x32xf32>
    %cst_193 = arith.constant dense<0.000000e+00> : vector<32x32xf32>
    %151 = tpu.matmul %148, %150, %cst_193 {dimension_numbers = #tpu.dot_dimension_numbers<[1], [0], [0], [1], [0, 0, 1, 1], [], []>} : vector<32x32xf32>, vector<32x32xf32>, vector<32x32xf32> -> vector<32x32xf32>
    %152 = arith.addf %146, %151 : vector<32x32xf32>
    %c0_194 = arith.constant 0 : index
    %c0_195 = arith.constant 0 : index
    %c2_196 = arith.constant 2 : index
    %c0_197 = arith.constant 0 : index
    %153 = vector.load %arg13[%c0_194, %c0_195, %c2_196, %c0_197] : memref<8x4x4x32xf32, #tpu.memory_space<vmem>>, vector<8x2x2x32xf32>
    %154 = vector.shape_cast %153 : vector<8x2x2x32xf32> to vector<32x32xf32>
    %c2_198 = arith.constant 2 : index
    %c0_199 = arith.constant 0 : index
    %c0_200 = arith.constant 0 : index
    %155 = vector.load %arg6[%c2_198, %c0_199, %c0_200] : memref<9x32x32xf32, #tpu.memory_space<vmem>>, vector<1x32x32xf32>
    %156 = vector.shape_cast %155 : vector<1x32x32xf32> to vector<32x32xf32>
    %cst_201 = arith.constant dense<0.000000e+00> : vector<32x32xf32>
    %157 = tpu.matmul %154, %156, %cst_201 {dimension_numbers = #tpu.dot_dimension_numbers<[1], [0], [0], [1], [0, 0, 1, 1], [], []>} : vector<32x32xf32>, vector<32x32xf32>, vector<32x32xf32> -> vector<32x32xf32>
    %158 = arith.addf %152, %157 : vector<32x32xf32>
    %c0_202 = arith.constant 0 : index
    %c1_203 = arith.constant 1 : index
    %c0_204 = arith.constant 0 : index
    %c0_205 = arith.constant 0 : index
    %159 = vector.load %arg13[%c0_202, %c1_203, %c0_204, %c0_205] : memref<8x4x4x32xf32, #tpu.memory_space<vmem>>, vector<8x2x2x32xf32>
    %160 = vector.shape_cast %159 : vector<8x2x2x32xf32> to vector<32x32xf32>
    %c3_206 = arith.constant 3 : index
    %c0_207 = arith.constant 0 : index
    %c0_208 = arith.constant 0 : index
    %161 = vector.load %arg6[%c3_206, %c0_207, %c0_208] : memref<9x32x32xf32, #tpu.memory_space<vmem>>, vector<1x32x32xf32>
    %162 = vector.shape_cast %161 : vector<1x32x32xf32> to vector<32x32xf32>
    %cst_209 = arith.constant dense<0.000000e+00> : vector<32x32xf32>
    %163 = tpu.matmul %160, %162, %cst_209 {dimension_numbers = #tpu.dot_dimension_numbers<[1], [0], [0], [1], [0, 0, 1, 1], [], []>} : vector<32x32xf32>, vector<32x32xf32>, vector<32x32xf32> -> vector<32x32xf32>
    %164 = arith.addf %158, %163 : vector<32x32xf32>
    %c0_210 = arith.constant 0 : index
    %c1_211 = arith.constant 1 : index
    %c1_212 = arith.constant 1 : index
    %c0_213 = arith.constant 0 : index
    %165 = vector.load %arg13[%c0_210, %c1_211, %c1_212, %c0_213] : memref<8x4x4x32xf32, #tpu.memory_space<vmem>>, vector<8x2x2x32xf32>
    %166 = vector.shape_cast %165 : vector<8x2x2x32xf32> to vector<32x32xf32>
    %c4_214 = arith.constant 4 : index
    %c0_215 = arith.constant 0 : index
    %c0_216 = arith.constant 0 : index
    %167 = vector.load %arg6[%c4_214, %c0_215, %c0_216] : memref<9x32x32xf32, #tpu.memory_space<vmem>>, vector<1x32x32xf32>
    %168 = vector.shape_cast %167 : vector<1x32x32xf32> to vector<32x32xf32>
    %cst_217 = arith.constant dense<0.000000e+00> : vector<32x32xf32>
    %169 = tpu.matmul %166, %168, %cst_217 {dimension_numbers = #tpu.dot_dimension_numbers<[1], [0], [0], [1], [0, 0, 1, 1], [], []>} : vector<32x32xf32>, vector<32x32xf32>, vector<32x32xf32> -> vector<32x32xf32>
    %170 = arith.addf %164, %169 : vector<32x32xf32>
    %c0_218 = arith.constant 0 : index
    %c1_219 = arith.constant 1 : index
    %c2_220 = arith.constant 2 : index
    %c0_221 = arith.constant 0 : index
    %171 = vector.load %arg13[%c0_218, %c1_219, %c2_220, %c0_221] : memref<8x4x4x32xf32, #tpu.memory_space<vmem>>, vector<8x2x2x32xf32>
    %172 = vector.shape_cast %171 : vector<8x2x2x32xf32> to vector<32x32xf32>
    %c5_222 = arith.constant 5 : index
    %c0_223 = arith.constant 0 : index
    %c0_224 = arith.constant 0 : index
    %173 = vector.load %arg6[%c5_222, %c0_223, %c0_224] : memref<9x32x32xf32, #tpu.memory_space<vmem>>, vector<1x32x32xf32>
    %174 = vector.shape_cast %173 : vector<1x32x32xf32> to vector<32x32xf32>
    %cst_225 = arith.constant dense<0.000000e+00> : vector<32x32xf32>
    %175 = tpu.matmul %172, %174, %cst_225 {dimension_numbers = #tpu.dot_dimension_numbers<[1], [0], [0], [1], [0, 0, 1, 1], [], []>} : vector<32x32xf32>, vector<32x32xf32>, vector<32x32xf32> -> vector<32x32xf32>
    %176 = arith.addf %170, %175 : vector<32x32xf32>
    %c0_226 = arith.constant 0 : index
    %c2_227 = arith.constant 2 : index
    %c0_228 = arith.constant 0 : index
    %c0_229 = arith.constant 0 : index
    %177 = vector.load %arg13[%c0_226, %c2_227, %c0_228, %c0_229] : memref<8x4x4x32xf32, #tpu.memory_space<vmem>>, vector<8x2x2x32xf32>
    %178 = vector.shape_cast %177 : vector<8x2x2x32xf32> to vector<32x32xf32>
    %c6_230 = arith.constant 6 : index
    %c0_231 = arith.constant 0 : index
    %c0_232 = arith.constant 0 : index
    %179 = vector.load %arg6[%c6_230, %c0_231, %c0_232] : memref<9x32x32xf32, #tpu.memory_space<vmem>>, vector<1x32x32xf32>
    %180 = vector.shape_cast %179 : vector<1x32x32xf32> to vector<32x32xf32>
    %cst_233 = arith.constant dense<0.000000e+00> : vector<32x32xf32>
    %181 = tpu.matmul %178, %180, %cst_233 {dimension_numbers = #tpu.dot_dimension_numbers<[1], [0], [0], [1], [0, 0, 1, 1], [], []>} : vector<32x32xf32>, vector<32x32xf32>, vector<32x32xf32> -> vector<32x32xf32>
    %182 = arith.addf %176, %181 : vector<32x32xf32>
    %c0_234 = arith.constant 0 : index
    %c2_235 = arith.constant 2 : index
    %c1_236 = arith.constant 1 : index
    %c0_237 = arith.constant 0 : index
    %183 = vector.load %arg13[%c0_234, %c2_235, %c1_236, %c0_237] : memref<8x4x4x32xf32, #tpu.memory_space<vmem>>, vector<8x2x2x32xf32>
    %184 = vector.shape_cast %183 : vector<8x2x2x32xf32> to vector<32x32xf32>
    %c7_238 = arith.constant 7 : index
    %c0_239 = arith.constant 0 : index
    %c0_240 = arith.constant 0 : index
    %185 = vector.load %arg6[%c7_238, %c0_239, %c0_240] : memref<9x32x32xf32, #tpu.memory_space<vmem>>, vector<1x32x32xf32>
    %186 = vector.shape_cast %185 : vector<1x32x32xf32> to vector<32x32xf32>
    %cst_241 = arith.constant dense<0.000000e+00> : vector<32x32xf32>
    %187 = tpu.matmul %184, %186, %cst_241 {dimension_numbers = #tpu.dot_dimension_numbers<[1], [0], [0], [1], [0, 0, 1, 1], [], []>} : vector<32x32xf32>, vector<32x32xf32>, vector<32x32xf32> -> vector<32x32xf32>
    %188 = arith.addf %182, %187 : vector<32x32xf32>
    %c0_242 = arith.constant 0 : index
    %c2_243 = arith.constant 2 : index
    %c2_244 = arith.constant 2 : index
    %c0_245 = arith.constant 0 : index
    %189 = vector.load %arg13[%c0_242, %c2_243, %c2_244, %c0_245] : memref<8x4x4x32xf32, #tpu.memory_space<vmem>>, vector<8x2x2x32xf32>
    %190 = vector.shape_cast %189 : vector<8x2x2x32xf32> to vector<32x32xf32>
    %c8_246 = arith.constant 8 : index
    %c0_247 = arith.constant 0 : index
    %c0_248 = arith.constant 0 : index
    %191 = vector.load %arg6[%c8_246, %c0_247, %c0_248] : memref<9x32x32xf32, #tpu.memory_space<vmem>>, vector<1x32x32xf32>
    %192 = vector.shape_cast %191 : vector<1x32x32xf32> to vector<32x32xf32>
    %cst_249 = arith.constant dense<0.000000e+00> : vector<32x32xf32>
    %193 = tpu.matmul %190, %192, %cst_249 {dimension_numbers = #tpu.dot_dimension_numbers<[1], [0], [0], [1], [0, 0, 1, 1], [], []>} : vector<32x32xf32>, vector<32x32xf32>, vector<32x32xf32> -> vector<32x32xf32>
    %194 = arith.addf %188, %193 : vector<32x32xf32>
    %c0_250 = arith.constant 0 : index
    %c0_251 = arith.constant 0 : index
    %195 = vector.load %arg7[%c0_250, %c0_251] : memref<1x32xf32, #tpu.memory_space<vmem>>, vector<1x32xf32>
    %196 = vector.broadcast %195 : vector<1x32xf32> to vector<32x32xf32>
    %197 = arith.addf %194, %196 : vector<32x32xf32>
    %cst_252 = arith.constant 0.000000e+00 : f32
    %198 = vector.broadcast %cst_252 : f32 to vector<32x32xf32>
    %199 = arith.maximumf %197, %198 : vector<32x32xf32>
    %200 = vector.shape_cast %199 : vector<32x32xf32> to vector<16x2x32xf32>
    %cst_253 = arith.constant dense<0xFF800000> : vector<16x32xf32>
    %201 = vector.multi_reduction <maximumf>, %200, %cst_253 [1] : vector<16x2x32xf32> to vector<16x32xf32>
    %202 = vector.shape_cast %201 : vector<16x32xf32> to vector<8x2x1x32xf32>
    %cst_254 = arith.constant dense<0xFF800000> : vector<8x1x32xf32>
    %203 = vector.multi_reduction <maximumf>, %202, %cst_254 [1] : vector<8x2x1x32xf32> to vector<8x1x32xf32>
    %204 = vector.shape_cast %203 : vector<8x1x32xf32> to vector<8x1x1x32xf32>
    %205 = vector.shape_cast %204 : vector<8x1x1x32xf32> to vector<8x32xf32>
    %c0_255 = arith.constant 0 : index
    %c0_256 = arith.constant 0 : index
    %206 = vector.load %arg8[%c0_255, %c0_256] : memref<32x10xf32, #tpu.memory_space<vmem>>, vector<32x10xf32>
    %cst_257 = arith.constant dense<0.000000e+00> : vector<8x10xf32>
    %207 = tpu.matmul %205, %206, %cst_257 {dimension_numbers = #tpu.dot_dimension_numbers<[1], [0], [0], [1], [0, 0, 1, 1], [], []>} : vector<8x32xf32>, vector<32x10xf32>, vector<8x10xf32> -> vector<8x10xf32>
    %c0_258 = arith.constant 0 : index
    %c0_259 = arith.constant 0 : index
    %208 = vector.load %arg9[%c0_258, %c0_259] : memref<1x10xf32, #tpu.memory_space<vmem>>, vector<1x10xf32>
    %209 = vector.broadcast %208 : vector<1x10xf32> to vector<8x10xf32>
    %210 = arith.addf %207, %209 : vector<8x10xf32>
    %c0_260 = arith.constant 0 : index
    %c0_261 = arith.constant 0 : index
    %211 = vector.load %arg10[%c0_260, %c0_261] : memref<8x10xf32, #tpu.memory_space<vmem>>, vector<8x10xf32>
    tpu.vector_store %arg10[%c0_260, %c0_261], %210 {strides = array<i32>} : memref<8x10xf32, #tpu.memory_space<vmem>>, vector<8x10xf32>,
    return
  }
  func.func @transform_0(%arg0: i32) -> (i32, i32, i32, i32) {
    %c0_i32 = arith.constant 0 : i32
    %c0_i32_0 = arith.constant 0 : i32
    %c0_i32_1 = arith.constant 0 : i32
    %c0_i32_2 = arith.constant 0 : i32
    return %arg0, %c0_i32, %c0_i32_0, %c0_i32_1 : i32, i32, i32, i32
  }
  func.func @transform_1(%arg0: i32) -> (i32, i32, i32) {
    %c0_i32 = arith.constant 0 : i32
    %c0_i32_0 = arith.constant 0 : i32
    %c0_i32_1 = arith.constant 0 : i32
    %c0_i32_2 = arith.constant 0 : i32
    return %c0_i32, %c0_i32_0, %c0_i32_1 : i32, i32, i32
  }
  func.func @transform_2(%arg0: i32) -> (i32, i32) {
    %c0_i32 = arith.constant 0 : i32
    %c0_i32_0 = arith.constant 0 : i32
    %c0_i32_1 = arith.constant 0 : i32
    return %c0_i32, %c0_i32_0 : i32, i32
  }
  func.func @transform_3(%arg0: i32) -> (i32, i32, i32) {
    %c0_i32 = arith.constant 0 : i32
    %c0_i32_0 = arith.constant 0 : i32
    %c0_i32_1 = arith.constant 0 : i32
    %c0_i32_2 = arith.constant 0 : i32
    return %c0_i32, %c0_i32_0, %c0_i32_1 : i32, i32, i32
  }
  func.func @transform_4(%arg0: i32) -> (i32, i32) {
    %c0_i32 = arith.constant 0 : i32
    %c0_i32_0 = arith.constant 0 : i32
    %c0_i32_1 = arith.constant 0 : i32
    return %c0_i32, %c0_i32_0 : i32, i32
  }
  func.func @transform_5(%arg0: i32) -> (i32, i32, i32) {
    %c0_i32 = arith.constant 0 : i32
    %c0_i32_0 = arith.constant 0 : i32
    %c0_i32_1 = arith.constant 0 : i32
    %c0_i32_2 = arith.constant 0 : i32
    return %c0_i32, %c0_i32_0, %c0_i32_1 : i32, i32, i32
  }
  func.func @transform_6(%arg0: i32) -> (i32, i32) {
    %c0_i32 = arith.constant 0 : i32
    %c0_i32_0 = arith.constant 0 : i32
    %c0_i32_1 = arith.constant 0 : i32
    return %c0_i32, %c0_i32_0 : i32, i32
  }
  func.func @transform_7(%arg0: i32) -> (i32, i32) {
    %c0_i32 = arith.constant 0 : i32
    %c0_i32_0 = arith.constant 0 : i32
    %c0_i32_1 = arith.constant 0 : i32
    return %c0_i32, %c0_i32_0 : i32, i32
  }
  func.func @transform_8(%arg0: i32) -> (i32, i32) {
    %c0_i32 = arith.constant 0 : i32
    %c0_i32_0 = arith.constant 0 : i32
    %c0_i32_1 = arith.constant 0 : i32
    return %c0_i32, %c0_i32_0 : i32, i32
  }
  func.func @transform_9(%arg0: i32) -> (i32, i32) {
    %c0_i32 = arith.constant 0 : i32
    %c0_i32_0 = arith.constant 0 : i32
    return %arg0, %c0_i32 : i32, i32
  }
}

</mosaic_0001>

<bundles_post_ra>
// kernel: tpu_custom_call.1
= control target key start
LH: loop header
LB: loop body
LE: loop exit
PB: predicated region body
PF: predicated region fallthrough
CT: control target
= control target key end

     0   :  { %14 = vsyncpa [#allocation6], 0  ;;  %s25207_s0 = inlined_call_operand.vmem [shape: f32[16,8,8,3], index: 0, kind: input, shape index: {}]   ;;  %s25208_s1 = inlined_call_operand.vmem [shape: f32[9,3,16], index: 1, kind: input, shape index: {}]   ;;  %s25209_s2 = inlined_call_operand.vmem [shape: f32[1,16], index: 2, kind: input, shape index: {}]   ;;  %s25210_s3 = inlined_call_operand.vmem [shape: f32[9,16,32], index: 3, kind: input, shape index: {}]   ;;  %s25211_s4 = inlined_call_operand.vmem [shape: f32[1,32], index: 4, kind: input, shape index: {}]   ;;  %s25212_s5 = inlined_call_operand.vmem [shape: f32[9,32,32], index: 5, kind: input, shape index: {}]   ;;  %s25213_s6 = inlined_call_operand.vmem [shape: f32[1,32], index: 6, kind: input, shape index: {}]   ;;  %s25214_s7 = inlined_call_operand.vmem [shape: f32[32,10], index: 7, kind: input, shape index: {}]   ;;  %s25215_s8 = inlined_call_operand.vmem [shape: f32[1,10], index: 8, kind: input, shape index: {}]   ;;  %s25216_s9 = inlined_call_operand.hbm [shape: f32[16,10], index: 9, kind: output, shape index: {}]  }
   0x1   :  { %16 = vsyncpa [#allocation6 + $0x1], 0  ;;  %s20861_s30 = smov 0   ;;  %s20863_s10 = smov 0  }
   0x2   :  { %s20865_s11 = smov 0   ;;  %s20867_s12 = smov 0  }
   0x3 LB: > { %s20882_s13 = sadd.s32 4294967295, %s20804_s12   ;;  %s16682_s14 = sadd.s32 4294967294, %s20804_s12   ;;  %s20804_s12 = sphi %s20867_s12, %s25409_s12   ;;  %s20800_s11 = sphi %s20865_s11, %s25408_s11   ;;  %s20796_s10 = sphi %s20863_s10, %s25407_s10   ;;  %s20792_s30 = sphi %s20861_s30, %s25406_s30  }
   0x4   : > { %s20886_s15 = sadd.s32 1, %s20804_s12   ;;  %s223_s16 = sadd.s32 1, %s20800_s11 }
   0x5   : > { %s220_s17 = ssub.s32 %s20804_s12, %s20886_s15  ;;  %p233_p0 = scmp.ne.s32.totalorder %s20800_s11, %s20796_s10 }
   0x6   : > { %p221_p1 = scmp.eq.s32.totalorder %s220_s17, 0  ;;  %p234_p2 = scmp.eq.s32.totalorder %s20882_s13, 1 }
   0x7   : > { %p239_p3 = scmp.ne.s32.totalorder %s20796_s10, %s20792_s30  ;;  %p240_p4 = scmp.eq.s32.totalorder %s16682_s14, 1 }
   0x8   : > { %s20897_s18 = scalar_select %p221_p1, %s20800_s11, %s223_s16  }
   0x9   : > { %p20899_p5 = por %p234_p2, %p233_p0  ;;  %p20903_p6 = por %p240_p4, %p239_p3 }
   0xa   : > { %p16685_p7 = scmp.ge.s32.totalorder %s20804_s12, 1  ;;  %p292_p8 = scmp.lt.s32.totalorder %s20804_s12, 3 }
   0xc   : > { %p293_p9 = pnand %p16685_p7, %p292_p8 }
   0xe   : > { %296 = sbr.rel (%p293_p9) target bundleno = 2834 (0xb12), region = 56 }
  0x15   : > { %vm950_vm0 = vcmask 1042432   ;;  %v20912_v0 = vld [vmem:[%s25208_s1 + $0xc] sm:$0x7]  ;;  %s16687_s23 = sshll.u32 %s20882_s13, 3  ;;  %vm336_vm1 = vcmask 23552   ;;  %vm338_vm2 = vcmask 17408  }
  0x16   : > { %18639 = vmatprep.subr.msk.mxu0 %vm950_vm0, %v20912_v0  ;;  %p20919_p10 = scmp.lt.s32.totalorder %s16687_s23, 15  ;;  %v25217_v1 = vmov 0.0   ;;  %v21086_v2 = vld [vmem:[%s25208_s1 + $0x10] sm:$0x7]  ;;  %v21091_v3 = vld [vmem:[%s25208_s1 + $0x4] sm:$0x7] }
  0x17   : > { %340 = vst.msk [vmem:[#allocation2 + $0x10] sm:$0xff] %vm336_vm1, %v25217_v1  ;;  %337 = vst.msk [vmem:[#allocation2] sm:$0xff] %vm336_vm1, %v25217_v1  ;;  %18640 = vmatpush3.msk.msra.mxu0 %vm950_vm0, %v20912_v0  ;;  %18345 = vmatprep.subr.msk.mxu1 %vm950_vm0, %v21091_v3  ;;  %v21326_v31 = vld [vmem:[%s25208_s1 + $0x14] sm:$0x7]  ;;  %vm10611_vm3 = vcmask 128000   ;;  %vm8433_vm4 = vcmask 123904  }
  0x18   : > { %342 = vst.msk [vmem:[#allocation2 + $0x20] sm:$0xff] %vm336_vm1, %v25217_v1  ;;  %344 = vst.msk [vmem:[#allocation2 + $0x30] sm:$0xff] %vm336_vm1, %v25217_v1  ;;  %s25411_s23 = smov (!%p20919_p10, %s16687_s23), 15  ;;  %18737 = vmatprep.subr.msk.mxu0 %vm950_vm0, %v21086_v2  ;;  %18346 = vmatpush3.msk.msra.mxu1 %vm950_vm0, %v21091_v3  ;;  %vm10226_vm5 = vcmask 130048   ;;  %vm10788_vm6 = vcmask 1041409   ;;  %vm10790_vm7 = vcmask 1042434  }
  0x19   : > { %346 = vst.msk [vmem:[#allocation2 + $0x40] sm:$0xff] %vm336_vm1, %v25217_v1  ;;  %348 = vst.msk [vmem:[#allocation2 + $0x50] sm:$0xff] %vm336_vm1, %v25217_v1  ;;  %s17520_s29 = sshll.u32 %s25411_s23, 6  ;;  %vm10792_vm8 = vcmask 1043459   ;;  %vm10920_vm9 = vcmask 125952   ;;  %vm14342_vm10 = vcmask 257024  }
  0x1a   : > { %350 = vst.msk [vmem:[#allocation2 + $0x60] sm:$0xff] %vm336_vm1, %v25217_v1  ;;  %352 = vst.msk [vmem:[#allocation2 + $0x70] sm:$0xff] %vm336_vm1, %v25217_v1  ;;  %s21268_s17 = scalar_lea.vmem %s25207_s0, %s17520_s29  ;;  %vm13796_vm11 = vcmask 254976   ;;  %vm14245_vm12 = vcmask 261120   ;;  %vm20809_vm13 = vmmov 0   ;;  %vm16527_vm14 = vcmask 1044484  }
  0x1b   : > { %354 = vst.msk [vmem:[#allocation2 + $0x80] sm:$0xff] %vm336_vm1, %v25217_v1  ;;  %356 = vst.msk [vmem:[#allocation2 + $0x90] sm:$0xff] %vm336_vm1, %v25217_v1  ;;  %v498_v4 = vld [vmem:[%s21268_s17] sm:$0xff]  ;;  %v499_v5 = vld [vmem:[%s21268_s17 + $0x8] sm:$0xff]  ;;  %vm16529_vm15 = vcmask 1045509   ;;  %s326_s25 = sand.u32 1, %s20796_s10  }
  0x1c   : > { %358 = vst.msk [vmem:[#allocation2 + $0xa0] sm:$0xff] %vm336_vm1, %v25217_v1  ;;  %360 = vst.msk [vmem:[#allocation2 + $0xb0] sm:$0xff] %vm336_vm1, %v25217_v1  ;;  %v500_v6 = vld [vmem:[%s21268_s17 + $0x10] sm:$0xff]  ;;  %v501_v7 = vld [vmem:[%s21268_s17 + $0x18] sm:$0xff]  ;;  %s16686_s26 = sshll.u32 %s326_s25, 3  ;;  %s17517_s29 = sshll.u32 %s20882_s13, 7 }
  0x1d   : > { %362 = vst.msk [vmem:[#allocation2 + $0xc0] sm:$0xff] %vm336_vm1, %v25217_v1  ;;  %364 = vst.msk [vmem:[#allocation2 + $0xd0] sm:$0xff] %vm336_vm1, %v25217_v1  ;;  %v502_v8 = vld [vmem:[%s21268_s17 + $0x20] sm:$0xff]  ;;  %v503_v9 = vld [vmem:[%s21268_s17 + $0x28] sm:$0xff]  ;;  %s328_s14 = scalar_lea.vmem [#allocation5], %s16686_s26  ;;  %s25165_s22 = scalar_lea.hbm %s25216_s9, %s17517_s29 }
  0x1e   : > { %366 = vst.msk [vmem:[#allocation2 + $0xe0] sm:$0xff] %vm336_vm1, %v25217_v1  ;;  %368 = vst.msk [vmem:[#allocation2 + $0xf0] sm:$0xff] %vm336_vm1, %v25217_v1  ;;  %v504_v10 = vld [vmem:[%s21268_s17 + $0x30] sm:$0xff]  ;;  %v505_v11 = vld [vmem:[%s21268_s17 + $0x38] sm:$0xff]  ;;  %s16623_s16 = sshll.u32 %s328_s14, 4  ;;  %s16610_s23 = scalar_lea.sflag [#allocation6], %s326_s25  ;;  %s25167_s16 = int_to_ptr.vmem [resolvable:$true] %s16623_s16 }
  0x1f   : > { %370 = vst.msk [vmem:[#allocation2 + $0x100] sm:$0xff] %vm336_vm1, %v25217_v1  ;;  %372 = vst.msk [vmem:[#allocation2 + $0x110] sm:$0xff] %vm336_vm1, %v25217_v1  ;;  %v506_v12 = vld [vmem:[%s21268_s17 + $0x40] sm:$0xff]  ;;  %v507_v13 = vld [vmem:[%s21268_s17 + $0x48] sm:$0xff]  ;;  %s20742_s24 = scalar_lea.vmem %s25167_s16, 128  ;;  %s20810_s13 = smov [#allocation5]  }
  0x20   : > { %374 = vst.msk [vmem:[#allocation2 + $0x120] sm:$0xff] %vm336_vm1, %v25217_v1  ;;  %376 = vst.msk [vmem:[#allocation2 + $0x130] sm:$0xff] %vm336_vm1, %v25217_v1  ;;  %v508_v14 = vld [vmem:[%s21268_s17 + $0x50] sm:$0xff]  ;;  %v509_v15 = vld [vmem:[%s21268_s17 + $0x58] sm:$0xff]  ;;  %p20743_p11 = scmp.ne.s32.totalorder %s25167_s16, %s20742_s24  ;;  %s20746_s26 = sshll.u32 %s20810_s13, 4  ;;  %s20747_s26 = int_to_ptr.vmem [resolvable:$false] %s20746_s26 }
  0x21   : > { %378 = vst.msk [vmem:[#allocation2 + $0x140] sm:$0xff] %vm336_vm1, %v25217_v1  ;;  %380 = vst.msk [vmem:[#allocation2 + $0x150] sm:$0xff] %vm336_vm1, %v25217_v1  ;;  %v510_v16 = vld [vmem:[%s21268_s17 + $0x60] sm:$0xff]  ;;  %v511_v17 = vld [vmem:[%s21268_s17 + $0x68] sm:$0xff]  ;;  %s20748_s27 = scalar_lea.vmem %s20747_s26, 256  ;;  %p20749_p0 = scmp.lt.s32.totalorder %s25167_s16, %s20747_s26 }
  0x22   : > { %382 = vst.msk [vmem:[#allocation2 + $0x160] sm:$0xff] %vm336_vm1, %v25217_v1  ;;  %384 = vst.msk [vmem:[#allocation2 + $0x170] sm:$0xff] %vm336_vm1, %v25217_v1  ;;  %v512_v18 = vld [vmem:[%s21268_s17 + $0x70] sm:$0xff]  ;;  %v513_v19 = vld [vmem:[%s21268_s17 + $0x78] sm:$0xff]  ;;  %p20744_p12 = pnand %p20743_p11, %p20899_p5  ;;  %p20750_p1 = scmp.lt.s32.totalorder %s20748_s27, %s20742_s24 }
  0x23   : > { %386 = vst.msk [vmem:[#allocation2 + $0x180] sm:$0xff] %vm336_vm1, %v25217_v1  ;;  %388 = vst.msk [vmem:[#allocation2 + $0x190] sm:$0xff] %vm336_vm1, %v25217_v1  ;;  %v514_v20 = vld [vmem:[%s21268_s17 + $0x80] sm:$0xff]  ;;  %v515_v21 = vld [vmem:[%s21268_s17 + $0x88] sm:$0xff] }
  0x24   : > { %390 = vst.msk [vmem:[#allocation2 + $0x1a0] sm:$0xff] %vm336_vm1, %v25217_v1  ;;  %392 = vst.msk [vmem:[#allocation2 + $0x1b0] sm:$0xff] %vm336_vm1, %v25217_v1  ;;  %v516_v22 = vld [vmem:[%s21268_s17 + $0x90] sm:$0xff]  ;;  %v517_v23 = vld [vmem:[%s21268_s17 + $0x98] sm:$0xff]  ;;  %p20745_p13 = pneg %p20744_p12  ;;  %p20751_p2 = por %p20750_p1, %p20749_p0 }
  0x25   : > { %394 = vst.msk [vmem:[#allocation2 + $0x1c0] sm:$0xff] %vm336_vm1, %v25217_v1  ;;  %396 = vst.msk [vmem:[#allocation2 + $0x1d0] sm:$0xff] %vm336_vm1, %v25217_v1  ;;  %v518_v24 = vld [vmem:[%s21268_s17 + $0xa0] sm:$0xff]  ;;  %v519_v25 = vld [vmem:[%s21268_s17 + $0xa8] sm:$0xff] }
  0x26   : > { %398 = vst.msk [vmem:[#allocation2 + $0x1e0] sm:$0xff] %vm336_vm1, %v25217_v1  ;;  %400 = vst.msk [vmem:[#allocation2 + $0x1f0] sm:$0xff] %vm336_vm1, %v25217_v1  ;;  %v520_v26 = vld [vmem:[%s21268_s17 + $0xb0] sm:$0xff]  ;;  %v521_v27 = vld [vmem:[%s21268_s17 + $0xb8] sm:$0xff]  ;;  %p20752_p3 = pnand %p20751_p2, %p20745_p13 }
  0x27   : > { %402 = vst.msk [vmem:[#allocation2 + $0x200] sm:$0xff] %vm336_vm1, %v25217_v1  ;;  %404 = vst.msk [vmem:[#allocation2 + $0x210] sm:$0xff] %vm336_vm1, %v25217_v1  ;;  %v522_v36 = vld [vmem:[%s21268_s17 + $0xc0] sm:$0xff]  ;;  %v523_v37 = vld [vmem:[%s21268_s17 + $0xc8] sm:$0xff] }
  0x28   : > { %406 = vst.msk [vmem:[#allocation2 + $0x220] sm:$0xff] %vm336_vm1, %v25217_v1  ;;  %408 = vst.msk [vmem:[#allocation2 + $0x230] sm:$0xff] %vm336_vm1, %v25217_v1  ;;  %v524_v38 = vld [vmem:[%s21268_s17 + $0xd0] sm:$0xff]  ;;  %v525_v40 = vld [vmem:[%s21268_s17 + $0xd8] sm:$0xff] }
  0x29   : > { %410 = vst.msk [vmem:[#allocation2 + $0x240] sm:$0xff] %vm336_vm1, %v25217_v1  ;;  %412 = vst.msk [vmem:[#allocation2 + $0x250] sm:$0xff] %vm336_vm1, %v25217_v1  ;;  %v526_v41 = vld [vmem:[%s21268_s17 + $0xe0] sm:$0xff]  ;;  %v527_v42 = vld [vmem:[%s21268_s17 + $0xe8] sm:$0xff] }
  0x2a   : > { %414 = vst.msk [vmem:[#allocation2 + $0x260] sm:$0xff] %vm336_vm1, %v25217_v1  ;;  %416 = vst.msk [vmem:[#allocation2 + $0x270] sm:$0xff] %vm336_vm1, %v25217_v1  ;;  %v528_v44 = vld [vmem:[%s21268_s17 + $0xf0] sm:$0xff]  ;;  %v529_v45 = vld [vmem:[%s21268_s17 + $0xf8] sm:$0xff] }
  0x2b   : > { %418 = vst.msk [vmem:[#allocation2 + $0x280] sm:$0xff] %vm336_vm1, %v25217_v1  ;;  %420 = vst.msk [vmem:[#allocation2 + $0x290] sm:$0xff] %vm336_vm1, %v25217_v1  ;;  %v530_v46 = vld [vmem:[%s21268_s17 + $0x100] sm:$0xff]  ;;  %v531_v47 = vld [vmem:[%s21268_s17 + $0x108] sm:$0xff] }
  0x2c   : > { %422 = vst.msk [vmem:[#allocation2 + $0x2a0] sm:$0xff] %vm336_vm1, %v25217_v1  ;;  %424 = vst.msk [vmem:[#allocation2 + $0x2b0] sm:$0xff] %vm336_vm1, %v25217_v1  ;;  %v532_v48 = vld [vmem:[%s21268_s17 + $0x110] sm:$0xff]  ;;  %v533_v49 = vld [vmem:[%s21268_s17 + $0x118] sm:$0xff] }
  0x2d   : > { %426 = vst.msk [vmem:[#allocation2 + $0x2c0] sm:$0xff] %vm336_vm1, %v25217_v1  ;;  %428 = vst.msk [vmem:[#allocation2 + $0x2d0] sm:$0xff] %vm336_vm1, %v25217_v1  ;;  %v534_v50 = vld [vmem:[%s21268_s17 + $0x120] sm:$0xff]  ;;  %v535_v51 = vld [vmem:[%s21268_s17 + $0x128] sm:$0xff] }
  0x2e   : > { %430 = vst.msk [vmem:[#allocation2 + $0x2e0] sm:$0xff] %vm336_vm1, %v25217_v1  ;;  %432 = vst.msk [vmem:[#allocation2 + $0x2f0] sm:$0xff] %vm336_vm1, %v25217_v1  ;;  %v536_v52 = vld [vmem:[%s21268_s17 + $0x130] sm:$0xff]  ;;  %v537_v54 = vld [vmem:[%s21268_s17 + $0x138] sm:$0xff] }
  0x2f   : > { %434 = vst.msk [vmem:[#allocation2 + $0x300] sm:$0xff] %vm336_vm1, %v25217_v1  ;;  %436 = vst.msk [vmem:[#allocation2 + $0x310] sm:$0xff] %vm336_vm1, %v25217_v1  ;;  %v538_v55 = vld [vmem:[%s21268_s17 + $0x140] sm:$0xff]  ;;  %v539_v56 = vld [vmem:[%s21268_s17 + $0x148] sm:$0xff] }
  0x30   : > { %438 = vst.msk [vmem:[#allocation2 + $0x320] sm:$0xff] %vm336_vm1, %v25217_v1  ;;  %440 = vst.msk [vmem:[#allocation2 + $0x330] sm:$0xff] %vm336_vm1, %v25217_v1  ;;  %v540_v57 = vld [vmem:[%s21268_s17 + $0x150] sm:$0xff]  ;;  %v541_v58 = vld [vmem:[%s21268_s17 + $0x158] sm:$0xff] }
  0x31   : > { %442 = vst.msk [vmem:[#allocation2 + $0x340] sm:$0xff] %vm336_vm1, %v25217_v1  ;;  %444 = vst.msk [vmem:[#allocation2 + $0x350] sm:$0xff] %vm336_vm1, %v25217_v1  ;;  %v542_v59 = vld [vmem:[%s21268_s17 + $0x160] sm:$0xff]  ;;  %v543_v60 = vld [vmem:[%s21268_s17 + $0x168] sm:$0xff] }
  0x32   : > { %446 = vst.msk [vmem:[#allocation2 + $0x360] sm:$0xff] %vm336_vm1, %v25217_v1  ;;  %448 = vst.msk [vmem:[#allocation2 + $0x370] sm:$0xff] %vm336_vm1, %v25217_v1  ;;  %v544_v61 = vld [vmem:[%s21268_s17 + $0x170] sm:$0xff]  ;;  %v545_v62 = vld [vmem:[%s21268_s17 + $0x178] sm:$0xff] }
  0x33   : > { %450 = vst.msk [vmem:[#allocation2 + $0x380] sm:$0xff] %vm336_vm1, %v25217_v1  ;;  %452 = vst.msk [vmem:[#allocation2 + $0x390] sm:$0xff] %vm336_vm1, %v25217_v1 }
  0x34   : > { %454 = vst.msk [vmem:[#allocation2 + $0x3a0] sm:$0xff] %vm336_vm1, %v25217_v1  ;;  %456 = vst.msk [vmem:[#allocation2 + $0x3b0] sm:$0xff] %vm336_vm1, %v25217_v1 }
  0x35   : > { %458 = vst.msk [vmem:[#allocation2 + $0x3c0] sm:$0xff] %vm336_vm1, %v25217_v1  ;;  %460 = vst.msk [vmem:[#allocation2 + $0x3d0] sm:$0xff] %vm336_vm1, %v25217_v1 }
  0x36   : > { %462 = vst.msk [vmem:[#allocation2 + $0x3e0] sm:$0xff] %vm336_vm1, %v25217_v1  ;;  %464 = vst.msk [vmem:[#allocation2 + $0x3f0] sm:$0xff] %vm336_vm1, %v25217_v1 }
  0x37   : > { %466 = vst.msk [vmem:[#allocation2 + $0x400] sm:$0xff] %vm336_vm1, %v25217_v1  ;;  %468 = vst.msk [vmem:[#allocation2 + $0x410] sm:$0xff] %vm336_vm1, %v25217_v1 }
  0x38   : > { %470 = vst.msk [vmem:[#allocation2 + $0x420] sm:$0xff] %vm336_vm1, %v25217_v1  ;;  %472 = vst.msk [vmem:[#allocation2 + $0x430] sm:$0xff] %vm336_vm1, %v25217_v1 }
  0x39   : > { %474 = vst.msk [vmem:[#allocation2 + $0x440] sm:$0xff] %vm336_vm1, %v25217_v1  ;;  %476 = vst.msk [vmem:[#allocation2 + $0x450] sm:$0xff] %vm336_vm1, %v25217_v1 }
  0x3a   : > { %478 = vst.msk [vmem:[#allocation2 + $0x460] sm:$0xff] %vm336_vm1, %v25217_v1  ;;  %480 = vst.msk [vmem:[#allocation2 + $0x470] sm:$0xff] %vm336_vm1, %v25217_v1 }
  0x3b   : > { %482 = vst.msk [vmem:[#allocation2 + $0x480] sm:$0xff] %vm336_vm1, %v25217_v1  ;;  %484 = vst.msk [vmem:[#allocation2 + $0x490] sm:$0xff] %vm336_vm1, %v25217_v1 }
  0x3c   : > { %486 = vst.msk [vmem:[#allocation2 + $0x4a0] sm:$0xff] %vm336_vm1, %v25217_v1  ;;  %488 = vst.msk [vmem:[#allocation2 + $0x4b0] sm:$0xff] %vm336_vm1, %v25217_v1 }
  0x3d   : > { %490 = vst.msk [vmem:[#allocation2 + $0x4c0] sm:$0xff] %vm336_vm1, %v25217_v1  ;;  %492 = vst.msk [vmem:[#allocation2 + $0x4d0] sm:$0xff] %vm336_vm1, %v25217_v1 }
  0x3e   : > { %494 = vst.msk [vmem:[#allocation2 + $0x4e0] sm:$0xff] %vm336_vm1, %v25217_v1  ;;  %496 = vst.msk [vmem:[#allocation2 + $0x4f0] sm:$0xff] %vm336_vm1, %v25217_v1 }
  0x3f   : > { %341 = vst.msk [vmem:[#allocation2 + $0x18] sm:$0x3] %vm338_vm2, %v25217_v1  ;;  %339 = vst.msk [vmem:[#allocation2 + $0x8] sm:$0x3] %vm338_vm2, %v25217_v1 }
  0x40   : > { %343 = vst.msk [vmem:[#allocation2 + $0x28] sm:$0x3] %vm338_vm2, %v25217_v1  ;;  %345 = vst.msk [vmem:[#allocation2 + $0x38] sm:$0x3] %vm338_vm2, %v25217_v1 }
  0x41   : > { %347 = vst.msk [vmem:[#allocation2 + $0x48] sm:$0x3] %vm338_vm2, %v25217_v1  ;;  %349 = vst.msk [vmem:[#allocation2 + $0x58] sm:$0x3] %vm338_vm2, %v25217_v1 }
  0x42   : > { %351 = vst.msk [vmem:[#allocation2 + $0x68] sm:$0x3] %vm338_vm2, %v25217_v1  ;;  %353 = vst.msk [vmem:[#allocation2 + $0x78] sm:$0x3] %vm338_vm2, %v25217_v1 }
  0x43   : > { %355 = vst.msk [vmem:[#allocation2 + $0x88] sm:$0x3] %vm338_vm2, %v25217_v1  ;;  %357 = vst.msk [vmem:[#allocation2 + $0x98] sm:$0x3] %vm338_vm2, %v25217_v1 }
  0x44   : > { %359 = vst.msk [vmem:[#allocation2 + $0xa8] sm:$0x3] %vm338_vm2, %v25217_v1  ;;  %361 = vst.msk [vmem:[#allocation2 + $0xb8] sm:$0x3] %vm338_vm2, %v25217_v1 }
  0x45   : > { %363 = vst.msk [vmem:[#allocation2 + $0xc8] sm:$0x3] %vm338_vm2, %v25217_v1  ;;  %365 = vst.msk [vmem:[#allocation2 + $0xd8] sm:$0x3] %vm338_vm2, %v25217_v1 }
  0x46   : > { %367 = vst.msk [vmem:[#allocation2 + $0xe8] sm:$0x3] %vm338_vm2, %v25217_v1  ;;  %369 = vst.msk [vmem:[#allocation2 + $0xf8] sm:$0x3] %vm338_vm2, %v25217_v1 }
  0x47   : > { %371 = vst.msk [vmem:[#allocation2 + $0x108] sm:$0x3] %vm338_vm2, %v25217_v1  ;;  %373 = vst.msk [vmem:[#allocation2 + $0x118] sm:$0x3] %vm338_vm2, %v25217_v1 }
  0x48   : > { %375 = vst.msk [vmem:[#allocation2 + $0x128] sm:$0x3] %vm338_vm2, %v25217_v1  ;;  %377 = vst.msk [vmem:[#allocation2 + $0x138] sm:$0x3] %vm338_vm2, %v25217_v1 }
  0x49   : > { %379 = vst.msk [vmem:[#allocation2 + $0x148] sm:$0x3] %vm338_vm2, %v25217_v1  ;;  %381 = vst.msk [vmem:[#allocation2 + $0x158] sm:$0x3] %vm338_vm2, %v25217_v1 }
  0x4a   : > { %383 = vst.msk [vmem:[#allocation2 + $0x168] sm:$0x3] %vm338_vm2, %v25217_v1  ;;  %385 = vst.msk [vmem:[#allocation2 + $0x178] sm:$0x3] %vm338_vm2, %v25217_v1 }
  0x4b   : > { %387 = vst.msk [vmem:[#allocation2 + $0x188] sm:$0x3] %vm338_vm2, %v25217_v1  ;;  %389 = vst.msk [vmem:[#allocation2 + $0x198] sm:$0x3] %vm338_vm2, %v25217_v1 }
  0x4c   : > { %391 = vst.msk [vmem:[#allocation2 + $0x1a8] sm:$0x3] %vm338_vm2, %v25217_v1  ;;  %393 = vst.msk [vmem:[#allocation2 + $0x1b8] sm:$0x3] %vm338_vm2, %v25217_v1 }
  0x4d   : > { %395 = vst.msk [vmem:[#allocation2 + $0x1c8] sm:$0x3] %vm338_vm2, %v25217_v1  ;;  %397 = vst.msk [vmem:[#allocation2 + $0x1d8] sm:$0x3] %vm338_vm2, %v25217_v1 }
  0x4e   : > { %399 = vst.msk [vmem:[#allocation2 + $0x1e8] sm:$0x3] %vm338_vm2, %v25217_v1  ;;  %401 = vst.msk [vmem:[#allocation2 + $0x1f8] sm:$0x3] %vm338_vm2, %v25217_v1 }
  0x4f   : > { %403 = vst.msk [vmem:[#allocation2 + $0x208] sm:$0x3] %vm338_vm2, %v25217_v1  ;;  %405 = vst.msk [vmem:[#allocation2 + $0x218] sm:$0x3] %vm338_vm2, %v25217_v1 }
  0x50   : > { %407 = vst.msk [vmem:[#allocation2 + $0x228] sm:$0x3] %vm338_vm2, %v25217_v1  ;;  %409 = vst.msk [vmem:[#allocation2 + $0x238] sm:$0x3] %vm338_vm2, %v25217_v1 }
  0x51   : > { %411 = vst.msk [vmem:[#allocation2 + $0x248] sm:$0x3] %vm338_vm2, %v25217_v1  ;;  %413 = vst.msk [vmem:[#allocation2 + $0x258] sm:$0x3] %vm338_vm2, %v25217_v1 }
  0x52   : > { %415 = vst.msk [vmem:[#allocation2 + $0x268] sm:$0x3] %vm338_vm2, %v25217_v1  ;;  %417 = vst.msk [vmem:[#allocation2 + $0x278] sm:$0x3] %vm338_vm2, %v25217_v1 }
  0x53   : > { %419 = vst.msk [vmem:[#allocation2 + $0x288] sm:$0x3] %vm338_vm2, %v25217_v1  ;;  %421 = vst.msk [vmem:[#allocation2 + $0x298] sm:$0x3] %vm338_vm2, %v25217_v1 }
  0x54   : > { %423 = vst.msk [vmem:[#allocation2 + $0x2a8] sm:$0x3] %vm338_vm2, %v25217_v1  ;;  %425 = vst.msk [vmem:[#allocation2 + $0x2b8] sm:$0x3] %vm338_vm2, %v25217_v1 }
  0x55   : > { %427 = vst.msk [vmem:[#allocation2 + $0x2c8] sm:$0x3] %vm338_vm2, %v25217_v1  ;;  %429 = vst.msk [vmem:[#allocation2 + $0x2d8] sm:$0x3] %vm338_vm2, %v25217_v1 }
  0x56   : > { %431 = vst.msk [vmem:[#allocation2 + $0x2e8] sm:$0x3] %vm338_vm2, %v25217_v1  ;;  %433 = vst.msk [vmem:[#allocation2 + $0x2f8] sm:$0x3] %vm338_vm2, %v25217_v1 }
  0x57   : > { %435 = vst.msk [vmem:[#allocation2 + $0x308] sm:$0x3] %vm338_vm2, %v25217_v1  ;;  %437 = vst.msk [vmem:[#allocation2 + $0x318] sm:$0x3] %vm338_vm2, %v25217_v1 }
  0x58   : > { %439 = vst.msk [vmem:[#allocation2 + $0x328] sm:$0x3] %vm338_vm2, %v25217_v1  ;;  %441 = vst.msk [vmem:[#allocation2 + $0x338] sm:$0x3] %vm338_vm2, %v25217_v1 }
  0x59   : > { %443 = vst.msk [vmem:[#allocation2 + $0x348] sm:$0x3] %vm338_vm2, %v25217_v1  ;;  %445 = vst.msk [vmem:[#allocation2 + $0x358] sm:$0x3] %vm338_vm2, %v25217_v1 }
  0x5a   : > { %447 = vst.msk [vmem:[#allocation2 + $0x368] sm:$0x3] %vm338_vm2, %v25217_v1  ;;  %449 = vst.msk [vmem:[#allocation2 + $0x378] sm:$0x3] %vm338_vm2, %v25217_v1 }
  0x5b   : > { %451 = vst.msk [vmem:[#allocation2 + $0x388] sm:$0x3] %vm338_vm2, %v25217_v1  ;;  %453 = vst.msk [vmem:[#allocation2 + $0x398] sm:$0x3] %vm338_vm2, %v25217_v1 }
  0x5c   : > { %455 = vst.msk [vmem:[#allocation2 + $0x3a8] sm:$0x3] %vm338_vm2, %v25217_v1  ;;  %457 = vst.msk [vmem:[#allocation2 + $0x3b8] sm:$0x3] %vm338_vm2, %v25217_v1 }
  0x5d   : > { %459 = vst.msk [vmem:[#allocation2 + $0x3c8] sm:$0x3] %vm338_vm2, %v25217_v1  ;;  %461 = vst.msk [vmem:[#allocation2 + $0x3d8] sm:$0x3] %vm338_vm2, %v25217_v1 }
  0x5e   : > { %463 = vst.msk [vmem:[#allocation2 + $0x3e8] sm:$0x3] %vm338_vm2, %v25217_v1  ;;  %465 = vst.msk [vmem:[#allocation2 + $0x3f8] sm:$0x3] %vm338_vm2, %v25217_v1 }
  0x5f   : > { %467 = vst.msk [vmem:[#allocation2 + $0x408] sm:$0x3] %vm338_vm2, %v25217_v1  ;;  %469 = vst.msk [vmem:[#allocation2 + $0x418] sm:$0x3] %vm338_vm2, %v25217_v1 }
  0x60   : > { %471 = vst.msk [vmem:[#allocation2 + $0x428] sm:$0x3] %vm338_vm2, %v25217_v1  ;;  %473 = vst.msk [vmem:[#allocation2 + $0x438] sm:$0x3] %vm338_vm2, %v25217_v1 }
  0x61   : > { %475 = vst.msk [vmem:[#allocation2 + $0x448] sm:$0x3] %vm338_vm2, %v25217_v1  ;;  %477 = vst.msk [vmem:[#allocation2 + $0x458] sm:$0x3] %vm338_vm2, %v25217_v1 }
  0x62   : > { %479 = vst.msk [vmem:[#allocation2 + $0x468] sm:$0x3] %vm338_vm2, %v25217_v1  ;;  %481 = vst.msk [vmem:[#allocation2 + $0x478] sm:$0x3] %vm338_vm2, %v25217_v1 }
  0x63   : > { %483 = vst.msk [vmem:[#allocation2 + $0x488] sm:$0x3] %vm338_vm2, %v25217_v1  ;;  %485 = vst.msk [vmem:[#allocation2 + $0x498] sm:$0x3] %vm338_vm2, %v25217_v1 }
  0x64   : > { %487 = vst.msk [vmem:[#allocation2 + $0x4a8] sm:$0x3] %vm338_vm2, %v25217_v1  ;;  %489 = vst.msk [vmem:[#allocation2 + $0x4b8] sm:$0x3] %vm338_vm2, %v25217_v1 }
  0x65   : > { %491 = vst.msk [vmem:[#allocation2 + $0x4c8] sm:$0x3] %vm338_vm2, %v25217_v1  ;;  %493 = vst.msk [vmem:[#allocation2 + $0x4d8] sm:$0x3] %vm338_vm2, %v25217_v1 }
  0x66   : > { %495 = vst.msk [vmem:[#allocation2 + $0x4e8] sm:$0x3] %vm338_vm2, %v25217_v1  ;;  %497 = vst.msk [vmem:[#allocation2 + $0x4f8] sm:$0x3] %vm338_vm2, %v25217_v1  ;;  %vm16607_vm2 = vcmask 80896  }
  0x67   : > { %563 = vst.msk [vmem:[#allocation2 + $0x11] sm:$0xff] %vm336_vm1, %v498_v4  ;;  %564 = vst.msk [vmem:[#allocation2 + $0x21] sm:$0xff] %vm336_vm1, %v499_v5  ;;  %v546_v5 = vld [vmem:[%s21268_s17 + $0x180] sm:$0xff] }
  0x68   : > { %565 = vst.msk [vmem:[#allocation2 + $0x31] sm:$0xff] %vm336_vm1, %v500_v6  ;;  %566 = vst.msk [vmem:[#allocation2 + $0x41] sm:$0xff] %vm336_vm1, %v501_v7  ;;  %v547_v6 = vld [vmem:[%s21268_s17 + $0x188] sm:$0xff]  ;;  %v548_v7 = vld [vmem:[%s21268_s17 + $0x190] sm:$0xff] }
  0x69   : > { %567 = vst.msk [vmem:[#allocation2 + $0x51] sm:$0xff] %vm336_vm1, %v502_v8  ;;  %568 = vst.msk [vmem:[#allocation2 + $0x61] sm:$0xff] %vm336_vm1, %v503_v9  ;;  %v549_v8 = vld [vmem:[%s21268_s17 + $0x198] sm:$0xff]  ;;  %v692_v9 = vld [vmem:[#allocation2 + $0x1] sm:$0xff] }
  0x6a   : > { %569 = vst.msk [vmem:[#allocation2 + $0x71] sm:$0xff] %vm336_vm1, %v504_v10  ;;  %570 = vst.msk [vmem:[#allocation2 + $0x81] sm:$0xff] %vm336_vm1, %v505_v11  ;;  %18347 = vmatprep.mubr.msk.f32.mxu1 %vm336_vm1, %v692_v9  ;;  %v550_v11 = vld [vmem:[%s21268_s17 + $0x1a0] sm:$0xff] }
  0x6b   : > { %571 = vst.msk [vmem:[#allocation2 + $0xb1] sm:$0xff] %vm336_vm1, %v506_v12  ;;  %572 = vst.msk [vmem:[#allocation2 + $0xc1] sm:$0xff] %vm336_vm1, %v507_v13  ;;  %v551_v12 = vld [vmem:[%s21268_s17 + $0x1a8] sm:$0xff] }
  0x6c   : > { %573 = vst.msk [vmem:[#allocation2 + $0xd1] sm:$0xff] %vm336_vm1, %v508_v14  ;;  %574 = vst.msk [vmem:[#allocation2 + $0xe1] sm:$0xff] %vm336_vm1, %v509_v15  ;;  %v552_v15 = vld [vmem:[%s21268_s17 + $0x1b0] sm:$0xff] }
  0x6d   : > { %575 = vst.msk [vmem:[#allocation2 + $0xf1] sm:$0xff] %vm336_vm1, %v510_v16  ;;  %576 = vst.msk [vmem:[#allocation2 + $0x101] sm:$0xff] %vm336_vm1, %v511_v17  ;;  %v553_v16 = vld [vmem:[%s21268_s17 + $0x1b8] sm:$0xff] }
  0x6e   : > { %577 = vst.msk [vmem:[#allocation2 + $0x111] sm:$0xff] %vm336_vm1, %v512_v18  ;;  %578 = vst.msk [vmem:[#allocation2 + $0x121] sm:$0xff] %vm336_vm1, %v513_v19  ;;  %v2629_v28 = vld [vmem:[#allocation2 + $0x10] sm:$0xff]  ;;  %v21315_v29 = vld [vmem:[#allocation2 + $0x20] sm:$0xff] }
  0x6f   : > { %579 = vst.msk [vmem:[#allocation2 + $0x151] sm:$0xff] %vm336_vm1, %v514_v20  ;;  %580 = vst.msk [vmem:[#allocation2 + $0x161] sm:$0xff] %vm336_vm1, %v515_v21  ;;  %v21317_v30 = vld [vmem:[#allocation2 + $0x30] sm:$0xff]  ;;  %18641 = vmatprep.mubr.msk.f32.mxu0 %vm336_vm1, %v2629_v28  ;;  %v21334_v32 = vld [vmem:[#allocation2 + $0x40] sm:$0xff] }
  0x70   : > { %581 = vst.msk [vmem:[#allocation2 + $0x171] sm:$0xff] %vm336_vm1, %v516_v22  ;;  %582 = vst.msk [vmem:[#allocation2 + $0x181] sm:$0xff] %vm336_vm1, %v517_v23  ;;  %18642 = vmatmul.mubr.msk.f32.vlgmr.msra.gmra.mrb[0].mxu0 %vm336_vm1, %v21315_v29  ;;  %v21336_v33 = vld [vmem:[#allocation2 + $0x50] sm:$0xff]  ;;  %v21344_v34 = vld [vmem:[#allocation2 + $0x60] sm:$0xff] }
  0x71   : > { %583 = vst.msk [vmem:[#allocation2 + $0x191] sm:$0xff] %vm336_vm1, %v518_v24  ;;  %584 = vst.msk [vmem:[#allocation2 + $0x1a1] sm:$0xff] %vm336_vm1, %v519_v25  ;;  %18738 = vmatpush3.msk.msra.mxu0 %vm950_vm0, %v21086_v2  ;;  %18644 = vmatprep.mubr.msk.f32.mxu0 %vm336_vm1, %v21317_v30  ;;  %v21346_v35 = vld [vmem:[#allocation2 + $0x70] sm:$0xff]  ;;  %v2636_v39 = vld [vmem:[#allocation2 + $0x80] sm:$0xff] }
  0x72   : > { %585 = vst.msk [vmem:[#allocation2 + $0x1b1] sm:$0xff] %vm336_vm1, %v520_v26  ;;  %586 = vst.msk [vmem:[#allocation2 + $0x1c1] sm:$0xff] %vm336_vm1, %v521_v27  ;;  %18835 = vmatprep.subr.msk.mxu0 %vm950_vm0, %v21326_v31  ;;  %v21359_v43 = vld [vmem:[#allocation2 + $0xb0] sm:$0xff]  ;;  %v21381_v53 = vld [vmem:[#allocation2 + $0xc0] sm:$0xff] }
  0x73   : > { %587 = vst.msk [vmem:[#allocation2 + $0x1f1] sm:$0xff] %vm336_vm1, %v522_v36  ;;  %588 = vst.msk [vmem:[#allocation2 + $0x201] sm:$0xff] %vm336_vm1, %v523_v37  ;;  %v21404_v63 = vld [vmem:[#allocation2 + $0xd0] sm:$0xff]  ;;  %v21413_v0 = vld [vmem:[#allocation2 + $0xe0] sm:$0xff] }
  0x74   : > { %18645 = vmatmul.mubr.msk.f32.gmra.mrb[2].mxu0 %vm336_vm1, %v21334_v32  ;;  %589 = vst.msk [vmem:[#allocation2 + $0x211] sm:$0xff] %vm336_vm1, %v524_v38  ;;  %590 = vst.msk [vmem:[#allocation2 + $0x221] sm:$0xff] %vm336_vm1, %v525_v40  ;;  %v21415_v2 = vld [vmem:[#allocation2 + $0xf0] sm:$0xff]  ;;  %v21421_v3 = vld [vmem:[#allocation2 + $0x100] sm:$0xff] }
  0x75   : > { %18647 = vmatprep.mubr.msk.f32.mxu0 %vm336_vm1, %v21336_v33  ;;  %591 = vst.msk [vmem:[#allocation2 + $0x231] sm:$0xff] %vm336_vm1, %v526_v41  ;;  %592 = vst.msk [vmem:[#allocation2 + $0x241] sm:$0xff] %vm336_vm1, %v527_v42  ;;  %v21423_v4 = vld [vmem:[#allocation2 + $0x110] sm:$0xff]  ;;  %v21440_v13 = vld [vmem:[#allocation2 + $0x21] sm:$0xff] }
  0x76   : > { %593 = vst.msk [vmem:[#allocation2 + $0x251] sm:$0xff] %vm336_vm1, %v528_v44  ;;  %594 = vst.msk [vmem:[#allocation2 + $0x261] sm:$0xff] %vm336_vm1, %v529_v45  ;;  %v21432_v10 = vld [vmem:[#allocation2 + $0x11] sm:$0xff]  ;;  %v2644_v14 = vld [vmem:[#allocation2 + $0x120] sm:$0xff] }
  0x77   : > { %595 = vst.msk [vmem:[#allocation2 + $0x291] sm:$0xff] %vm336_vm1, %v530_v46  ;;  %596 = vst.msk [vmem:[#allocation2 + $0x2a1] sm:$0xff] %vm336_vm1, %v531_v47  ;;  %18348 = vmatmul.mubr.msk.f32.vlgmr.msra.gmra.mrb[0].mxu1 %vm336_vm1, %v21432_v10  ;;  %v21450_v17 = vld [vmem:[#allocation2 + $0x150] sm:$0xff]  ;;  %v554_v19 = vld [vmem:[%s21268_s17 + $0x1c0] sm:$0xff] }
  0x78   : > { %18648 = vmatmul.mubr.msk.f32.gmra.mrb[4].mxu0 %vm336_vm1, %v21344_v34  ;;  %597 = vst.msk [vmem:[#allocation2 + $0x2b1] sm:$0xff] %vm336_vm1, %v532_v48  ;;  %598 = vst.msk [vmem:[#allocation2 + $0x2c1] sm:$0xff] %vm336_vm1, %v533_v49  ;;  %18350 = vmatprep.mubr.msk.f32.mxu1 %vm336_vm1, %v21440_v13  ;;  %v21454_v18 = vld [vmem:[#allocation2 + $0x31] sm:$0xff]  ;;  %v21459_v20 = vld [vmem:[#allocation2 + $0x41] sm:$0xff] }
  0x79   : > { %18650 = vmatprep.mubr.msk.f32.mxu0 %vm336_vm1, %v21346_v35  ;;  %599 = vst.msk [vmem:[#allocation2 + $0x2d1] sm:$0xff] %vm336_vm1, %v534_v50  ;;  %600 = vst.msk [vmem:[#allocation2 + $0x2e1] sm:$0xff] %vm336_vm1, %v535_v51  ;;  %v555_v21 = vld [vmem:[%s21268_s17 + $0x1c8] sm:$0xff]  ;;  %v556_v22 = vld [vmem:[%s21268_s17 + $0x1d0] sm:$0xff] }
  0x7a   : > { %601 = vst.msk [vmem:[#allocation2 + $0x2f1] sm:$0xff] %vm336_vm1, %v536_v52  ;;  %602 = vst.msk [vmem:[#allocation2 + $0x301] sm:$0xff] %vm336_vm1, %v537_v54  ;;  %v557_v23 = vld [vmem:[%s21268_s17 + $0x1d8] sm:$0xff]  ;;  %v21469_v24 = vld [vmem:[#allocation2 + $0x160] sm:$0xff] }
  0x7b   : > { %603 = vst.msk [vmem:[#allocation2 + $0x331] sm:$0xff] %vm336_vm1, %v538_v55  ;;  %604 = vst.msk [vmem:[#allocation2 + $0x341] sm:$0xff] %vm336_vm1, %v539_v56  ;;  %18351 = vmatmul.mubr.msk.f32.gmra.mrb[2].mxu1 %vm336_vm1, %v21454_v18  ;;  %v21475_v25 = vld [vmem:[#allocation2 + $0x170] sm:$0xff]  ;;  %v21481_v27 = vld [vmem:[#allocation2 + $0x61] sm:$0xff] }
  0x7c   : > { %18651 = vmatmul.mubr.msk.f32.gmra.mrb[6].mxu0 %vm336_vm1, %v2636_v39  ;;  %605 = vst.msk [vmem:[#allocation2 + $0x351] sm:$0xff] %vm336_vm1, %v540_v57  ;;  %606 = vst.msk [vmem:[#allocation2 + $0x361] sm:$0xff] %vm336_vm1, %v541_v58  ;;  %18353 = vmatprep.mubr.msk.f32.mxu1 %vm336_vm1, %v21459_v20  ;;  %v21479_v26 = vld [vmem:[#allocation2 + $0x51] sm:$0xff]  ;;  %v21487_v28 = vld [vmem:[#allocation2 + $0x180] sm:$0xff] }
  0x7d   : > { %18653 = vmatprep.mubr.msk.f32.mxu0 %vm336_vm1, %v21359_v43  ;;  %607 = vst.msk [vmem:[#allocation2 + $0x371] sm:$0xff] %vm336_vm1, %v542_v59  ;;  %608 = vst.msk [vmem:[#allocation2 + $0x381] sm:$0xff] %vm336_vm1, %v543_v60  ;;  %v21491_v36 = vld [vmem:[#allocation2 + $0x190] sm:$0xff]  ;;  %v700_v38 = vld [vmem:[#allocation2 + $0xa1] sm:$0xff] }
  0x7e   : > { %609 = vst.msk [vmem:[#allocation2 + $0x391] sm:$0xff] %vm336_vm1, %v544_v61  ;;  %610 = vst.msk [vmem:[#allocation2 + $0x3a1] sm:$0xff] %vm336_vm1, %v545_v62  ;;  %v21495_v37 = vld [vmem:[#allocation2 + $0x71] sm:$0xff]  ;;  %v21501_v39 = vld [vmem:[#allocation2 + $0x1a0] sm:$0xff] }
  0x7f   : > { %611 = vst.msk [vmem:[#allocation2 + $0x3d1] sm:$0xff] %vm336_vm1, %v546_v5  ;;  %612 = vst.msk [vmem:[#allocation2 + $0x3e1] sm:$0xff] %vm336_vm1, %v547_v6  ;;  %18354 = vmatmul.mubr.msk.f32.gmra.mrb[4].mxu1 %vm336_vm1, %v21479_v26  ;;  %v21505_v40 = vld [vmem:[#allocation2 + $0x1b0] sm:$0xff]  ;;  %v21510_v42 = vld [vmem:[#allocation2 + $0xc1] sm:$0xff] }
  0x80   : > { %18654 = vmatmul.mubr.msk.f32.gmra.mrb[8].mxu0 %vm336_vm1, %v21381_v53  ;;  %613 = vst.msk [vmem:[#allocation2 + $0x3f1] sm:$0xff] %vm336_vm1, %v548_v7  ;;  %614 = vst.msk [vmem:[#allocation2 + $0x401] sm:$0xff] %vm336_vm1, %v549_v8  ;;  %18356 = vmatprep.mubr.msk.f32.mxu1 %vm336_vm1, %v21481_v27  ;;  %v21508_v41 = vld [vmem:[#allocation2 + $0xb1] sm:$0xff]  ;;  %v2652_v44 = vld [vmem:[#allocation2 + $0x1c0] sm:$0xff] }
  0x81   : > { %18656 = vmatprep.mubr.msk.f32.mxu0 %vm336_vm1, %v21404_v63  ;;  %615 = vst.msk [vmem:[#allocation2 + $0x411] sm:$0xff] %vm336_vm1, %v550_v11  ;;  %616 = vst.msk [vmem:[#allocation2 + $0x421] sm:$0xff] %vm336_vm1, %v551_v12  ;;  %v21518_v45 = vld [vmem:[#allocation2 + $0x1f0] sm:$0xff]  ;;  %v21524_v47 = vld [vmem:[#allocation2 + $0xe1] sm:$0xff] }
  0x82   : > { %617 = vst.msk [vmem:[#allocation2 + $0x431] sm:$0xff] %vm336_vm1, %v552_v15  ;;  %618 = vst.msk [vmem:[#allocation2 + $0x441] sm:$0xff] %vm336_vm1, %v553_v16  ;;  %v21522_v46 = vld [vmem:[#allocation2 + $0xd1] sm:$0xff]  ;;  %v21529_v48 = vld [vmem:[#allocation2 + $0x200] sm:$0xff] }
  0x83   : > { %619 = vst.msk [vmem:[#allocation2 + $0x471] sm:$0xff] %vm336_vm1, %v554_v19  ;;  %620 = vst.msk [vmem:[#allocation2 + $0x481] sm:$0xff] %vm336_vm1, %v555_v21  ;;  %18357 = vmatmul.mubr.msk.f32.gmra.mrb[6].mxu1 %vm336_vm1, %v21495_v37  ;;  %v21533_v49 = vld [vmem:[#allocation2 + $0x210] sm:$0xff]  ;;  %v21539_v51 = vld [vmem:[#allocation2 + $0x101] sm:$0xff] }
  0x84   : > { %18657 = vmatmul.mubr.msk.f32.gmra.mrb[10].mxu0 %vm336_vm1, %v21413_v0  ;;  %621 = vst.msk [vmem:[#allocation2 + $0x491] sm:$0xff] %vm336_vm1, %v556_v22  ;;  %622 = vst.msk [vmem:[#allocation2 + $0x4a1] sm:$0xff] %vm336_vm1, %v557_v23  ;;  %18359 = vmatprep.mubr.msk.f32.mxu1 %vm336_vm1, %v700_v38  ;;  %v21537_v50 = vld [vmem:[#allocation2 + $0xf1] sm:$0xff]  ;;  %v21545_v52 = vld [vmem:[#allocation2 + $0x220] sm:$0xff] }
  0x85   : > { %18659 = vmatprep.mubr.msk.f32.mxu0 %vm336_vm1, %v21415_v2  ;;  %25258 = vst [vmem:[#allocation8_spill] sm:$0xff] %v21505_v40  ;;  %25259 = vst [vmem:[#allocation9_spill] sm:$0xff] %v21518_v45  ;;  %v21549_v54 = vld [vmem:[#allocation2 + $0x230] sm:$0xff]  ;;  %v708_v56 = vld [vmem:[#allocation2 + $0x141] sm:$0xff] }
  0x86   : > { %25260 = vst [vmem:[#allocation10_spill] sm:$0xff] %v21529_v48  ;;  %25261 = vst [vmem:[#allocation11_spill] sm:$0xff] %v21533_v49  ;;  %v21553_v55 = vld [vmem:[#allocation2 + $0x111] sm:$0xff]  ;;  %v21559_v57 = vld [vmem:[#allocation2 + $0x240] sm:$0xff] }
  0x87   : > { %18360 = vmatmul.mubr.msk.f32.gmra.mrb[8].mxu1 %vm336_vm1, %v21508_v41  ;;  %25262 = vst [vmem:[#allocation12_spill] sm:$0xff] %v21545_v52  ;;  %25263 = vst [vmem:[#allocation13_spill] sm:$0xff] %v21549_v54  ;;  %v21563_v58 = vld [vmem:[#allocation2 + $0x250] sm:$0xff]  ;;  %v21568_v60 = vld [vmem:[#allocation2 + $0x161] sm:$0xff] }
  0x88   : > { %18660 = vmatmul.mubr.msk.f32.gmra.mrb[12].mxu0 %vm336_vm1, %v21421_v3  ;;  %18362 = vmatprep.mubr.msk.f32.mxu1 %vm336_vm1, %v21510_v42  ;;  %25264 = vst [vmem:[#allocation14_spill] sm:$0xff] %v21559_v57  ;;  %25265 = vst [vmem:[#allocation15_spill] sm:$0xff] %v21563_v58  ;;  %v21566_v59 = vld [vmem:[#allocation2 + $0x151] sm:$0xff]  ;;  %v2660_v61 = vld [vmem:[#allocation2 + $0x260] sm:$0xff] }
  0x89   : > { %18662 = vmatprep.mubr.msk.f32.mxu0 %vm336_vm1, %v21423_v4  ;;  %v21576_v62 = vld [vmem:[#allocation2 + $0x290] sm:$0xff]  ;;  %v21582_v6 = vld [vmem:[#allocation2 + $0x181] sm:$0xff] }
  0x8a   : > { %25266 = vst [vmem:[#allocation16_spill] sm:$0xff] %v21576_v62  ;;  %v21580_v5 = vld [vmem:[#allocation2 + $0x171] sm:$0xff]  ;;  %v21587_v7 = vld [vmem:[#allocation2 + $0x2a0] sm:$0xff] }
  0x8b   : > { %18363 = vmatmul.mubr.msk.f32.gmra.mrb[10].mxu1 %vm336_vm1, %v21522_v46  ;;  %25267 = vst [vmem:[#allocation17_spill] sm:$0xff] %v21587_v7  ;;  %v21591_v8 = vld [vmem:[#allocation2 + $0x2b0] sm:$0xff]  ;;  %v21597_v11 = vld [vmem:[#allocation2 + $0x1a1] sm:$0xff] }
  0x8c   : > { %18663 = vmatmul.mubr.msk.f32.gmra.mrb[14].mxu0 %vm336_vm1, %v2644_v14  ;;  %18365 = vmatprep.mubr.msk.f32.mxu1 %vm336_vm1, %v21524_v47  ;;  %25268 = vst [vmem:[#allocation18_spill] sm:$0xff] %v21591_v8  ;;  %v21595_v9 = vld [vmem:[#allocation2 + $0x191] sm:$0xff]  ;;  %v21603_v12 = vld [vmem:[#allocation2 + $0x2c0] sm:$0xff] }
  0x8d   : > { %18665 = vmatprep.mubr.msk.f32.mxu0 %vm336_vm1, %v21450_v17  ;;  %25269 = vst [vmem:[#allocation19_spill] sm:$0xff] %v21603_v12  ;;  %v21607_v14 = vld [vmem:[#allocation2 + $0x2d0] sm:$0xff]  ;;  %v716_v16 = vld [vmem:[#allocation2 + $0x1e1] sm:$0xff] }
  0x8e   : > { %25270 = vst [vmem:[#allocation20_spill] sm:$0xff] %v21607_v14  ;;  %v21611_v15 = vld [vmem:[#allocation2 + $0x1b1] sm:$0xff]  ;;  %v21617_v19 = vld [vmem:[#allocation2 + $0x2e0] sm:$0xff] }
  0x8f   : > { %18366 = vmatmul.mubr.msk.f32.gmra.mrb[12].mxu1 %vm336_vm1, %v21537_v50  ;;  %25271 = vst [vmem:[#allocation21_spill] sm:$0xff] %v21617_v19  ;;  %v21621_v21 = vld [vmem:[#allocation2 + $0x2f0] sm:$0xff]  ;;  %v21626_v23 = vld [vmem:[#allocation2 + $0x201] sm:$0xff] }
  0x90   : > { %18666 = vmatmul.mubr.msk.f32.gmra.mrb[16].mxu0 %vm336_vm1, %v21469_v24  ;;  %18368 = vmatprep.mubr.msk.f32.mxu1 %vm336_vm1, %v21539_v51  ;;  %25272 = vst [vmem:[#allocation22_spill] sm:$0xff] %v21621_v21  ;;  %v21624_v22 = vld [vmem:[#allocation2 + $0x1f1] sm:$0xff]  ;;  %v2668_v38 = vld [vmem:[#allocation2 + $0x300] sm:$0xff] }
  0x91   : > { %18668 = vmatprep.mubr.msk.f32.mxu0 %vm336_vm1, %v21475_v25  ;;  %v21649_v1 = vld [vmem:[#allocation2 + $0x350] sm:$0xff] }
  0x92   : > { %25275 = vst [vmem:[#allocation25_spill] sm:$0xff] %v21649_v1 }
  0x93   : > { %18369 = vmatmul.mubr.msk.f32.gmra.mrb[14].mxu1 %vm336_vm1, %v21553_v55 }
  0x94   : > { %18669 = vmatmul.mubr.msk.f32.gmra.mrb[18].mxu0 %vm336_vm1, %v21487_v28  ;;  %18371 = vmatprep.mubr.msk.f32.mxu1 %vm336_vm1, %v708_v56  ;;  %v21638_v56 = vld [vmem:[#allocation2 + $0x211] sm:$0xff] }
  0x95   : > { %18671 = vmatprep.mubr.msk.f32.mxu0 %vm336_vm1, %v21491_v36 }
  0x97   : > { %18372 = vmatmul.mubr.msk.f32.gmra.mrb[16].mxu1 %vm336_vm1, %v21566_v59 }
  0x98   : > { %18672 = vmatmul.mubr.msk.f32.gmra.mrb[20].mxu0 %vm336_vm1, %v21501_v39  ;;  %18374 = vmatprep.mubr.msk.f32.mxu1 %vm336_vm1, %v21568_v60 }
  0x99   : > { %18674 = vmatprep.mubr.msk.f32.mxu0 %vm336_vm1, %v21505_v40  ;;  %v21767_v40 = vld [vmem:[#allocation2 + $0x361] sm:$0xff] }
  0x9b   : > { %18375 = vmatmul.mubr.msk.f32.gmra.mrb[18].mxu1 %vm336_vm1, %v21580_v5 }
  0x9c   : > { %18675 = vmatmul.mubr.msk.f32.gmra.mrb[22].mxu0 %vm336_vm1, %v2652_v44  ;;  %18377 = vmatprep.mubr.msk.f32.mxu1 %vm336_vm1, %v21582_v6  ;;  %v21634_v44 = vld [vmem:[#allocation2 + $0x330] sm:$0xff] }
  0x9d   : > { %18677 = vmatprep.mubr.msk.f32.mxu0 %vm336_vm1, %v21518_v45  ;;  %25273 = vst [vmem:[#allocation23_spill] sm:$0xff] %v21634_v44  ;;  %v21761_v45 = vld [vmem:[#allocation2 + $0x470] sm:$0xff] }
  0x9e   : > { %25289 = vst [vmem:[#allocation39_spill] sm:$0xff] %v21761_v45 }
  0x9f   : > { %18378 = vmatmul.mubr.msk.f32.gmra.mrb[20].mxu1 %vm336_vm1, %v21595_v9 }
  0xa0   : > { %18678 = vmatmul.mubr.msk.f32.gmra.mrb[24].mxu0 %vm336_vm1, %v21529_v48  ;;  %18380 = vmatprep.mubr.msk.f32.mxu1 %vm336_vm1, %v21597_v11  ;;  %v21749_v48 = vld [vmem:[#allocation2 + $0x331] sm:$0xff] }
  0xa1   : > { %18680 = vmatprep.mubr.msk.f32.mxu0 %vm336_vm1, %v21533_v49  ;;  %v21746_v49 = vld [vmem:[#allocation2 + $0x430] sm:$0xff]  ;;  %25287 = vst [vmem:[#allocation37_spill] sm:$0xff] %v21749_v48 }
  0xa2   : > { %25286 = vst [vmem:[#allocation36_spill] sm:$0xff] %v21746_v49 }
  0xa3   : > { %18381 = vmatmul.mubr.msk.f32.gmra.mrb[22].mxu1 %vm336_vm1, %v21611_v15 }
  0xa4   : > { %18681 = vmatmul.mubr.msk.f32.gmra.mrb[26].mxu0 %vm336_vm1, %v21545_v52  ;;  %18383 = vmatprep.mubr.msk.f32.mxu1 %vm336_vm1, %v716_v16  ;;  %v21645_v16 = vld [vmem:[#allocation2 + $0x340] sm:$0xff] }
  0xa5   : > { %18683 = vmatprep.mubr.msk.f32.mxu0 %vm336_vm1, %v21549_v54  ;;  %25274 = vst [vmem:[#allocation24_spill] sm:$0xff] %v21645_v16  ;;  %v21719_v54 = vld [vmem:[#allocation2 + $0x2e1] sm:$0xff] }
  0xa6   : > { %v732_v52 = vld [vmem:[#allocation2 + $0x321] sm:$0xff] }
  0xa7   : > { %18384 = vmatmul.mubr.msk.f32.gmra.mrb[24].mxu1 %vm336_vm1, %v21624_v22 }
  0xa8   : > { %18684 = vmatmul.mubr.msk.f32.gmra.mrb[28].mxu0 %vm336_vm1, %v21559_v57  ;;  %18386 = vmatprep.mubr.msk.f32.mxu1 %vm336_vm1, %v21626_v23  ;;  %v21703_v57 = vld [vmem:[#allocation2 + $0x2c1] sm:$0xff] }
  0xa9   : > { %18686 = vmatprep.mubr.msk.f32.mxu0 %vm336_vm1, %v21563_v58  ;;  %v21695_v58 = vld [vmem:[#allocation2 + $0x3d0] sm:$0xff] }
  0xaa   : > { %25280 = vst [vmem:[#allocation30_spill] sm:$0xff] %v21695_v58 }
  0xab   : > { %18387 = vmatmul.mubr.msk.f32.gmra.mrb[26].mxu1 %vm336_vm1, %v21638_v56 }
  0xac   : > { %18687 = vmatmul.mubr.msk.f32.gmra.mrb[30].mxu0 %vm336_vm1, %v2660_v61  ;;  %v21640_v61 = vld [vmem:[#allocation2 + $0x221] sm:$0xff] }
  0xad   : > { %18689 = vmatprep.mubr.msk.f32.mxu0 %vm336_vm1, %v21576_v62  ;;  %18389 = vmatprep.mubr.msk.f32.mxu1 %vm336_vm1, %v21640_v61  ;;  %v21685_v62 = vld [vmem:[#allocation2 + $0x2a1] sm:$0xff] }
  0xb0   : > { %18690 = vmatmul.mubr.msk.f32.gmra.mrb[32].mxu0 %vm336_vm1, %v21587_v7  ;;  %v558_v7 = vld [vmem:[%s21268_s17 + $0x1e0] sm:$0xff] }
  0xb1   : > { %18692 = vmatprep.mubr.msk.f32.mxu0 %vm336_vm1, %v21591_v8  ;;  %v21682_v8 = vld [vmem:[#allocation2 + $0x291] sm:$0xff]  ;;  %623 = vst.msk [vmem:[#allocation2 + $0x4b1] sm:$0xff] %vm336_vm1, %v558_v7 }
  0xb2   : > { %v560_v7 = vld [vmem:[%s21268_s17 + $0x1f0] sm:$0xff] }
  0xb3   : > { %625 = vst.msk [vmem:[#allocation2 + $0x4d1] sm:$0xff] %vm336_vm1, %v560_v7  ;;  %v21729_v7 = vld [vmem:[#allocation2 + $0x410] sm:$0xff] }
  0xb4   : > { %18693 = vmatmul.mubr.msk.f32.gmra.mrb[34].mxu0 %vm336_vm1, %v21603_v12  ;;  %v724_v12 = vld [vmem:[#allocation2 + $0x281] sm:$0xff]  ;;  %25284 = vst [vmem:[#allocation34_spill] sm:$0xff] %v21729_v7 }
  0xb5   : > { %18695 = vmatprep.mubr.msk.f32.mxu0 %vm336_vm1, %v21607_v14  ;;  %v21669_v14 = vld [vmem:[#allocation2 + $0x251] sm:$0xff] }
  0xb8   : > { %18696 = vmatmul.mubr.msk.f32.gmra.mrb[36].mxu0 %vm336_vm1, %v21617_v19  ;;  %v21655_v19 = vld [vmem:[#allocation2 + $0x241] sm:$0xff] }
  0xb9   : > { %18698 = vmatprep.mubr.msk.f32.mxu0 %vm336_vm1, %v21621_v21  ;;  %v21653_v21 = vld [vmem:[#allocation2 + $0x231] sm:$0xff] }
  0xba   : > { %18390 = vmatmul.mubr.msk.f32.gmra.mrb[28].mxu1 %vm336_vm1, %v21653_v21 }
  0xbb   : > { %18392 = vmatprep.mubr.msk.f32.mxu1 %vm336_vm1, %v21655_v19 }
  0xbc   : > { %18699 = vmatmul.mubr.msk.f32.gmra.mrb[38].mxu0 %vm336_vm1, %v2668_v38  ;;  %v21661_v38 = vld [vmem:[#allocation2 + $0x360] sm:$0xff] }
  0xbd   : > { %18701 = vmatprep.mubr.msk.f32.mxu0 %vm336_vm1, %v21634_v44  ;;  %25276 = vst [vmem:[#allocation26_spill] sm:$0xff] %v21661_v38  ;;  %v21665_v44 = vld [vmem:[#allocation2 + $0x370] sm:$0xff] }
  0xbe   : > { %25277 = vst [vmem:[#allocation27_spill] sm:$0xff] %v21665_v44  ;;  %18393 = vmatmul.mubr.msk.f32.gmra.mrb[30].mxu1 %vm336_vm1, %v21669_v14 }
  0xbf   : > { %18395 = vmatprep.mubr.msk.f32.mxu1 %vm336_vm1, %v724_v12  ;;  %v21699_v12 = vld [vmem:[#allocation2 + $0x2b1] sm:$0xff] }
  0xc0   : > { %18702 = vmatmul.mubr.msk.f32.gmra.mrb[40].mxu0 %vm336_vm1, %v21645_v16  ;;  %v21679_v16 = vld [vmem:[#allocation2 + $0x390] sm:$0xff] }
  0xc1   : > { %18704 = vmatprep.mubr.msk.f32.mxu0 %vm336_vm1, %v21649_v1  ;;  %v21675_v1 = vld [vmem:[#allocation2 + $0x380] sm:$0xff]  ;;  %25279 = vst [vmem:[#allocation29_spill] sm:$0xff] %v21679_v16 }
  0xc2   : > { %25278 = vst [vmem:[#allocation28_spill] sm:$0xff] %v21675_v1  ;;  %18396 = vmatmul.mubr.msk.f32.gmra.mrb[32].mxu1 %vm336_vm1, %v21682_v8 }
  0xc3   : > { %18398 = vmatprep.mubr.msk.f32.mxu1 %vm336_vm1, %v21685_v62 }
  0xc4   : > { %18705 = vmatmul.mubr.msk.f32.gmra.mrb[42].mxu0 %vm336_vm1, %v21661_v38  ;;  %v559_v38 = vld [vmem:[%s21268_s17 + $0x1e8] sm:$0xff] }
  0xc5   : > { %18707 = vmatprep.mubr.msk.f32.mxu0 %vm336_vm1, %v21665_v44  ;;  %v2676_v44 = vld [vmem:[#allocation2 + $0x3a0] sm:$0xff]  ;;  %624 = vst.msk [vmem:[#allocation2 + $0x4c1] sm:$0xff] %vm336_vm1, %v559_v38  ;;  %v21717_v38 = vld [vmem:[#allocation2 + $0x2d1] sm:$0xff] }
  0xc6   : > { %18399 = vmatmul.mubr.msk.f32.gmra.mrb[34].mxu1 %vm336_vm1, %v21699_v12 }
  0xc7   : > { %18401 = vmatprep.mubr.msk.f32.mxu1 %vm336_vm1, %v21703_v57 }
  0xc8   : > { %18708 = vmatmul.mubr.msk.f32.gmra.mrb[44].mxu0 %vm336_vm1, %v21675_v1  ;;  %v21713_v1 = vld [vmem:[#allocation2 + $0x3f0] sm:$0xff] }
  0xc9   : > { %18710 = vmatprep.mubr.msk.f32.mxu0 %vm336_vm1, %v21679_v16  ;;  %v21709_v16 = vld [vmem:[#allocation2 + $0x3e0] sm:$0xff]  ;;  %25282 = vst [vmem:[#allocation32_spill] sm:$0xff] %v21713_v1 }
  0xca   : > { %25281 = vst [vmem:[#allocation31_spill] sm:$0xff] %v21709_v16  ;;  %18402 = vmatmul.mubr.msk.f32.gmra.mrb[36].mxu1 %vm336_vm1, %v21717_v38 }
  0xcb   : > { %18404 = vmatprep.mubr.msk.f32.mxu1 %vm336_vm1, %v21719_v54 }
  0xcc   : > { %18711 = vmatmul.mubr.msk.f32.gmra.mrb[46].mxu0 %vm336_vm1, %v2676_v44  ;;  %v21725_v44 = vld [vmem:[#allocation2 + $0x400] sm:$0xff] }
  0xcd   : > { %18713 = vmatprep.mubr.msk.f32.mxu0 %vm336_vm1, %v21695_v58  ;;  %25283 = vst [vmem:[#allocation33_spill] sm:$0xff] %v21725_v44  ;;  %v21733_v58 = vld [vmem:[#allocation2 + $0x2f1] sm:$0xff] }
  0xce   : > { %18405 = vmatmul.mubr.msk.f32.gmra.mrb[38].mxu1 %vm336_vm1, %v21733_v58 }
  0xcf   : > { %18407 = vmatprep.mubr.msk.f32.mxu1 %vm336_vm1, %v732_v52  ;;  %v21765_v52 = vld [vmem:[#allocation2 + $0x351] sm:$0xff] }
  0xd0   : > { %18714 = vmatmul.mubr.msk.f32.gmra.mrb[48].mxu0 %vm336_vm1, %v21709_v16  ;;  %v21742_v16 = vld [vmem:[#allocation2 + $0x420] sm:$0xff] }
  0xd1   : > { %18716 = vmatprep.mubr.msk.f32.mxu0 %vm336_vm1, %v21713_v1  ;;  %v691_v1 = vld [vmem:[%s25208_s1] sm:$0x7]  ;;  %25285 = vst [vmem:[#allocation35_spill] sm:$0xff] %v21742_v16 }
  0xd2   : > { %18443 = vmatprep.subr.msk.mxu1 %vm950_vm0, %v691_v1  ;;  %18408 = vmatmul.mubr.msk.f32.gmra.mrb[40].mxu1 %vm336_vm1, %v21749_v48  ;;  %v21784_v48 = vld [vmem:[#allocation2 + $0x381] sm:$0xff] }
  0xd3   : > { %18444 = vmatpush3.msk.msra.mxu1 %vm950_vm0, %v691_v1  ;;  %v561_v1 = vld [vmem:[%s21268_s17 + $0x1f8] sm:$0xff]  ;;  %25292 = vst [vmem:[#allocation42_spill] sm:$0xff] %v21784_v48 }
  0xd4   : > { %18717 = vmatmul.mubr.msk.f32.gmra.mrb[50].mxu0 %vm336_vm1, %v21725_v44  ;;  %v21752_v44 = vld [vmem:[#allocation2 + $0x341] sm:$0xff]  ;;  %626 = vst.msk [vmem:[#allocation2 + $0x4e1] sm:$0xff] %vm336_vm1, %v561_v1  ;;  %v21796_v1 = vld [vmem:[#allocation2 + $0x391] sm:$0xff] }
  0xd5   : > { %18719 = vmatprep.mubr.msk.f32.mxu0 %vm336_vm1, %v21729_v7  ;;  %25288 = vst [vmem:[#allocation38_spill] sm:$0xff] %v21752_v44  ;;  %v2684_v7 = vld [vmem:[#allocation2 + $0x440] sm:$0xff]  ;;  %18410 = vmatprep.mubr.msk.f32.mxu1 %vm336_vm1, %v21752_v44  ;;  %v21782_v44 = vld [vmem:[#allocation2 + $0x371] sm:$0xff] }
  0xd6   : > { %18411 = vmatmul.mubr.msk.f32.gmra.mrb[42].mxu1 %vm336_vm1, %v21765_v52 }
  0xd7   : > { %18413 = vmatprep.mubr.msk.f32.mxu1 %vm336_vm1, %v21767_v40 }
  0xd8   : > { %18720 = vmatmul.mubr.msk.f32.gmra.mrb[52].mxu0 %vm336_vm1, %v21742_v16  ;;  %v21778_v16 = vld [vmem:[#allocation2 + $0x490] sm:$0xff] }
  0xd9   : > { %18722 = vmatprep.mubr.msk.f32.mxu0 %vm336_vm1, %v21746_v49  ;;  %v21774_v49 = vld [vmem:[#allocation2 + $0x480] sm:$0xff]  ;;  %25291 = vst [vmem:[#allocation41_spill] sm:$0xff] %v21778_v16 }
  0xda   : > { %25290 = vst [vmem:[#allocation40_spill] sm:$0xff] %v21774_v49  ;;  %18414 = vmatmul.mubr.msk.f32.gmra.mrb[44].mxu1 %vm336_vm1, %v21782_v44 }
  0xdb   : > { %18416 = vmatprep.mubr.msk.f32.mxu1 %vm336_vm1, %v21784_v48  ;;  %v21814_v48 = vld [vmem:[#allocation2 + $0x3e1] sm:$0xff] }
  0xdc   : > { %18723 = vmatmul.mubr.msk.f32.gmra.mrb[54].mxu0 %vm336_vm1, %v2684_v7  ;;  %v21790_v7 = vld [vmem:[#allocation2 + $0x4a0] sm:$0xff] }
  0xdd   : > { %18725 = vmatprep.mubr.msk.f32.mxu0 %vm336_vm1, %v21761_v45  ;;  %v740_v45 = vld [vmem:[#allocation2 + $0x3c1] sm:$0xff] }
  0xde   : > { %18417 = vmatmul.mubr.msk.f32.gmra.mrb[46].mxu1 %vm336_vm1, %v21796_v1 }
  0xdf   : > { %18419 = vmatprep.mubr.msk.f32.mxu1 %vm336_vm1, %v740_v45  ;;  %v748_v45 = vld [vmem:[#allocation2 + $0x461] sm:$0xff] }
  0xe0   : > { %18726 = vmatmul.mubr.msk.f32.gmra.mrb[56].mxu0 %vm336_vm1, %v21774_v49  ;;  %v21810_v49 = vld [vmem:[%s25208_s1 + $0x18] sm:$0x7] }
  0xe1   : > { %18728 = vmatprep.mubr.msk.f32.mxu0 %vm336_vm1, %v21778_v16  ;;  %v21805_v16 = vld [vmem:[#allocation2 + $0x3d1] sm:$0xff] }
  0xe2   : > { %18420 = vmatmul.mubr.msk.f32.gmra.mrb[48].mxu1 %vm336_vm1, %v21805_v16 }
  0xe3   : > { %18422 = vmatprep.mubr.msk.f32.mxu1 %vm336_vm1, %v21814_v48 }
  0xe4   : > { %18729 = vmatmul.mubr.msk.f32.gmra.mrb[58].mxu0 %vm336_vm1, %v21790_v7 }
  0xe5   : > { %18739 = vmatprep.mubr.msk.f32.mxu0 %vm336_vm1, %v21432_v10  ;;  %v21826_v10 = vld [vmem:[#allocation2 + $0x3f1] sm:$0xff] }
  0xe6   : > { %18423 = vmatmul.mubr.msk.f32.gmra.mrb[50].mxu1 %vm336_vm1, %v21826_v10 }
  0xe8   : > { %18740 = vmatmul.mubr.msk.f32.vlgmr.msra.gmra.mrb[0].mxu0 %vm336_vm1, %v21440_v13  ;;  %v21830_v13 = vld [vmem:[#allocation2 + $0x401] sm:$0xff] }
  0xe9   : > { %18836 = vmatpush3.msk.msra.mxu0 %vm950_vm0, %v21326_v31  ;;  %18742 = vmatprep.mubr.msk.f32.mxu0 %vm336_vm1, %v21454_v18  ;;  %v21838_v31 = vld [vmem:[#allocation2 + $0x411] sm:$0xff]  ;;  %v21842_v18 = vld [vmem:[#allocation2 + $0x421] sm:$0xff] }
  0xea   : > { %18933 = vmatprep.subr.msk.mxu0 %vm950_vm0, %v21810_v49  ;;  %18425 = vmatprep.mubr.msk.f32.mxu1 %vm336_vm1, %v21830_v13 }
  0xeb   : > { %18426 = vmatmul.mubr.msk.f32.gmra.mrb[52].mxu1 %vm336_vm1, %v21838_v31 }
  0xec   : > { %18743 = vmatmul.mubr.msk.f32.gmra.mrb[2].mxu0 %vm336_vm1, %v21459_v20  ;;  %v3346_v20 = vld [vmem:[#allocation2 + $0x81] sm:$0xff]  ;;  %18428 = vmatprep.mubr.msk.f32.mxu1 %vm336_vm1, %v21842_v18 }
  0xed   : > { %18745 = vmatprep.mubr.msk.f32.mxu0 %vm336_vm1, %v21479_v26  ;;  %v21850_v26 = vld [vmem:[#allocation2 + $0x431] sm:$0xff] }
  0xef   : > { %18429 = vmatmul.mubr.msk.f32.gmra.mrb[54].mxu1 %vm336_vm1, %v21850_v26 }
  0xf0   : > { %18746 = vmatmul.mubr.msk.f32.gmra.mrb[4].mxu0 %vm336_vm1, %v21481_v27  ;;  %18431 = vmatprep.mubr.msk.f32.mxu1 %vm336_vm1, %v748_v45  ;;  %v21858_v27 = vld [vmem:[#allocation2 + $0x471] sm:$0xff]  ;;  %v627_v45 = vld [vmem:[#allocation2] sm:$0xff] }
  0xf1   : > { %18748 = vmatprep.mubr.msk.f32.mxu0 %vm336_vm1, %v21495_v37  ;;  %v21862_v37 = vld [vmem:[#allocation2 + $0x481] sm:$0xff] }
  0xf3   : > { %18432 = vmatmul.mubr.msk.f32.gmra.mrb[56].mxu1 %vm336_vm1, %v21858_v27 }
  0xf4   : > { %18749 = vmatmul.mubr.msk.f32.gmra.mrb[6].mxu0 %vm336_vm1, %v3346_v20  ;;  %18434 = vmatprep.mubr.msk.f32.mxu1 %vm336_vm1, %v21862_v37  ;;  %v21874_v20 = vld [vmem:[#allocation2 + $0x4a1] sm:$0xff] }
  0xf5   : > { %18751 = vmatprep.mubr.msk.f32.mxu0 %vm336_vm1, %v21508_v41  ;;  %v21870_v41 = vld [vmem:[#allocation2 + $0x491] sm:$0xff] }
  0xf7   : > { %18435 = vmatmul.mubr.msk.f32.gmra.mrb[58].mxu1 %vm336_vm1, %v21870_v41 }
  0xf8   : > { %18752 = vmatmul.mubr.msk.f32.gmra.mrb[8].mxu0 %vm336_vm1, %v21510_v42  ;;  %18437 = vmatprep.mubr.msk.f32.mxu1 %vm336_vm1, %v21874_v20  ;;  %v21882_v42 = vld [vmem:[#allocation2 + $0x4b1] sm:$0xff] }
  0xf9   : > { %18754 = vmatprep.mubr.msk.f32.mxu0 %vm336_vm1, %v21522_v46  ;;  %v21886_v46 = vld [vmem:[#allocation2 + $0x4c1] sm:$0xff] }
  0xfb   : > { %18438 = vmatmul.mubr.msk.f32.gmra.mrb[60].mxu1 %vm336_vm1, %v21882_v42 }
  0xfc   : > { %18755 = vmatmul.mubr.msk.f32.gmra.mrb[10].mxu0 %vm336_vm1, %v21524_v47  ;;  %v3354_v47 = vld [vmem:[#allocation2 + $0x121] sm:$0xff]  ;;  %18440 = vmatprep.mubr.msk.f32.mxu1 %vm336_vm1, %v21886_v46 }
  0xfd   : > { %18757 = vmatprep.mubr.msk.f32.mxu0 %vm336_vm1, %v21537_v50  ;;  %v21894_v50 = vld [vmem:[#allocation2 + $0x4d1] sm:$0xff] }
  0xff   : > { %18441 = vmatmul.mubr.msk.f32.gmra.mrb[62].mxu1 %vm336_vm1, %v21894_v50 }
 0x100   : > { %18758 = vmatmul.mubr.msk.f32.gmra.mrb[12].mxu0 %vm336_vm1, %v21539_v51  ;;  %18445 = vmatprep.mubr.msk.f32.mxu1 %vm336_vm1, %v627_v45  ;;  %v628_v51 = vld [vmem:[#allocation2 + $0x10] sm:$0xff]  ;;  %v25325_v45 = vld [vmem:[#allocation39_spill] sm:$0xff] }
 0x101   : > { %18760 = vmatprep.mubr.msk.f32.mxu0 %vm336_vm1, %v21553_v55  ;;  %v3362_v55 = vld [vmem:[#allocation2 + $0x1c1] sm:$0xff] }
 0x103   : > { %18446 = vmatmul.mubr.msk.f32.vlgmr.msra.gmra.mrb[0].mxu1 %vm336_vm1, %v628_v51  ;;  %v25326_v51 = vld [vmem:[#allocation40_spill] sm:$0xff] }
 0x104   : > { %18761 = vmatmul.mubr.msk.f32.gmra.mrb[14].mxu0 %vm336_vm1, %v3354_v47  ;;  %18448 = vmatprep.mubr.msk.f32.mxu1 %vm336_vm1, %v21315_v29  ;;  %v635_v29 = vld [vmem:[#allocation2 + $0xa0] sm:$0xff] }
 0x105   : > { %18763 = vmatprep.mubr.msk.f32.mxu0 %vm336_vm1, %v21566_v59  ;;  %v25309_v59 = vld [vmem:[#allocation21_spill] sm:$0xff]  ;;  %v22156_v47 = vld [vmem:[#allocation2 + $0xe2] sm:$0xff] }
 0x107   : > { %18449 = vmatmul.mubr.msk.f32.gmra.mrb[2].mxu1 %vm336_vm1, %v21317_v30  ;;  %v3370_v30 = vld [vmem:[#allocation2 + $0x261] sm:$0xff] }
 0x108   : > { %18764 = vmatmul.mubr.msk.f32.gmra.mrb[16].mxu0 %vm336_vm1, %v21568_v60  ;;  %18451 = vmatprep.mubr.msk.f32.mxu1 %vm336_vm1, %v21334_v32  ;;  %v643_v32 = vld [vmem:[#allocation2 + $0x140] sm:$0xff] }
 0x109   : > { %18766 = vmatprep.mubr.msk.f32.mxu0 %vm336_vm1, %v21580_v5  ;;  %v667_v60 = vld [vmem:[#allocation2 + $0x320] sm:$0xff] }
 0x10a   : > { %v25310_v5 = vld [vmem:[#allocation22_spill] sm:$0xff] }
 0x10b   : > { %18452 = vmatmul.mubr.msk.f32.gmra.mrb[4].mxu1 %vm336_vm1, %v21336_v33  ;;  %v3378_v33 = vld [vmem:[#allocation2 + $0x301] sm:$0xff] }
 0x10c   : > { %18767 = vmatmul.mubr.msk.f32.gmra.mrb[18].mxu0 %vm336_vm1, %v21582_v6  ;;  %18454 = vmatprep.mubr.msk.f32.mxu1 %vm336_vm1, %v21344_v34  ;;  %v651_v34 = vld [vmem:[#allocation2 + $0x1e0] sm:$0xff]  ;;  %v22061_v6 = vld [vmem:[%s25208_s1 + $0xc] sm:$0x7] }
 0x10d   : > { %18769 = vmatprep.mubr.msk.f32.mxu0 %vm336_vm1, %v21595_v9  ;;  %v25312_v9 = vld [vmem:[#allocation24_spill] sm:$0xff] }
 0x10f   : > { %18455 = vmatmul.mubr.msk.f32.gmra.mrb[6].mxu1 %vm336_vm1, %v21346_v35  ;;  %v25293_v35 = vld [vmem:[#allocation37_spill] sm:$0xff] }
 0x110   : > { %18770 = vmatmul.mubr.msk.f32.gmra.mrb[20].mxu0 %vm336_vm1, %v21597_v11  ;;  %18457 = vmatprep.mubr.msk.f32.mxu1 %vm336_vm1, %v635_v29  ;;  %v25313_v11 = vld [vmem:[#allocation25_spill] sm:$0xff] }
 0x111   : > { %18772 = vmatprep.mubr.msk.f32.mxu0 %vm336_vm1, %v21611_v15  ;;  %v3402_v15 = vld [vmem:[#allocation2 + $0x4e1] sm:$0xff]  ;;  %v22170_v29 = vld [vmem:[#allocation2 + $0x112] sm:$0xff] }
 0x113   : > { %18458 = vmatmul.mubr.msk.f32.gmra.mrb[8].mxu1 %vm336_vm1, %v21359_v43  ;;  %v25294_v43 = vld [vmem:[#allocation8_spill] sm:$0xff] }
 0x114   : > { %18773 = vmatmul.mubr.msk.f32.gmra.mrb[22].mxu0 %vm336_vm1, %v3362_v55  ;;  %18460 = vmatprep.mubr.msk.f32.mxu1 %vm336_vm1, %v21381_v53  ;;  %v25295_v53 = vld [vmem:[#allocation38_spill] sm:$0xff] }
 0x115   : > { %18775 = vmatprep.mubr.msk.f32.mxu0 %vm336_vm1, %v21624_v22  ;;  %v25316_v22 = vld [vmem:[#allocation28_spill] sm:$0xff]  ;;  %v22168_v55 = vld [vmem:[#allocation2 + $0x102] sm:$0xff] }
 0x117   : > { %18461 = vmatmul.mubr.msk.f32.gmra.mrb[10].mxu1 %vm336_vm1, %v21404_v63  ;;  %v25296_v63 = vld [vmem:[#allocation9_spill] sm:$0xff] }
 0x118   : > { %18776 = vmatmul.mubr.msk.f32.gmra.mrb[24].mxu0 %vm336_vm1, %v21626_v23  ;;  %18463 = vmatprep.mubr.msk.f32.mxu1 %vm336_vm1, %v21413_v0  ;;  %v25297_v0 = vld [vmem:[#allocation10_spill] sm:$0xff] }
 0x119   : > { %18778 = vmatprep.mubr.msk.f32.mxu0 %vm336_vm1, %v21638_v56  ;;  %v675_v23 = vld [vmem:[#allocation2 + $0x3c0] sm:$0xff] }
 0x11a   : > { %v22092_v56 = vld [vmem:[#allocation2 + $0x22] sm:$0xff] }
 0x11b   : > { %18464 = vmatmul.mubr.msk.f32.gmra.mrb[12].mxu1 %vm336_vm1, %v21415_v2  ;;  %v25298_v2 = vld [vmem:[#allocation11_spill] sm:$0xff] }
 0x11c   : > { %18779 = vmatmul.mubr.msk.f32.gmra.mrb[26].mxu0 %vm336_vm1, %v21640_v61  ;;  %18466 = vmatprep.mubr.msk.f32.mxu1 %vm336_vm1, %v21421_v3  ;;  %v25299_v3 = vld [vmem:[#allocation12_spill] sm:$0xff] }
 0x11d   : > { %18781 = vmatprep.mubr.msk.f32.mxu0 %vm336_vm1, %v21653_v21  ;;  %v25315_v21 = vld [vmem:[#allocation27_spill] sm:$0xff]  ;;  %v22094_v61 = vld [vmem:[#allocation2 + $0x32] sm:$0xff] }
 0x11f   : > { %18467 = vmatmul.mubr.msk.f32.gmra.mrb[14].mxu1 %vm336_vm1, %v21423_v4  ;;  %v25300_v4 = vld [vmem:[#allocation42_spill] sm:$0xff] }
 0x120   : > { %18782 = vmatmul.mubr.msk.f32.gmra.mrb[28].mxu0 %vm336_vm1, %v21655_v19  ;;  %18469 = vmatprep.mubr.msk.f32.mxu1 %vm336_vm1, %v643_v32  ;;  %v22083_v19 = vld [vmem:[#allocation2 + $0x12] sm:$0xff] }
 0x121   : > { %18784 = vmatprep.mubr.msk.f32.mxu0 %vm336_vm1, %v21669_v14  ;;  %v25314_v14 = vld [vmem:[#allocation26_spill] sm:$0xff]  ;;  %v22176_v32 = vld [vmem:[#allocation2 + $0x4b0] sm:$0xff] }
 0x123   : > { %18470 = vmatmul.mubr.msk.f32.gmra.mrb[16].mxu1 %vm336_vm1, %v21450_v17  ;;  %v3386_v17 = vld [vmem:[#allocation2 + $0x3a1] sm:$0xff] }
 0x124   : > { %18785 = vmatmul.mubr.msk.f32.gmra.mrb[30].mxu0 %vm336_vm1, %v3370_v30  ;;  %18472 = vmatprep.mubr.msk.f32.mxu1 %vm336_vm1, %v21469_v24  ;;  %v25301_v24 = vld [vmem:[#allocation13_spill] sm:$0xff] }
 0x125   : > { %18787 = vmatprep.mubr.msk.f32.mxu0 %vm336_vm1, %v21682_v8  ;;  %v25311_v8 = vld [vmem:[#allocation23_spill] sm:$0xff]  ;;  %v25327_v30 = vld [vmem:[#allocation41_spill] sm:$0xff] }
 0x127   : > { %18473 = vmatmul.mubr.msk.f32.gmra.mrb[18].mxu1 %vm336_vm1, %v21475_v25  ;;  %v25302_v25 = vld [vmem:[#allocation14_spill] sm:$0xff] }
 0x128   : > { %18788 = vmatmul.mubr.msk.f32.gmra.mrb[32].mxu0 %vm336_vm1, %v21685_v62  ;;  %18475 = vmatprep.mubr.msk.f32.mxu1 %vm336_vm1, %v21487_v28  ;;  %v659_v28 = vld [vmem:[#allocation2 + $0x280] sm:$0xff]  ;;  %v16821_v62 = vld [vmem:[%s25208_s1 + $0x8] sm:$0x7] }
 0x129   : > { %18790 = vmatprep.mubr.msk.f32.mxu0 %vm336_vm1, %v21699_v12  ;;  %18541 = vmatprep.subr.msk.mxu1 %vm950_vm0, %v16821_v62  ;;  %v22102_v12 = vld [vmem:[%s25208_s1 + $0x1c] sm:$0x7] }
 0x12a   : > { %18542 = vmatpush3.msk.msra.mxu1 %vm950_vm0, %v16821_v62  ;;  %v22267_v62 = vld [vmem:[#allocation2 + $0x2b2] sm:$0xff] }
 0x12b   : > { %18476 = vmatmul.mubr.msk.f32.gmra.mrb[20].mxu1 %vm336_vm1, %v21491_v36  ;;  %v25303_v36 = vld [vmem:[#allocation15_spill] sm:$0xff]  ;;  %19730 = vmatprep.subr.msk.mxu1 %vm950_vm0, %v22061_v6 }
 0x12c   : > { %18791 = vmatmul.mubr.msk.f32.gmra.mrb[34].mxu0 %vm336_vm1, %v21703_v57  ;;  %18478 = vmatprep.mubr.msk.f32.mxu1 %vm336_vm1, %v21501_v39  ;;  %v25304_v39 = vld [vmem:[#allocation16_spill] sm:$0xff]  ;;  %v25307_v57 = vld [vmem:[#allocation19_spill] sm:$0xff] }
 0x12d   : > { %18793 = vmatprep.mubr.msk.f32.mxu0 %vm336_vm1, %v21717_v38  ;;  %v22110_v38 = vld [vmem:[#allocation2 + $0x42] sm:$0xff] }
 0x12f   : > { %18479 = vmatmul.mubr.msk.f32.gmra.mrb[22].mxu1 %vm336_vm1, %v25294_v43  ;;  %v1919_v43 = vld [vmem:[#allocation2 + $0x2] sm:$0xff] }
 0x130   : > { %18794 = vmatmul.mubr.msk.f32.gmra.mrb[36].mxu0 %vm336_vm1, %v21719_v54  ;;  %18481 = vmatprep.mubr.msk.f32.mxu1 %vm336_vm1, %v651_v34  ;;  %v25306_v54 = vld [vmem:[#allocation18_spill] sm:$0xff] }
 0x131   : > { %18796 = vmatprep.mubr.msk.f32.mxu0 %vm336_vm1, %v21733_v58  ;;  %v25308_v58 = vld [vmem:[#allocation20_spill] sm:$0xff]  ;;  %v4064_v34 = vld [vmem:[#allocation2 + $0x122] sm:$0xff] }
 0x133   : > { %18482 = vmatmul.mubr.msk.f32.gmra.mrb[24].mxu1 %vm336_vm1, %v25296_v63  ;;  %v22195_v63 = vld [vmem:[#allocation2 + $0x172] sm:$0xff] }
 0x134   : > { %18797 = vmatmul.mubr.msk.f32.gmra.mrb[38].mxu0 %vm336_vm1, %v3378_v33  ;;  %18484 = vmatprep.mubr.msk.f32.mxu1 %vm336_vm1, %v25297_v0  ;;  %v22180_v33 = vld [vmem:[#allocation2 + $0x4c0] sm:$0xff] }
 0x135   : > { %18799 = vmatprep.mubr.msk.f32.mxu0 %vm336_vm1, %v25293_v35  ;;  %v22184_v35 = vld [vmem:[#allocation2 + $0x152] sm:$0xff]  ;;  %v4068_v0 = vld [vmem:[#allocation2 + $0x182] sm:$0xff] }
 0x137   : > { %18485 = vmatmul.mubr.msk.f32.gmra.mrb[26].mxu1 %vm336_vm1, %v25298_v2  ;;  %v22203_v2 = vld [vmem:[#allocation2 + $0x192] sm:$0xff] }
 0x138   : > { %18800 = vmatmul.mubr.msk.f32.gmra.mrb[40].mxu0 %vm336_vm1, %v25295_v53  ;;  %18487 = vmatprep.mubr.msk.f32.mxu1 %vm336_vm1, %v25299_v3  ;;  %v4066_v53 = vld [vmem:[#allocation2 + $0x162] sm:$0xff] }
 0x139   : > { %18802 = vmatprep.mubr.msk.f32.mxu0 %vm336_vm1, %v21765_v52  ;;  %v25318_v52 = vld [vmem:[#allocation30_spill] sm:$0xff] }
 0x13a   : > { %v4070_v3 = vld [vmem:[#allocation2 + $0x1a2] sm:$0xff] }
 0x13b   : > { %18488 = vmatmul.mubr.msk.f32.gmra.mrb[28].mxu1 %vm336_vm1, %v25301_v24  ;;  %v22223_v24 = vld [vmem:[#allocation2 + $0x1f2] sm:$0xff] }
 0x13c   : > { %18803 = vmatmul.mubr.msk.f32.gmra.mrb[42].mxu0 %vm336_vm1, %v21767_v40  ;;  %18490 = vmatprep.mubr.msk.f32.mxu1 %vm336_vm1, %v25302_v25  ;;  %v25305_v40 = vld [vmem:[#allocation17_spill] sm:$0xff]  ;;  %v1927_v25 = vld [vmem:[#allocation2 + $0xa2] sm:$0xff] }
 0x13d   : > { %18805 = vmatprep.mubr.msk.f32.mxu0 %vm336_vm1, %v21782_v44  ;;  %v22112_v44 = vld [vmem:[#allocation2 + $0x52] sm:$0xff] }
 0x13f   : > { %18491 = vmatmul.mubr.msk.f32.gmra.mrb[30].mxu1 %vm336_vm1, %v25303_v36  ;;  %v22232_v36 = vld [vmem:[#allocation2 + $0x212] sm:$0xff] }
 0x140   : > { %18806 = vmatmul.mubr.msk.f32.gmra.mrb[44].mxu0 %vm336_vm1, %v25300_v4  ;;  %18493 = vmatprep.mubr.msk.f32.mxu1 %vm336_vm1, %v659_v28  ;;  %v22214_v4 = vld [vmem:[#allocation2 + $0x1b2] sm:$0xff]  ;;  %v4074_v28 = vld [vmem:[#allocation2 + $0x202] sm:$0xff] }
 0x141   : > { %18808 = vmatprep.mubr.msk.f32.mxu0 %vm336_vm1, %v21796_v1  ;;  %v25319_v1 = vld [vmem:[#allocation31_spill] sm:$0xff] }
 0x143   : > { %18494 = vmatmul.mubr.msk.f32.gmra.mrb[32].mxu1 %vm336_vm1, %v25304_v39  ;;  %v4076_v39 = vld [vmem:[#allocation2 + $0x222] sm:$0xff] }
 0x144   : > { %18809 = vmatmul.mubr.msk.f32.gmra.mrb[46].mxu0 %vm336_vm1, %v3386_v17  ;;  %18496 = vmatprep.mubr.msk.f32.mxu1 %vm336_vm1, %v25305_v40  ;;  %v4072_v17 = vld [vmem:[#allocation2 + $0x1c2] sm:$0xff]  ;;  %v22240_v40 = vld [vmem:[#allocation2 + $0x232] sm:$0xff] }
 0x145   : > { %18811 = vmatprep.mubr.msk.f32.mxu0 %vm336_vm1, %v21805_v16  ;;  %v25317_v16 = vld [vmem:[#allocation29_spill] sm:$0xff] }
 0x147   : > { %18497 = vmatmul.mubr.msk.f32.gmra.mrb[34].mxu1 %vm336_vm1, %v25306_v54  ;;  %v4078_v54 = vld [vmem:[#allocation2 + $0x242] sm:$0xff] }
 0x148   : > { %18812 = vmatmul.mubr.msk.f32.gmra.mrb[48].mxu0 %vm336_vm1, %v21814_v48  ;;  %18499 = vmatprep.mubr.msk.f32.mxu1 %vm336_vm1, %v25307_v57  ;;  %v3394_v48 = vld [vmem:[#allocation2 + $0x441] sm:$0xff]  ;;  %v22249_v57 = vld [vmem:[#allocation2 + $0x252] sm:$0xff] }
 0x149   : > { %18814 = vmatprep.mubr.msk.f32.mxu0 %vm336_vm1, %v21826_v10  ;;  %v22126_v10 = vld [vmem:[#allocation2 + $0x72] sm:$0xff] }
 0x14b   : > { %18500 = vmatmul.mubr.msk.f32.gmra.mrb[36].mxu1 %vm336_vm1, %v25308_v58  ;;  %v22258_v58 = vld [vmem:[#allocation2 + $0x292] sm:$0xff] }
 0x14c   : > { %18815 = vmatmul.mubr.msk.f32.gmra.mrb[50].mxu0 %vm336_vm1, %v21830_v13  ;;  %18502 = vmatprep.mubr.msk.f32.mxu1 %vm336_vm1, %v25309_v59  ;;  %v25320_v13 = vld [vmem:[#allocation32_spill] sm:$0xff]  ;;  %v1935_v59 = vld [vmem:[#allocation2 + $0x142] sm:$0xff] }
 0x14d   : > { %18817 = vmatprep.mubr.msk.f32.mxu0 %vm336_vm1, %v21838_v31  ;;  %v25321_v31 = vld [vmem:[#allocation33_spill] sm:$0xff] }
 0x14f   : > { %18503 = vmatmul.mubr.msk.f32.gmra.mrb[38].mxu1 %vm336_vm1, %v25310_v5  ;;  %v4084_v5 = vld [vmem:[#allocation2 + $0x2c2] sm:$0xff] }
 0x150   : > { %18818 = vmatmul.mubr.msk.f32.gmra.mrb[52].mxu0 %vm336_vm1, %v21842_v18  ;;  %18505 = vmatprep.mubr.msk.f32.mxu1 %vm336_vm1, %v667_v60  ;;  %v4056_v18 = vld [vmem:[#allocation2 + $0x82] sm:$0xff] }
 0x151   : > { %18820 = vmatprep.mubr.msk.f32.mxu0 %vm336_vm1, %v21850_v26  ;;  %v22136_v26 = vld [vmem:[#allocation2 + $0xb2] sm:$0xff]  ;;  %v4082_v60 = vld [vmem:[#allocation2 + $0x2a2] sm:$0xff] }
 0x153   : > { %18506 = vmatmul.mubr.msk.f32.gmra.mrb[40].mxu1 %vm336_vm1, %v25311_v8  ;;  %v4086_v8 = vld [vmem:[#allocation2 + $0x2e2] sm:$0xff] }
 0x154   : > { %18821 = vmatmul.mubr.msk.f32.gmra.mrb[54].mxu0 %vm336_vm1, %v3394_v48  ;;  %18508 = vmatprep.mubr.msk.f32.mxu1 %vm336_vm1, %v25312_v9  ;;  %v4080_v48 = vld [vmem:[#allocation2 + $0x262] sm:$0xff]  ;;  %v22283_v9 = vld [vmem:[#allocation2 + $0x2f2] sm:$0xff] }
 0x155   : > { %18823 = vmatprep.mubr.msk.f32.mxu0 %vm336_vm1, %v21858_v27  ;;  %v25322_v27 = vld [vmem:[#allocation34_spill] sm:$0xff] }
 0x157   : > { %18509 = vmatmul.mubr.msk.f32.gmra.mrb[42].mxu1 %vm336_vm1, %v25313_v11  ;;  %v4088_v11 = vld [vmem:[#allocation2 + $0x302] sm:$0xff] }
 0x158   : > { %18824 = vmatmul.mubr.msk.f32.gmra.mrb[56].mxu0 %vm336_vm1, %v21862_v37  ;;  %18511 = vmatprep.mubr.msk.f32.mxu1 %vm336_vm1, %v25314_v14  ;;  %v25323_v37 = vld [vmem:[#allocation35_spill] sm:$0xff]  ;;  %v22291_v14 = vld [vmem:[#allocation2 + $0x332] sm:$0xff] }
 0x159   : > { %18826 = vmatprep.mubr.msk.f32.mxu0 %vm336_vm1, %v21870_v41  ;;  %v683_v41 = vld [vmem:[#allocation2 + $0x460] sm:$0xff] }
 0x15b   : > { %18512 = vmatmul.mubr.msk.f32.gmra.mrb[44].mxu1 %vm336_vm1, %v25315_v21  ;;  %v22299_v21 = vld [vmem:[#allocation2 + $0x352] sm:$0xff] }
 0x15c   : > { %18827 = vmatmul.mubr.msk.f32.gmra.mrb[58].mxu0 %vm336_vm1, %v21874_v20  ;;  %18514 = vmatprep.mubr.msk.f32.mxu1 %vm336_vm1, %v25316_v22  ;;  %v22145_v20 = vld [vmem:[#allocation2 + $0xc2] sm:$0xff] }
 0x15d   : > { %18829 = vmatprep.mubr.msk.f32.mxu0 %vm336_vm1, %v21882_v42  ;;  %v22147_v42 = vld [vmem:[#allocation2 + $0xd2] sm:$0xff]  ;;  %v4092_v22 = vld [vmem:[#allocation2 + $0x362] sm:$0xff] }
 0x15f   : > { %18515 = vmatmul.mubr.msk.f32.gmra.mrb[46].mxu1 %vm336_vm1, %v25317_v16  ;;  %v4096_v16 = vld [vmem:[#allocation2 + $0x3a2] sm:$0xff] }
 0x160   : > { %18830 = vmatmul.mubr.msk.f32.gmra.mrb[60].mxu0 %vm336_vm1, %v21886_v46  ;;  %18517 = vmatprep.mubr.msk.f32.mxu1 %vm336_vm1, %v675_v23  ;;  %v25324_v46 = vld [vmem:[#allocation36_spill] sm:$0xff] }
 0x161   : > { %18832 = vmatprep.mubr.msk.f32.mxu0 %vm336_vm1, %v21894_v50  ;;  %v22158_v50 = vld [vmem:[#allocation2 + $0xf2] sm:$0xff] }
 0x162   : > { %v22307_v23 = vld [vmem:[#allocation2 + $0x372] sm:$0xff] }
 0x163   : > { %18518 = vmatmul.mubr.msk.f32.gmra.mrb[48].mxu1 %vm336_vm1, %v25318_v52  ;;  %v4098_v52 = vld [vmem:[#allocation2 + $0x3e2] sm:$0xff] }
 0x164   : > { %18833 = vmatmul.mubr.msk.f32.gmra.mrb[62].mxu0 %vm336_vm1, %v3402_v15  ;;  %18520 = vmatprep.mubr.msk.f32.mxu1 %vm336_vm1, %v25319_v1  ;;  %v1943_v15 = vld [vmem:[#allocation2 + $0x1e2] sm:$0xff]  ;;  %v22331_v1 = vld [vmem:[#allocation2 + $0x3f2] sm:$0xff] }
 0x165   : > { %18837 = vmatprep.mubr.msk.f32.mxu0 %vm336_vm1, %v22083_v19 }
 0x167   : > { %18521 = vmatmul.mubr.msk.f32.gmra.mrb[50].mxu1 %vm336_vm1, %v25320_v13  ;;  %v4102_v13 = vld [vmem:[#allocation2 + $0x422] sm:$0xff] }
 0x168   : > { %18838 = vmatmul.mubr.msk.f32.vlgmr.msra.gmra.mrb[0].mxu0 %vm336_vm1, %v22092_v56  ;;  %18523 = vmatprep.mubr.msk.f32.mxu1 %vm336_vm1, %v25321_v31  ;;  %v22347_v31 = vld [vmem:[#allocation2 + $0x432] sm:$0xff] }
 0x169   : > { %18934 = vmatpush3.msk.msra.mxu0 %vm950_vm0, %v21810_v49  ;;  %18840 = vmatprep.mubr.msk.f32.mxu0 %vm336_vm1, %v22094_v61  ;;  %v22124_v49 = vld [vmem:[#allocation2 + $0x62] sm:$0xff] }
 0x16a   : > { %19031 = vmatprep.subr.msk.mxu0 %vm950_vm0, %v22102_v12 }
 0x16b   : > { %18524 = vmatmul.mubr.msk.f32.gmra.mrb[52].mxu1 %vm336_vm1, %v25322_v27  ;;  %v1959_v27 = vld [vmem:[#allocation2 + $0x322] sm:$0xff] }
 0x16c   : > { %18841 = vmatmul.mubr.msk.f32.gmra.mrb[2].mxu0 %vm336_vm1, %v22110_v38  ;;  %18526 = vmatprep.mubr.msk.f32.mxu1 %vm336_vm1, %v25323_v37  ;;  %v4106_v37 = vld [vmem:[#allocation2 + $0x482] sm:$0xff] }
 0x16d   : > { %18843 = vmatprep.mubr.msk.f32.mxu0 %vm336_vm1, %v22112_v44 }
 0x16f   : > { %18527 = vmatmul.mubr.msk.f32.gmra.mrb[54].mxu1 %vm336_vm1, %v25324_v46  ;;  %v4110_v46 = vld [vmem:[#allocation2 + $0x4c2] sm:$0xff] }
 0x170   : > { %18844 = vmatmul.mubr.msk.f32.gmra.mrb[4].mxu0 %vm336_vm1, %v22124_v49  ;;  %18529 = vmatprep.mubr.msk.f32.mxu1 %vm336_vm1, %v683_v41  ;;  %v22363_v41 = vld [vmem:[#allocation2 + $0x492] sm:$0xff] }
 0x171   : > { %18846 = vmatprep.mubr.msk.f32.mxu0 %vm336_vm1, %v22126_v10 }
 0x173   : > { %18530 = vmatmul.mubr.msk.f32.gmra.mrb[56].mxu1 %vm336_vm1, %v25325_v45  ;;  %v4760_v45 = vld [vmem:[#allocation2 + $0x20] sm:$0xff] }
 0x174   : > { %18847 = vmatmul.mubr.msk.f32.gmra.mrb[6].mxu0 %vm336_vm1, %v4056_v18  ;;  %18532 = vmatprep.mubr.msk.f32.mxu1 %vm336_vm1, %v25326_v51  ;;  %v4104_v18 = vld [vmem:[#allocation2 + $0x442] sm:$0xff] }
 0x175   : > { %18849 = vmatprep.mubr.msk.f32.mxu0 %vm336_vm1, %v22136_v26  ;;  %v1967_v51 = vld [vmem:[#allocation2 + $0x3c2] sm:$0xff] }
 0x177   : > { %18533 = vmatmul.mubr.msk.f32.gmra.mrb[58].mxu1 %vm336_vm1, %v25327_v30  ;;  %v22398_v30 = vld [vmem:[%s25208_s1 + $0x20] sm:$0x7] }
 0x178   : > { %18850 = vmatmul.mubr.msk.f32.gmra.mrb[8].mxu0 %vm336_vm1, %v22145_v20  ;;  %18535 = vmatprep.mubr.msk.f32.mxu1 %vm336_vm1, %v21790_v7  ;;  %v22190_v7 = vld [vmem:[#allocation2 + $0x4d0] sm:$0xff] }
 0x179   : > { %18852 = vmatprep.mubr.msk.f32.mxu0 %vm336_vm1, %v22147_v42 }
 0x17b   : > { %18536 = vmatmul.mubr.msk.f32.gmra.mrb[60].mxu1 %vm336_vm1, %v22176_v32 }
 0x17c   : > { %18853 = vmatmul.mubr.msk.f32.gmra.mrb[10].mxu0 %vm336_vm1, %v22156_v47  ;;  %18538 = vmatprep.mubr.msk.f32.mxu1 %vm336_vm1, %v22180_v33 }
 0x17d   : > { %18855 = vmatprep.mubr.msk.f32.mxu0 %vm336_vm1, %v22158_v50 }
 0x17f   : > { %18539 = vmatmul.mubr.msk.f32.gmra.mrb[62].mxu1 %vm336_vm1, %v22190_v7 }
 0x180   : > { %18856 = vmatmul.mubr.msk.f32.gmra.mrb[12].mxu0 %vm336_vm1, %v22168_v55  ;;  %18543 = vmatprep.mubr.msk.f32.mxu1 %vm336_vm1, %v1919_v43  ;;  %v4765_v43 = vld [vmem:[#allocation2 + $0x70] sm:$0xff] }
 0x181   : > { %18858 = vmatprep.mubr.msk.f32.mxu0 %vm336_vm1, %v22170_v29 }
 0x183   : > { %18544 = vmatmul.mubr.msk.f32.vlgmr.msra.gmra.mrb[0].mxu1 %vm336_vm1, %v22083_v19  ;;  %v4090_v19 = vld [vmem:[#allocation2 + $0x342] sm:$0xff] }
 0x184   : > { %18859 = vmatmul.mubr.msk.f32.gmra.mrb[14].mxu0 %vm336_vm1, %v4064_v34  ;;  %18546 = vmatprep.mubr.msk.f32.mxu1 %vm336_vm1, %v22092_v56  ;;  %v4094_v56 = vld [vmem:[#allocation2 + $0x382] sm:$0xff]  ;;  %v4763_v34 = vld [vmem:[#allocation2 + $0x50] sm:$0xff] }
 0x185   : > { %18861 = vmatprep.mubr.msk.f32.mxu0 %vm336_vm1, %v22184_v35  ;;  %19731 = vmatpush3.msk.msra.mxu1 %vm950_vm0, %v22061_v6  ;;  %v22275_v6 = vld [vmem:[#allocation2 + $0x2d2] sm:$0xff] }
 0x187   : > { %18547 = vmatmul.mubr.msk.f32.gmra.mrb[2].mxu1 %vm336_vm1, %v22094_v61  ;;  %v22315_v61 = vld [vmem:[#allocation2 + $0x392] sm:$0xff] }
 0x188   : > { %18862 = vmatmul.mubr.msk.f32.gmra.mrb[16].mxu0 %vm336_vm1, %v4066_v53  ;;  %18549 = vmatprep.mubr.msk.f32.mxu1 %vm336_vm1, %v22110_v38  ;;  %v22323_v38 = vld [vmem:[#allocation2 + $0x3d2] sm:$0xff] }
 0x189   : > { %18864 = vmatprep.mubr.msk.f32.mxu0 %vm336_vm1, %v22195_v63 }
 0x18b   : > { %18550 = vmatmul.mubr.msk.f32.gmra.mrb[4].mxu1 %vm336_vm1, %v22112_v44  ;;  %v1951_v44 = vld [vmem:[#allocation2 + $0x282] sm:$0xff] }
 0x18c   : > { %18865 = vmatmul.mubr.msk.f32.gmra.mrb[18].mxu0 %vm336_vm1, %v4068_v0  ;;  %18552 = vmatprep.mubr.msk.f32.mxu1 %vm336_vm1, %v22124_v49  ;;  %v4100_v49 = vld [vmem:[#allocation2 + $0x402] sm:$0xff] }
 0x18d   : > { %18867 = vmatprep.mubr.msk.f32.mxu0 %vm336_vm1, %v22203_v2 }
 0x18f   : > { %18553 = vmatmul.mubr.msk.f32.gmra.mrb[6].mxu1 %vm336_vm1, %v22126_v10  ;;  %v22339_v10 = vld [vmem:[#allocation2 + $0x412] sm:$0xff] }
 0x190   : > { %18868 = vmatmul.mubr.msk.f32.gmra.mrb[20].mxu0 %vm336_vm1, %v4070_v3  ;;  %18555 = vmatprep.mubr.msk.f32.mxu1 %vm336_vm1, %v1927_v25  ;;  %v4774_v25 = vld [vmem:[#allocation2 + $0x120] sm:$0xff] }
 0x191   : > { %18870 = vmatprep.mubr.msk.f32.mxu0 %vm336_vm1, %v22214_v4 }
 0x193   : > { %18556 = vmatmul.mubr.msk.f32.gmra.mrb[8].mxu1 %vm336_vm1, %v22136_v26  ;;  %v22355_v26 = vld [vmem:[#allocation2 + $0x472] sm:$0xff] }
 0x194   : > { %18871 = vmatmul.mubr.msk.f32.gmra.mrb[22].mxu0 %vm336_vm1, %v4072_v17  ;;  %18558 = vmatprep.mubr.msk.f32.mxu1 %vm336_vm1, %v22145_v20  ;;  %v4108_v20 = vld [vmem:[#allocation2 + $0x4a2] sm:$0xff] }
 0x195   : > { %18873 = vmatprep.mubr.msk.f32.mxu0 %vm336_vm1, %v22223_v24  ;;  %v4772_v17 = vld [vmem:[#allocation2 + $0x100] sm:$0xff] }
 0x197   : > { %18559 = vmatmul.mubr.msk.f32.gmra.mrb[10].mxu1 %vm336_vm1, %v22147_v42  ;;  %v22371_v42 = vld [vmem:[#allocation2 + $0x4b2] sm:$0xff] }
 0x198   : > { %18874 = vmatmul.mubr.msk.f32.gmra.mrb[24].mxu0 %vm336_vm1, %v4074_v28  ;;  %18561 = vmatprep.mubr.msk.f32.mxu1 %vm336_vm1, %v22156_v47  ;;  %v22379_v47 = vld [vmem:[#allocation2 + $0x4d2] sm:$0xff] }
 0x199   : > { %18876 = vmatprep.mubr.msk.f32.mxu0 %vm336_vm1, %v22232_v36 }
 0x19b   : > { %18562 = vmatmul.mubr.msk.f32.gmra.mrb[12].mxu1 %vm336_vm1, %v22158_v50  ;;  %v4112_v50 = vld [vmem:[#allocation2 + $0x4e2] sm:$0xff] }
 0x19c   : > { %18877 = vmatmul.mubr.msk.f32.gmra.mrb[26].mxu0 %vm336_vm1, %v4076_v39  ;;  %18564 = vmatprep.mubr.msk.f32.mxu1 %vm336_vm1, %v22168_v55  ;;  %v4761_v55 = vld [vmem:[#allocation2 + $0x30] sm:$0xff] }
 0x19d   : > { %18879 = vmatprep.mubr.msk.f32.mxu0 %vm336_vm1, %v22240_v40 }
 0x19f   : > { %18565 = vmatmul.mubr.msk.f32.gmra.mrb[14].mxu1 %vm336_vm1, %v22170_v29  ;;  %v4762_v29 = vld [vmem:[#allocation2 + $0x40] sm:$0xff] }
 0x1a0   : > { %18880 = vmatmul.mubr.msk.f32.gmra.mrb[28].mxu0 %vm336_vm1, %v4078_v54  ;;  %18567 = vmatprep.mubr.msk.f32.mxu1 %vm336_vm1, %v1935_v59  ;;  %v4782_v59 = vld [vmem:[#allocation2 + $0x1c0] sm:$0xff] }
 0x1a1   : > { %18882 = vmatprep.mubr.msk.f32.mxu0 %vm336_vm1, %v22249_v57 }
 0x1a3   : > { %18568 = vmatmul.mubr.msk.f32.gmra.mrb[16].mxu1 %vm336_vm1, %v22184_v35  ;;  %v4764_v35 = vld [vmem:[#allocation2 + $0x60] sm:$0xff] }
 0x1a4   : > { %18883 = vmatmul.mubr.msk.f32.gmra.mrb[30].mxu0 %vm336_vm1, %v4080_v48  ;;  %18570 = vmatprep.mubr.msk.f32.mxu1 %vm336_vm1, %v4066_v53  ;;  %v4766_v53 = vld [vmem:[#allocation2 + $0x80] sm:$0xff] }
 0x1a5   : > { %18885 = vmatprep.mubr.msk.f32.mxu0 %vm336_vm1, %v22258_v58  ;;  %v22451_v48 = vld [vmem:[#allocation2 + $0x4e0] sm:$0xff] }
 0x1a7   : > { %18571 = vmatmul.mubr.msk.f32.gmra.mrb[18].mxu1 %vm336_vm1, %v22195_v63  ;;  %v4768_v63 = vld [vmem:[#allocation2 + $0xc0] sm:$0xff] }
 0x1a8   : > { %18886 = vmatmul.mubr.msk.f32.gmra.mrb[32].mxu0 %vm336_vm1, %v4082_v60  ;;  %18573 = vmatprep.mubr.msk.f32.mxu1 %vm336_vm1, %v4068_v0  ;;  %v1975_v0 = vld [vmem:[#allocation2 + $0x462] sm:$0xff] }
 0x1a9   : > { %18888 = vmatprep.mubr.msk.f32.mxu0 %vm336_vm1, %v22267_v62 }
 0x1ab   : > { %18574 = vmatmul.mubr.msk.f32.gmra.mrb[20].mxu1 %vm336_vm1, %v22203_v2  ;;  %v4769_v2 = vld [vmem:[#allocation2 + $0xd0] sm:$0xff] }
 0x1ac   : > { %18889 = vmatmul.mubr.msk.f32.gmra.mrb[34].mxu0 %vm336_vm1, %v4084_v5  ;;  %18576 = vmatprep.mubr.msk.f32.mxu1 %vm336_vm1, %v4070_v3  ;;  %v4770_v3 = vld [vmem:[#allocation2 + $0xe0] sm:$0xff] }
 0x1ad   : > { %18891 = vmatprep.mubr.msk.f32.mxu0 %vm336_vm1, %v22275_v6 }
 0x1af   : > { %18577 = vmatmul.mubr.msk.f32.gmra.mrb[22].mxu1 %vm336_vm1, %v22214_v4  ;;  %v4771_v4 = vld [vmem:[#allocation2 + $0xf0] sm:$0xff] }
 0x1b0   : > { %18892 = vmatmul.mubr.msk.f32.gmra.mrb[36].mxu0 %vm336_vm1, %v4086_v8  ;;  %18579 = vmatprep.mubr.msk.f32.mxu1 %vm336_vm1, %v1943_v15  ;;  %v4791_v15 = vld [vmem:[#allocation2 + $0x270] sm:$0xff] }
 0x1b1   : > { %18894 = vmatprep.mubr.msk.f32.mxu0 %vm336_vm1, %v22283_v9 }
 0x1b3   : > { %18580 = vmatmul.mubr.msk.f32.gmra.mrb[24].mxu1 %vm336_vm1, %v22223_v24  ;;  %v4773_v24 = vld [vmem:[#allocation2 + $0x110] sm:$0xff] }
 0x1b4   : > { %18895 = vmatmul.mubr.msk.f32.gmra.mrb[38].mxu0 %vm336_vm1, %v4088_v11  ;;  %18582 = vmatprep.mubr.msk.f32.mxu1 %vm336_vm1, %v4074_v28  ;;  %v4775_v28 = vld [vmem:[#allocation2 + $0x130] sm:$0xff] }
 0x1b5   : > { %18897 = vmatprep.mubr.msk.f32.mxu0 %vm336_vm1, %v22291_v14  ;;  %v4789_v11 = vld [vmem:[#allocation2 + $0x250] sm:$0xff] }
 0x1b7   : > { %18583 = vmatmul.mubr.msk.f32.gmra.mrb[26].mxu1 %vm336_vm1, %v22232_v36  ;;  %v4776_v36 = vld [vmem:[#allocation2 + $0x160] sm:$0xff] }
 0x1b8   : > { %18898 = vmatmul.mubr.msk.f32.gmra.mrb[40].mxu0 %vm336_vm1, %v4090_v19  ;;  %18585 = vmatprep.mubr.msk.f32.mxu1 %vm336_vm1, %v4076_v39  ;;  %v4777_v39 = vld [vmem:[#allocation2 + $0x170] sm:$0xff] }
 0x1b9   : > { %18900 = vmatprep.mubr.msk.f32.mxu0 %vm336_vm1, %v22299_v21 }
 0x1bb   : > { %18586 = vmatmul.mubr.msk.f32.gmra.mrb[28].mxu1 %vm336_vm1, %v22240_v40  ;;  %v4778_v40 = vld [vmem:[#allocation2 + $0x180] sm:$0xff] }
 0x1bc   : > { %18901 = vmatmul.mubr.msk.f32.gmra.mrb[42].mxu0 %vm336_vm1, %v4092_v22  ;;  %18588 = vmatprep.mubr.msk.f32.mxu1 %vm336_vm1, %v4078_v54  ;;  %v4779_v54 = vld [vmem:[#allocation2 + $0x190] sm:$0xff] }
 0x1bd   : > { %18903 = vmatprep.mubr.msk.f32.mxu0 %vm336_vm1, %v22307_v23 }
 0x1bf   : > { %18589 = vmatmul.mubr.msk.f32.gmra.mrb[30].mxu1 %vm336_vm1, %v22249_v57  ;;  %v4780_v57 = vld [vmem:[#allocation2 + $0x1a0] sm:$0xff] }
 0x1c0   : > { %18904 = vmatmul.mubr.msk.f32.gmra.mrb[44].mxu0 %vm336_vm1, %v4094_v56  ;;  %18591 = vmatprep.mubr.msk.f32.mxu1 %vm336_vm1, %v1951_v44  ;;  %v4800_v44 = vld [vmem:[#allocation2 + $0x340] sm:$0xff] }
 0x1c1   : > { %18906 = vmatprep.mubr.msk.f32.mxu0 %vm336_vm1, %v22315_v61 }
 0x1c3   : > { %18592 = vmatmul.mubr.msk.f32.gmra.mrb[32].mxu1 %vm336_vm1, %v22258_v58  ;;  %v4781_v58 = vld [vmem:[#allocation2 + $0x1b0] sm:$0xff] }
 0x1c4   : > { %18907 = vmatmul.mubr.msk.f32.gmra.mrb[46].mxu0 %vm336_vm1, %v4096_v16  ;;  %18594 = vmatprep.mubr.msk.f32.mxu1 %vm336_vm1, %v4082_v60  ;;  %v4783_v60 = vld [vmem:[#allocation2 + $0x1d0] sm:$0xff]  ;;  %v4798_v16 = vld [vmem:[#allocation2 + $0x300] sm:$0xff] }
 0x1c5   : > { %18909 = vmatprep.mubr.msk.f32.mxu0 %vm336_vm1, %v22323_v38 }
 0x1c7   : > { %18595 = vmatmul.mubr.msk.f32.gmra.mrb[34].mxu1 %vm336_vm1, %v22267_v62  ;;  %v4784_v62 = vld [vmem:[#allocation2 + $0x200] sm:$0xff] }
 0x1c8   : > { %18910 = vmatmul.mubr.msk.f32.gmra.mrb[48].mxu0 %vm336_vm1, %v4098_v52  ;;  %18597 = vmatprep.mubr.msk.f32.mxu1 %vm336_vm1, %v4084_v5  ;;  %v4785_v5 = vld [vmem:[#allocation2 + $0x210] sm:$0xff] }
 0x1c9   : > { %18912 = vmatprep.mubr.msk.f32.mxu0 %vm336_vm1, %v22331_v1 }
 0x1cb   : > { %18598 = vmatmul.mubr.msk.f32.gmra.mrb[36].mxu1 %vm336_vm1, %v22275_v6  ;;  %v4786_v6 = vld [vmem:[#allocation2 + $0x220] sm:$0xff] }
 0x1cc   : > { %18913 = vmatmul.mubr.msk.f32.gmra.mrb[50].mxu0 %vm336_vm1, %v4100_v49  ;;  %18600 = vmatprep.mubr.msk.f32.mxu1 %vm336_vm1, %v4086_v8  ;;  %v4787_v8 = vld [vmem:[#allocation2 + $0x230] sm:$0xff] }
 0x1cd   : > { %18915 = vmatprep.mubr.msk.f32.mxu0 %vm336_vm1, %v22339_v10 }
 0x1cf   : > { %18601 = vmatmul.mubr.msk.f32.gmra.mrb[38].mxu1 %vm336_vm1, %v22283_v9  ;;  %v4788_v9 = vld [vmem:[#allocation2 + $0x240] sm:$0xff] }
 0x1d0   : > { %18916 = vmatmul.mubr.msk.f32.gmra.mrb[52].mxu0 %vm336_vm1, %v4102_v13  ;;  %18603 = vmatprep.mubr.msk.f32.mxu1 %vm336_vm1, %v1959_v27  ;;  %v4809_v27 = vld [vmem:[#allocation2 + $0x3f0] sm:$0xff] }
 0x1d1   : > { %18918 = vmatprep.mubr.msk.f32.mxu0 %vm336_vm1, %v22347_v31 }
 0x1d3   : > { %18604 = vmatmul.mubr.msk.f32.gmra.mrb[40].mxu1 %vm336_vm1, %v22291_v14  ;;  %v4790_v14 = vld [vmem:[#allocation2 + $0x260] sm:$0xff] }
 0x1d4   : > { %18919 = vmatmul.mubr.msk.f32.gmra.mrb[54].mxu0 %vm336_vm1, %v4104_v18  ;;  %18606 = vmatprep.mubr.msk.f32.mxu1 %vm336_vm1, %v4090_v19  ;;  %v4792_v19 = vld [vmem:[#allocation2 + $0x2a0] sm:$0xff]  ;;  %v4807_v18 = vld [vmem:[#allocation2 + $0x3b0] sm:$0xff] }
 0x1d5   : > { %18921 = vmatprep.mubr.msk.f32.mxu0 %vm336_vm1, %v22355_v26 }
 0x1d7   : > { %18607 = vmatmul.mubr.msk.f32.gmra.mrb[42].mxu1 %vm336_vm1, %v22299_v21  ;;  %v4793_v21 = vld [vmem:[#allocation2 + $0x2b0] sm:$0xff] }
 0x1d8   : > { %18922 = vmatmul.mubr.msk.f32.gmra.mrb[56].mxu0 %vm336_vm1, %v4106_v37  ;;  %18609 = vmatprep.mubr.msk.f32.mxu1 %vm336_vm1, %v4092_v22  ;;  %v4794_v22 = vld [vmem:[#allocation2 + $0x2c0] sm:$0xff] }
 0x1d9   : > { %18924 = vmatprep.mubr.msk.f32.mxu0 %vm336_vm1, %v22363_v41 }
 0x1db   : > { %18610 = vmatmul.mubr.msk.f32.gmra.mrb[44].mxu1 %vm336_vm1, %v22307_v23  ;;  %v4795_v23 = vld [vmem:[#allocation2 + $0x2d0] sm:$0xff] }
 0x1dc   : > { %18925 = vmatmul.mubr.msk.f32.gmra.mrb[58].mxu0 %vm336_vm1, %v4108_v20  ;;  %18612 = vmatprep.mubr.msk.f32.mxu1 %vm336_vm1, %v4094_v56  ;;  %v4796_v56 = vld [vmem:[#allocation2 + $0x2e0] sm:$0xff] }
 0x1dd   : > { %18927 = vmatprep.mubr.msk.f32.mxu0 %vm336_vm1, %v22371_v42 }
 0x1df   : > { %18613 = vmatmul.mubr.msk.f32.gmra.mrb[46].mxu1 %vm336_vm1, %v22315_v61  ;;  %v4797_v61 = vld [vmem:[#allocation2 + $0x2f0] sm:$0xff] }
 0x1e0   : > { %18928 = vmatmul.mubr.msk.f32.gmra.mrb[60].mxu0 %vm336_vm1, %v4110_v46  ;;  %18615 = vmatprep.mubr.msk.f32.mxu1 %vm336_vm1, %v1967_v51  ;;  %v4818_v51 = vld [vmem:[#allocation2 + $0x4a0] sm:$0xff] }
 0x1e1   : > { %18930 = vmatprep.mubr.msk.f32.mxu0 %vm336_vm1, %v22379_v47 }
 0x1e3   : > { %18616 = vmatmul.mubr.msk.f32.gmra.mrb[48].mxu1 %vm336_vm1, %v22323_v38  ;;  %v4799_v38 = vld [vmem:[#allocation2 + $0x310] sm:$0xff] }
 0x1e4   : > { %18931 = vmatmul.mubr.msk.f32.gmra.mrb[62].mxu0 %vm336_vm1, %v4112_v50  ;;  %18618 = vmatprep.mubr.msk.f32.mxu1 %vm336_vm1, %v4098_v52  ;;  %v4801_v52 = vld [vmem:[#allocation2 + $0x350] sm:$0xff]  ;;  %v4816_v50 = vld [vmem:[#allocation2 + $0x480] sm:$0xff] }
 0x1e5   : > { %18935 = vmatprep.mubr.msk.f32.mxu0 %vm336_vm1, %v4760_v45  ;;  %v4817_v45 = vld [vmem:[#allocation2 + $0x490] sm:$0xff] }
 0x1e7   : > { %18619 = vmatmul.mubr.msk.f32.gmra.mrb[50].mxu1 %vm336_vm1, %v22331_v1  ;;  %v4802_v1 = vld [vmem:[#allocation2 + $0x360] sm:$0xff] }
 0x1e8   : > { %18936 = vmatmul.mubr.msk.f32.vlgmr.msra.gmra.mrb[0].mxu0 %vm336_vm1, %v4761_v55  ;;  %18621 = vmatprep.mubr.msk.f32.mxu1 %vm336_vm1, %v4100_v49  ;;  %v4803_v49 = vld [vmem:[#allocation2 + $0x370] sm:$0xff] }
 0x1e9   : > { %19032 = vmatpush3.msk.msra.mxu0 %vm950_vm0, %v22102_v12  ;;  %18938 = vmatprep.mubr.msk.f32.mxu0 %vm336_vm1, %v4762_v29  ;;  %v4767_v12 = vld [vmem:[#allocation2 + $0x90] sm:$0xff] }
 0x1ea   : > { %19129 = vmatprep.subr.msk.mxu0 %vm950_vm0, %v22398_v30 }
 0x1eb   : > { %18622 = vmatmul.mubr.msk.f32.gmra.mrb[52].mxu1 %vm336_vm1, %v22339_v10  ;;  %v4804_v10 = vld [vmem:[#allocation2 + $0x380] sm:$0xff] }
 0x1ec   : > { %18939 = vmatmul.mubr.msk.f32.gmra.mrb[2].mxu0 %vm336_vm1, %v4763_v34  ;;  %18624 = vmatprep.mubr.msk.f32.mxu1 %vm336_vm1, %v4102_v13  ;;  %v4805_v13 = vld [vmem:[#allocation2 + $0x390] sm:$0xff] }
 0x1ed   : > { %18941 = vmatprep.mubr.msk.f32.mxu0 %vm336_vm1, %v4764_v35  ;;  %v4823_v34 = vld [vmem:[#allocation2 + $0x4f0] sm:$0xff] }
 0x1ef   : > { %18625 = vmatmul.mubr.msk.f32.gmra.mrb[54].mxu1 %vm336_vm1, %v22347_v31  ;;  %v4806_v31 = vld [vmem:[#allocation2 + $0x3a0] sm:$0xff] }
 0x1f0   : > { %18942 = vmatmul.mubr.msk.f32.gmra.mrb[4].mxu0 %vm336_vm1, %v4765_v43  ;;  %18627 = vmatprep.mubr.msk.f32.mxu1 %vm336_vm1, %v1975_v0  ;;  %v5470_v43 = vld [vmem:[#allocation2 + $0x21] sm:$0xff] }
 0x1f1   : > { %18944 = vmatprep.mubr.msk.f32.mxu0 %vm336_vm1, %v4766_v53 }
 0x1f3   : > { %18628 = vmatmul.mubr.msk.f32.gmra.mrb[56].mxu1 %vm336_vm1, %v22355_v26  ;;  %v4808_v26 = vld [vmem:[#allocation2 + $0x3e0] sm:$0xff] }
 0x1f4   : > { %18945 = vmatmul.mubr.msk.f32.gmra.mrb[6].mxu0 %vm336_vm1, %v4767_v12  ;;  %18630 = vmatprep.mubr.msk.f32.mxu1 %vm336_vm1, %v4106_v37  ;;  %v4810_v37 = vld [vmem:[#allocation2 + $0x400] sm:$0xff] }
 0x1f5   : > { %18947 = vmatprep.mubr.msk.f32.mxu0 %vm336_vm1, %v4768_v63  ;;  %v5472_v12 = vld [vmem:[#allocation2 + $0x41] sm:$0xff] }
 0x1f7   : > { %18631 = vmatmul.mubr.msk.f32.gmra.mrb[58].mxu1 %vm336_vm1, %v22363_v41  ;;  %v4811_v41 = vld [vmem:[#allocation2 + $0x410] sm:$0xff] }
 0x1f8   : > { %18948 = vmatmul.mubr.msk.f32.gmra.mrb[8].mxu0 %vm336_vm1, %v4769_v2  ;;  %18633 = vmatprep.mubr.msk.f32.mxu1 %vm336_vm1, %v4108_v20  ;;  %v4812_v20 = vld [vmem:[#allocation2 + $0x420] sm:$0xff] }
 0x1f9   : > { %18950 = vmatprep.mubr.msk.f32.mxu0 %vm336_vm1, %v4770_v3  ;;  %v5474_v2 = vld [vmem:[#allocation2 + $0x61] sm:$0xff] }
 0x1fb   : > { %18634 = vmatmul.mubr.msk.f32.gmra.mrb[60].mxu1 %vm336_vm1, %v22371_v42  ;;  %v4813_v42 = vld [vmem:[#allocation2 + $0x430] sm:$0xff] }
 0x1fc   : > { %18951 = vmatmul.mubr.msk.f32.gmra.mrb[10].mxu0 %vm336_vm1, %v4771_v4  ;;  %18636 = vmatprep.mubr.msk.f32.mxu1 %vm336_vm1, %v4110_v46  ;;  %v4814_v46 = vld [vmem:[#allocation2 + $0x440] sm:$0xff]  ;;  %v5475_v4 = vld [vmem:[#allocation2 + $0x71] sm:$0xff] }
 0x1fd   : > { %18953 = vmatprep.mubr.msk.f32.mxu0 %vm336_vm1, %v4772_v17 }
 0x1ff   : > { %18637 = vmatmul.mubr.msk.f32.gmra.mrb[62].mxu1 %vm336_vm1, %v22379_v47  ;;  %v4815_v47 = vld [vmem:[#allocation2 + $0x450] sm:$0xff] }
 0x200   : > { %18954 = vmatmul.mubr.msk.f32.gmra.mrb[12].mxu0 %vm336_vm1, %v4773_v24  ;;  %18731 = vmatprep.mubr.msk.f32.mxu1 %vm336_vm1, %v22176_v32  ;;  %v5476_v24 = vld [vmem:[#allocation2 + $0x81] sm:$0xff] }
 0x201   : > { %18956 = vmatprep.mubr.msk.f32.mxu0 %vm336_vm1, %v4774_v25 }
 0x203   : > { %18732 = vmatmul.mubr.msk.f32.vlgmr.msra.gmra.mrb[60].mxu1 %vm336_vm1, %v22180_v33 }
 0x204   : > { %18957 = vmatmul.mubr.msk.f32.gmra.mrb[14].mxu0 %vm336_vm1, %v4775_v28  ;;  %18734 = vmatprep.mubr.msk.f32.mxu1 %vm336_vm1, %v22190_v7 }
 0x205   : > { %18959 = vmatprep.mubr.msk.f32.mxu0 %vm336_vm1, %v4776_v36  ;;  %v5478_v36 = vld [vmem:[#allocation2 + $0xc1] sm:$0xff] }
 0x207   : > { %18735 = vmatmul.mubr.msk.f32.gmra.mrb[62].mxu1 %vm336_vm1, %v22451_v48 }
 0x208   : > { %18960 = vmatmul.mubr.msk.f32.gmra.mrb[16].mxu0 %vm336_vm1, %v4777_v39 }
 0x209   : > { %18962 = vmatprep.mubr.msk.f32.mxu0 %vm336_vm1, %v4778_v40  ;;  %v5479_v40 = vld [vmem:[#allocation2 + $0xd1] sm:$0xff] }
 0x20c   : > { %18963 = vmatmul.mubr.msk.f32.gmra.mrb[18].mxu0 %vm336_vm1, %v4779_v54 }
 0x20d   : > { %18965 = vmatprep.mubr.msk.f32.mxu0 %vm336_vm1, %v4780_v57  ;;  %v5480_v57 = vld [vmem:[#allocation2 + $0xe1] sm:$0xff] }
 0x210   : > { %18966 = vmatmul.mubr.msk.f32.gmra.mrb[20].mxu0 %vm336_vm1, %v4781_v58  ;;  %v5481_v58 = vld [vmem:[#allocation2 + $0xf1] sm:$0xff] }
 0x211   : > { %18968 = vmatprep.mubr.msk.f32.mxu0 %vm336_vm1, %v4782_v59 }
 0x214   : > { %18969 = vmatmul.mubr.msk.f32.gmra.mrb[22].mxu0 %vm336_vm1, %v4783_v60  ;;  %v5482_v60 = vld [vmem:[#allocation2 + $0x101] sm:$0xff] }
 0x215   : > { %18971 = vmatprep.mubr.msk.f32.mxu0 %vm336_vm1, %v4784_v62 }
 0x218   : > { %18972 = vmatmul.mubr.msk.f32.gmra.mrb[24].mxu0 %vm336_vm1, %v4785_v5  ;;  %v5483_v5 = vld [vmem:[#allocation2 + $0x111] sm:$0xff] }
 0x219   : > { %18974 = vmatprep.mubr.msk.f32.mxu0 %vm336_vm1, %v4786_v6 }
 0x21c   : > { %18975 = vmatmul.mubr.msk.f32.gmra.mrb[26].mxu0 %vm336_vm1, %v4787_v8  ;;  %v5484_v8 = vld [vmem:[#allocation2 + $0x121] sm:$0xff] }
 0x21d   : > { %18977 = vmatprep.mubr.msk.f32.mxu0 %vm336_vm1, %v4788_v9 }
 0x220   : > { %18978 = vmatmul.mubr.msk.f32.gmra.mrb[28].mxu0 %vm336_vm1, %v4789_v11  ;;  %v5485_v11 = vld [vmem:[#allocation2 + $0x131] sm:$0xff] }
 0x221   : > { %18980 = vmatprep.mubr.msk.f32.mxu0 %vm336_vm1, %v4790_v14 }
 0x224   : > { %18981 = vmatmul.mubr.msk.f32.gmra.mrb[30].mxu0 %vm336_vm1, %v4791_v15  ;;  %v5486_v15 = vld [vmem:[#allocation2 + $0x161] sm:$0xff] }
 0x225   : > { %18983 = vmatprep.mubr.msk.f32.mxu0 %vm336_vm1, %v4792_v19 }
 0x228   : > { %18984 = vmatmul.mubr.msk.f32.gmra.mrb[32].mxu0 %vm336_vm1, %v4793_v21  ;;  %v5487_v21 = vld [vmem:[#allocation2 + $0x171] sm:$0xff] }
 0x229   : > { %18986 = vmatprep.mubr.msk.f32.mxu0 %vm336_vm1, %v4794_v22 }
 0x22c   : > { %18987 = vmatmul.mubr.msk.f32.gmra.mrb[34].mxu0 %vm336_vm1, %v4795_v23  ;;  %v5488_v23 = vld [vmem:[#allocation2 + $0x181] sm:$0xff] }
 0x22d   : > { %18989 = vmatprep.mubr.msk.f32.mxu0 %vm336_vm1, %v4796_v56 }
 0x230   : > { %18990 = vmatmul.mubr.msk.f32.gmra.mrb[36].mxu0 %vm336_vm1, %v4797_v61  ;;  %v5489_v61 = vld [vmem:[#allocation2 + $0x191] sm:$0xff] }
 0x231   : > { %18992 = vmatprep.mubr.msk.f32.mxu0 %vm336_vm1, %v4798_v16 }
 0x234   : > { %18993 = vmatmul.mubr.msk.f32.gmra.mrb[38].mxu0 %vm336_vm1, %v4799_v38  ;;  %v5490_v38 = vld [vmem:[#allocation2 + $0x1a1] sm:$0xff] }
 0x235   : > { %18995 = vmatprep.mubr.msk.f32.mxu0 %vm336_vm1, %v4800_v44 }
 0x238   : > { %18996 = vmatmul.mubr.msk.f32.gmra.mrb[40].mxu0 %vm336_vm1, %v4801_v52  ;;  %v5491_v52 = vld [vmem:[#allocation2 + $0x1b1] sm:$0xff] }
 0x239   : > { %18998 = vmatprep.mubr.msk.f32.mxu0 %vm336_vm1, %v4802_v1 }
 0x23c   : > { %18999 = vmatmul.mubr.msk.f32.gmra.mrb[42].mxu0 %vm336_vm1, %v4803_v49  ;;  %v5492_v49 = vld [vmem:[#allocation2 + $0x1c1] sm:$0xff] }
 0x23d   : > { %19001 = vmatprep.mubr.msk.f32.mxu0 %vm336_vm1, %v4804_v10 }
 0x240   : > { %19002 = vmatmul.mubr.msk.f32.gmra.mrb[44].mxu0 %vm336_vm1, %v4805_v13  ;;  %v5493_v13 = vld [vmem:[#allocation2 + $0x1d1] sm:$0xff] }
 0x241   : > { %19004 = vmatprep.mubr.msk.f32.mxu0 %vm336_vm1, %v4806_v31 }
 0x244   : > { %19005 = vmatmul.mubr.msk.f32.gmra.mrb[46].mxu0 %vm336_vm1, %v4807_v18  ;;  %v5494_v18 = vld [vmem:[#allocation2 + $0x201] sm:$0xff] }
 0x245   : > { %19007 = vmatprep.mubr.msk.f32.mxu0 %vm336_vm1, %v4808_v26 }
 0x248   : > { %19008 = vmatmul.mubr.msk.f32.gmra.mrb[48].mxu0 %vm336_vm1, %v4809_v27  ;;  %v5495_v27 = vld [vmem:[#allocation2 + $0x211] sm:$0xff] }
 0x249   : > { %19010 = vmatprep.mubr.msk.f32.mxu0 %vm336_vm1, %v4810_v37 }
 0x24c   : > { %19011 = vmatmul.mubr.msk.f32.gmra.mrb[50].mxu0 %vm336_vm1, %v4811_v41  ;;  %v5496_v41 = vld [vmem:[#allocation2 + $0x221] sm:$0xff] }
 0x24d   : > { %19013 = vmatprep.mubr.msk.f32.mxu0 %vm336_vm1, %v4812_v20 }
 0x250   : > { %19014 = vmatmul.mubr.msk.f32.gmra.mrb[52].mxu0 %vm336_vm1, %v4813_v42  ;;  %v5497_v42 = vld [vmem:[#allocation2 + $0x231] sm:$0xff] }
 0x251   : > { %19016 = vmatprep.mubr.msk.f32.mxu0 %vm336_vm1, %v4814_v46 }
 0x254   : > { %19017 = vmatmul.mubr.msk.f32.gmra.mrb[54].mxu0 %vm336_vm1, %v4815_v47  ;;  %v5498_v47 = vld [vmem:[#allocation2 + $0x241] sm:$0xff] }
 0x255   : > { %19019 = vmatprep.mubr.msk.f32.mxu0 %vm336_vm1, %v4816_v50 }
 0x256   : > { %v22499_v55 = vpop.f32.mrb[0].mxu1 }
 0x257   : > { %v22501_v29 = vpop.f32.mrb[1].mxu1 }
 0x258   : > { %19020 = vmatmul.mubr.msk.f32.gmra.mrb[56].mxu0 %vm336_vm1, %v4817_v45  ;;  %v5499_v45 = vld [vmem:[#allocation2 + $0x251] sm:$0xff] }
 0x259   : > { %19022 = vmatprep.mubr.msk.f32.mxu0 %vm336_vm1, %v4818_v51 }
 0x25a   : > { %v22507_v35 = vpop.f32.mrb[2].mxu1 }
 0x25b   : > { %v22509_v53 = vpop.f32.mrb[3].mxu1 }
 0x25c   : > { %19023 = vmatmul.mubr.msk.f32.gmra.mrb[58].mxu0 %vm336_vm1, %v22176_v32  ;;  %v5471_v32 = vld [vmem:[#allocation2 + $0x31] sm:$0xff] }
 0x25d   : > { %19025 = vmatprep.mubr.msk.f32.mxu0 %vm336_vm1, %v22180_v33 }
 0x25e   : > { %v22513_v33 = vpop.f32.mrb[4].mxu1 }
 0x25f   : > { %v22515_v63 = vpop.f32.mrb[5].mxu1 }
 0x260   : > { %19026 = vmatmul.mubr.msk.f32.gmra.mrb[60].mxu0 %vm336_vm1, %v22190_v7  ;;  %v5473_v7 = vld [vmem:[#allocation2 + $0x51] sm:$0xff] }
 0x261   : > { %19028 = vmatprep.mubr.msk.f32.mxu0 %vm336_vm1, %v22451_v48 }
 0x262   : > { %v22521_v0 = vpop.f32.mrb[6].mxu1 }
 0x263   : > { %v22523_v3 = vpop.f32.mrb[7].mxu1 }
 0x264   : > { %19029 = vmatmul.mubr.msk.f32.gmra.mrb[62].mxu0 %vm336_vm1, %v4823_v34  ;;  %v5500_v34 = vld [vmem:[#allocation2 + $0x261] sm:$0xff] }
 0x265   : > { %19033 = vmatprep.mubr.msk.f32.mxu0 %vm336_vm1, %v5470_v43 }
 0x266   : > { %v22527_v17 = vpop.f32.mrb[8].mxu1 }
 0x267   : > { %v22529_v25 = vpop.f32.mrb[9].mxu1 }
 0x268   : > { %19034 = vmatmul.mubr.msk.f32.vlgmr.msra.gmra.mrb[0].mxu0 %vm336_vm1, %v5471_v32  ;;  %v5501_v32 = vld [vmem:[#allocation2 + $0x271] sm:$0xff] }
 0x269   : > { %19130 = vmatpush3.msk.msra.mxu0 %vm950_vm0, %v22398_v30  ;;  %19036 = vmatprep.mubr.msk.f32.mxu0 %vm336_vm1, %v5472_v12  ;;  %v5477_v30 = vld [vmem:[#allocation2 + $0x91] sm:$0xff]  ;;  %vm16531_vm0 = vcmask 1046534  }
 0x26a   : > { %v22533_v28 = vpop.f32.mrb[10].mxu1 }
 0x26b   : > { %v22535_v39 = vpop.f32.mrb[11].mxu1 }
 0x26c   : > { %19037 = vmatmul.mubr.msk.f32.gmra.mrb[2].mxu0 %vm336_vm1, %v5473_v7  ;;  %v5502_v7 = vld [vmem:[#allocation2 + $0x2a1] sm:$0xff] }
 0x26d   : > { %19039 = vmatprep.mubr.msk.f32.mxu0 %vm336_vm1, %v5474_v2 }
 0x26e   : > { %v22539_v54 = vpop.f32.mrb[12].mxu1 }
 0x26f   : > { %v22541_v48 = vpop.f32.mrb[13].mxu1 }
 0x270   : > { %19040 = vmatmul.mubr.msk.f32.gmra.mrb[4].mxu0 %vm336_vm1, %v5475_v4  ;;  %v5503_v4 = vld [vmem:[#allocation2 + $0x2b1] sm:$0xff] }
 0x271   : > { %19042 = vmatprep.mubr.msk.f32.mxu0 %vm336_vm1, %v5476_v24 }
 0x272   : > { %v22545_v59 = vpop.f32.mrb[14].mxu1 }
 0x273   : > { %v22547_v62 = vpop.f32.mrb[15].mxu1 }
 0x274   : > { %19043 = vmatmul.mubr.msk.f32.gmra.mrb[6].mxu0 %vm336_vm1, %v5477_v30  ;;  %v5504_v30 = vld [vmem:[#allocation2 + $0x2c1] sm:$0xff] }
 0x275   : > { %19045 = vmatprep.mubr.msk.f32.mxu0 %vm336_vm1, %v5478_v36 }
 0x276   : > { %v22551_v6 = vpop.f32.mrb[16].mxu1 }
 0x277   : > { %v22553_v9 = vpop.f32.mrb[17].mxu1 }
 0x278   : > { %19046 = vmatmul.mubr.msk.f32.gmra.mrb[8].mxu0 %vm336_vm1, %v5479_v40  ;;  %v5505_v40 = vld [vmem:[#allocation2 + $0x2d1] sm:$0xff] }
 0x279   : > { %19048 = vmatprep.mubr.msk.f32.mxu0 %vm336_vm1, %v5480_v57 }
 0x27a   : > { %v22557_v14 = vpop.f32.mrb[18].mxu1 }
 0x27b   : > { %v22559_v19 = vpop.f32.mrb[19].mxu1 }
 0x27c   : > { %19049 = vmatmul.mubr.msk.f32.gmra.mrb[10].mxu0 %vm336_vm1, %v5481_v58  ;;  %v5506_v58 = vld [vmem:[#allocation2 + $0x2e1] sm:$0xff] }
 0x27d   : > { %19051 = vmatprep.mubr.msk.f32.mxu0 %vm336_vm1, %v5482_v60 }
 0x27e   : > { %v22563_v22 = vpop.f32.mrb[20].mxu1 }
 0x27f   : > { %v22565_v56 = vpop.f32.mrb[21].mxu1 }
 0x280   : > { %19052 = vmatmul.mubr.msk.f32.gmra.mrb[12].mxu0 %vm336_vm1, %v5483_v5  ;;  %v5507_v5 = vld [vmem:[#allocation2 + $0x2f1] sm:$0xff] }
 0x281   : > { %19054 = vmatprep.mubr.msk.f32.mxu0 %vm336_vm1, %v5484_v8 }
 0x282   : > { %v22569_v16 = vpop.f32.mrb[22].mxu1 }
 0x283   : > { %v22571_v44 = vpop.f32.mrb[23].mxu1 }
 0x284   : > { %19055 = vmatmul.mubr.msk.f32.gmra.mrb[14].mxu0 %vm336_vm1, %v5485_v11  ;;  %v5508_v11 = vld [vmem:[#allocation2 + $0x301] sm:$0xff] }
 0x285   : > { %19057 = vmatprep.mubr.msk.f32.mxu0 %vm336_vm1, %v5486_v15 }
 0x286   : > { %v22575_v1 = vpop.f32.mrb[24].mxu1 }
 0x287   : > { %v22577_v10 = vpop.f32.mrb[25].mxu1 }
 0x288   : > { %19058 = vmatmul.mubr.msk.f32.gmra.mrb[16].mxu0 %vm336_vm1, %v5487_v21  ;;  %v5509_v21 = vld [vmem:[#allocation2 + $0x311] sm:$0xff] }
 0x289   : > { %19060 = vmatprep.mubr.msk.f32.mxu0 %vm336_vm1, %v5488_v23 }
 0x28a   : > { %v22581_v31 = vpop.f32.mrb[26].mxu1 }
 0x28b   : > { %25328 = vst [vmem:[#allocation37_spill] sm:$0xff] %v22581_v31  ;;  %v22583_v26 = vpop.f32.mrb[27].mxu1 }
 0x28c   : > { %19061 = vmatmul.mubr.msk.f32.gmra.mrb[18].mxu0 %vm336_vm1, %v5489_v61  ;;  %25329 = vst [vmem:[#allocation8_spill] sm:$0xff] %v22583_v26  ;;  %v5510_v61 = vld [vmem:[#allocation2 + $0x341] sm:$0xff] }
 0x28d   : > { %19063 = vmatprep.mubr.msk.f32.mxu0 %vm336_vm1, %v5490_v38 }
 0x28e   : > { %v22587_v37 = vpop.f32.mrb[28].mxu1 }
 0x28f   : > { %25330 = vst [vmem:[#allocation38_spill] sm:$0xff] %v22587_v37  ;;  %v22589_v20 = vpop.f32.mrb[29].mxu1 }
 0x290   : > { %19064 = vmatmul.mubr.msk.f32.gmra.mrb[20].mxu0 %vm336_vm1, %v5491_v52  ;;  %25331 = vst [vmem:[#allocation9_spill] sm:$0xff] %v22589_v20  ;;  %v5511_v52 = vld [vmem:[#allocation2 + $0x351] sm:$0xff] }
 0x291   : > { %19066 = vmatprep.mubr.msk.f32.mxu0 %vm336_vm1, %v5492_v49 }
 0x292   : > { %v22593_v46 = vpop.f32.mrb[30].mxu1 }
 0x293   : > { %25332 = vst [vmem:[#allocation10_spill] sm:$0xff] %v22593_v46  ;;  %v22595_v50 = vpop.f32.mrb[31].mxu1 }
 0x294   : > { %19067 = vmatmul.mubr.msk.f32.gmra.mrb[22].mxu0 %vm336_vm1, %v5493_v13  ;;  %25333 = vst [vmem:[#allocation11_spill] sm:$0xff] %v22595_v50  ;;  %v5512_v13 = vld [vmem:[#allocation2 + $0x361] sm:$0xff] }
 0x295   : > { %19069 = vmatprep.mubr.msk.f32.mxu0 %vm336_vm1, %v5494_v18 }
 0x296   : > { %v22599_v51 = vpop.f32.mrb[32].mxu1 }
 0x297   : > { %25334 = vst [vmem:[#allocation12_spill] sm:$0xff] %v22599_v51  ;;  %v22601_v43 = vpop.f32.mrb[33].mxu1 }
 0x298   : > { %19070 = vmatmul.mubr.msk.f32.gmra.mrb[24].mxu0 %vm336_vm1, %v5495_v27  ;;  %25335 = vst [vmem:[#allocation42_spill] sm:$0xff] %v22601_v43  ;;  %v5513_v27 = vld [vmem:[#allocation2 + $0x371] sm:$0xff] }
 0x299   : > { %19072 = vmatprep.mubr.msk.f32.mxu0 %vm336_vm1, %v5496_v41 }
 0x29a   : > { %v22605_v12 = vpop.f32.mrb[34].mxu1 }
 0x29b   : > { %25336 = vst [vmem:[#allocation13_spill] sm:$0xff] %v22605_v12  ;;  %v22607_v2 = vpop.f32.mrb[35].mxu1 }
 0x29c   : > { %19073 = vmatmul.mubr.msk.f32.gmra.mrb[26].mxu0 %vm336_vm1, %v5497_v42  ;;  %25337 = vst [vmem:[#allocation14_spill] sm:$0xff] %v22607_v2  ;;  %v5514_v42 = vld [vmem:[#allocation2 + $0x381] sm:$0xff] }
 0x29d   : > { %19075 = vmatprep.mubr.msk.f32.mxu0 %vm336_vm1, %v5498_v47 }
 0x29e   : > { %v22611_v24 = vpop.f32.mrb[36].mxu1 }
 0x29f   : > { %25338 = vst [vmem:[#allocation15_spill] sm:$0xff] %v22611_v24  ;;  %v22613_v36 = vpop.f32.mrb[37].mxu1 }
 0x2a0   : > { %19076 = vmatmul.mubr.msk.f32.gmra.mrb[28].mxu0 %vm336_vm1, %v5499_v45  ;;  %25339 = vst [vmem:[#allocation16_spill] sm:$0xff] %v22613_v36  ;;  %v5515_v45 = vld [vmem:[#allocation2 + $0x391] sm:$0xff] }
 0x2a1   : > { %19078 = vmatprep.mubr.msk.f32.mxu0 %vm336_vm1, %v5500_v34 }
 0x2a2   : > { %v22617_v57 = vpop.f32.mrb[38].mxu1 }
 0x2a3   : > { %25340 = vst [vmem:[#allocation17_spill] sm:$0xff] %v22617_v57  ;;  %v22619_v60 = vpop.f32.mrb[39].mxu1 }
 0x2a4   : > { %19079 = vmatmul.mubr.msk.f32.gmra.mrb[30].mxu0 %vm336_vm1, %v5501_v32  ;;  %25341 = vst [vmem:[#allocation18_spill] sm:$0xff] %v22619_v60  ;;  %v5516_v32 = vld [vmem:[#allocation2 + $0x3a1] sm:$0xff] }
 0x2a5   : > { %19081 = vmatprep.mubr.msk.f32.mxu0 %vm336_vm1, %v5502_v7 }
 0x2a6   : > { %v22623_v8 = vpop.f32.mrb[40].mxu1 }
 0x2a7   : > { %25342 = vst [vmem:[#allocation19_spill] sm:$0xff] %v22623_v8  ;;  %v22625_v15 = vpop.f32.mrb[41].mxu1 }
 0x2a8   : > { %19082 = vmatmul.mubr.msk.f32.gmra.mrb[32].mxu0 %vm336_vm1, %v5503_v4  ;;  %25343 = vst [vmem:[#allocation20_spill] sm:$0xff] %v22625_v15  ;;  %v5517_v4 = vld [vmem:[#allocation2 + $0x3b1] sm:$0xff] }
 0x2a9   : > { %19084 = vmatprep.mubr.msk.f32.mxu0 %vm336_vm1, %v5504_v30 }
 0x2aa   : > { %v22629_v23 = vpop.f32.mrb[42].mxu1 }
 0x2ab   : > { %25344 = vst [vmem:[#allocation21_spill] sm:$0xff] %v22629_v23  ;;  %v22631_v38 = vpop.f32.mrb[43].mxu1 }
 0x2ac   : > { %19085 = vmatmul.mubr.msk.f32.gmra.mrb[34].mxu0 %vm336_vm1, %v5505_v40  ;;  %25345 = vst [vmem:[#allocation22_spill] sm:$0xff] %v22631_v38  ;;  %v5518_v40 = vld [vmem:[#allocation2 + $0x3e1] sm:$0xff] }
 0x2ad   : > { %19087 = vmatprep.mubr.msk.f32.mxu0 %vm336_vm1, %v5506_v58 }
 0x2ae   : > { %v22635_v49 = vpop.f32.mrb[44].mxu1 }
 0x2af   : > { %25346 = vst [vmem:[#allocation23_spill] sm:$0xff] %v22635_v49  ;;  %v22637_v18 = vpop.f32.mrb[45].mxu1 }
 0x2b0   : > { %19088 = vmatmul.mubr.msk.f32.gmra.mrb[36].mxu0 %vm336_vm1, %v5507_v5  ;;  %25347 = vst [vmem:[#allocation24_spill] sm:$0xff] %v22637_v18  ;;  %v5519_v5 = vld [vmem:[#allocation2 + $0x3f1] sm:$0xff] }
 0x2b1   : > { %19090 = vmatprep.mubr.msk.f32.mxu0 %vm336_vm1, %v5508_v11 }
 0x2b2   : > { %v22641_v41 = vpop.f32.mrb[46].mxu1 }
 0x2b3   : > { %25348 = vst [vmem:[#allocation25_spill] sm:$0xff] %v22641_v41  ;;  %v22643_v47 = vpop.f32.mrb[47].mxu1 }
 0x2b4   : > { %19091 = vmatmul.mubr.msk.f32.gmra.mrb[38].mxu0 %vm336_vm1, %v5509_v21  ;;  %25349 = vst [vmem:[#allocation26_spill] sm:$0xff] %v22643_v47  ;;  %v5520_v21 = vld [vmem:[#allocation2 + $0x401] sm:$0xff] }
 0x2b5   : > { %19093 = vmatprep.mubr.msk.f32.mxu0 %vm336_vm1, %v5510_v61 }
 0x2b6   : > { %v22647_v34 = vpop.f32.mrb[48].mxu1 }
 0x2b7   : > { %25350 = vst [vmem:[#allocation27_spill] sm:$0xff] %v22647_v34  ;;  %v22649_v7 = vpop.f32.mrb[49].mxu1 }
 0x2b8   : > { %19094 = vmatmul.mubr.msk.f32.gmra.mrb[40].mxu0 %vm336_vm1, %v5511_v52  ;;  %25351 = vst [vmem:[#allocation28_spill] sm:$0xff] %v22649_v7  ;;  %v5521_v52 = vld [vmem:[#allocation2 + $0x411] sm:$0xff] }
 0x2b9   : > { %19096 = vmatprep.mubr.msk.f32.mxu0 %vm336_vm1, %v5512_v13 }
 0x2ba   : > { %v22653_v30 = vpop.f32.mrb[50].mxu1 }
 0x2bb   : > { %25352 = vst [vmem:[#allocation29_spill] sm:$0xff] %v22653_v30  ;;  %v22655_v58 = vpop.f32.mrb[51].mxu1 }
 0x2bc   : > { %19097 = vmatmul.mubr.msk.f32.gmra.mrb[42].mxu0 %vm336_vm1, %v5513_v27  ;;  %25353 = vst [vmem:[#allocation30_spill] sm:$0xff] %v22655_v58  ;;  %v5522_v27 = vld [vmem:[#allocation2 + $0x421] sm:$0xff] }
 0x2bd   : > { %19099 = vmatprep.mubr.msk.f32.mxu0 %vm336_vm1, %v5514_v42 }
 0x2be   : > { %v22659_v11 = vpop.f32.mrb[52].mxu1 }
 0x2bf   : > { %25354 = vst [vmem:[#allocation31_spill] sm:$0xff] %v22659_v11  ;;  %v22661_v61 = vpop.f32.mrb[53].mxu1 }
 0x2c0   : > { %19100 = vmatmul.mubr.msk.f32.gmra.mrb[44].mxu0 %vm336_vm1, %v5515_v45  ;;  %25355 = vst [vmem:[#allocation32_spill] sm:$0xff] %v22661_v61  ;;  %v5523_v45 = vld [vmem:[#allocation2 + $0x431] sm:$0xff] }
 0x2c1   : > { %19102 = vmatprep.mubr.msk.f32.mxu0 %vm336_vm1, %v5516_v32 }
 0x2c2   : > { %v22665_v13 = vpop.f32.mrb[54].mxu1 }
 0x2c3   : > { %25356 = vst [vmem:[#allocation33_spill] sm:$0xff] %v22665_v13  ;;  %v22667_v42 = vpop.f32.mrb[55].mxu1  ;;  %v5526_v13 = vld [vmem:[#allocation2 + $0x481] sm:$0xff] }
 0x2c4   : > { %19103 = vmatmul.mubr.msk.f32.gmra.mrb[46].mxu0 %vm336_vm1, %v5517_v4  ;;  %25357 = vst [vmem:[#allocation34_spill] sm:$0xff] %v22667_v42  ;;  %v5524_v4 = vld [vmem:[#allocation2 + $0x441] sm:$0xff] }
 0x2c5   : > { %19105 = vmatprep.mubr.msk.f32.mxu0 %vm336_vm1, %v5518_v40 }
 0x2c6   : > { %v22671_v32 = vpop.f32.mrb[56].mxu1 }
 0x2c7   : > { %25358 = vst [vmem:[#allocation35_spill] sm:$0xff] %v22671_v32  ;;  %v22673_v40 = vpop.f32.mrb[57].mxu1 }
 0x2c8   : > { %19106 = vmatmul.mubr.msk.f32.gmra.mrb[48].mxu0 %vm336_vm1, %v5519_v5  ;;  %25359 = vst [vmem:[#allocation36_spill] sm:$0xff] %v22673_v40  ;;  %v5525_v5 = vld [vmem:[#allocation2 + $0x451] sm:$0xff] }
 0x2c9   : > { %19108 = vmatprep.mubr.msk.f32.mxu0 %vm336_vm1, %v5520_v21  ;;  %v5529_v40 = vld [vmem:[#allocation2 + $0x4b1] sm:$0xff] }
 0x2ca   : > { %v22677_v21 = vpop.f32.mrb[58].mxu1 }
 0x2cb   : > { %25360 = vst [vmem:[#allocation39_spill] sm:$0xff] %v22677_v21  ;;  %v22679_v61 = vpop.f32.mrb[59].mxu1 }
 0x2cc   : > { %19109 = vmatmul.mubr.msk.f32.gmra.mrb[50].mxu0 %vm336_vm1, %v5521_v52  ;;  %25361 = vst [vmem:[#allocation40_spill] sm:$0xff] %v22679_v61  ;;  %v5527_v52 = vld [vmem:[#allocation2 + $0x491] sm:$0xff]  ;;  %v5532_v61 = vld [vmem:[#allocation2 + $0x4e1] sm:$0xff] }
 0x2cd   : > { %19111 = vmatprep.mubr.msk.f32.mxu0 %vm336_vm1, %v5522_v27  ;;  %v5528_v27 = vld [vmem:[#allocation2 + $0x4a1] sm:$0xff] }
 0x2d0   : > { %19112 = vmatmul.mubr.msk.f32.gmra.mrb[52].mxu0 %vm336_vm1, %v5523_v45  ;;  %v5530_v45 = vld [vmem:[#allocation2 + $0x4c1] sm:$0xff] }
 0x2d1   : > { %19114 = vmatprep.mubr.msk.f32.mxu0 %vm336_vm1, %v5524_v4  ;;  %v5531_v4 = vld [vmem:[#allocation2 + $0x4d1] sm:$0xff] }
 0x2d4   : > { %19115 = vmatmul.mubr.msk.f32.gmra.mrb[54].mxu0 %vm336_vm1, %v5525_v5 }
 0x2d5   : > { %19117 = vmatprep.mubr.msk.f32.mxu0 %vm336_vm1, %v5526_v13  ;;  %v5533_v13 = vld [vmem:[#allocation2 + $0x4f1] sm:$0xff] }
 0x2d6   : > { %v22687_v21 = vpop.f32.mrb[60].mxu1 }
 0x2d7   : > { %25362 = vst [vmem:[#allocation41_spill] sm:$0xff] %v22687_v21  ;;  %v22689_v32 = vpop.f32.mrb[61].mxu1 }
 0x2d8   : > { %19118 = vmatmul.mubr.msk.f32.gmra.mrb[56].mxu0 %vm336_vm1, %v5527_v52  ;;  %25363 = vst [vmem:[#allocation43_spill] sm:$0xff] %v22689_v32  ;;  %v6180_v52 = vld [vmem:[#allocation2 + $0x22] sm:$0xff]  ;;  %v6183_v32 = vld [vmem:[#allocation2 + $0x52] sm:$0xff] }
 0x2d9   : > { %19120 = vmatprep.mubr.msk.f32.mxu0 %vm336_vm1, %v5528_v27 }
 0x2da   : > { %v22693_v5 = vpop.f32.mrb[62].mxu1 }
 0x2db   : > { %25364 = vst [vmem:[#allocation44_spill] sm:$0xff] %v22693_v5  ;;  %v22695_v27 = vpop.f32.mrb[63].mxu1  ;;  %v6186_v5 = vld [vmem:[#allocation2 + $0x82] sm:$0xff] }
 0x2dc   : > { %19121 = vmatmul.mubr.msk.f32.gmra.mrb[58].mxu0 %vm336_vm1, %v5529_v40  ;;  %25365 = vst [vmem:[#allocation45_spill] sm:$0xff] %v22695_v27  ;;  %v6181_v40 = vld [vmem:[#allocation2 + $0x32] sm:$0xff]  ;;  %v25366_v27 = vmov 0.0  }
 0x2dd   : > { %19123 = vmatprep.mubr.msk.f32.mxu0 %vm336_vm1, %v5530_v45  ;;  %v6182_v45 = vld [vmem:[#allocation2 + $0x42] sm:$0xff]  ;;  %10613 = vst.msk [vmem:[#allocation3 + $0x8] sm:$0x3f] %vm10611_vm3, %v25366_v27  ;;  %10612 = vst.msk [vmem:[#allocation3] sm:$0x3f] %vm10611_vm3, %v25366_v27 }
 0x2de   : > { %10614 = vst.msk [vmem:[#allocation3 + $0x10] sm:$0x3f] %vm10611_vm3, %v25366_v27  ;;  %10615 = vst.msk [vmem:[#allocation3 + $0x18] sm:$0x3f] %vm10611_vm3, %v25366_v27 }
 0x2df   : > { %10616 = vst.msk [vmem:[#allocation3 + $0x20] sm:$0x3f] %vm10611_vm3, %v25366_v27  ;;  %10617 = vst.msk [vmem:[#allocation3 + $0x28] sm:$0x3f] %vm10611_vm3, %v25366_v27 }
 0x2e0   : > { %19124 = vmatmul.mubr.msk.f32.gmra.mrb[60].mxu0 %vm336_vm1, %v5531_v4  ;;  %v6184_v4 = vld [vmem:[#allocation2 + $0x62] sm:$0xff]  ;;  %10618 = vst.msk [vmem:[#allocation3 + $0x30] sm:$0x3f] %vm10611_vm3, %v25366_v27  ;;  %10619 = vst.msk [vmem:[#allocation3 + $0x38] sm:$0x3f] %vm10611_vm3, %v25366_v27 }
 0x2e1   : > { %19126 = vmatprep.mubr.msk.f32.mxu0 %vm336_vm1, %v5532_v61  ;;  %v6185_v61 = vld [vmem:[#allocation2 + $0x72] sm:$0xff]  ;;  %10620 = vst.msk [vmem:[#allocation3 + $0x40] sm:$0x3f] %vm10611_vm3, %v25366_v27  ;;  %10621 = vst.msk [vmem:[#allocation3 + $0x48] sm:$0x3f] %vm10611_vm3, %v25366_v27 }
 0x2e2   : > { %10622 = vst.msk [vmem:[#allocation3 + $0x50] sm:$0x3f] %vm10611_vm3, %v25366_v27  ;;  %10623 = vst.msk [vmem:[#allocation3 + $0x58] sm:$0x3f] %vm10611_vm3, %v25366_v27 }
 0x2e3   : > { %10624 = vst.msk [vmem:[#allocation3 + $0x60] sm:$0x3f] %vm10611_vm3, %v25366_v27  ;;  %10625 = vst.msk [vmem:[#allocation3 + $0x68] sm:$0x3f] %vm10611_vm3, %v25366_v27 }
 0x2e4   : > { %19127 = vmatmul.mubr.msk.f32.gmra.mrb[62].mxu0 %vm336_vm1, %v5533_v13  ;;  %v6187_v13 = vld [vmem:[#allocation2 + $0x92] sm:$0xff]  ;;  %10626 = vst.msk [vmem:[#allocation3 + $0x70] sm:$0x3f] %vm10611_vm3, %v25366_v27  ;;  %10627 = vst.msk [vmem:[#allocation3 + $0x78] sm:$0x3f] %vm10611_vm3, %v25366_v27 }
 0x2e5   : > { %19131 = vmatprep.mubr.msk.f32.mxu0 %vm336_vm1, %v6180_v52  ;;  %v6188_v52 = vld [vmem:[#allocation2 + $0xc2] sm:$0xff]  ;;  %10628 = vst.msk [vmem:[#allocation3 + $0x80] sm:$0x3f] %vm10611_vm3, %v25366_v27  ;;  %10629 = vst.msk [vmem:[#allocation3 + $0x88] sm:$0x3f] %vm10611_vm3, %v25366_v27 }
 0x2e6   : > { %10630 = vst.msk [vmem:[#allocation3 + $0x90] sm:$0x3f] %vm10611_vm3, %v25366_v27  ;;  %10631 = vst.msk [vmem:[#allocation3 + $0x98] sm:$0x3f] %vm10611_vm3, %v25366_v27 }
 0x2e7   : > { %10632 = vst.msk [vmem:[#allocation3 + $0xa0] sm:$0x3f] %vm10611_vm3, %v25366_v27  ;;  %10633 = vst.msk [vmem:[#allocation3 + $0xa8] sm:$0x3f] %vm10611_vm3, %v25366_v27 }
 0x2e8   : > { %19132 = vmatmul.mubr.msk.f32.vlgmr.msra.gmra.mrb[0].mxu0 %vm336_vm1, %v6181_v40  ;;  %v6189_v40 = vld [vmem:[#allocation2 + $0xd2] sm:$0xff]  ;;  %10634 = vst.msk [vmem:[#allocation3 + $0xb0] sm:$0x3f] %vm10611_vm3, %v25366_v27  ;;  %10635 = vst.msk [vmem:[#allocation3 + $0xb8] sm:$0x3f] %vm10611_vm3, %v25366_v27 }
 0x2e9   : > { %19134 = vmatprep.mubr.msk.f32.mxu0 %vm336_vm1, %v6182_v45  ;;  %v6190_v45 = vld [vmem:[#allocation2 + $0xe2] sm:$0xff]  ;;  %10636 = vst.msk [vmem:[#allocation3 + $0xc0] sm:$0x3f] %vm10611_vm3, %v25366_v27  ;;  %10637 = vst.msk [vmem:[#allocation3 + $0xc8] sm:$0x3f] %vm10611_vm3, %v25366_v27 }
 0x2ea   : > { %10638 = vst.msk [vmem:[#allocation3 + $0xd0] sm:$0x3f] %vm10611_vm3, %v25366_v27  ;;  %10639 = vst.msk [vmem:[#allocation3 + $0xd8] sm:$0x3f] %vm10611_vm3, %v25366_v27 }
 0x2eb   : > { %10640 = vst.msk [vmem:[#allocation3 + $0xe0] sm:$0x3f] %vm10611_vm3, %v25366_v27  ;;  %10641 = vst.msk [vmem:[#allocation3 + $0xe8] sm:$0x3f] %vm10611_vm3, %v25366_v27 }
 0x2ec   : > { %19135 = vmatmul.mubr.msk.f32.gmra.mrb[2].mxu0 %vm336_vm1, %v6183_v32  ;;  %v6191_v32 = vld [vmem:[#allocation2 + $0xf2] sm:$0xff]  ;;  %10642 = vst.msk [vmem:[#allocation3 + $0xf0] sm:$0x3f] %vm10611_vm3, %v25366_v27  ;;  %10643 = vst.msk [vmem:[#allocation3 + $0xf8] sm:$0x3f] %vm10611_vm3, %v25366_v27 }
 0x2ed   : > { %19137 = vmatprep.mubr.msk.f32.mxu0 %vm336_vm1, %v6184_v4  ;;  %v6192_v4 = vld [vmem:[#allocation2 + $0x102] sm:$0xff]  ;;  %10644 = vst.msk [vmem:[#allocation3 + $0x100] sm:$0x3f] %vm10611_vm3, %v25366_v27  ;;  %10645 = vst.msk [vmem:[#allocation3 + $0x108] sm:$0x3f] %vm10611_vm3, %v25366_v27 }
 0x2ee   : > { %10646 = vst.msk [vmem:[#allocation3 + $0x110] sm:$0x3f] %vm10611_vm3, %v25366_v27  ;;  %10647 = vst.msk [vmem:[#allocation3 + $0x118] sm:$0x3f] %vm10611_vm3, %v25366_v27 }
 0x2ef   : > { %10648 = vst.msk [vmem:[#allocation3 + $0x120] sm:$0x3f] %vm10611_vm3, %v25366_v27  ;;  %10649 = vst.msk [vmem:[#allocation3 + $0x128] sm:$0x3f] %vm10611_vm3, %v25366_v27 }
 0x2f0   : > { %19138 = vmatmul.mubr.msk.f32.gmra.mrb[4].mxu0 %vm336_vm1, %v6185_v61  ;;  %v6193_v61 = vld [vmem:[#allocation2 + $0x112] sm:$0xff]  ;;  %10650 = vst.msk [vmem:[#allocation3 + $0x130] sm:$0x3f] %vm10611_vm3, %v25366_v27  ;;  %10651 = vst.msk [vmem:[#allocation3 + $0x138] sm:$0x3f] %vm10611_vm3, %v25366_v27 }
 0x2f1   : > { %19140 = vmatprep.mubr.msk.f32.mxu0 %vm336_vm1, %v6186_v5  ;;  %v6194_v5 = vld [vmem:[#allocation2 + $0x122] sm:$0xff]  ;;  %10652 = vst.msk [vmem:[#allocation3 + $0x140] sm:$0x3f] %vm10611_vm3, %v25366_v27  ;;  %10653 = vst.msk [vmem:[#allocation3 + $0x148] sm:$0x3f] %vm10611_vm3, %v25366_v27 }
 0x2f2   : > { %10654 = vst.msk [vmem:[#allocation3 + $0x150] sm:$0x3f] %vm10611_vm3, %v25366_v27  ;;  %10655 = vst.msk [vmem:[#allocation3 + $0x158] sm:$0x3f] %vm10611_vm3, %v25366_v27 }
 0x2f3   : > { %10656 = vst.msk [vmem:[#allocation3 + $0x160] sm:$0x3f] %vm10611_vm3, %v25366_v27  ;;  %10657 = vst.msk [vmem:[#allocation3 + $0x168] sm:$0x3f] %vm10611_vm3, %v25366_v27 }
 0x2f4   : > { %19141 = vmatmul.mubr.msk.f32.gmra.mrb[6].mxu0 %vm336_vm1, %v6187_v13  ;;  %v6195_v13 = vld [vmem:[#allocation2 + $0x132] sm:$0xff]  ;;  %10658 = vst.msk [vmem:[#allocation3 + $0x170] sm:$0x3f] %vm10611_vm3, %v25366_v27  ;;  %10659 = vst.msk [vmem:[#allocation3 + $0x178] sm:$0x3f] %vm10611_vm3, %v25366_v27 }
 0x2f5   : > { %19143 = vmatprep.mubr.msk.f32.mxu0 %vm336_vm1, %v6188_v52  ;;  %v6196_v52 = vld [vmem:[#allocation2 + $0x162] sm:$0xff] }
 0x2f8   : > { %19144 = vmatmul.mubr.msk.f32.gmra.mrb[8].mxu0 %vm336_vm1, %v6189_v40  ;;  %v6197_v40 = vld [vmem:[#allocation2 + $0x172] sm:$0xff] }
 0x2f9   : > { %19146 = vmatprep.mubr.msk.f32.mxu0 %vm336_vm1, %v6190_v45  ;;  %v6198_v45 = vld [vmem:[#allocation2 + $0x182] sm:$0xff] }
 0x2fc   : > { %19147 = vmatmul.mubr.msk.f32.gmra.mrb[10].mxu0 %vm336_vm1, %v6191_v32  ;;  %v6199_v32 = vld [vmem:[#allocation2 + $0x192] sm:$0xff] }
 0x2fd   : > { %19149 = vmatprep.mubr.msk.f32.mxu0 %vm336_vm1, %v6192_v4  ;;  %v6200_v4 = vld [vmem:[#allocation2 + $0x1a2] sm:$0xff] }
 0x300   : > { %19150 = vmatmul.mubr.msk.f32.gmra.mrb[12].mxu0 %vm336_vm1, %v6193_v61  ;;  %v6201_v61 = vld [vmem:[#allocation2 + $0x1b2] sm:$0xff] }
 0x301   : > { %19152 = vmatprep.mubr.msk.f32.mxu0 %vm336_vm1, %v6194_v5  ;;  %v6202_v5 = vld [vmem:[#allocation2 + $0x1c2] sm:$0xff] }
 0x304   : > { %19153 = vmatmul.mubr.msk.f32.gmra.mrb[14].mxu0 %vm336_vm1, %v6195_v13  ;;  %v6203_v13 = vld [vmem:[#allocation2 + $0x1d2] sm:$0xff] }
 0x305   : > { %19155 = vmatprep.mubr.msk.f32.mxu0 %vm336_vm1, %v6196_v52  ;;  %v6204_v52 = vld [vmem:[#allocation2 + $0x202] sm:$0xff] }
 0x308   : > { %19156 = vmatmul.mubr.msk.f32.gmra.mrb[16].mxu0 %vm336_vm1, %v6197_v40  ;;  %v6205_v40 = vld [vmem:[#allocation2 + $0x212] sm:$0xff] }
 0x309   : > { %19158 = vmatprep.mubr.msk.f32.mxu0 %vm336_vm1, %v6198_v45  ;;  %v6206_v45 = vld [vmem:[#allocation2 + $0x222] sm:$0xff] }
 0x30c   : > { %19159 = vmatmul.mubr.msk.f32.gmra.mrb[18].mxu0 %vm336_vm1, %v6199_v32  ;;  %v6207_v32 = vld [vmem:[#allocation2 + $0x232] sm:$0xff] }
 0x30d   : > { %19161 = vmatprep.mubr.msk.f32.mxu0 %vm336_vm1, %v6200_v4  ;;  %v6208_v4 = vld [vmem:[#allocation2 + $0x242] sm:$0xff] }
 0x310   : > { %19162 = vmatmul.mubr.msk.f32.gmra.mrb[20].mxu0 %vm336_vm1, %v6201_v61  ;;  %v6209_v61 = vld [vmem:[#allocation2 + $0x252] sm:$0xff] }
 0x311   : > { %19164 = vmatprep.mubr.msk.f32.mxu0 %vm336_vm1, %v6202_v5  ;;  %v6210_v5 = vld [vmem:[#allocation2 + $0x262] sm:$0xff] }
 0x314   : > { %19165 = vmatmul.mubr.msk.f32.gmra.mrb[22].mxu0 %vm336_vm1, %v6203_v13  ;;  %v6211_v13 = vld [vmem:[#allocation2 + $0x272] sm:$0xff] }
 0x315   : > { %19167 = vmatprep.mubr.msk.f32.mxu0 %vm336_vm1, %v6204_v52  ;;  %v6212_v52 = vld [vmem:[#allocation2 + $0x2a2] sm:$0xff] }
 0x318   : > { %19168 = vmatmul.mubr.msk.f32.gmra.mrb[24].mxu0 %vm336_vm1, %v6205_v40  ;;  %v6213_v40 = vld [vmem:[#allocation2 + $0x2b2] sm:$0xff] }
 0x319   : > { %19170 = vmatprep.mubr.msk.f32.mxu0 %vm336_vm1, %v6206_v45  ;;  %v6214_v45 = vld [vmem:[#allocation2 + $0x2c2] sm:$0xff] }
 0x31c   : > { %19171 = vmatmul.mubr.msk.f32.gmra.mrb[26].mxu0 %vm336_vm1, %v6207_v32  ;;  %v6215_v32 = vld [vmem:[#allocation2 + $0x2d2] sm:$0xff] }
 0x31d   : > { %19173 = vmatprep.mubr.msk.f32.mxu0 %vm336_vm1, %v6208_v4  ;;  %v6216_v4 = vld [vmem:[#allocation2 + $0x2e2] sm:$0xff] }
 0x320   : > { %19174 = vmatmul.mubr.msk.f32.gmra.mrb[28].mxu0 %vm336_vm1, %v6209_v61  ;;  %v6217_v61 = vld [vmem:[#allocation2 + $0x2f2] sm:$0xff] }
 0x321   : > { %19176 = vmatprep.mubr.msk.f32.mxu0 %vm336_vm1, %v6210_v5  ;;  %v6218_v5 = vld [vmem:[#allocation2 + $0x302] sm:$0xff] }
 0x324   : > { %19177 = vmatmul.mubr.msk.f32.gmra.mrb[30].mxu0 %vm336_vm1, %v6211_v13  ;;  %v6219_v13 = vld [vmem:[#allocation2 + $0x312] sm:$0xff] }
 0x325   : > { %19179 = vmatprep.mubr.msk.f32.mxu0 %vm336_vm1, %v6212_v52  ;;  %v6220_v52 = vld [vmem:[#allocation2 + $0x342] sm:$0xff] }
 0x328   : > { %19180 = vmatmul.mubr.msk.f32.gmra.mrb[32].mxu0 %vm336_vm1, %v6213_v40  ;;  %v6221_v40 = vld [vmem:[#allocation2 + $0x352] sm:$0xff] }
 0x329   : > { %19182 = vmatprep.mubr.msk.f32.mxu0 %vm336_vm1, %v6214_v45  ;;  %v6222_v45 = vld [vmem:[#allocation2 + $0x362] sm:$0xff] }
 0x32c   : > { %19183 = vmatmul.mubr.msk.f32.gmra.mrb[34].mxu0 %vm336_vm1, %v6215_v32  ;;  %v6223_v32 = vld [vmem:[#allocation2 + $0x372] sm:$0xff] }
 0x32d   : > { %19185 = vmatprep.mubr.msk.f32.mxu0 %vm336_vm1, %v6216_v4  ;;  %v6224_v4 = vld [vmem:[#allocation2 + $0x382] sm:$0xff] }
 0x330   : > { %19186 = vmatmul.mubr.msk.f32.gmra.mrb[36].mxu0 %vm336_vm1, %v6217_v61  ;;  %v6225_v61 = vld [vmem:[#allocation2 + $0x392] sm:$0xff] }
 0x331   : > { %19188 = vmatprep.mubr.msk.f32.mxu0 %vm336_vm1, %v6218_v5  ;;  %v6226_v5 = vld [vmem:[#allocation2 + $0x3a2] sm:$0xff] }
 0x334   : > { %19189 = vmatmul.mubr.msk.f32.gmra.mrb[38].mxu0 %vm336_vm1, %v6219_v13  ;;  %v6227_v13 = vld [vmem:[#allocation2 + $0x3b2] sm:$0xff] }
 0x335   : > { %19191 = vmatprep.mubr.msk.f32.mxu0 %vm336_vm1, %v6220_v52  ;;  %v6228_v52 = vld [vmem:[#allocation2 + $0x3e2] sm:$0xff] }
 0x338   : > { %19192 = vmatmul.mubr.msk.f32.gmra.mrb[40].mxu0 %vm336_vm1, %v6221_v40  ;;  %v6229_v40 = vld [vmem:[#allocation2 + $0x3f2] sm:$0xff] }
 0x339   : > { %19194 = vmatprep.mubr.msk.f32.mxu0 %vm336_vm1, %v6222_v45  ;;  %v6230_v45 = vld [vmem:[#allocation2 + $0x402] sm:$0xff] }
 0x33c   : > { %19195 = vmatmul.mubr.msk.f32.gmra.mrb[42].mxu0 %vm336_vm1, %v6223_v32  ;;  %v6231_v32 = vld [vmem:[#allocation2 + $0x412] sm:$0xff] }
 0x33d   : > { %19197 = vmatprep.mubr.msk.f32.mxu0 %vm336_vm1, %v6224_v4  ;;  %v6232_v4 = vld [vmem:[#allocation2 + $0x422] sm:$0xff] }
 0x340   : > { %19198 = vmatmul.mubr.msk.f32.gmra.mrb[44].mxu0 %vm336_vm1, %v6225_v61  ;;  %v6233_v61 = vld [vmem:[#allocation2 + $0x432] sm:$0xff] }
 0x341   : > { %19200 = vmatprep.mubr.msk.f32.mxu0 %vm336_vm1, %v6226_v5  ;;  %v6234_v5 = vld [vmem:[#allocation2 + $0x442] sm:$0xff] }
 0x344   : > { %19201 = vmatmul.mubr.msk.f32.gmra.mrb[46].mxu0 %vm336_vm1, %v6227_v13  ;;  %v6235_v13 = vld [vmem:[#allocation2 + $0x452] sm:$0xff] }
 0x345   : > { %19203 = vmatprep.mubr.msk.f32.mxu0 %vm336_vm1, %v6228_v52  ;;  %v6236_v52 = vld [vmem:[#allocation2 + $0x482] sm:$0xff] }
 0x348   : > { %19204 = vmatmul.mubr.msk.f32.gmra.mrb[48].mxu0 %vm336_vm1, %v6229_v40  ;;  %v6237_v40 = vld [vmem:[#allocation2 + $0x492] sm:$0xff] }
 0x349   : > { %19206 = vmatprep.mubr.msk.f32.mxu0 %vm336_vm1, %v6230_v45  ;;  %v6238_v45 = vld [vmem:[#allocation2 + $0x4a2] sm:$0xff] }
 0x34c   : > { %19207 = vmatmul.mubr.msk.f32.gmra.mrb[50].mxu0 %vm336_vm1, %v6231_v32  ;;  %v6239_v32 = vld [vmem:[#allocation2 + $0x4b2] sm:$0xff] }
 0x34d   : > { %19209 = vmatprep.mubr.msk.f32.mxu0 %vm336_vm1, %v6232_v4  ;;  %v6240_v4 = vld [vmem:[#allocation2 + $0x4c2] sm:$0xff] }
 0x350   : > { %19210 = vmatmul.mubr.msk.f32.gmra.mrb[52].mxu0 %vm336_vm1, %v6233_v61  ;;  %v6241_v61 = vld [vmem:[#allocation2 + $0x4d2] sm:$0xff] }
 0x351   : > { %19212 = vmatprep.mubr.msk.f32.mxu0 %vm336_vm1, %v6234_v5  ;;  %v6242_v5 = vld [vmem:[#allocation2 + $0x4e2] sm:$0xff] }
 0x354   : > { %19213 = vmatmul.mubr.msk.f32.gmra.mrb[54].mxu0 %vm336_vm1, %v6235_v13  ;;  %v6243_v13 = vld [vmem:[#allocation2 + $0x4f2] sm:$0xff] }
 0x355   : > { %19215 = vmatprep.mubr.msk.f32.mxu0 %vm336_vm1, %v6236_v52  ;;  %v20807_v52 = vmov 1983009808  }
 0x358   : > { %19216 = vmatmul.mubr.msk.f32.gmra.mrb[56].mxu0 %vm336_vm1, %v6237_v40  ;;  %v7091_v40 = vunpack.c.l.s4 %v20807_v52 }
 0x359   : > { %19218 = vmatprep.mubr.msk.f32.mxu0 %vm336_vm1, %v6238_v45  ;;  %v7093_v45 = vlaneseq }
 0x35a   : > { %v7092_v21 = vunpack.c.0.s8 %v7091_v40 }
 0x35b   : > { %v7094_v42 = vshrl.u32 %v7093_v45, 7 }
 0x35c   : > { %19219 = vmatmul.mubr.msk.f32.gmra.mrb[58].mxu0 %vm336_vm1, %v6239_v32  ;;  %v22861_v32 = vld [vmem:[%s25209_s2] ss:$0 sm:$0xff] }
 0x35d   : > { %19221 = vmatprep.mubr.msk.f32.mxu0 %vm336_vm1, %v6240_v4  ;;  %v22866_v58 = vsub.s32 %v7092_v21, %v7094_v42 }
 0x360   : > { %19222 = vmatmul.mubr.msk.f32.gmra.mrb[60].mxu0 %vm336_vm1, %v6241_v61 }
 0x361   : > { %19224 = vmatprep.mubr.msk.f32.mxu0 %vm336_vm1, %v6242_v5 }
 0x364   : > { %19225 = vmatmul.mubr.msk.f32.gmra.mrb[62].mxu0 %vm336_vm1, %v6243_v13  ;;  %vm16533_vm1 = vcmask 1047559  }
 0x3bb   : > { %v19133_v11 = vpop.f32.mrb[0].mxu0 }
 0x3bc   : > { %v19732_v4 = vadd.f32 %v19133_v11, %v22499_v55  ;;  %v6507_v27 = vpop.f32.mrb[1].mxu0 }
 0x3bd   : > { %v19733_v61 = vadd.f32 %v6507_v27, %v22501_v29 }
 0x3be   : > { %v6898_v5 = vadd.f32 %v19732_v4, %v22861_v32 }
 0x3bf   : > { %v6897_v13 = vadd.f32 %v19733_v61, %v22861_v32  ;;  %v19136_v52 = vpop.f32.mrb[2].mxu0 }
 0x3c0   : > { %v6962_v40 = vmax.f32 %v6898_v5, 0.0  ;;  %v19734_v45 = vadd.f32 %v19136_v52, %v22507_v35  ;;  %v6517_v30 = vpop.f32.mrb[3].mxu0 }
 0x3c1   : > { %v6961_v7 = vmax.f32 %v6897_v13, 0.0  ;;  %v19735_v34 = vadd.f32 %v6517_v30, %v22509_v53 }
 0x3c2   : > { %v7106_v47 = vcombine.high %v6962_v40, %v6962_v40  ;;  %v7113_v55 = vrot.slane %v6962_v40, %v22866_v58  ;;  %v6900_v29 = vadd.f32 %v19734_v45, %v22861_v32 }
 0x3c3   : > { %v7089_v11 = vcombine.high %v6961_v7, %v6961_v7  ;;  %v7096_v42 = vrot.slane %v6961_v7, %v22866_v58  ;;  %v22875_v21 = vadd.f32 %v19735_v34, %v22861_v32  ;;  %v22877_v27 = vpop.f32.mrb[4].mxu0 }
 0x3c4   : > { %v7120_v35 = vrot.slane %v7106_v47, %v22866_v58  ;;  %v7121_v4 = vcombine.high %v7113_v55, %v7113_v55  ;;  %v8462_v61 = vsel %vm8433_vm4, %v7113_v55, -inf  ;;  %v22881_v5 = vmax.f32 %v6900_v29, 0.0  ;;  %v22883_v53 = vpop.f32.mrb[5].mxu0 }
 0x3c5   : > { %v8463_v30 = vrot.slane %v8462_v61, 4  ;;  %v7103_v13 = vrot.slane %v7089_v11, %v22866_v58  ;;  %v7104_v52 = vcombine.high %v7096_v42, %v7096_v42  ;;  %v8434_v7 = vsel %vm8433_vm4, %v7096_v42, -inf }
 0x3c6   : > { %v7122_v40 = vcombine.high %v7120_v35, %v7120_v35  ;;  %v8469_v34 = vsel %vm8433_vm4, %v7121_v4, -inf  ;;  %v8476_v45 = vsel %vm8433_vm4, %v7120_v35, -inf  ;;  %v8435_v47 = vrot.slane %v8434_v7, 4 }
 0x3c7   : > { %v8464_v41 = vmax.f32 %v8462_v61, %v8463_v30  ;;  %v8470_v18 = vrot.slane %v8469_v34, 4  ;;  %v8477_v55 = vrot.slane %v8476_v45, 4  ;;  %v7105_v29 = vcombine.high %v7103_v13, %v7103_v13  ;;  %v22889_v49 = vpop.f32.mrb[6].mxu0 }
 0x3c8   : > { %v8483_v38 = vsel %vm8433_vm4, %v7122_v40, -inf  ;;  %v8436_v23 = vmax.f32 %v8434_v7, %v8435_v47  ;;  %v8441_v11 = vsel %vm8433_vm4, %v7104_v52, -inf  ;;  %v8448_v42 = vsel %vm8433_vm4, %v7103_v13, -inf  ;;  %v22894_v15 = vpop.f32.mrb[7].mxu0 }
 0x3c9   : > { %v8465_v4 = vrot.slane %v8464_v41, 2  ;;  %v8471_v8 = vmax.f32 %v8469_v34, %v8470_v18  ;;  %v8478_v35 = vmax.f32 %v8476_v45, %v8477_v55  ;;  %v8484_v60 = vrot.slane %v8483_v38, 4 }
 0x3ca   : > { %v8437_v57 = vrot.slane %v8436_v23, 2  ;;  %v8442_v61 = vrot.slane %v8441_v11, 4  ;;  %v8449_v30 = vrot.slane %v8448_v42, 4  ;;  %v8455_v36 = vsel %vm8433_vm4, %v7105_v29, -inf }
 0x3cb   : > { %v8466_v24 = vmax.f32 %v8464_v41, %v8465_v4  ;;  %v8472_v2 = vrot.slane %v8471_v8, 2  ;;  %v8479_v12 = vrot.slane %v8478_v35, 2  ;;  %v8485_v40 = vmax.f32 %v8483_v38, %v8484_v60  ;;  %v22897_v7 = vpop.f32.mrb[8].mxu0 }
 0x3cc   : > { %v8438_v52 = vmax.f32 %v8436_v23, %v8437_v57  ;;  %v8443_v47 = vmax.f32 %v8441_v11, %v8442_v61  ;;  %v8450_v13 = vmax.f32 %v8448_v42, %v8449_v30  ;;  %v8456_v43 = vrot.slane %v8455_v36, 4  ;;  %v22899_v51 = vpop.f32.mrb[9].mxu0 }
 0x3cd   : > { %v8467_v18 = vrot.slane %v8466_v24, 1  ;;  %v8473_v34 = vmax.f32 %v8471_v8, %v8472_v2  ;;  %v8480_v45 = vmax.f32 %v8478_v35, %v8479_v12  ;;  %v8486_v55 = vrot.slane %v8485_v40, 2 }
 0x3ce   : > { %v8439_v50 = vrot.slane %v8438_v52, 1  ;;  %v8444_v46 = vrot.slane %v8443_v47, 2  ;;  %v8451_v20 = vrot.slane %v8450_v13, 2  ;;  %v8457_v29 = vmax.f32 %v8455_v36, %v8456_v43 }
 0x3cf   : > { %v8468_v41 = vmax.f32 %v8466_v24, %v8467_v18  ;;  %v8474_v4 = vrot.slane %v8473_v34, 1  ;;  %v8481_v60 = vrot.slane %v8480_v45, 1  ;;  %v8487_v38 = vmax.f32 %v8485_v40, %v8486_v55  ;;  %v22901_v57 = vpop.f32.mrb[10].mxu0 }
 0x3d0   : > { %v8440_v23 = vmax.f32 %v8438_v52, %v8439_v50  ;;  %v8445_v11 = vmax.f32 %v8443_v47, %v8444_v46  ;;  %v8452_v42 = vmax.f32 %v8450_v13, %v8451_v20  ;;  %v8458_v61 = vrot.slane %v8457_v29, 2  ;;  %v22903_v2 = vpop.f32.mrb[11].mxu0 }
 0x3d1   : > { %v8475_v12 = vmax.f32 %v8473_v34, %v8474_v4  ;;  %v8482_v8 = vmax.f32 %v8480_v45, %v8481_v60  ;;  %v8488_v35 = vrot.slane %v8487_v38, 1  ;;  %v10228_v43 = vsel %vm10226_vm5, %v8468_v41, -inf }
 0x3d2   : > { %v8446_v24 = vrot.slane %v8445_v11, 1  ;;  %v8453_v36 = vrot.slane %v8452_v42, 1  ;;  %v8459_v30 = vmax.f32 %v8457_v29, %v8458_v61  ;;  %v10227_v40 = vsel %vm10226_vm5, %v8440_v23, -inf }
 0x3d3   : > { %v8489_v18 = vmax.f32 %v8487_v38, %v8488_v35  ;;  %v10231_v50 = vsel %vm10226_vm5, %v8475_v12, -inf  ;;  %v10234_v20 = vsel %vm10226_vm5, %v8482_v8, -inf  ;;  %v10229_v46 = vmax.f32 %v10227_v40, %v10228_v43  ;;  %v22909_v52 = vpop.f32.mrb[12].mxu0 }
 0x3d4   : > { %v8447_v47 = vmax.f32 %v8445_v11, %v8446_v24  ;;  %v8454_v13 = vmax.f32 %v8452_v42, %v8453_v36  ;;  %v8460_v34 = vrot.slane %v8459_v30, 1  ;;  %v7140_v45 = vcombine.high %v22881_v5, %v22881_v5  ;;  %v22913_v55 = vpop.f32.mrb[13].mxu0 }
 0x3d5   : > { %v10237_v29 = vsel %vm10226_vm5, %v8489_v18, -inf  ;;  %v7147_v41 = vrot.slane %v22881_v5, %v22866_v58  ;;  %v6963_v4 = vmax.f32 %v22875_v21, 0.0  ;;  %v19736_v60 = vadd.f32 %v22877_v27, %v22513_v33 }
 0x3d6   : > { %v8461_v38 = vmax.f32 %v8459_v30, %v8460_v34  ;;  %v10230_v23 = vsel %vm10226_vm5, %v8447_v47, -inf  ;;  %v10233_v11 = vsel %vm10226_vm5, %v8454_v13, -inf  ;;  %v7154_v42 = vrot.slane %v7140_v45, %v22866_v58 }
 0x3d7   : > { %v10232_v61 = vmax.f32 %v10230_v23, %v10231_v50  ;;  %v10235_v12 = vmax.f32 %v10233_v11, %v10234_v20  ;;  %v7155_v8 = vcombine.high %v7147_v41, %v7147_v41  ;;  %v8518_v35 = vsel %vm8433_vm4, %v7147_v41, -inf  ;;  %v22925_v43 = vpop.f32.mrb[14].mxu0 }
 0x3d8   : > { %v10236_v5 = vsel %vm10226_vm5, %v8461_v38, -inf  ;;  %v7156_v21 = vcombine.high %v7154_v42, %v7154_v42  ;;  %v8519_v24 = vrot.slane %v8518_v35, 4  ;;  %v8532_v33 = vsel %vm8433_vm4, %v7154_v42, -inf  ;;  %v22929_v27 = vpop.f32.mrb[15].mxu0 }
 0x3d9   : > { %v10238_v36 = vmax.f32 %v10236_v5, %v10237_v29  ;;  %v10789_v30 = vsel %vm10788_vm6, %v10232_v61, %v10229_v46  ;;  %v8525_v40 = vsel %vm8433_vm4, %v7155_v8, -inf  ;;  %v8533_v18 = vrot.slane %v8532_v33, 4 }
 0x3da   : > { %v10791_v50 = vsel %vm10790_vm7, %v10235_v12, %v10789_v30  ;;  %v8520_v20 = vmax.f32 %v8518_v35, %v8519_v24  ;;  %v8526_v47 = vrot.slane %v8525_v40, 4  ;;  %v8539_v13 = vsel %vm8433_vm4, %v7156_v21, -inf }
 0x3db   : > { %v10793_v34 = vsel %vm10792_vm8, %v10238_v36, %v10791_v50  ;;  %v8534_v45 = vmax.f32 %v8532_v33, %v8533_v18  ;;  %v8540_v41 = vrot.slane %v8539_v13, 4  ;;  %v7123_v38 = vcombine.high %v6963_v4, %v6963_v4  ;;  %v22942_v35 = vpop.f32.mrb[16].mxu0 }
 0x3dc   : > { %10921 = vst.msk [vmem:[#allocation3 + $0x9] sm:$0xf] %vm10920_vm9, %v10793_v34  ;;  %v8521_v23 = vrot.slane %v8520_v20, 2  ;;  %v8527_v29 = vmax.f32 %v8525_v40, %v8526_v47  ;;  %v7130_v46 = vrot.slane %v6963_v4, %v22866_v58  ;;  %v6902_v11 = vadd.f32 %v19736_v60, %v22861_v32 }
 0x3dd   : > { %v8535_v42 = vrot.slane %v8534_v45, 2  ;;  %v8541_v61 = vmax.f32 %v8539_v13, %v8540_v41  ;;  %v7137_v12 = vrot.slane %v7123_v38, %v22866_v58  ;;  %v19737_v8 = vadd.f32 %v22883_v53, %v22515_v63 }
 0x3de   : > { %v8522_v5 = vmax.f32 %v8520_v20, %v8521_v23  ;;  %v8528_v21 = vrot.slane %v8527_v29, 2  ;;  %v7138_v24 = vcombine.high %v7130_v46, %v7130_v46  ;;  %v8490_v33 = vsel %vm8433_vm4, %v7130_v46, -inf }
 0x3df   : > { %v8536_v36 = vmax.f32 %v8534_v45, %v8535_v42  ;;  %v8542_v30 = vrot.slane %v8541_v61, 2  ;;  %v7139_v40 = vcombine.high %v7137_v12, %v7137_v12  ;;  %v8491_v4 = vrot.slane %v8490_v33, 4 }
 0x3e0   : > { %v8523_v18 = vrot.slane %v8522_v5, 1  ;;  %v8529_v60 = vmax.f32 %v8527_v29, %v8528_v21  ;;  %v8497_v50 = vsel %vm8433_vm4, %v7138_v24, -inf  ;;  %v8504_v47 = vsel %vm8433_vm4, %v7137_v12, -inf }
 0x3e1   : > { %v8537_v13 = vrot.slane %v8536_v36, 1  ;;  %v8543_v34 = vmax.f32 %v8541_v61, %v8542_v30  ;;  %v8492_v63 = vmax.f32 %v8490_v33, %v8491_v4  ;;  %v8498_v53 = vrot.slane %v8497_v50, 4 }
 0x3e2   : > { %v8524_v41 = vmax.f32 %v8522_v5, %v8523_v18  ;;  %v8530_v20 = vrot.slane %v8529_v60, 1  ;;  %v8505_v38 = vrot.slane %v8504_v47, 4  ;;  %v8511_v23 = vsel %vm8433_vm4, %v7139_v40, -inf  ;;  %v22951_v40 = vpop.f32.mrb[17].mxu0 }
 0x3e3   : > { %v8538_v46 = vmax.f32 %v8536_v36, %v8537_v13  ;;  %v8544_v45 = vrot.slane %v8543_v34, 1  ;;  %v8493_v42 = vrot.slane %v8492_v63, 2  ;;  %v8499_v37 = vmax.f32 %v8497_v50, %v8498_v53 }
 0x3e4   : > { %v8531_v26 = vmax.f32 %v8529_v60, %v8530_v20  ;;  %v10240_v29 = vsel %vm10226_vm5, %v8524_v41, -inf  ;;  %v8506_v21 = vmax.f32 %v8504_v47, %v8505_v38  ;;  %v8512_v24 = vrot.slane %v8511_v23, 4 }
 0x3e5   : > { %v8545_v31 = vmax.f32 %v8543_v34, %v8544_v45  ;;  %v10246_v12 = vsel %vm10226_vm5, %v8538_v46, -inf  ;;  %v8494_v61 = vmax.f32 %v8492_v63, %v8493_v42  ;;  %v8500_v33 = vrot.slane %v8499_v37, 2 }
 0x3e6   : > { %v10243_v5 = vsel %vm10226_vm5, %v8531_v26, -inf  ;;  %v8507_v30 = vrot.slane %v8506_v21, 2  ;;  %v8513_v4 = vmax.f32 %v8511_v23, %v8512_v24  ;;  %v6966_v18 = vmax.f32 %v6902_v11, 0.0 }
 0x3e7   : > { %v10249_v36 = vsel %vm10226_vm5, %v8545_v31, -inf  ;;  %v8495_v50 = vrot.slane %v8494_v61, 1  ;;  %v8501_v60 = vmax.f32 %v8499_v37, %v8500_v33  ;;  %v6901_v13 = vadd.f32 %v19737_v8, %v22861_v32 }
 0x3e8   : > { %v8508_v47 = vmax.f32 %v8506_v21, %v8507_v30  ;;  %v8514_v53 = vrot.slane %v8513_v4, 2  ;;  %v7174_v34 = vcombine.high %v6966_v18, %v6966_v18  ;;  %v7181_v41 = vrot.slane %v6966_v18, %v22866_v58 }
 0x3e9   : > { %v8496_v63 = vmax.f32 %v8494_v61, %v8495_v50  ;;  %v8502_v20 = vrot.slane %v8501_v60, 1  ;;  %v6965_v38 = vmax.f32 %v6901_v13, 0.0  ;;  %v19738_v26 = vadd.f32 %v22889_v49, %v22521_v0 }
 0x3ea   : > { %v8509_v11 = vrot.slane %v8508_v47, 1  ;;  %v8515_v23 = vmax.f32 %v8513_v4, %v8514_v53  ;;  %v7188_v46 = vrot.slane %v7174_v34, %v22866_v58  ;;  %v7189_v31 = vcombine.high %v7181_v41, %v7181_v41 }
 0x3eb   : > { %v8503_v45 = vmax.f32 %v8501_v60, %v8502_v20  ;;  %v10239_v37 = vsel %vm10226_vm5, %v8496_v63, -inf  ;;  %v8574_v8 = vsel %vm8433_vm4, %v7181_v41, -inf  ;;  %v7157_v42 = vcombine.high %v6965_v38, %v6965_v38 }
 0x3ec   : > { %v8510_v21 = vmax.f32 %v8508_v47, %v8509_v11  ;;  %v8516_v24 = vrot.slane %v8515_v23, 1  ;;  %v10241_v33 = vmax.f32 %v10239_v37, %v10240_v29  ;;  %v7190_v61 = vcombine.high %v7188_v46, %v7188_v46 }
 0x3ed   : > { %v10242_v30 = vsel %vm10226_vm5, %v8503_v45, -inf  ;;  %v8575_v18 = vrot.slane %v8574_v8, 4  ;;  %v8581_v0 = vsel %vm8433_vm4, %v7189_v31, -inf  ;;  %v8588_v49 = vsel %vm8433_vm4, %v7188_v46, -inf }
 0x3ee   : > { %v8517_v4 = vmax.f32 %v8515_v23, %v8516_v24  ;;  %v10244_v50 = vmax.f32 %v10242_v30, %v10243_v5  ;;  %v10245_v60 = vsel %vm10226_vm5, %v8510_v21, -inf  ;;  %v8582_v13 = vrot.slane %v8581_v0, 4 }
 0x3ef   : > { %v10247_v53 = vmax.f32 %v10245_v60, %v10246_v12  ;;  %v8576_v34 = vmax.f32 %v8574_v8, %v8575_v18  ;;  %v8589_v41 = vrot.slane %v8588_v49, 4  ;;  %v8595_v47 = vsel %vm8433_vm4, %v7190_v61, -inf  ;;  %v22971_v8 = vpop.f32.mrb[18].mxu0 }
 0x3f0   : > { %v10248_v29 = vsel %vm10226_vm5, %v8517_v4, -inf  ;;  %v10794_v63 = vsel %vm10788_vm6, %v10244_v50, %v10241_v33  ;;  %v8583_v20 = vmax.f32 %v8581_v0, %v8582_v13  ;;  %v8596_v11 = vrot.slane %v8595_v47, 4 }
 0x3f1   : > { %v10250_v45 = vmax.f32 %v10248_v29, %v10249_v36  ;;  %v10795_v31 = vsel %vm10790_vm7, %v10247_v53, %v10794_v63  ;;  %v8577_v46 = vrot.slane %v8576_v34, 2  ;;  %v8590_v23 = vmax.f32 %v8588_v49, %v8589_v41 }
 0x3f2   : > { %v8584_v5 = vrot.slane %v8583_v20, 2  ;;  %v8597_v37 = vmax.f32 %v8595_v47, %v8596_v11  ;;  %v7164_v21 = vrot.slane %v6965_v38, %v22866_v58  ;;  %v7171_v12 = vrot.slane %v7157_v42, %v22866_v58 }
 0x3f3   : > { %v10796_v24 = vsel %vm10792_vm8, %v10250_v45, %v10795_v31  ;;  %v8578_v61 = vmax.f32 %v8576_v34, %v8577_v46  ;;  %v8591_v30 = vrot.slane %v8590_v23, 2  ;;  %v6904_v33 = vadd.f32 %v19738_v26, %v22861_v32 }
 0x3f4   : > { %10922 = vst.msk [vmem:[#allocation3 + $0x11] sm:$0xf] %vm10920_vm9, %v10796_v24  ;;  %v8585_v36 = vmax.f32 %v8583_v20, %v8584_v5  ;;  %v8598_v18 = vrot.slane %v8597_v37, 2  ;;  %v7172_v0 = vcombine.high %v7164_v21, %v7164_v21  ;;  %v7173_v49 = vcombine.high %v7171_v12, %v7171_v12 }
 0x3f5   : > { %v8579_v4 = vrot.slane %v8578_v61, 1  ;;  %v8592_v50 = vmax.f32 %v8590_v23, %v8591_v30  ;;  %v8546_v38 = vsel %vm8433_vm4, %v7164_v21, -inf  ;;  %v8560_v42 = vsel %vm8433_vm4, %v7171_v12, -inf }
 0x3f6   : > { %v8586_v60 = vrot.slane %v8585_v36, 1  ;;  %v8599_v13 = vmax.f32 %v8597_v37, %v8598_v18  ;;  %v8547_v53 = vrot.slane %v8546_v38, 4  ;;  %v8553_v34 = vsel %vm8433_vm4, %v7172_v0, -inf }
 0x3f7   : > { %v8580_v41 = vmax.f32 %v8578_v61, %v8579_v4  ;;  %v8593_v47 = vrot.slane %v8592_v50, 1  ;;  %v8554_v26 = vrot.slane %v8553_v34, 4  ;;  %v8561_v29 = vrot.slane %v8560_v42, 4 }
 0x3f8   : > { %v8587_v63 = vmax.f32 %v8585_v36, %v8586_v60  ;;  %v8600_v20 = vrot.slane %v8599_v13, 1  ;;  %v8548_v11 = vmax.f32 %v8546_v38, %v8547_v53  ;;  %v8567_v45 = vsel %vm8433_vm4, %v7173_v49, -inf  ;;  %v22987_v53 = vpop.f32.mrb[19].mxu0 }
 0x3f9   : > { %v8594_v31 = vmax.f32 %v8592_v50, %v8593_v47  ;;  %v10252_v46 = vsel %vm10226_vm5, %v8580_v41, -inf  ;;  %v8555_v23 = vmax.f32 %v8553_v34, %v8554_v26  ;;  %v8562_v5 = vmax.f32 %v8560_v42, %v8561_v29 }
 0x3fa   : > { %v8601_v21 = vmax.f32 %v8599_v13, %v8600_v20  ;;  %v10255_v37 = vsel %vm10226_vm5, %v8587_v63, -inf  ;;  %v8549_v12 = vrot.slane %v8548_v11, 2  ;;  %v8568_v24 = vrot.slane %v8567_v45, 4 }
 0x3fb   : > { %v10258_v61 = vsel %vm10226_vm5, %v8594_v31, -inf  ;;  %v8556_v30 = vrot.slane %v8555_v23, 2  ;;  %v8563_v18 = vrot.slane %v8562_v5, 2  ;;  %v6968_v0 = vmax.f32 %v6904_v33, 0.0 }
 0x3fc   : > { %v10261_v36 = vsel %vm10226_vm5, %v8601_v21, -inf  ;;  %v8550_v4 = vmax.f32 %v8548_v11, %v8549_v12  ;;  %v8569_v38 = vmax.f32 %v8567_v45, %v8568_v24  ;;  %v19739_v49 = vadd.f32 %v22894_v15, %v22523_v3 }
 0x3fd   : > { %v8557_v50 = vmax.f32 %v8555_v23, %v8556_v30  ;;  %v8564_v60 = vmax.f32 %v8562_v5, %v8563_v18  ;;  %v7208_v42 = vcombine.high %v6968_v0, %v6968_v0  ;;  %v7215_v13 = vrot.slane %v6968_v0, %v22866_v58 }
 0x3fe   : > { %v8551_v34 = vrot.slane %v8550_v4, 1  ;;  %v8570_v41 = vrot.slane %v8569_v38, 2  ;;  %v6903_v47 = vadd.f32 %v19739_v49, %v22861_v32  ;;  %v19740_v33 = vadd.f32 %v22897_v7, %v22527_v17 }
 0x3ff   : > { %v8558_v26 = vrot.slane %v8557_v50, 1  ;;  %v8565_v29 = vrot.slane %v8564_v60, 1  ;;  %v7222_v63 = vrot.slane %v7208_v42, %v22866_v58  ;;  %v7223_v20 = vcombine.high %v7215_v13, %v7215_v13 }
 0x400   : > { %v8552_v3 = vmax.f32 %v8550_v4, %v8551_v34  ;;  %v8571_v15 = vmax.f32 %v8569_v38, %v8570_v41  ;;  %v8630_v11 = vsel %vm8433_vm4, %v7215_v13, -inf  ;;  %v6967_v45 = vmax.f32 %v6903_v47, 0.0 }
 0x401   : > { %v8559_v31 = vmax.f32 %v8557_v50, %v8558_v26  ;;  %v8566_v23 = vmax.f32 %v8564_v60, %v8565_v29  ;;  %v7224_v5 = vcombine.high %v7222_v63, %v7222_v63  ;;  %v8631_v21 = vrot.slane %v8630_v11, 4 }
 0x402   : > { %v8572_v12 = vrot.slane %v8571_v15, 1  ;;  %v10251_v24 = vsel %vm10226_vm5, %v8552_v3, -inf  ;;  %v8637_v30 = vsel %vm8433_vm4, %v7223_v20, -inf  ;;  %v8644_v17 = vsel %vm8433_vm4, %v7222_v63, -inf }
 0x403   : > { %v10253_v7 = vmax.f32 %v10251_v24, %v10252_v46  ;;  %v10254_v18 = vsel %vm10226_vm5, %v8559_v31, -inf  ;;  %v10257_v0 = vsel %vm10226_vm5, %v8566_v23, -inf  ;;  %v8632_v4 = vmax.f32 %v8630_v11, %v8631_v21 }
 0x404   : > { %v8573_v38 = vmax.f32 %v8571_v15, %v8572_v12  ;;  %v10256_v49 = vmax.f32 %v10254_v18, %v10255_v37  ;;  %v10259_v42 = vmax.f32 %v10257_v0, %v10258_v61  ;;  %v8638_v50 = vrot.slane %v8637_v30, 4  ;;  %v23008_v18 = vpop.f32.mrb[20].mxu0 }
 0x405   : > { %v8633_v60 = vrot.slane %v8632_v4, 2  ;;  %v8645_v13 = vrot.slane %v8644_v17, 4  ;;  %v8651_v34 = vsel %vm8433_vm4, %v7224_v5, -inf  ;;  %v7191_v41 = vcombine.high %v6967_v45, %v6967_v45 }
 0x406   : > { %v10260_v47 = vsel %vm10226_vm5, %v8573_v38, -inf  ;;  %v10797_v26 = vsel %vm10788_vm6, %v10256_v49, %v10253_v7  ;;  %v8639_v29 = vmax.f32 %v8637_v30, %v8638_v50  ;;  %v8652_v46 = vrot.slane %v8651_v34, 4 }
 0x407   : > { %v10262_v63 = vmax.f32 %v10260_v47, %v10261_v36  ;;  %v10798_v20 = vsel %vm10790_vm7, %v10259_v42, %v10797_v26  ;;  %v8634_v3 = vmax.f32 %v8632_v4, %v8633_v60  ;;  %v8646_v11 = vmax.f32 %v8644_v17, %v8645_v13 }
 0x408   : > { %v8640_v15 = vrot.slane %v8639_v29, 2  ;;  %v8653_v37 = vmax.f32 %v8651_v34, %v8652_v46  ;;  %v7198_v61 = vrot.slane %v6967_v45, %v22866_v58  ;;  %v7205_v31 = vrot.slane %v7191_v41, %v22866_v58  ;;  %v23016_v41 = vpop.f32.mrb[21].mxu0 }
 0x409   : > { %v10799_v23 = vsel %vm10792_vm8, %v10262_v63, %v10798_v20  ;;  %v8635_v5 = vrot.slane %v8634_v3, 1  ;;  %v8647_v21 = vrot.slane %v8646_v11, 2  ;;  %v6906_v12 = vadd.f32 %v19740_v33, %v22861_v32 }
 0x40a   : > { %10923 = vst.msk [vmem:[#allocation3 + $0x19] sm:$0xf] %vm10920_vm9, %v10799_v23  ;;  %v8641_v24 = vmax.f32 %v8639_v29, %v8640_v15  ;;  %v8654_v36 = vrot.slane %v8653_v37, 2  ;;  %v7206_v30 = vcombine.high %v7198_v61, %v7198_v61  ;;  %v7207_v7 = vcombine.high %v7205_v31, %v7205_v31 }
 0x40b   : > { %v8636_v17 = vmax.f32 %v8634_v3, %v8635_v5  ;;  %v8648_v0 = vmax.f32 %v8646_v11, %v8647_v21  ;;  %v8602_v45 = vsel %vm8433_vm4, %v7198_v61, -inf  ;;  %v8616_v4 = vsel %vm8433_vm4, %v7205_v31, -inf }
 0x40c   : > { %v8642_v38 = vrot.slane %v8641_v24, 1  ;;  %v8655_v49 = vmax.f32 %v8653_v37, %v8654_v36  ;;  %v8603_v42 = vrot.slane %v8602_v45, 4  ;;  %v8609_v50 = vsel %vm8433_vm4, %v7206_v30, -inf }
 0x40d   : > { %v8649_v33 = vrot.slane %v8648_v0, 1  ;;  %v23014_v60 = vsel %vm10226_vm5, %v8636_v17, -inf  ;;  %v8610_v13 = vrot.slane %v8609_v50, 4  ;;  %v8617_v34 = vrot.slane %v8616_v4, 4 }
 0x40e   : > { %v8643_v47 = vmax.f32 %v8641_v24, %v8642_v38  ;;  %v8656_v26 = vrot.slane %v8655_v49, 1  ;;  %v8604_v29 = vmax.f32 %v8602_v45, %v8603_v42  ;;  %v8623_v46 = vsel %vm8433_vm4, %v7207_v7, -inf }
 0x40f   : > { %v8650_v63 = vmax.f32 %v8648_v0, %v8649_v33  ;;  %v8611_v20 = vmax.f32 %v8609_v50, %v8610_v13  ;;  %v8618_v3 = vmax.f32 %v8616_v4, %v8617_v34  ;;  %v8624_v11 = vrot.slane %v8623_v46, 4 }
 0x410   : > { %v8657_v15 = vmax.f32 %v8655_v49, %v8656_v26  ;;  %v10267_v37 = vsel %vm10226_vm5, %v8643_v47, -inf  ;;  %v8605_v61 = vrot.slane %v8604_v29, 2  ;;  %v6970_v31 = vmax.f32 %v6906_v12, 0.0 }
 0x411   : > { %v10270_v23 = vsel %vm10226_vm5, %v8650_v63, -inf  ;;  %v8612_v5 = vrot.slane %v8611_v20, 2  ;;  %v8619_v21 = vrot.slane %v8618_v3, 2  ;;  %v8625_v36 = vmax.f32 %v8623_v46, %v8624_v11 }
 0x412   : > { %v10273_v24 = vsel %vm10226_vm5, %v8657_v15, -inf  ;;  %v8606_v30 = vmax.f32 %v8604_v29, %v8605_v61  ;;  %v7242_v17 = vcombine.high %v6970_v31, %v6970_v31  ;;  %v7249_v7 = vrot.slane %v6970_v31, %v22866_v58 }
 0x413   : > { %v8613_v0 = vmax.f32 %v8611_v20, %v8612_v5  ;;  %v8620_v45 = vmax.f32 %v8618_v3, %v8619_v21  ;;  %v8626_v4 = vrot.slane %v8625_v36, 2  ;;  %v19741_v38 = vadd.f32 %v22899_v51, %v22529_v25 }
 0x414   : > { %v8607_v49 = vrot.slane %v8606_v30, 1  ;;  %v7256_v12 = vrot.slane %v7242_v17, %v22866_v58  ;;  %v7257_v42 = vcombine.high %v7249_v7, %v7249_v7  ;;  %v8686_v50 = vsel %vm8433_vm4, %v7249_v7, -inf }
 0x415   : > { %v8614_v33 = vrot.slane %v8613_v0, 1  ;;  %v8621_v13 = vrot.slane %v8620_v45, 1  ;;  %v8627_v34 = vmax.f32 %v8625_v36, %v8626_v4  ;;  %v8687_v47 = vrot.slane %v8686_v50, 4 }
 0x416   : > { %v8608_v26 = vmax.f32 %v8606_v30, %v8607_v49  ;;  %v7258_v29 = vcombine.high %v7256_v12, %v7256_v12  ;;  %v8693_v46 = vsel %vm8433_vm4, %v7257_v42, -inf  ;;  %v8700_v63 = vsel %vm8433_vm4, %v7256_v12, -inf }
 0x417   : > { %v8615_v20 = vmax.f32 %v8613_v0, %v8614_v33  ;;  %v8622_v3 = vmax.f32 %v8620_v45, %v8621_v13  ;;  %v8628_v11 = vrot.slane %v8627_v34, 1  ;;  %v8688_v25 = vmax.f32 %v8686_v50, %v8687_v47 }
 0x418   : > { %v10263_v51 = vsel %vm10226_vm5, %v8608_v26, -inf  ;;  %v8694_v15 = vrot.slane %v8693_v46, 4  ;;  %v8701_v61 = vrot.slane %v8700_v63, 4  ;;  %v8707_v31 = vsel %vm8433_vm4, %v7258_v29, -inf }
 0x419   : > { %v8629_v5 = vmax.f32 %v8627_v34, %v8628_v11  ;;  %v10265_v21 = vmax.f32 %v10263_v51, %v23014_v60  ;;  %v10266_v36 = vsel %vm10226_vm5, %v8615_v20, -inf  ;;  %v10269_v30 = vsel %vm10226_vm5, %v8622_v3, -inf  ;;  %v20447_v20 = vld [vmem:[#allocation3 + $0x1] ss:$8 sps:$4 sm:$0xff]  }
 0x41a   : > { %v10268_v17 = vmax.f32 %v10266_v36, %v10267_v37  ;;  %v10271_v7 = vmax.f32 %v10269_v30, %v10270_v23  ;;  %v8689_v4 = vrot.slane %v8688_v25, 2  ;;  %v8695_v0 = vmax.f32 %v8693_v46, %v8694_v15  ;;  %19231 = vmatprep.mubr.msk.f32.mxu1 %vm10226_vm5, %v20447_v20 }
 0x41b   : > { %v10272_v45 = vsel %vm10226_vm5, %v8629_v5, -inf  ;;  %v8702_v49 = vmax.f32 %v8700_v63, %v8701_v61  ;;  %v8708_v12 = vrot.slane %v8707_v31, 4  ;;  %v6905_v42 = vadd.f32 %v19741_v38, %v22861_v32 }
 0x41c   : > { %v10274_v50 = vmax.f32 %v10272_v45, %v10273_v24  ;;  %v10800_v33 = vsel %vm10788_vm6, %v10268_v17, %v10265_v21  ;;  %v8690_v13 = vmax.f32 %v8688_v25, %v8689_v4  ;;  %v8696_v34 = vrot.slane %v8695_v0, 2 }
 0x41d   : > { %v10801_v60 = vsel %vm10790_vm7, %v10271_v7, %v10800_v33  ;;  %v8703_v47 = vrot.slane %v8702_v49, 2  ;;  %v8709_v26 = vmax.f32 %v8707_v31, %v8708_v12  ;;  %v6969_v29 = vmax.f32 %v6905_v42, 0.0  ;;  %v23059_v12 = vpop.f32.mrb[22].mxu0 }
 0x41e   : > { %v10802_v37 = vsel %vm10792_vm8, %v10274_v50, %v10801_v60  ;;  %v8691_v23 = vrot.slane %v8690_v13, 1  ;;  %v8697_v46 = vmax.f32 %v8695_v0, %v8696_v34  ;;  %v19742_v63 = vadd.f32 %v22901_v57, %v22533_v28 }
 0x41f   : > { %10924 = vst.msk [vmem:[#allocation3 + $0x21] sm:$0xf] %vm10920_vm9, %v10802_v37  ;;  %v8704_v24 = vmax.f32 %v8702_v49, %v8703_v47  ;;  %v8710_v38 = vrot.slane %v8709_v26, 2  ;;  %v7225_v3 = vcombine.high %v6969_v29, %v6969_v29  ;;  %v7232_v11 = vrot.slane %v6969_v29, %v22866_v58  ;;  %v23067_v29 = vpop.f32.mrb[23].mxu0 }
 0x420   : > { %v8692_v25 = vmax.f32 %v8690_v13, %v8691_v23  ;;  %v8698_v51 = vrot.slane %v8697_v46, 1  ;;  %v6908_v15 = vadd.f32 %v19742_v63, %v22861_v32  ;;  %v23046_v61 = vadd.f32 %v22903_v2, %v22535_v39 }
 0x421   : > { %v8705_v31 = vrot.slane %v8704_v24, 1  ;;  %v8711_v28 = vmax.f32 %v8709_v26, %v8710_v38  ;;  %v7239_v57 = vrot.slane %v7225_v3, %v22866_v58  ;;  %v7240_v5 = vcombine.high %v7232_v11, %v7232_v11 }
 0x422   : > { %v8699_v21 = vmax.f32 %v8697_v46, %v8698_v51  ;;  %v23051_v36 = vsel %vm10226_vm5, %v8692_v25, -inf  ;;  %v8658_v30 = vsel %vm8433_vm4, %v7232_v11, -inf  ;;  %v6972_v17 = vmax.f32 %v6908_v15, 0.0 }
 0x423   : > { %v8706_v7 = vmax.f32 %v8704_v24, %v8705_v31  ;;  %v8712_v32 = vrot.slane %v8711_v28, 1  ;;  %v7241_v4 = vcombine.high %v7239_v57, %v7239_v57  ;;  %v8659_v0 = vrot.slane %v8658_v30, 4 }
 0x424   : > { %v23055_v39 = vsel %vm10226_vm5, %v8699_v21, -inf  ;;  %v8665_v2 = vsel %vm8433_vm4, %v7240_v5, -inf  ;;  %v8672_v45 = vsel %vm8433_vm4, %v7239_v57, -inf  ;;  %v7276_v49 = vcombine.high %v6972_v17, %v6972_v17 }
 0x425   : > { %v8713_v42 = vmax.f32 %v8711_v28, %v8712_v32  ;;  %v23062_v50 = vsel %vm10226_vm5, %v8706_v7, -inf  ;;  %v8660_v33 = vmax.f32 %v8658_v30, %v8659_v0  ;;  %v8666_v13 = vrot.slane %v8665_v2, 4 }
 0x426   : > { %v8673_v34 = vrot.slane %v8672_v45, 4  ;;  %v8679_v60 = vsel %vm8433_vm4, %v7241_v4, -inf  ;;  %v7283_v47 = vrot.slane %v6972_v17, %v22866_v58  ;;  %v7290_v26 = vrot.slane %v7276_v49, %v22866_v58 }
 0x427   : > { %v23070_v37 = vsel %vm10226_vm5, %v8713_v42, -inf  ;;  %v8661_v23 = vrot.slane %v8660_v33, 2  ;;  %v8667_v46 = vmax.f32 %v8665_v2, %v8666_v13  ;;  %v8680_v63 = vrot.slane %v8679_v60, 4 }
 0x428   : > { %v8674_v20 = vmax.f32 %v8672_v45, %v8673_v34  ;;  %v7291_v24 = vcombine.high %v7283_v47, %v7283_v47  ;;  %v7292_v38 = vcombine.high %v7290_v26, %v7290_v26  ;;  %v8742_v3 = vsel %vm8433_vm4, %v7283_v47, -inf }
 0x429   : > { %v8662_v11 = vmax.f32 %v8660_v33, %v8661_v23  ;;  %v8668_v25 = vrot.slane %v8667_v46, 2  ;;  %v8681_v51 = vmax.f32 %v8679_v60, %v8680_v63  ;;  %v8743_v15 = vrot.slane %v8742_v3, 4 }
 0x42a   : > { %v8675_v31 = vrot.slane %v8674_v20, 2  ;;  %v8749_v28 = vsel %vm8433_vm4, %v7291_v24, -inf  ;;  %v8756_v57 = vsel %vm8433_vm4, %v7290_v26, -inf  ;;  %v8763_v5 = vsel %vm8433_vm4, %v7292_v38, -inf }
 0x42b   : > { %v8663_v21 = vrot.slane %v8662_v11, 1  ;;  %v8669_v30 = vmax.f32 %v8667_v46, %v8668_v25  ;;  %v8682_v17 = vrot.slane %v8681_v51, 2  ;;  %v8744_v7 = vmax.f32 %v8742_v3, %v8743_v15 }
 0x42c   : > { %v8676_v32 = vmax.f32 %v8674_v20, %v8675_v31  ;;  %v8750_v4 = vrot.slane %v8749_v28, 4  ;;  %v8757_v0 = vrot.slane %v8756_v57, 4  ;;  %v8764_v2 = vrot.slane %v8763_v5, 4 }
 0x42d   : > { %v8664_v45 = vmax.f32 %v8662_v11, %v8663_v21  ;;  %v8670_v49 = vrot.slane %v8669_v30, 1  ;;  %v8683_v42 = vmax.f32 %v8681_v51, %v8682_v17  ;;  %v8745_v33 = vrot.slane %v8744_v7, 2 }
 0x42e   : > { %v8677_v13 = vrot.slane %v8676_v32, 1  ;;  %v8751_v34 = vmax.f32 %v8749_v28, %v8750_v4  ;;  %v8758_v60 = vmax.f32 %v8756_v57, %v8757_v0  ;;  %v8765_v47 = vmax.f32 %v8763_v5, %v8764_v2 }
 0x42f   : > { %v8671_v23 = vmax.f32 %v8669_v30, %v8670_v49  ;;  %v8684_v26 = vrot.slane %v8683_v42, 1  ;;  %v10275_v63 = vsel %vm10226_vm5, %v8664_v45, -inf  ;;  %v8746_v24 = vmax.f32 %v8744_v7, %v8745_v33 }
 0x430   : > { %v8678_v46 = vmax.f32 %v8676_v32, %v8677_v13  ;;  %v10277_v38 = vmax.f32 %v10275_v63, %v23051_v36  ;;  %v8752_v20 = vrot.slane %v8751_v34, 2  ;;  %v8759_v3 = vrot.slane %v8758_v60, 2 }
 0x431   : > { %v8685_v25 = vmax.f32 %v8683_v42, %v8684_v26  ;;  %v10278_v11 = vsel %vm10226_vm5, %v8671_v23, -inf  ;;  %v8747_v15 = vrot.slane %v8746_v24, 1  ;;  %v8766_v51 = vrot.slane %v8765_v47, 2  ;;  %v23104_v26 = vpop.f32.mrb[24].mxu0 }
 0x432   : > { %v10280_v31 = vmax.f32 %v10278_v11, %v23055_v39  ;;  %v10281_v28 = vsel %vm10226_vm5, %v8678_v46, -inf  ;;  %v8753_v57 = vmax.f32 %v8751_v34, %v8752_v20  ;;  %v8760_v5 = vmax.f32 %v8758_v60, %v8759_v3 }
 0x433   : > { %v10283_v21 = vmax.f32 %v10281_v28, %v23062_v50  ;;  %v10284_v30 = vsel %vm10226_vm5, %v8685_v25, -inf  ;;  %v8748_v17 = vmax.f32 %v8746_v24, %v8747_v15  ;;  %v8767_v7 = vmax.f32 %v8765_v47, %v8766_v51  ;;  %v23092_v50 = vld [vmem:[%s25209_s2] ss:$0 sm:$0xff] }
 0x434   : > { %v10286_v36 = vmax.f32 %v10284_v30, %v23070_v37  ;;  %v10803_v32 = vsel %vm10788_vm6, %v10280_v31, %v10277_v38  ;;  %v8754_v4 = vrot.slane %v8753_v57, 1  ;;  %v8761_v0 = vrot.slane %v8760_v5, 1 }
 0x435   : > { %v10804_v2 = vsel %vm10790_vm7, %v10283_v21, %v10803_v32  ;;  %v8768_v45 = vrot.slane %v8767_v7, 1  ;;  %v23087_v39 = vsel %vm10226_vm5, %v8748_v17, -inf  ;;  %v6907_v49 = vadd.f32 %v23092_v50, %v23046_v61 }
 0x436   : > { %v10805_v37 = vsel %vm10792_vm8, %v10286_v36, %v10804_v2  ;;  %v8755_v42 = vmax.f32 %v8753_v57, %v8754_v4  ;;  %v8762_v33 = vmax.f32 %v8760_v5, %v8761_v0  ;;  %v19744_v13 = vadd.f32 %v22909_v52, %v22539_v54 }
 0x437   : > { %10925 = vst.msk [vmem:[#allocation3 + $0x39] sm:$0xf] %vm10920_vm9, %v10805_v37  ;;  %v8769_v34 = vmax.f32 %v8767_v7, %v8768_v45  ;;  %v6971_v60 = vmax.f32 %v6907_v49, 0.0  ;;  %v19745_v47 = vadd.f32 %v22913_v55, %v22541_v48  ;;  %v19746_v23 = vadd.f32 %v22925_v43, %v22545_v59  ;;  %v23140_v7 = vpop.f32.mrb[25].mxu0 }
 0x438   : > { %v23107_v61 = vsel %vm10226_vm5, %v8755_v42, -inf  ;;  %v23110_v63 = vsel %vm10226_vm5, %v8762_v33, -inf  ;;  %v6910_v54 = vadd.f32 %v23092_v50, %v19744_v13  ;;  %v19747_v52 = vadd.f32 %v22929_v27, %v22547_v62 }
 0x439   : > { %v23116_v24 = vsel %vm10226_vm5, %v8769_v34, -inf  ;;  %v7259_v48 = vcombine.high %v6971_v60, %v6971_v60  ;;  %v7266_v55 = vrot.slane %v6971_v60, %v22866_v58  ;;  %v6909_v59 = vadd.f32 %v23092_v50, %v19745_v47 }
 0x43a   : > { %v6974_v43 = vmax.f32 %v6910_v54, 0.0  ;;  %v6912_v46 = vadd.f32 %v23092_v50, %v19746_v23  ;;  %v23122_v38 = vadd.f32 %v23092_v50, %v19747_v52  ;;  %v23126_v20 = vadd.f32 %v22942_v35, %v22551_v6 }
 0x43b   : > { %v7273_v62 = vrot.slane %v7259_v48, %v22866_v58  ;;  %v7274_v27 = vcombine.high %v7266_v55, %v7266_v55  ;;  %v8714_v3 = vsel %vm8433_vm4, %v7266_v55, -inf  ;;  %v23130_v25 = vmax.f32 %v6909_v59, 0.0 }
 0x43c   : > { %v8715_v11 = vrot.slane %v8714_v3, 4  ;;  %v7310_v15 = vcombine.high %v6974_v43, %v6974_v43  ;;  %v7317_v51 = vrot.slane %v6974_v43, %v22866_v58  ;;  %v23133_v31 = vmax.f32 %v6912_v46, 0.0 }
 0x43d   : > { %v7275_v28 = vcombine.high %v7273_v62, %v7273_v62  ;;  %v8721_v57 = vsel %vm8433_vm4, %v7274_v27, -inf  ;;  %v8728_v5 = vsel %vm8433_vm4, %v7273_v62, -inf  ;;  %v7293_v6 = vcombine.high %v23130_v25, %v23130_v25 }
 0x43e   : > { %v8716_v35 = vmax.f32 %v8714_v3, %v8715_v11  ;;  %v8722_v21 = vrot.slane %v8721_v57, 4  ;;  %v8729_v30 = vrot.slane %v8728_v5, 4  ;;  %v7324_v17 = vrot.slane %v7310_v15, %v22866_v58 }
 0x43f   : > { %v8735_v36 = vsel %vm8433_vm4, %v7275_v28, -inf  ;;  %v7325_v32 = vcombine.high %v7317_v51, %v7317_v51  ;;  %v8798_v4 = vsel %vm8433_vm4, %v7317_v51, -inf  ;;  %v23146_v0 = vrot.slane %v23130_v25, %v22866_v58 }
 0x440   : > { %v8717_v2 = vrot.slane %v8716_v35, 2  ;;  %v8723_v45 = vmax.f32 %v8721_v57, %v8722_v21  ;;  %v8730_v49 = vmax.f32 %v8728_v5, %v8729_v30  ;;  %v8736_v37 = vrot.slane %v8735_v36, 4 }
 0x441   : > { %v7326_v42 = vcombine.high %v7324_v17, %v7324_v17  ;;  %v8799_v33 = vrot.slane %v8798_v4, 4  ;;  %v8805_v13 = vsel %vm8433_vm4, %v7325_v32, -inf  ;;  %v8812_v34 = vsel %vm8433_vm4, %v7324_v17, -inf }
 0x442   : > { %v8718_v60 = vmax.f32 %v8716_v35, %v8717_v2  ;;  %v8724_v47 = vrot.slane %v8723_v45, 2  ;;  %v8731_v23 = vrot.slane %v8730_v49, 2  ;;  %v8737_v54 = vmax.f32 %v8735_v36, %v8736_v37 }
 0x443   : > { %v8800_v52 = vmax.f32 %v8798_v4, %v8799_v33  ;;  %v8806_v48 = vrot.slane %v8805_v13, 4  ;;  %v8813_v55 = vrot.slane %v8812_v34, 4  ;;  %v8819_v59 = vsel %vm8433_vm4, %v7326_v42, -inf }
 0x444   : > { %v8719_v43 = vrot.slane %v8718_v60, 1  ;;  %v8725_v46 = vmax.f32 %v8723_v45, %v8724_v47  ;;  %v8732_v62 = vmax.f32 %v8730_v49, %v8731_v23  ;;  %v8738_v27 = vrot.slane %v8737_v54, 2 }
 0x445   : > { %v8801_v3 = vrot.slane %v8800_v52, 2  ;;  %v8807_v25 = vmax.f32 %v8805_v13, %v8806_v48  ;;  %v8814_v11 = vmax.f32 %v8812_v34, %v8813_v55  ;;  %v8820_v15 = vrot.slane %v8819_v59, 4  ;;  %v23157_v48 = vpop.f32.mrb[26].mxu0 }
 0x446   : > { %v8720_v51 = vmax.f32 %v8718_v60, %v8719_v43  ;;  %v8726_v28 = vrot.slane %v8725_v46, 1  ;;  %v8733_v57 = vrot.slane %v8732_v62, 1  ;;  %v8739_v5 = vmax.f32 %v8737_v54, %v8738_v27 }
 0x447   : > { %v8802_v35 = vmax.f32 %v8800_v52, %v8801_v3  ;;  %v8808_v21 = vrot.slane %v8807_v25, 2  ;;  %v8815_v30 = vrot.slane %v8814_v11, 2  ;;  %v8821_v17 = vmax.f32 %v8819_v59, %v8820_v15 }
 0x448   : > { %v8727_v36 = vmax.f32 %v8725_v46, %v8726_v28  ;;  %v8734_v32 = vmax.f32 %v8732_v62, %v8733_v57  ;;  %v8740_v4 = vrot.slane %v8739_v5, 1  ;;  %v10287_v2 = vsel %vm10226_vm5, %v8720_v51, -inf }
 0x449   : > { %v10289_v45 = vmax.f32 %v10287_v2, %v23087_v39  ;;  %v8803_v49 = vrot.slane %v8802_v35, 1  ;;  %v8809_v37 = vmax.f32 %v8807_v25, %v8808_v21  ;;  %v8816_v42 = vmax.f32 %v8814_v11, %v8815_v30 }
 0x44a   : > { %v8741_v33 = vmax.f32 %v8739_v5, %v8740_v4  ;;  %v10290_v13 = vsel %vm10226_vm5, %v8727_v36, -inf  ;;  %v10293_v34 = vsel %vm10226_vm5, %v8734_v32, -inf  ;;  %v8822_v60 = vrot.slane %v8821_v17, 2 }
 0x44b   : > { %v10292_v47 = vmax.f32 %v10290_v13, %v23107_v61  ;;  %v10295_v23 = vmax.f32 %v10293_v34, %v23110_v63  ;;  %v8804_v54 = vmax.f32 %v8802_v35, %v8803_v49  ;;  %v8810_v52 = vrot.slane %v8809_v37, 1 }
 0x44c   : > { %v10296_v55 = vsel %vm10226_vm5, %v8741_v33, -inf  ;;  %v8817_v39 = vrot.slane %v8816_v42, 1  ;;  %v8823_v59 = vmax.f32 %v8821_v17, %v8822_v60  ;;  %v7307_v43 = vrot.slane %v7293_v6, %v22866_v58  ;;  %v23193_v33 = vpop.f32.mrb[27].mxu0 }
 0x44d   : > { %v10298_v46 = vmax.f32 %v10296_v55, %v23116_v24  ;;  %v10806_v62 = vsel %vm10788_vm6, %v10292_v47, %v10289_v45  ;;  %v8811_v27 = vmax.f32 %v8809_v37, %v8810_v52  ;;  %v23164_v3 = vsel %vm10226_vm5, %v8804_v54, -inf }
 0x44e   : > { %v10807_v61 = vsel %vm10790_vm7, %v10295_v23, %v10806_v62  ;;  %v8818_v63 = vmax.f32 %v8816_v42, %v8817_v39  ;;  %v8824_v25 = vrot.slane %v8823_v59, 1  ;;  %v7308_v11 = vcombine.high %v23146_v0, %v23146_v0 }
 0x44f   : > { %v10808_v15 = vsel %vm10792_vm8, %v10298_v46, %v10807_v61  ;;  %v23171_v51 = vsel %vm10226_vm5, %v8811_v27, -inf  ;;  %v7309_v6 = vcombine.high %v7307_v43, %v7307_v43  ;;  %v8770_v24 = vsel %vm8433_vm4, %v23146_v0, -inf }
 0x450   : > { %10926 = vst.msk [vmem:[#allocation3 + $0x41] sm:$0xf] %vm10920_vm9, %v10808_v15  ;;  %v8825_v28 = vmax.f32 %v8823_v59, %v8824_v25  ;;  %v23177_v57 = vsel %vm10226_vm5, %v8818_v63, -inf  ;;  %v8771_v5 = vrot.slane %v8770_v24, 4  ;;  %v8777_v35 = vsel %vm8433_vm4, %v7308_v11, -inf }
 0x451   : > { %v8778_v21 = vrot.slane %v8777_v35, 4  ;;  %v8784_v30 = vsel %vm8433_vm4, %v7307_v43, -inf  ;;  %v8791_v17 = vsel %vm8433_vm4, %v7309_v6, -inf  ;;  %v7344_v36 = vcombine.high %v23133_v31, %v23133_v31 }
 0x452   : > { %v23185_v32 = vsel %vm10226_vm5, %v8825_v28, -inf  ;;  %v8772_v0 = vmax.f32 %v8770_v24, %v8771_v5  ;;  %v8785_v4 = vrot.slane %v8784_v30, 4  ;;  %v8792_v2 = vrot.slane %v8791_v17, 4 }
 0x453   : > { %v8779_v45 = vmax.f32 %v8777_v35, %v8778_v21  ;;  %v7351_v49 = vrot.slane %v23133_v31, %v22866_v58  ;;  %v7358_v37 = vrot.slane %v7344_v36, %v22866_v58  ;;  %v23191_v42 = vmax.f32 %v23122_v38, 0.0 }
 0x454   : > { %v8773_v13 = vrot.slane %v8772_v0, 2  ;;  %v8786_v34 = vmax.f32 %v8784_v30, %v8785_v4  ;;  %v8793_v60 = vmax.f32 %v8791_v17, %v8792_v2  ;;  %v23197_v47 = vadd.f32 %v23092_v50, %v23126_v20 }
 0x455   : > { %v8780_v23 = vrot.slane %v8779_v45, 2  ;;  %v7359_v54 = vcombine.high %v7351_v49, %v7351_v49  ;;  %v7360_v52 = vcombine.high %v7358_v37, %v7358_v37  ;;  %v8854_v55 = vsel %vm8433_vm4, %v7351_v49, -inf }
 0x456   : > { %v8774_v31 = vmax.f32 %v8772_v0, %v8773_v13  ;;  %v8787_v39 = vrot.slane %v8786_v34, 2  ;;  %v8794_v59 = vrot.slane %v8793_v60, 2  ;;  %v8855_v43 = vrot.slane %v8854_v55, 4 }
 0x457   : > { %v8781_v38 = vmax.f32 %v8779_v45, %v8780_v23  ;;  %v8861_v46 = vsel %vm8433_vm4, %v7359_v54, -inf  ;;  %v8868_v62 = vsel %vm8433_vm4, %v7358_v37, -inf  ;;  %v8875_v27 = vsel %vm8433_vm4, %v7360_v52, -inf }
 0x458   : > { %v8775_v61 = vrot.slane %v8774_v31, 1  ;;  %v8788_v63 = vmax.f32 %v8786_v34, %v8787_v39  ;;  %v8795_v20 = vmax.f32 %v8793_v60, %v8794_v59  ;;  %v8856_v25 = vmax.f32 %v8854_v55, %v8855_v43 }
 0x459   : > { %v8782_v11 = vrot.slane %v8781_v38, 1  ;;  %v8862_v15 = vrot.slane %v8861_v46, 4  ;;  %v8869_v6 = vrot.slane %v8868_v62, 4  ;;  %v8876_v24 = vrot.slane %v8875_v27, 4 }
 0x45a   : > { %v8776_v28 = vmax.f32 %v8774_v31, %v8775_v61  ;;  %v8789_v5 = vrot.slane %v8788_v63, 1  ;;  %v8796_v35 = vrot.slane %v8795_v20, 1  ;;  %v8857_v21 = vrot.slane %v8856_v25, 2 }
 0x45b   : > { %v8783_v30 = vmax.f32 %v8781_v38, %v8782_v11  ;;  %v8863_v17 = vmax.f32 %v8861_v46, %v8862_v15  ;;  %v8870_v36 = vmax.f32 %v8868_v62, %v8869_v6  ;;  %v8877_v0 = vmax.f32 %v8875_v27, %v8876_v24  ;;  %v23214_v27 = vpop.f32.mrb[28].mxu0 }
 0x45c   : > { %v8790_v4 = vmax.f32 %v8788_v63, %v8789_v5  ;;  %v8797_v2 = vmax.f32 %v8795_v20, %v8796_v35  ;;  %v10299_v45 = vsel %vm10226_vm5, %v8776_v28, -inf  ;;  %v8858_v49 = vmax.f32 %v8856_v25, %v8857_v21 }
 0x45d   : > { %v10301_v37 = vmax.f32 %v10299_v45, %v23164_v3  ;;  %v10302_v13 = vsel %vm10226_vm5, %v8783_v30, -inf  ;;  %v8864_v34 = vrot.slane %v8863_v17, 2  ;;  %v8871_v60 = vrot.slane %v8870_v36, 2 }
 0x45e   : > { %v10304_v23 = vmax.f32 %v10302_v13, %v23171_v51  ;;  %v10305_v54 = vsel %vm10226_vm5, %v8790_v4, -inf  ;;  %v10308_v52 = vsel %vm10226_vm5, %v8797_v2, -inf  ;;  %v8859_v55 = vrot.slane %v8858_v49, 1 }
 0x45f   : > { %v10307_v31 = vmax.f32 %v10305_v54, %v23177_v57  ;;  %v10310_v39 = vmax.f32 %v10308_v52, %v23185_v32  ;;  %v8865_v59 = vmax.f32 %v8863_v17, %v8864_v34  ;;  %v8872_v43 = vmax.f32 %v8870_v36, %v8871_v60 }
 0x460   : > { %v10809_v38 = vsel %vm10788_vm6, %v10304_v23, %v10301_v37  ;;  %v8860_v3 = vmax.f32 %v8858_v49, %v8859_v55  ;;  %v8878_v46 = vrot.slane %v8877_v0, 2  ;;  %v7327_v62 = vcombine.high %v23191_v42, %v23191_v42 }
 0x461   : > { %v10810_v51 = vsel %vm10790_vm7, %v10307_v31, %v10809_v38  ;;  %v8866_v61 = vrot.slane %v8865_v59, 1  ;;  %v8873_v63 = vrot.slane %v8872_v43, 1  ;;  %v7334_v57 = vrot.slane %v23191_v42, %v22866_v58 }
 0x462   : > { %v10811_v32 = vsel %vm10792_vm8, %v10310_v39, %v10810_v51  ;;  %v8879_v20 = vmax.f32 %v8877_v0, %v8878_v46  ;;  %v23221_v25 = vsel %vm10226_vm5, %v8860_v3, -inf  ;;  %v7341_v11 = vrot.slane %v7327_v62, %v22866_v58 }
 0x463   : > { %10927 = vst.msk [vmem:[#allocation3 + $0x49] sm:$0xf] %vm10920_vm9, %v10811_v32  ;;  %v8867_v15 = vmax.f32 %v8865_v59, %v8866_v61  ;;  %v8874_v6 = vmax.f32 %v8872_v43, %v8873_v63  ;;  %v7342_v24 = vcombine.high %v7334_v57, %v7334_v57  ;;  %v8826_v28 = vsel %vm8433_vm4, %v7334_v57, -inf }
 0x464   : > { %v8880_v5 = vrot.slane %v8879_v20, 1  ;;  %v7343_v35 = vcombine.high %v7341_v11, %v7341_v11  ;;  %v8827_v21 = vrot.slane %v8826_v28, 4  ;;  %v8840_v42 = vsel %vm8433_vm4, %v7341_v11, -inf }
 0x465   : > { %v23228_v30 = vsel %vm10226_vm5, %v8867_v15, -inf  ;;  %v23231_v17 = vsel %vm10226_vm5, %v8874_v6, -inf  ;;  %v8833_v36 = vsel %vm8433_vm4, %v7342_v24, -inf  ;;  %v8841_v0 = vrot.slane %v8840_v42, 4 }
 0x466   : > { %v8881_v4 = vmax.f32 %v8879_v20, %v8880_v5  ;;  %v8828_v2 = vmax.f32 %v8826_v28, %v8827_v21  ;;  %v8834_v45 = vrot.slane %v8833_v36, 4  ;;  %v8847_v49 = vsel %vm8433_vm4, %v7343_v35, -inf }
 0x467   : > { %v8842_v37 = vmax.f32 %v8840_v42, %v8841_v0  ;;  %v8848_v13 = vrot.slane %v8847_v49, 4  ;;  %v6978_v34 = vmax.f32 %v23197_v47, 0.0  ;;  %v19749_v60 = vadd.f32 %v22951_v40, %v22553_v9  ;;  %v23248_v9 = vpop.f32.mrb[29].mxu0 }
 0x468   : > { %v23239_v23 = vsel %vm10226_vm5, %v8881_v4, -inf  ;;  %v8829_v54 = vrot.slane %v8828_v2, 2  ;;  %v8835_v52 = vmax.f32 %v8833_v36, %v8834_v45  ;;  %v19750_v55 = vadd.f32 %v22971_v8, %v22557_v14 }
 0x469   : > { %v8843_v31 = vrot.slane %v8842_v37, 2  ;;  %v8849_v39 = vmax.f32 %v8847_v49, %v8848_v13  ;;  %v7378_v59 = vcombine.high %v6978_v34, %v6978_v34  ;;  %v7385_v43 = vrot.slane %v6978_v34, %v22866_v58 }
 0x46a   : > { %v8830_v38 = vmax.f32 %v8828_v2, %v8829_v54  ;;  %v8836_v3 = vrot.slane %v8835_v52, 2  ;;  %v6913_v47 = vadd.f32 %v23092_v50, %v19749_v60  ;;  %v23246_v46 = vadd.f32 %v23092_v50, %v19750_v55 }
 0x46b   : > { %v8844_v40 = vmax.f32 %v8842_v37, %v8843_v31  ;;  %v8850_v62 = vrot.slane %v8849_v39, 2  ;;  %v7392_v51 = vrot.slane %v7378_v59, %v22866_v58  ;;  %v7393_v61 = vcombine.high %v7385_v43, %v7385_v43 }
 0x46c   : > { %v8831_v14 = vrot.slane %v8830_v38, 1  ;;  %v8837_v8 = vmax.f32 %v8835_v52, %v8836_v3  ;;  %v8910_v63 = vsel %vm8433_vm4, %v7385_v43, -inf  ;;  %v6977_v57 = vmax.f32 %v6913_v47, 0.0 }
 0x46d   : > { %v8845_v32 = vrot.slane %v8844_v40, 1  ;;  %v8851_v20 = vmax.f32 %v8849_v39, %v8850_v62  ;;  %v7394_v11 = vcombine.high %v7392_v51, %v7392_v51  ;;  %v8911_v15 = vrot.slane %v8910_v63, 4 }
 0x46e   : > { %v8832_v6 = vmax.f32 %v8830_v38, %v8831_v14  ;;  %v8838_v24 = vrot.slane %v8837_v8, 1  ;;  %v8917_v28 = vsel %vm8433_vm4, %v7393_v61, -inf  ;;  %v8924_v5 = vsel %vm8433_vm4, %v7392_v51, -inf }
 0x46f   : > { %v8846_v35 = vmax.f32 %v8844_v40, %v8845_v32  ;;  %v8852_v21 = vrot.slane %v8851_v20, 1  ;;  %v8912_v42 = vmax.f32 %v8910_v63, %v8911_v15  ;;  %v8918_v36 = vrot.slane %v8917_v28, 4 }
 0x470   : > { %v8839_v0 = vmax.f32 %v8837_v8, %v8838_v24  ;;  %v10311_v4 = vsel %vm10226_vm5, %v8832_v6, -inf  ;;  %v8925_v2 = vrot.slane %v8924_v5, 4  ;;  %v8931_v45 = vsel %vm8433_vm4, %v7394_v11, -inf }
 0x471   : > { %v8853_v49 = vmax.f32 %v8851_v20, %v8852_v21  ;;  %v10313_v37 = vmax.f32 %v10311_v4, %v23221_v25  ;;  %v10317_v13 = vsel %vm10226_vm5, %v8846_v35, -inf  ;;  %v8913_v34 = vrot.slane %v8912_v42, 2 }
 0x472   : > { %v10314_v60 = vsel %vm10226_vm5, %v8839_v0, -inf  ;;  %v10319_v54 = vmax.f32 %v10317_v13, %v23231_v17  ;;  %v8919_v52 = vmax.f32 %v8917_v28, %v8918_v36  ;;  %v8926_v55 = vmax.f32 %v8924_v5, %v8925_v2  ;;  %v23265_v17 = vpop.f32.mrb[30].mxu0 }
 0x473   : > { %v10316_v31 = vmax.f32 %v10314_v60, %v23228_v30  ;;  %v10320_v39 = vsel %vm10226_vm5, %v8853_v49, -inf  ;;  %v8914_v59 = vmax.f32 %v8912_v42, %v8913_v34  ;;  %v8932_v43 = vrot.slane %v8931_v45, 4 }
 0x474   : > { %v10322_v38 = vmax.f32 %v10320_v39, %v23239_v23  ;;  %v8920_v3 = vrot.slane %v8919_v52, 2  ;;  %v8927_v47 = vrot.slane %v8926_v55, 2  ;;  %v7361_v25 = vcombine.high %v6977_v57, %v6977_v57 }
 0x475   : > { %v10812_v40 = vsel %vm10788_vm6, %v10316_v31, %v10313_v37  ;;  %v8915_v62 = vrot.slane %v8914_v59, 1  ;;  %v8933_v51 = vmax.f32 %v8931_v45, %v8932_v43  ;;  %v7368_v61 = vrot.slane %v6977_v57, %v22866_v58 }
 0x476   : > { %v10813_v14 = vsel %vm10790_vm7, %v10319_v54, %v10812_v40  ;;  %v8921_v30 = vmax.f32 %v8919_v52, %v8920_v3  ;;  %v8928_v8 = vmax.f32 %v8926_v55, %v8927_v47  ;;  %v7375_v63 = vrot.slane %v7361_v25, %v22866_v58 }
 0x477   : > { %v10814_v32 = vsel %vm10792_vm8, %v10322_v38, %v10813_v14  ;;  %v8916_v23 = vmax.f32 %v8914_v59, %v8915_v62  ;;  %v8934_v20 = vrot.slane %v8933_v51, 2  ;;  %v7376_v11 = vcombine.high %v7368_v61, %v7368_v61  ;;  %v23281_v59 = vpop.f32.mrb[31].mxu0 }
 0x478   : > { %10928 = vst.msk [vmem:[#allocation3 + $0x51] sm:$0xf] %vm10920_vm9, %v10814_v32  ;;  %v8922_v15 = vrot.slane %v8921_v30, 1  ;;  %v8929_v6 = vrot.slane %v8928_v8, 1  ;;  %v7377_v24 = vcombine.high %v7375_v63, %v7375_v63  ;;  %v8882_v57 = vsel %vm8433_vm4, %v7368_v61, -inf }
 0x479   : > { %v8935_v28 = vmax.f32 %v8933_v51, %v8934_v20  ;;  %v23273_v5 = vsel %vm10226_vm5, %v8916_v23, -inf  ;;  %v8883_v35 = vrot.slane %v8882_v57, 4  ;;  %v8889_v21 = vsel %vm8433_vm4, %v7376_v11, -inf }
 0x47a   : > { %v8923_v42 = vmax.f32 %v8921_v30, %v8922_v15  ;;  %v8930_v36 = vmax.f32 %v8928_v8, %v8929_v6  ;;  %v8890_v0 = vrot.slane %v8889_v21, 4  ;;  %v8896_v4 = vsel %vm8433_vm4, %v7375_v63, -inf }
 0x47b   : > { %v8936_v2 = vrot.slane %v8935_v28, 1  ;;  %v8884_v45 = vmax.f32 %v8882_v57, %v8883_v35  ;;  %v8897_v49 = vrot.slane %v8896_v4, 4  ;;  %v8903_v37 = vsel %vm8433_vm4, %v7377_v24, -inf }
 0x47c   : > { %v10327_v13 = vsel %vm10226_vm5, %v8923_v42, -inf  ;;  %v10330_v34 = vsel %vm10226_vm5, %v8930_v36, -inf  ;;  %v8891_v60 = vmax.f32 %v8889_v21, %v8890_v0  ;;  %v8904_v54 = vrot.slane %v8903_v37, 4 }
 0x47d   : > { %v8937_v52 = vmax.f32 %v8935_v28, %v8936_v2  ;;  %v8885_v55 = vrot.slane %v8884_v45, 2  ;;  %v8898_v31 = vmax.f32 %v8896_v4, %v8897_v49  ;;  %v6980_v39 = vmax.f32 %v23246_v46, 0.0 }
 0x47e   : > { %v8892_v43 = vrot.slane %v8891_v60, 2  ;;  %v8905_v38 = vmax.f32 %v8903_v37, %v8904_v54  ;;  %v19751_v3 = vadd.f32 %v22987_v53, %v22559_v19  ;;  %v19752_v47 = vadd.f32 %v23008_v18, %v22563_v22 }
 0x47f   : > { %v10333_v25 = vsel %vm10226_vm5, %v8937_v52, -inf  ;;  %v8886_v40 = vmax.f32 %v8884_v45, %v8885_v55  ;;  %v8899_v62 = vrot.slane %v8898_v31, 2  ;;  %v7412_v51 = vcombine.high %v6980_v39, %v6980_v39 }
 0x480   : > { %v8893_v61 = vmax.f32 %v8891_v60, %v8892_v43  ;;  %v8906_v14 = vrot.slane %v8905_v38, 2  ;;  %v7419_v30 = vrot.slane %v6980_v39, %v22866_v58  ;;  %v6915_v46 = vadd.f32 %v23092_v50, %v19751_v3 }
 0x481   : > { %v8887_v8 = vrot.slane %v8886_v40, 1  ;;  %v8900_v63 = vmax.f32 %v8898_v31, %v8899_v62  ;;  %v7426_v32 = vrot.slane %v7412_v51, %v22866_v58  ;;  %v6918_v19 = vadd.f32 %v23092_v50, %v19752_v47 }
 0x482   : > { %v8894_v53 = vrot.slane %v8893_v61, 1  ;;  %v8907_v23 = vmax.f32 %v8905_v38, %v8906_v14  ;;  %v7427_v22 = vcombine.high %v7419_v30, %v7419_v30  ;;  %v8966_v18 = vsel %vm8433_vm4, %v7419_v30, -inf }
 0x483   : > { %v8888_v20 = vmax.f32 %v8886_v40, %v8887_v8  ;;  %v8901_v11 = vrot.slane %v8900_v63, 1  ;;  %v7428_v15 = vcombine.high %v7426_v32, %v7426_v32  ;;  %v8967_v6 = vrot.slane %v8966_v18, 4 }
 0x484   : > { %v8895_v24 = vmax.f32 %v8893_v61, %v8894_v53  ;;  %v8908_v57 = vrot.slane %v8907_v23, 1  ;;  %v8973_v28 = vsel %vm8433_vm4, %v7427_v22, -inf  ;;  %v8980_v35 = vsel %vm8433_vm4, %v7426_v32, -inf }
 0x485   : > { %v8902_v21 = vmax.f32 %v8900_v63, %v8901_v11  ;;  %v10323_v42 = vsel %vm10226_vm5, %v8888_v20, -inf  ;;  %v8968_v36 = vmax.f32 %v8966_v18, %v8967_v6  ;;  %v8974_v0 = vrot.slane %v8973_v28, 4  ;;  %v23308_v6 = vpop.f32.mrb[32].mxu0 }
 0x486   : > { %v8909_v4 = vmax.f32 %v8907_v23, %v8908_v57  ;;  %v10325_v2 = vmax.f32 %v10323_v42, %v23273_v5  ;;  %v10326_v45 = vsel %vm10226_vm5, %v8895_v24, -inf  ;;  %v8981_v49 = vrot.slane %v8980_v35, 4 }
 0x487   : > { %v10328_v37 = vmax.f32 %v10326_v45, %v10327_v13  ;;  %v10329_v60 = vsel %vm10226_vm5, %v8902_v21, -inf  ;;  %v8969_v54 = vrot.slane %v8968_v36, 2  ;;  %v8975_v52 = vmax.f32 %v8973_v28, %v8974_v0 }
 0x488   : > { %v10331_v55 = vmax.f32 %v10329_v60, %v10330_v34  ;;  %v10332_v31 = vsel %vm10226_vm5, %v8909_v4, -inf  ;;  %v8982_v39 = vmax.f32 %v8980_v35, %v8981_v49  ;;  %v8987_v43 = vsel %vm8433_vm4, %v7428_v15, -inf }
 0x489   : > { %v10334_v38 = vmax.f32 %v10332_v31, %v10333_v25  ;;  %v10815_v3 = vsel %vm10788_vm6, %v10328_v37, %v10325_v2  ;;  %v8970_v47 = vmax.f32 %v8968_v36, %v8969_v54  ;;  %v8976_v40 = vrot.slane %v8975_v52, 2 }
 0x48a   : > { %v10816_v5 = vsel %vm10790_vm7, %v10331_v55, %v10815_v3  ;;  %v8983_v62 = vrot.slane %v8982_v39, 2  ;;  %v8988_v51 = vrot.slane %v8987_v43, 4  ;;  %v6979_v13 = vmax.f32 %v6915_v46, 0.0 }
 0x48b   : > { %v10817_v61 = vsel %vm10792_vm8, %v10334_v38, %v10816_v5  ;;  %v8971_v14 = vrot.slane %v8970_v47, 1  ;;  %v8977_v30 = vmax.f32 %v8975_v52, %v8976_v40  ;;  %v6982_v34 = vmax.f32 %v6918_v19, 0.0  ;;  %v23323_v52 = vpop.f32.mrb[33].mxu0 }
 0x48c   : > { %10929 = vst.msk [vmem:[#allocation3 + $0x69] sm:$0xf] %vm10920_vm9, %v10817_v61  ;;  %v8984_v8 = vmax.f32 %v8982_v39, %v8983_v62  ;;  %v8989_v63 = vmax.f32 %v8987_v43, %v8988_v51  ;;  %v7395_v32 = vcombine.high %v6979_v13, %v6979_v13  ;;  %v7402_v25 = vrot.slane %v6979_v13, %v22866_v58 }
 0x48d   : > { %v8972_v53 = vmax.f32 %v8970_v47, %v8971_v14  ;;  %v8978_v23 = vrot.slane %v8977_v30, 1  ;;  %v7446_v22 = vcombine.high %v6982_v34, %v6982_v34  ;;  %v7453_v18 = vrot.slane %v6982_v34, %v22866_v58 }
 0x48e   : > { %v8985_v20 = vrot.slane %v8984_v8, 1  ;;  %v8990_v11 = vrot.slane %v8989_v63, 2  ;;  %v7409_v46 = vrot.slane %v7395_v32, %v22866_v58  ;;  %v7410_v15 = vcombine.high %v7402_v25, %v7402_v25 }
 0x48f   : > { %v8979_v19 = vmax.f32 %v8977_v30, %v8978_v23  ;;  %v23311_v24 = vsel %vm10226_vm5, %v8972_v53, -inf  ;;  %v8938_v57 = vsel %vm8433_vm4, %v7402_v25, -inf  ;;  %v7460_v28 = vrot.slane %v7446_v22, %v22866_v58 }
 0x490   : > { %v8986_v35 = vmax.f32 %v8984_v8, %v8985_v20  ;;  %v8991_v21 = vmax.f32 %v8989_v63, %v8990_v11  ;;  %v7411_v42 = vcombine.high %v7409_v46, %v7409_v46  ;;  %v8939_v36 = vrot.slane %v8938_v57, 4 }
 0x491   : > { %v23316_v0 = vsel %vm10226_vm5, %v8979_v19, -inf  ;;  %v8945_v4 = vsel %vm8433_vm4, %v7410_v15, -inf  ;;  %v8952_v2 = vsel %vm8433_vm4, %v7409_v46, -inf  ;;  %v7461_v45 = vcombine.high %v7453_v18, %v7453_v18 }
 0x492   : > { %v8992_v49 = vrot.slane %v8991_v21, 1  ;;  %v23321_v37 = vsel %vm10226_vm5, %v8986_v35, -inf  ;;  %v8940_v60 = vmax.f32 %v8938_v57, %v8939_v36  ;;  %v8946_v54 = vrot.slane %v8945_v4, 4 }
 0x493   : > { %v8953_v55 = vrot.slane %v8952_v2, 4  ;;  %v8959_v31 = vsel %vm8433_vm4, %v7411_v42, -inf  ;;  %v7462_v39 = vcombine.high %v7460_v28, %v7460_v28  ;;  %v9022_v43 = vsel %vm8433_vm4, %v7453_v18, -inf }
 0x494   : > { %v8993_v38 = vmax.f32 %v8991_v21, %v8992_v49  ;;  %v8941_v3 = vrot.slane %v8940_v60, 2  ;;  %v8947_v47 = vmax.f32 %v8945_v4, %v8946_v54  ;;  %v8960_v40 = vrot.slane %v8959_v31, 4 }
 0x495   : > { %v8954_v5 = vmax.f32 %v8952_v2, %v8953_v55  ;;  %v9023_v62 = vrot.slane %v9022_v43, 4  ;;  %v9029_v51 = vsel %vm8433_vm4, %v7461_v45, -inf  ;;  %v9036_v13 = vsel %vm8433_vm4, %v7460_v28, -inf }
 0x496   : > { %v10345_v61 = vsel %vm10226_vm5, %v8993_v38, -inf  ;;  %v8942_v14 = vmax.f32 %v8940_v60, %v8941_v3  ;;  %v8948_v30 = vrot.slane %v8947_v47, 2  ;;  %v8961_v34 = vmax.f32 %v8959_v31, %v8960_v40 }
 0x497   : > { %v8955_v8 = vrot.slane %v8954_v5, 2  ;;  %v9024_v63 = vmax.f32 %v9022_v43, %v9023_v62  ;;  %v9030_v32 = vrot.slane %v9029_v51, 4  ;;  %v9037_v25 = vrot.slane %v9036_v13, 4 }
 0x498   : > { %v8943_v53 = vrot.slane %v8942_v14, 1  ;;  %v8949_v23 = vmax.f32 %v8947_v47, %v8948_v30  ;;  %v8962_v22 = vrot.slane %v8961_v34, 2  ;;  %v9043_v18 = vsel %vm8433_vm4, %v7462_v39, -inf }
 0x499   : > { %v8956_v20 = vmax.f32 %v8954_v5, %v8955_v8  ;;  %v9025_v11 = vrot.slane %v9024_v63, 2  ;;  %v9031_v46 = vmax.f32 %v9029_v51, %v9030_v32  ;;  %v9038_v15 = vmax.f32 %v9036_v13, %v9037_v25  ;;  %v17285_v25 = vld [vmem:[%s25210_s3 + $0x18] sm:$0xff] }
 0x49a   : > { %v8944_v19 = vmax.f32 %v8942_v14, %v8943_v53  ;;  %v8950_v57 = vrot.slane %v8949_v23, 1  ;;  %v8963_v28 = vmax.f32 %v8961_v34, %v8962_v22  ;;  %v9044_v35 = vrot.slane %v9043_v18, 4  ;;  %v23351_v22 = vpop.f32.mrb[34].mxu0 }
 0x49b   : > { %v8957_v21 = vrot.slane %v8956_v20, 1  ;;  %v9026_v42 = vmax.f32 %v9024_v63, %v9025_v11  ;;  %v9032_v36 = vrot.slane %v9031_v46, 2  ;;  %v9039_v4 = vrot.slane %v9038_v15, 2 }
 0x49c   : > { %v8951_v2 = vmax.f32 %v8949_v23, %v8950_v57  ;;  %v8964_v45 = vrot.slane %v8963_v28, 1  ;;  %v10335_v49 = vsel %vm10226_vm5, %v8944_v19, -inf  ;;  %v9045_v60 = vmax.f32 %v9043_v18, %v9044_v35 }
 0x49d   : > { %v8958_v54 = vmax.f32 %v8956_v20, %v8957_v21  ;;  %v10337_v55 = vmax.f32 %v10335_v49, %v23311_v24  ;;  %v9027_v31 = vrot.slane %v9026_v42, 1  ;;  %v9033_v39 = vmax.f32 %v9031_v46, %v9032_v36  ;;  %v25367_v21 = vld [vmem:[#allocation37_spill] sm:$0xff]  ;;  %v25368_v36 = vld [vmem:[#allocation8_spill] sm:$0xff] }
 0x49e   : > { %v8965_v43 = vmax.f32 %v8963_v28, %v8964_v45  ;;  %v10338_v38 = vsel %vm10226_vm5, %v8951_v2, -inf  ;;  %v9040_v3 = vmax.f32 %v9038_v15, %v9039_v4  ;;  %v9046_v47 = vrot.slane %v9045_v60, 2 }
 0x49f   : > { %v10340_v40 = vmax.f32 %v10338_v38, %v23316_v0  ;;  %v10341_v5 = vsel %vm10226_vm5, %v8958_v54, -inf  ;;  %v9028_v62 = vmax.f32 %v9026_v42, %v9027_v31  ;;  %v9034_v51 = vrot.slane %v9033_v39, 1  ;;  %v17284_v0 = vld [vmem:[%s25210_s3 + $0x10] sm:$0xff] }
 0x4a0   : > { %v10343_v13 = vmax.f32 %v10341_v5, %v23321_v37  ;;  %v10344_v14 = vsel %vm10226_vm5, %v8965_v43, -inf  ;;  %v9041_v30 = vrot.slane %v9040_v3, 1  ;;  %v9047_v34 = vmax.f32 %v9045_v60, %v9046_v47  ;;  %v20450_v47 = vld [vmem:[#allocation3 + $0x41] ss:$8 sps:$4 sm:$0xff]  }
 0x4a1   : > { %v10346_v24 = vmax.f32 %v10344_v14, %v10345_v61  ;;  %v10818_v8 = vsel %vm10788_vm6, %v10340_v40, %v10337_v55  ;;  %v9035_v63 = vmax.f32 %v9033_v39, %v9034_v51  ;;  %v23340_v32 = vsel %vm10226_vm5, %v9028_v62, -inf  ;;  %v23409_v40 = vpop.f32.mrb[35].mxu0 }
 0x4a2   : > { %v10819_v37 = vsel %vm10790_vm7, %v10343_v13, %v10818_v8  ;;  %v9042_v53 = vmax.f32 %v9040_v3, %v9041_v30  ;;  %v9048_v23 = vrot.slane %v9047_v34, 1  ;;  %v19753_v61 = vadd.f32 %v23016_v41, %v22565_v56 }
 0x4a3   : > { %v10820_v18 = vsel %vm10792_vm8, %v10346_v24, %v10819_v37  ;;  %v23355_v20 = vsel %vm10226_vm5, %v9035_v63, -inf  ;;  %v19754_v11 = vadd.f32 %v23059_v12, %v22569_v16  ;;  %v19755_v46 = vadd.f32 %v23067_v29, %v22571_v44  ;;  %v20448_v29 = vld [vmem:[#allocation3 + $0x11] ss:$8 sps:$4 sm:$0xff]  }
 0x4a4   : > { %10930 = vst.msk [vmem:[#allocation3 + $0x71] sm:$0xf] %vm10920_vm9, %v10820_v18  ;;  %v9049_v15 = vmax.f32 %v9047_v34, %v9048_v23  ;;  %v23363_v19 = vsel %vm10226_vm5, %v9042_v53, -inf  ;;  %v6917_v56 = vadd.f32 %v23092_v50, %v19753_v61  ;;  %v19616_v41 = vpack.c.bf16 %v17285_v25, %v17284_v0 }
 0x4a5   : > { %v6920_v57 = vadd.f32 %v23092_v50, %v19754_v11  ;;  %v6919_v28 = vadd.f32 %v23092_v50, %v19755_v46  ;;  %v19756_v35 = vadd.f32 %v23104_v26, %v22575_v1  ;;  %v19757_v16 = vadd.f32 %v23140_v7, %v22577_v10  ;;  %v23384_v1 = vld [vmem:[%s25209_s2] ss:$0 sm:$0xff]  ;;  %v20449_v7 = vld [vmem:[#allocation3 + $0x31] ss:$8 sps:$4 sm:$0xff]  }
 0x4a6   : > { %v23373_v44 = vsel %vm10226_vm5, %v9049_v15, -inf  ;;  %v6981_v12 = vmax.f32 %v6917_v56, 0.0  ;;  %19617 = vmatprep.subr.bf16.mxu1 %v19616_v41  ;;  %v19758_v42 = vadd.f32 %v23157_v48, %v25367_v21  ;;  %v19759_v4 = vadd.f32 %v23193_v33, %v25368_v36 }
 0x4a7   : > { %v6984_v2 = vmax.f32 %v6920_v57, 0.0  ;;  %v23379_v50 = vmax.f32 %v6919_v28, 0.0  ;;  %19619 = vmatpush3.bf16.msra.mxu1 %v19616_v41  ;;  %v6922_v10 = vadd.f32 %v23384_v1, %v19756_v35  ;;  %v23388_v26 = vadd.f32 %v23384_v1, %v19757_v16 }
 0x4a8   : > { %v7429_v45 = vcombine.high %v6981_v12, %v6981_v12  ;;  %v7436_v48 = vrot.slane %v6981_v12, %v22866_v58  ;;  %v23392_v33 = vadd.f32 %v23384_v1, %v19758_v42  ;;  %v23395_v49 = vadd.f32 %v23384_v1, %v19759_v4 }
 0x4a9   : > { %v7480_v60 = vcombine.high %v6984_v2, %v6984_v2  ;;  %v7487_v54 = vrot.slane %v6984_v2, %v22866_v58  ;;  %v7463_v55 = vcombine.high %v23379_v50, %v23379_v50  ;;  %v23402_v31 = vrot.slane %v23379_v50, %v22866_v58 }
 0x4aa   : > { %v7443_v39 = vrot.slane %v7429_v45, %v22866_v58  ;;  %v7444_v43 = vcombine.high %v7436_v48, %v7436_v48  ;;  %v8994_v38 = vsel %vm8433_vm4, %v7436_v48, -inf  ;;  %v23406_v3 = vmax.f32 %v6922_v10, 0.0  ;;  %19232 = vmatmul.mubr.msk.f32.vlgmr.msra.gmra.mrb[64].mxu1 %vm10226_vm5, %v20448_v29 }
 0x4ab   : > { %v8995_v5 = vrot.slane %v8994_v38, 4  ;;  %v7494_v62 = vrot.slane %v7480_v60, %v22866_v58  ;;  %v7495_v51 = vcombine.high %v7487_v54, %v7487_v54  ;;  %v9078_v13 = vsel %vm8433_vm4, %v7487_v54, -inf  ;;  %19234 = vmatprep.mubr.msk.f32.mxu1 %vm10226_vm5, %v20449_v7 }
 0x4ac   : > { %v7445_v14 = vcombine.high %v7443_v39, %v7443_v39  ;;  %v9001_v30 = vsel %vm8433_vm4, %v7444_v43, -inf  ;;  %v9008_v34 = vsel %vm8433_vm4, %v7443_v39, -inf  ;;  %v9079_v24 = vrot.slane %v9078_v13, 4 }
 0x4ad   : > { %v8996_v8 = vmax.f32 %v8994_v38, %v8995_v5  ;;  %v9002_v63 = vrot.slane %v9001_v30, 4  ;;  %v9009_v0 = vrot.slane %v9008_v34, 4  ;;  %v7496_v25 = vcombine.high %v7494_v62, %v7494_v62 }
 0x4ae   : > { %v9015_v37 = vsel %vm8433_vm4, %v7445_v14, -inf  ;;  %v9080_v53 = vmax.f32 %v9078_v13, %v9079_v24  ;;  %v9085_v23 = vsel %vm8433_vm4, %v7495_v51, -inf  ;;  %v9092_v61 = vsel %vm8433_vm4, %v7494_v62, -inf  ;;  %19235 = vmatmul.mubr.msk.f32.gmra.mrb[66].mxu1 %vm10226_vm5, %v20450_v47 }
 0x4af   : > { %v8997_v18 = vrot.slane %v8996_v8, 2  ;;  %v9003_v11 = vmax.f32 %v9001_v30, %v9002_v63  ;;  %v9010_v46 = vmax.f32 %v9008_v34, %v9009_v0  ;;  %v9016_v15 = vrot.slane %v9015_v37, 4 }
 0x4b0   : > { %v9081_v56 = vrot.slane %v9080_v53, 2  ;;  %v9086_v41 = vrot.slane %v9085_v23, 4  ;;  %v9093_v57 = vrot.slane %v9092_v61, 4  ;;  %v9099_v28 = vsel %vm8433_vm4, %v7496_v25, -inf }
 0x4b1   : > { %v8998_v35 = vmax.f32 %v8996_v8, %v8997_v18  ;;  %v9004_v16 = vrot.slane %v9003_v11, 2  ;;  %v9011_v12 = vrot.slane %v9010_v46, 2  ;;  %v9017_v29 = vmax.f32 %v9015_v37, %v9016_v15 }
 0x4b2   : > { %v9082_v21 = vmax.f32 %v9080_v53, %v9081_v56  ;;  %v9087_v42 = vmax.f32 %v9085_v23, %v9086_v41  ;;  %v9094_v36 = vmax.f32 %v9092_v61, %v9093_v57  ;;  %v9100_v4 = vrot.slane %v9099_v28, 4  ;;  %v23423_v53 = vpop.f32.mrb[36].mxu0 }
 0x4b3   : > { %v8999_v2 = vrot.slane %v8998_v35, 1  ;;  %v9005_v10 = vmax.f32 %v9003_v11, %v9004_v16  ;;  %v9012_v7 = vmax.f32 %v9010_v46, %v9011_v12  ;;  %v9018_v45 = vrot.slane %v9017_v29, 2 }
 0x4b4   : > { %v9083_v48 = vrot.slane %v9082_v21, 1  ;;  %v9088_v60 = vrot.slane %v9087_v42, 2  ;;  %v9095_v54 = vrot.slane %v9094_v36, 2  ;;  %v9101_v39 = vmax.f32 %v9099_v28, %v9100_v4 }
 0x4b5   : > { %v9000_v43 = vmax.f32 %v8998_v35, %v8999_v2  ;;  %v9006_v38 = vrot.slane %v9005_v10, 1  ;;  %v9013_v47 = vrot.slane %v9012_v7, 1  ;;  %v9019_v5 = vmax.f32 %v9017_v29, %v9018_v45 }
 0x4b6   : > { %v9084_v62 = vmax.f32 %v9082_v21, %v9083_v48  ;;  %v9089_v51 = vmax.f32 %v9087_v42, %v9088_v60  ;;  %v9096_v13 = vmax.f32 %v9094_v36, %v9095_v54  ;;  %v9102_v14 = vrot.slane %v9101_v39, 2 }
 0x4b7   : > { %v9007_v30 = vmax.f32 %v9005_v10, %v9006_v38  ;;  %v9014_v34 = vmax.f32 %v9012_v7, %v9013_v47  ;;  %v9020_v24 = vrot.slane %v9019_v5, 1  ;;  %v10347_v8 = vsel %vm10226_vm5, %v9000_v43, -inf }
 0x4b8   : > { %v10349_v63 = vmax.f32 %v10347_v8, %v23340_v32  ;;  %v9090_v0 = vrot.slane %v9089_v51, 1  ;;  %v9097_v25 = vrot.slane %v9096_v13, 1  ;;  %v9103_v37 = vmax.f32 %v9101_v39, %v9102_v14 }
 0x4b9   : > { %v9021_v23 = vmax.f32 %v9019_v5, %v9020_v24  ;;  %v10350_v61 = vsel %vm10226_vm5, %v9007_v30, -inf  ;;  %v10353_v18 = vsel %vm10226_vm5, %v9014_v34, -inf  ;;  %v23428_v11 = vsel %vm10226_vm5, %v9084_v62, -inf }
 0x4ba   : > { %v10352_v46 = vmax.f32 %v10350_v61, %v23355_v20  ;;  %v10355_v15 = vmax.f32 %v10353_v18, %v23363_v19  ;;  %v9091_v56 = vmax.f32 %v9089_v51, %v9090_v0  ;;  %v9098_v41 = vmax.f32 %v9096_v13, %v9097_v25 }
 0x4bb   : > { %v10356_v32 = vsel %vm10226_vm5, %v9021_v23, -inf  ;;  %v9104_v57 = vrot.slane %v9103_v37, 1  ;;  %v7477_v28 = vrot.slane %v7463_v55, %v22866_v58  ;;  %v7478_v35 = vcombine.high %v23402_v31, %v23402_v31  ;;  %v23450_v55 = vpop.f32.mrb[37].mxu0 }
 0x4bc   : > { %v10358_v16 = vmax.f32 %v10356_v32, %v23373_v44  ;;  %v10821_v12 = vsel %vm10788_vm6, %v10352_v46, %v10349_v63  ;;  %v23442_v20 = vsel %vm10226_vm5, %v9091_v56, -inf  ;;  %v23445_v19 = vsel %vm10226_vm5, %v9098_v41, -inf }
 0x4bd   : > { %v10822_v29 = vsel %vm10790_vm7, %v10355_v15, %v10821_v12  ;;  %v9105_v21 = vmax.f32 %v9103_v37, %v9104_v57  ;;  %v7479_v42 = vcombine.high %v7477_v28, %v7477_v28  ;;  %v9050_v50 = vsel %vm8433_vm4, %v23402_v31, -inf }
 0x4be   : > { %v10823_v36 = vsel %vm10792_vm8, %v10358_v16, %v10822_v29  ;;  %v9051_v44 = vrot.slane %v9050_v50, 4  ;;  %v9057_v4 = vsel %vm8433_vm4, %v7478_v35, -inf  ;;  %v9064_v2 = vsel %vm8433_vm4, %v7477_v28, -inf }
 0x4bf   : > { %10931 = vst.msk [vmem:[#allocation3 + $0x79] sm:$0xf] %vm10920_vm9, %v10823_v36  ;;  %v23457_v10 = vsel %vm10226_vm5, %v9105_v21, -inf  ;;  %v9058_v7 = vrot.slane %v9057_v4, 4  ;;  %v9065_v45 = vrot.slane %v9064_v2, 4  ;;  %v9071_v48 = vsel %vm8433_vm4, %v7479_v42, -inf }
 0x4c0   : > { %v9052_v60 = vmax.f32 %v9050_v50, %v9051_v44  ;;  %v9072_v31 = vrot.slane %v9071_v48, 4  ;;  %v7514_v54 = vcombine.high %v23406_v3, %v23406_v3  ;;  %v7521_v39 = vrot.slane %v23406_v3, %v22866_v58  ;;  %v20451_v36 = vld [vmem:[#allocation3 + $0x61] ss:$8 sps:$4 sm:$0xff]  }
 0x4c1   : > { %v9059_v43 = vmax.f32 %v9057_v4, %v9058_v7  ;;  %v9066_v38 = vmax.f32 %v9064_v2, %v9065_v45  ;;  %v6985_v47 = vmax.f32 %v23388_v26, 0.0  ;;  %v23466_v5 = vmax.f32 %v23392_v33, 0.0  ;;  %19237 = vmatprep.mubr.msk.f32.mxu1 %vm10226_vm5, %v20451_v36 }
 0x4c2   : > { %v9053_v62 = vrot.slane %v9052_v60, 2  ;;  %v9073_v51 = vmax.f32 %v9071_v48, %v9072_v31  ;;  %v7528_v13 = vrot.slane %v7514_v54, %v22866_v58  ;;  %v7529_v14 = vcombine.high %v7521_v39, %v7521_v39 }
 0x4c3   : > { %v9060_v30 = vrot.slane %v9059_v43, 2  ;;  %v9067_v34 = vrot.slane %v9066_v38, 2  ;;  %v9134_v24 = vsel %vm8433_vm4, %v7521_v39, -inf  ;;  %v7497_v8 = vcombine.high %v6985_v47, %v6985_v47 }
 0x4c4   : > { %v9054_v63 = vmax.f32 %v9052_v60, %v9053_v62  ;;  %v9074_v0 = vrot.slane %v9073_v51, 2  ;;  %v7530_v3 = vcombine.high %v7528_v13, %v7528_v13  ;;  %v9135_v25 = vrot.slane %v9134_v24, 4 }
 0x4c5   : > { %v9061_v37 = vmax.f32 %v9059_v43, %v9060_v30  ;;  %v9068_v23 = vmax.f32 %v9066_v38, %v9067_v34  ;;  %v9141_v26 = vsel %vm8433_vm4, %v7529_v14, -inf  ;;  %v9148_v33 = vsel %vm8433_vm4, %v7528_v13, -inf }
 0x4c6   : > { %v9055_v61 = vrot.slane %v9054_v63, 1  ;;  %v9075_v18 = vmax.f32 %v9073_v51, %v9074_v0  ;;  %v9136_v46 = vmax.f32 %v9134_v24, %v9135_v25  ;;  %v9142_v15 = vrot.slane %v9141_v26, 4 }
 0x4c7   : > { %v9062_v56 = vrot.slane %v9061_v37, 1  ;;  %v9069_v41 = vrot.slane %v9068_v23, 1  ;;  %v9149_v32 = vrot.slane %v9148_v33, 4  ;;  %v9155_v57 = vsel %vm8433_vm4, %v7530_v3, -inf  ;;  %v23486_v3 = vpop.f32.mrb[38].mxu0 }
 0x4c8   : > { %v9056_v28 = vmax.f32 %v9054_v63, %v9055_v61  ;;  %v9076_v35 = vrot.slane %v9075_v18, 1  ;;  %v9137_v16 = vrot.slane %v9136_v46, 2  ;;  %v9143_v12 = vmax.f32 %v9141_v26, %v9142_v15  ;;  %v23494_v61 = vpop.f32.mrb[39].mxu0 }
 0x4c9   : > { %v9063_v29 = vmax.f32 %v9061_v37, %v9062_v56  ;;  %v9070_v21 = vmax.f32 %v9068_v23, %v9069_v41  ;;  %v9150_v42 = vmax.f32 %v9148_v33, %v9149_v32  ;;  %v9156_v50 = vrot.slane %v9155_v57, 4 }
 0x4ca   : > { %v9077_v44 = vmax.f32 %v9075_v18, %v9076_v35  ;;  %v10359_v4 = vsel %vm10226_vm5, %v9056_v28, -inf  ;;  %v9138_v2 = vmax.f32 %v9136_v46, %v9137_v16  ;;  %v9144_v7 = vrot.slane %v9143_v12, 2 }
 0x4cb   : > { %v10361_v45 = vmax.f32 %v10359_v4, %v23428_v11  ;;  %v10362_v48 = vsel %vm10226_vm5, %v9063_v29, -inf  ;;  %v10365_v60 = vsel %vm10226_vm5, %v9070_v21, -inf  ;;  %v9151_v31 = vrot.slane %v9150_v42, 2 }
 0x4cc   : > { %v10364_v54 = vmax.f32 %v10362_v48, %v23442_v20  ;;  %v10367_v39 = vmax.f32 %v10365_v60, %v23445_v19  ;;  %v10368_v43 = vsel %vm10226_vm5, %v9077_v44, -inf  ;;  %v9139_v38 = vrot.slane %v9138_v2, 1 }
 0x4cd   : > { %v10370_v62 = vmax.f32 %v10368_v43, %v23457_v10  ;;  %v9145_v51 = vmax.f32 %v9143_v12, %v9144_v7  ;;  %v9152_v13 = vmax.f32 %v9150_v42, %v9151_v31  ;;  %v9157_v14 = vmax.f32 %v9155_v57, %v9156_v50 }
 0x4ce   : > { %v10824_v11 = vsel %vm10788_vm6, %v10364_v54, %v10361_v45  ;;  %v9140_v30 = vmax.f32 %v9138_v2, %v9139_v38  ;;  %v7504_v34 = vrot.slane %v6985_v47, %v22866_v58  ;;  %v7511_v24 = vrot.slane %v7497_v8, %v22866_v58 }
 0x4cf   : > { %v10825_v63 = vsel %vm10790_vm7, %v10367_v39, %v10824_v11  ;;  %v9146_v20 = vrot.slane %v9145_v51, 1  ;;  %v9153_v0 = vrot.slane %v9152_v13, 1  ;;  %v9158_v19 = vrot.slane %v9157_v14, 2 }
 0x4d0   : > { %v10826_v25 = vsel %vm10792_vm8, %v10370_v62, %v10825_v63  ;;  %v23490_v10 = vsel %vm10226_vm5, %v9140_v30, -inf  ;;  %v7512_v37 = vcombine.high %v7504_v34, %v7504_v34  ;;  %v7513_v23 = vcombine.high %v7511_v24, %v7511_v24 }
 0x4d1   : > { %10932 = vst.msk [vmem:[#allocation3 + $0x81] sm:$0xf] %vm10920_vm9, %v10826_v25  ;;  %v9147_v26 = vmax.f32 %v9145_v51, %v9146_v20  ;;  %v9154_v47 = vmax.f32 %v9152_v13, %v9153_v0  ;;  %v9159_v33 = vmax.f32 %v9157_v14, %v9158_v19  ;;  %v9106_v8 = vsel %vm8433_vm4, %v7504_v34, -inf }
 0x4d2   : > { %v9107_v18 = vrot.slane %v9106_v8, 4  ;;  %v9113_v46 = vsel %vm8433_vm4, %v7512_v37, -inf  ;;  %v9120_v15 = vsel %vm8433_vm4, %v7511_v24, -inf  ;;  %v9127_v56 = vsel %vm8433_vm4, %v7513_v23, -inf }
 0x4d3   : > { %v9160_v41 = vrot.slane %v9159_v33, 1  ;;  %v10375_v32 = vsel %vm10226_vm5, %v9147_v26, -inf  ;;  %v23501_v57 = vsel %vm10226_vm5, %v9154_v47, -inf  ;;  %v9114_v28 = vrot.slane %v9113_v46, 4 }
 0x4d4   : > { %v9108_v35 = vmax.f32 %v9106_v8, %v9107_v18  ;;  %v9121_v16 = vrot.slane %v9120_v15, 4  ;;  %v9128_v12 = vrot.slane %v9127_v56, 4  ;;  %v7548_v29 = vcombine.high %v23466_v5, %v23466_v5 }
 0x4d5   : > { %v9161_v21 = vmax.f32 %v9159_v33, %v9160_v41  ;;  %v9115_v42 = vmax.f32 %v9113_v46, %v9114_v28  ;;  %v7555_v50 = vrot.slane %v23466_v5, %v22866_v58  ;;  %v6987_v36 = vmax.f32 %v23395_v49, 0.0 }
 0x4d6   : > { %v9109_v44 = vrot.slane %v9108_v35, 2  ;;  %v9122_v4 = vmax.f32 %v9120_v15, %v9121_v16  ;;  %v9129_v2 = vmax.f32 %v9127_v56, %v9128_v12  ;;  %v7562_v7 = vrot.slane %v7548_v29, %v22866_v58 }
 0x4d7   : > { %v10381_v45 = vsel %vm10226_vm5, %v9161_v21, -inf  ;;  %v9116_v48 = vrot.slane %v9115_v42, 2  ;;  %v7563_v60 = vcombine.high %v7555_v50, %v7555_v50  ;;  %v9190_v31 = vsel %vm8433_vm4, %v7555_v50, -inf }
 0x4d8   : > { %v9110_v54 = vmax.f32 %v9108_v35, %v9109_v44  ;;  %v9123_v39 = vrot.slane %v9122_v4, 2  ;;  %v9130_v43 = vrot.slane %v9129_v2, 2  ;;  %v7564_v38 = vcombine.high %v7562_v7, %v7562_v7 }
 0x4d9   : > { %v9117_v62 = vmax.f32 %v9115_v42, %v9116_v48  ;;  %v9191_v51 = vrot.slane %v9190_v31, 4  ;;  %v9197_v5 = vsel %vm8433_vm4, %v7563_v60, -inf  ;;  %v9204_v49 = vsel %vm8433_vm4, %v7562_v7, -inf }
 0x4da   : > { %v9111_v13 = vrot.slane %v9110_v54, 1  ;;  %v9124_v14 = vmax.f32 %v9122_v4, %v9123_v39  ;;  %v9131_v11 = vmax.f32 %v9129_v2, %v9130_v43  ;;  %v9198_v30 = vrot.slane %v9197_v5, 4 }
 0x4db   : > { %v9118_v34 = vrot.slane %v9117_v62, 1  ;;  %v9192_v24 = vmax.f32 %v9190_v31, %v9191_v51  ;;  %v9205_v63 = vrot.slane %v9204_v49, 4  ;;  %v9211_v20 = vsel %vm8433_vm4, %v7564_v38, -inf }
 0x4dc   : > { %v9112_v0 = vmax.f32 %v9110_v54, %v9111_v13  ;;  %v9125_v19 = vrot.slane %v9124_v14, 1  ;;  %v9132_v25 = vrot.slane %v9131_v11, 1  ;;  %v9199_v37 = vmax.f32 %v9197_v5, %v9198_v30 }
 0x4dd   : > { %v9119_v23 = vmax.f32 %v9117_v62, %v9118_v34  ;;  %v9193_v26 = vrot.slane %v9192_v24, 2  ;;  %v9206_v47 = vmax.f32 %v9204_v49, %v9205_v63  ;;  %v9212_v33 = vrot.slane %v9211_v20, 4  ;;  %v25369_v63 = vld [vmem:[#allocation38_spill] sm:$0xff] }
 0x4de   : > { %v9126_v8 = vmax.f32 %v9124_v14, %v9125_v19  ;;  %v9133_v18 = vmax.f32 %v9131_v11, %v9132_v25  ;;  %v10371_v46 = vsel %vm10226_vm5, %v9112_v0, -inf  ;;  %v9200_v15 = vrot.slane %v9199_v37, 2 }
 0x4df   : > { %v10373_v56 = vmax.f32 %v10371_v46, %v23490_v10  ;;  %v10374_v41 = vsel %vm10226_vm5, %v9119_v23, -inf  ;;  %v9194_v28 = vmax.f32 %v9192_v24, %v9193_v26  ;;  %v9207_v35 = vrot.slane %v9206_v47, 2 }
 0x4e0   : > { %v10376_v16 = vmax.f32 %v10374_v41, %v10375_v32  ;;  %v10377_v12 = vsel %vm10226_vm5, %v9126_v8, -inf  ;;  %v10380_v29 = vsel %vm10226_vm5, %v9133_v18, -inf  ;;  %v9201_v21 = vmax.f32 %v9199_v37, %v9200_v15  ;;  %v25371_v8 = vld [vmem:[#allocation10_spill] sm:$0xff] }
 0x4e1   : > { %v10379_v42 = vmax.f32 %v10377_v12, %v23501_v57  ;;  %v10382_v50 = vmax.f32 %v10380_v29, %v10381_v45  ;;  %v9195_v44 = vrot.slane %v9194_v28, 1  ;;  %v9208_v4 = vmax.f32 %v9206_v47, %v9207_v35  ;;  %v23525_v45 = vpop.f32.mrb[40].mxu0  ;;  %v25370_v47 = vld [vmem:[#allocation9_spill] sm:$0xff] }
 0x4e2   : > { %v10827_v2 = vsel %vm10788_vm6, %v10376_v16, %v10373_v56  ;;  %v9202_v7 = vrot.slane %v9201_v21, 1  ;;  %v9213_v48 = vmax.f32 %v9211_v20, %v9212_v33  ;;  %v7531_v10 = vcombine.high %v6987_v36, %v6987_v36 }
 0x4e3   : > { %v10828_v60 = vsel %vm10790_vm7, %v10379_v42, %v10827_v2  ;;  %v9196_v31 = vmax.f32 %v9194_v28, %v9195_v44  ;;  %v9209_v54 = vrot.slane %v9208_v4, 1  ;;  %v7538_v32 = vrot.slane %v6987_v36, %v22866_v58  ;;  %v23548_v28 = vpop.f32.mrb[41].mxu0 }
 0x4e4   : > { %v10829_v39 = vsel %vm10792_vm8, %v10382_v50, %v10828_v60  ;;  %v9203_v43 = vmax.f32 %v9201_v21, %v9202_v7  ;;  %v9214_v38 = vrot.slane %v9213_v48, 2  ;;  %v7545_v57 = vrot.slane %v7531_v10, %v22866_v58 }
 0x4e5   : > { %10933 = vst.msk [vmem:[#allocation3 + $0x99] sm:$0xf] %vm10920_vm9, %v10829_v39  ;;  %v9210_v62 = vmax.f32 %v9208_v4, %v9209_v54  ;;  %v23529_v51 = vsel %vm10226_vm5, %v9196_v31, -inf  ;;  %v7546_v5 = vcombine.high %v7538_v32, %v7538_v32  ;;  %v9162_v49 = vsel %vm8433_vm4, %v7538_v32, -inf }
 0x4e6   : > { %v9215_v13 = vmax.f32 %v9213_v48, %v9214_v38  ;;  %v23533_v36 = vsel %vm10226_vm5, %v9203_v43, -inf  ;;  %v7547_v14 = vcombine.high %v7545_v57, %v7545_v57  ;;  %v9163_v11 = vrot.slane %v9162_v49, 4 }
 0x4e7   : > { %v23536_v30 = vsel %vm10226_vm5, %v9210_v62, -inf  ;;  %v9169_v34 = vsel %vm8433_vm4, %v7546_v5, -inf  ;;  %v9176_v24 = vsel %vm8433_vm4, %v7545_v57, -inf  ;;  %v19760_v20 = vadd.f32 %v23214_v27, %v25369_v63 }
 0x4e8   : > { %v9216_v0 = vrot.slane %v9215_v13, 1  ;;  %v9164_v19 = vmax.f32 %v9162_v49, %v9163_v11  ;;  %v9170_v25 = vrot.slane %v9169_v34, 4  ;;  %v9177_v37 = vrot.slane %v9176_v24, 4 }
 0x4e9   : > { %v9183_v23 = vsel %vm8433_vm4, %v7547_v14, -inf  ;;  %v6926_v26 = vadd.f32 %v23384_v1, %v19760_v20  ;;  %v19761_v33 = vadd.f32 %v23248_v9, %v25370_v47  ;;  %v19762_v18 = vadd.f32 %v23265_v17, %v25371_v8 }
 0x4ea   : > { %v9217_v46 = vmax.f32 %v9215_v13, %v9216_v0  ;;  %v9165_v15 = vrot.slane %v9164_v19, 2  ;;  %v9171_v56 = vmax.f32 %v9169_v34, %v9170_v25  ;;  %v9178_v41 = vmax.f32 %v9176_v24, %v9177_v37  ;;  %v20452_v25 = vld [vmem:[#allocation3 + $0x71] ss:$8 sps:$4 sm:$0xff]  }
 0x4eb   : > { %v9184_v27 = vrot.slane %v9183_v23, 4  ;;  %v6990_v35 = vmax.f32 %v6926_v26, 0.0  ;;  %v6925_v16 = vadd.f32 %v23384_v1, %v19761_v33  ;;  %v6928_v12 = vadd.f32 %v23384_v1, %v19762_v18  ;;  %19238 = vmatmul.mubr.msk.f32.gmra.mrb[68].mxu1 %vm10226_vm5, %v20452_v25 }
 0x4ec   : > { %v10393_v29 = vsel %vm10226_vm5, %v9217_v46, -inf  ;;  %v9166_v21 = vmax.f32 %v9164_v19, %v9165_v15  ;;  %v9172_v42 = vrot.slane %v9171_v56, 2  ;;  %v9179_v9 = vrot.slane %v9178_v41, 2 }
 0x4ed   : > { %v9185_v50 = vmax.f32 %v9183_v23, %v9184_v27  ;;  %v7582_v44 = vcombine.high %v6990_v35, %v6990_v35  ;;  %v7589_v17 = vrot.slane %v6990_v35, %v22866_v58  ;;  %v6989_v4 = vmax.f32 %v6925_v16, 0.0 }
 0x4ee   : > { %v9167_v2 = vrot.slane %v9166_v21, 1  ;;  %v9173_v7 = vmax.f32 %v9171_v56, %v9172_v42  ;;  %v9180_v48 = vmax.f32 %v9178_v41, %v9179_v9  ;;  %v23554_v10 = vmax.f32 %v6928_v12, 0.0 }
 0x4ef   : > { %v9186_v60 = vrot.slane %v9185_v50, 2  ;;  %v7596_v31 = vrot.slane %v7582_v44, %v22866_v58  ;;  %v7597_v54 = vcombine.high %v7589_v17, %v7589_v17  ;;  %v9246_v32 = vsel %vm8433_vm4, %v7589_v17, -inf }
 0x4f0   : > { %v9168_v39 = vmax.f32 %v9166_v21, %v9167_v2  ;;  %v9174_v43 = vrot.slane %v9173_v7, 1  ;;  %v9181_v38 = vrot.slane %v9180_v48, 1  ;;  %v9247_v57 = vrot.slane %v9246_v32, 4  ;;  %v23573_v2 = vpop.f32.mrb[42].mxu0 }
 0x4f1   : > { %v9187_v62 = vmax.f32 %v9185_v50, %v9186_v60  ;;  %v7598_v5 = vcombine.high %v7596_v31, %v7596_v31  ;;  %v9253_v49 = vsel %vm8433_vm4, %v7597_v54, -inf  ;;  %v9260_v13 = vsel %vm8433_vm4, %v7596_v31, -inf }
 0x4f2   : > { %v9175_v14 = vmax.f32 %v9173_v7, %v9174_v43  ;;  %v9182_v11 = vmax.f32 %v9180_v48, %v9181_v38  ;;  %v10383_v34 = vsel %vm10226_vm5, %v9168_v39, -inf  ;;  %v9248_v24 = vmax.f32 %v9246_v32, %v9247_v57 }
 0x4f3   : > { %v9188_v63 = vrot.slane %v9187_v62, 1  ;;  %v10385_v20 = vmax.f32 %v10383_v34, %v23529_v51  ;;  %v9254_v0 = vrot.slane %v9253_v49, 4  ;;  %v9261_v19 = vrot.slane %v9260_v13, 4 }
 0x4f4   : > { %v10386_v37 = vsel %vm10226_vm5, %v9175_v14, -inf  ;;  %v10389_v23 = vsel %vm10226_vm5, %v9182_v11, -inf  ;;  %v9249_v26 = vrot.slane %v9248_v24, 2  ;;  %v9267_v47 = vsel %vm8433_vm4, %v7598_v5, -inf }
 0x4f5   : > { %v9189_v33 = vmax.f32 %v9187_v62, %v9188_v63  ;;  %v10388_v8 = vmax.f32 %v10386_v37, %v23533_v36  ;;  %v10391_v18 = vmax.f32 %v10389_v23, %v23536_v30  ;;  %v9255_v46 = vmax.f32 %v9253_v49, %v9254_v0  ;;  %v23586_v63 = vpop.f32.mrb[43].mxu0 }
 0x4f6   : > { %v9250_v15 = vmax.f32 %v9248_v24, %v9249_v26  ;;  %v9262_v51 = vmax.f32 %v9260_v13, %v9261_v19  ;;  %v9268_v56 = vrot.slane %v9267_v47, 4  ;;  %v7565_v41 = vcombine.high %v6989_v4, %v6989_v4 }
 0x4f7   : > { %v10392_v27 = vsel %vm10226_vm5, %v9189_v33, -inf  ;;  %v10830_v35 = vsel %vm10788_vm6, %v10388_v8, %v10385_v20  ;;  %v9256_v16 = vrot.slane %v9255_v46, 2  ;;  %v7572_v12 = vrot.slane %v6989_v4, %v22866_v58 }
 0x4f8   : > { %v10394_v21 = vmax.f32 %v10392_v27, %v10393_v29  ;;  %v10831_v42 = vsel %vm10790_vm7, %v10391_v18, %v10830_v35  ;;  %v9251_v36 = vrot.slane %v9250_v15, 1  ;;  %v9263_v9 = vrot.slane %v9262_v51, 2 }
 0x4f9   : > { %v9257_v30 = vmax.f32 %v9255_v46, %v9256_v16  ;;  %v9269_v50 = vmax.f32 %v9267_v47, %v9268_v56  ;;  %v7579_v44 = vrot.slane %v7565_v41, %v22866_v58  ;;  %v7580_v17 = vcombine.high %v7572_v12, %v7572_v12 }
 0x4fa   : > { %v10832_v7 = vsel %vm10792_vm8, %v10394_v21, %v10831_v42  ;;  %v9252_v48 = vmax.f32 %v9250_v15, %v9251_v36  ;;  %v9264_v60 = vmax.f32 %v9262_v51, %v9263_v9  ;;  %v9218_v31 = vsel %vm8433_vm4, %v7572_v12, -inf }
 0x4fb   : > { %10934 = vst.msk [vmem:[#allocation3 + $0xa1] sm:$0xf] %vm10920_vm9, %v10832_v7  ;;  %v9258_v29 = vrot.slane %v9257_v30, 1  ;;  %v9270_v4 = vrot.slane %v9269_v50, 2  ;;  %v7581_v54 = vcombine.high %v7579_v44, %v7579_v44  ;;  %v9219_v32 = vrot.slane %v9218_v31, 4 }
 0x4fc   : > { %v9265_v39 = vrot.slane %v9264_v60, 1  ;;  %v23579_v43 = vsel %vm10226_vm5, %v9252_v48, -inf  ;;  %v9225_v38 = vsel %vm8433_vm4, %v7580_v17, -inf  ;;  %v9232_v57 = vsel %vm8433_vm4, %v7579_v44, -inf }
 0x4fd   : > { %v9259_v62 = vmax.f32 %v9257_v30, %v9258_v29  ;;  %v9271_v5 = vmax.f32 %v9269_v50, %v9270_v4  ;;  %v9220_v49 = vmax.f32 %v9218_v31, %v9219_v32  ;;  %v9226_v13 = vrot.slane %v9225_v38, 4 }
 0x4fe   : > { %v9266_v14 = vmax.f32 %v9264_v60, %v9265_v39  ;;  %v9233_v11 = vrot.slane %v9232_v57, 4  ;;  %v9239_v34 = vsel %vm8433_vm4, %v7581_v54, -inf  ;;  %v7616_v24 = vcombine.high %v23554_v10, %v23554_v10 }
 0x4ff   : > { %v9272_v20 = vrot.slane %v9271_v5, 1  ;;  %v10399_v0 = vsel %vm10226_vm5, %v9259_v62, -inf  ;;  %v9221_v19 = vrot.slane %v9220_v49, 2  ;;  %v9227_v25 = vmax.f32 %v9225_v38, %v9226_v13 }
 0x500   : > { %v10402_v37 = vsel %vm10226_vm5, %v9266_v14, -inf  ;;  %v9234_v23 = vmax.f32 %v9232_v57, %v9233_v11  ;;  %v9240_v26 = vrot.slane %v9239_v34, 4  ;;  %v7623_v47 = vrot.slane %v23554_v10, %v22866_v58 }
 0x501   : > { %v9273_v33 = vmax.f32 %v9271_v5, %v9272_v20  ;;  %v9222_v8 = vmax.f32 %v9220_v49, %v9221_v19  ;;  %v9228_v18 = vrot.slane %v9227_v25, 2  ;;  %v7630_v46 = vrot.slane %v7616_v24, %v22866_v58 }
 0x502   : > { %v9235_v15 = vrot.slane %v9234_v23, 2  ;;  %v9241_v51 = vmax.f32 %v9239_v34, %v9240_v26  ;;  %v7631_v56 = vcombine.high %v7623_v47, %v7623_v47  ;;  %v9302_v41 = vsel %vm8433_vm4, %v7623_v47, -inf }
 0x503   : > { %v10405_v27 = vsel %vm10226_vm5, %v9273_v33, -inf  ;;  %v9223_v35 = vrot.slane %v9222_v8, 1  ;;  %v9229_v16 = vmax.f32 %v9227_v25, %v9228_v18  ;;  %v7632_v12 = vcombine.high %v7630_v46, %v7630_v46  ;;  %v25372_v33 = vld [vmem:[#allocation11_spill] sm:$0xff] }
 0x504   : > { %v9236_v21 = vmax.f32 %v9234_v23, %v9235_v15  ;;  %v9242_v42 = vrot.slane %v9241_v51, 2  ;;  %v9303_v36 = vrot.slane %v9302_v41, 4  ;;  %v9309_v10 = vsel %vm8433_vm4, %v7631_v56, -inf }
 0x505   : > { %v9224_v9 = vmax.f32 %v9222_v8, %v9223_v35  ;;  %v9230_v30 = vrot.slane %v9229_v16, 1  ;;  %v9310_v50 = vrot.slane %v9309_v10, 4  ;;  %v9316_v44 = vsel %vm8433_vm4, %v7630_v46, -inf }
 0x506   : > { %v9237_v17 = vrot.slane %v9236_v21, 1  ;;  %v9243_v7 = vmax.f32 %v9241_v51, %v9242_v42  ;;  %v9304_v48 = vmax.f32 %v9302_v41, %v9303_v36  ;;  %v9317_v60 = vrot.slane %v9316_v44, 4  ;;  %v25373_v41 = vld [vmem:[#allocation12_spill] sm:$0xff]  ;;  %v25374_v42 = vld [vmem:[#allocation42_spill] sm:$0xff] }
 0x507   : > { %v9231_v31 = vmax.f32 %v9229_v16, %v9230_v30  ;;  %v10395_v29 = vsel %vm10226_vm5, %v9224_v9, -inf  ;;  %v9311_v4 = vmax.f32 %v9309_v10, %v9310_v50  ;;  %v9323_v54 = vsel %vm8433_vm4, %v7632_v12, -inf  ;;  %v23618_v30 = vpop.f32.mrb[44].mxu0 }
 0x508   : > { %v9238_v32 = vmax.f32 %v9236_v21, %v9237_v17  ;;  %v9244_v39 = vrot.slane %v9243_v7, 1  ;;  %v10397_v38 = vmax.f32 %v10395_v29, %v23579_v43  ;;  %v9305_v57 = vrot.slane %v9304_v48, 2  ;;  %v25375_v17 = vld [vmem:[#allocation13_spill] sm:$0xff] }
 0x509   : > { %v10398_v62 = vsel %vm10226_vm5, %v9231_v31, -inf  ;;  %v9312_v5 = vrot.slane %v9311_v4, 2  ;;  %v9318_v49 = vmax.f32 %v9316_v44, %v9317_v60  ;;  %v9324_v13 = vrot.slane %v9323_v54, 4 }
 0x50a   : > { %v9245_v14 = vmax.f32 %v9243_v7, %v9244_v39  ;;  %v10400_v11 = vmax.f32 %v10398_v62, %v10399_v0  ;;  %v10401_v34 = vsel %vm10226_vm5, %v9238_v32, -inf  ;;  %v9306_v24 = vmax.f32 %v9304_v48, %v9305_v57  ;;  %v25376_v32 = vld [vmem:[#allocation14_spill] sm:$0xff] }
 0x50b   : > { %v10403_v20 = vmax.f32 %v10401_v34, %v10402_v37  ;;  %v9313_v19 = vmax.f32 %v9311_v4, %v9312_v5  ;;  %v9319_v25 = vrot.slane %v9318_v49, 2  ;;  %v9325_v23 = vmax.f32 %v9323_v54, %v9324_v13 }
 0x50c   : > { %v10404_v26 = vsel %vm10226_vm5, %v9245_v14, -inf  ;;  %v10833_v47 = vsel %vm10788_vm6, %v10400_v11, %v10397_v38  ;;  %v9307_v43 = vrot.slane %v9306_v24, 1  ;;  %v19763_v8 = vadd.f32 %v23281_v59, %v25372_v33  ;;  %v23644_v11 = vpop.f32.mrb[45].mxu0 }
 0x50d   : > { %v10406_v18 = vmax.f32 %v10404_v26, %v10405_v27  ;;  %v10834_v46 = vsel %vm10790_vm7, %v10403_v20, %v10833_v47  ;;  %v9314_v15 = vrot.slane %v9313_v19, 1  ;;  %v9320_v0 = vmax.f32 %v9318_v49, %v9319_v25 }
 0x50e   : > { %v9308_v51 = vmax.f32 %v9306_v24, %v9307_v43  ;;  %v9326_v56 = vrot.slane %v9325_v23, 2  ;;  %v6927_v37 = vadd.f32 %v23384_v1, %v19763_v8  ;;  %v19764_v35 = vadd.f32 %v23308_v6, %v25373_v41 }
 0x50f   : > { %v10835_v16 = vsel %vm10792_vm8, %v10406_v18, %v10834_v46  ;;  %v9315_v12 = vmax.f32 %v9313_v19, %v9314_v15  ;;  %v9321_v21 = vrot.slane %v9320_v0, 1  ;;  %v19765_v36 = vadd.f32 %v23323_v52, %v25374_v42 }
 0x510   : > { %10935 = vst.msk [vmem:[#allocation3 + $0xa9] sm:$0xf] %vm10920_vm9, %v10835_v16  ;;  %v9327_v59 = vmax.f32 %v9325_v23, %v9326_v56  ;;  %v23615_v27 = vsel %vm10226_vm5, %v9308_v51, -inf  ;;  %v6991_v10 = vmax.f32 %v6927_v37, 0.0  ;;  %v6930_v9 = vadd.f32 %v23384_v1, %v19764_v35 }
 0x511   : > { %v9322_v50 = vmax.f32 %v9320_v0, %v9321_v21  ;;  %v23621_v6 = vsel %vm10226_vm5, %v9315_v12, -inf  ;;  %v6929_v44 = vadd.f32 %v23384_v1, %v19765_v36  ;;  %v19766_v52 = vadd.f32 %v23351_v22, %v25375_v17 }
 0x512   : > { %v9328_v7 = vrot.slane %v9327_v59, 1  ;;  %v7599_v48 = vcombine.high %v6991_v10, %v6991_v10  ;;  %v7606_v60 = vrot.slane %v6991_v10, %v22866_v58  ;;  %v6994_v31 = vmax.f32 %v6930_v9, 0.0 }
 0x513   : > { %v23628_v29 = vsel %vm10226_vm5, %v9322_v50, -inf  ;;  %v23630_v4 = vmax.f32 %v6929_v44, 0.0  ;;  %v23633_v54 = vadd.f32 %v23384_v1, %v19766_v52  ;;  %v23637_v39 = vadd.f32 %v23409_v40, %v25376_v32 }
 0x514   : > { %v9329_v38 = vmax.f32 %v9327_v59, %v9328_v7  ;;  %v7613_v22 = vrot.slane %v7599_v48, %v22866_v58  ;;  %v7614_v57 = vcombine.high %v7606_v60, %v7606_v60  ;;  %v9274_v62 = vsel %vm8433_vm4, %v7606_v60, -inf  ;;  %v20453_v60 = vld [vmem:[#allocation3 + $0x91] ss:$8 sps:$4 sm:$0xff]  }
 0x515   : > { %v9275_v5 = vrot.slane %v9274_v62, 4  ;;  %v7650_v49 = vcombine.high %v6994_v31, %v6994_v31  ;;  %v7657_v13 = vrot.slane %v6994_v31, %v22866_v58  ;;  %v7633_v14 = vcombine.high %v23630_v4, %v23630_v4  ;;  %19240 = vmatprep.mubr.msk.f32.mxu1 %vm10226_vm5, %v20453_v60 }
 0x516   : > { %v23647_v1 = vsel %vm10226_vm5, %v9329_v38, -inf  ;;  %v7615_v40 = vcombine.high %v7613_v22, %v7613_v22  ;;  %v9281_v34 = vsel %vm8433_vm4, %v7614_v57, -inf  ;;  %v9288_v24 = vsel %vm8433_vm4, %v7613_v22, -inf }
 0x517   : > { %v9276_v20 = vmax.f32 %v9274_v62, %v9275_v5  ;;  %v9282_v19 = vrot.slane %v9281_v34, 4  ;;  %v9289_v25 = vrot.slane %v9288_v24, 4  ;;  %v7664_v23 = vrot.slane %v7650_v49, %v22866_v58 }
 0x518   : > { %v9295_v26 = vsel %vm8433_vm4, %v7615_v40, -inf  ;;  %v7665_v47 = vcombine.high %v7657_v13, %v7657_v13  ;;  %v9358_v43 = vsel %vm8433_vm4, %v7657_v13, -inf  ;;  %v23656_v33 = vrot.slane %v23630_v4, %v22866_v58 }
 0x519   : > { %v9277_v8 = vrot.slane %v9276_v20, 2  ;;  %v9283_v18 = vmax.f32 %v9281_v34, %v9282_v19  ;;  %v9290_v46 = vmax.f32 %v9288_v24, %v9289_v25  ;;  %v9296_v15 = vrot.slane %v9295_v26, 4 }
 0x51a   : > { %v7666_v0 = vcombine.high %v7664_v23, %v7664_v23  ;;  %v9359_v51 = vrot.slane %v9358_v43, 4  ;;  %v9365_v56 = vsel %vm8433_vm4, %v7665_v47, -inf  ;;  %v9372_v37 = vsel %vm8433_vm4, %v7664_v23, -inf }
 0x51b   : > { %v9278_v41 = vmax.f32 %v9276_v20, %v9277_v8  ;;  %v9284_v35 = vrot.slane %v9283_v18, 2  ;;  %v9291_v16 = vrot.slane %v9290_v46, 2  ;;  %v9297_v12 = vmax.f32 %v9295_v26, %v9296_v15 }
 0x51c   : > { %v9360_v21 = vmax.f32 %v9358_v43, %v9359_v51  ;;  %v9366_v42 = vrot.slane %v9365_v56, 4  ;;  %v9373_v36 = vrot.slane %v9372_v37, 4  ;;  %v9379_v59 = vsel %vm8433_vm4, %v7666_v0, -inf  ;;  %v23668_v51 = vpop.f32.mrb[46].mxu0 }
 0x51d   : > { %v9279_v10 = vrot.slane %v9278_v41, 1  ;;  %v9285_v9 = vmax.f32 %v9283_v18, %v9284_v35  ;;  %v9292_v50 = vmax.f32 %v9290_v46, %v9291_v16  ;;  %v9298_v44 = vrot.slane %v9297_v12, 2  ;;  %v23697_v60 = vpop.f32.mrb[47].mxu0 }
 0x51e   : > { %v9361_v17 = vrot.slane %v9360_v21, 2  ;;  %v9367_v52 = vmax.f32 %v9365_v56, %v9366_v42  ;;  %v9374_v7 = vmax.f32 %v9372_v37, %v9373_v36  ;;  %v9380_v48 = vrot.slane %v9379_v59, 4 }
 0x51f   : > { %v9280_v31 = vmax.f32 %v9278_v41, %v9279_v10  ;;  %v9286_v32 = vrot.slane %v9285_v9, 1  ;;  %v9293_v38 = vrot.slane %v9292_v50, 1  ;;  %v9299_v22 = vmax.f32 %v9297_v12, %v9298_v44 }
 0x520   : > { %v9362_v57 = vmax.f32 %v9360_v21, %v9361_v17  ;;  %v9368_v62 = vrot.slane %v9367_v52, 2  ;;  %v9375_v5 = vrot.slane %v9374_v7, 2  ;;  %v9381_v49 = vmax.f32 %v9379_v59, %v9380_v48 }
 0x521   : > { %v9287_v13 = vmax.f32 %v9285_v9, %v9286_v32  ;;  %v9294_v40 = vmax.f32 %v9292_v50, %v9293_v38  ;;  %v9300_v34 = vrot.slane %v9299_v22, 1  ;;  %v10407_v24 = vsel %vm10226_vm5, %v9280_v31, -inf }
 0x522   : > { %v10409_v20 = vmax.f32 %v10407_v24, %v23615_v27  ;;  %v9363_v19 = vrot.slane %v9362_v57, 1  ;;  %v9369_v25 = vmax.f32 %v9367_v52, %v9368_v62  ;;  %v9376_v23 = vmax.f32 %v9374_v7, %v9375_v5  ;;  %v23706_v5 = vld [vmem:[%s25209_s2] ss:$0 sm:$0xff] }
 0x523   : > { %v9301_v26 = vmax.f32 %v9299_v22, %v9300_v34  ;;  %v10410_v47 = vsel %vm10226_vm5, %v9287_v13, -inf  ;;  %v10413_v43 = vsel %vm10226_vm5, %v9294_v40, -inf  ;;  %v9382_v8 = vrot.slane %v9381_v49, 2  ;;  %v25377_v34 = vld [vmem:[#allocation15_spill] sm:$0xff] }
 0x524   : > { %v10412_v18 = vmax.f32 %v10410_v47, %v23621_v6  ;;  %v10415_v46 = vmax.f32 %v10413_v43, %v23628_v29  ;;  %v9364_v15 = vmax.f32 %v9362_v57, %v9363_v19  ;;  %v9370_v0 = vrot.slane %v9369_v25, 1 }
 0x525   : > { %v10416_v56 = vsel %vm10226_vm5, %v9301_v26, -inf  ;;  %v9377_v27 = vrot.slane %v9376_v23, 1  ;;  %v9383_v37 = vmax.f32 %v9381_v49, %v9382_v8  ;;  %v7647_v41 = vrot.slane %v7633_v14, %v22866_v58 }
 0x526   : > { %v10418_v35 = vmax.f32 %v10416_v56, %v23647_v1  ;;  %v10836_v16 = vsel %vm10788_vm6, %v10412_v18, %v10409_v20  ;;  %v9371_v6 = vmax.f32 %v9369_v25, %v9370_v0  ;;  %v23678_v29 = vsel %vm10226_vm5, %v9364_v15, -inf }
 0x527   : > { %v10837_v12 = vsel %vm10790_vm7, %v10415_v46, %v10836_v16  ;;  %v9378_v21 = vmax.f32 %v9376_v23, %v9377_v27  ;;  %v9384_v42 = vrot.slane %v9383_v37, 1  ;;  %v7648_v36 = vcombine.high %v23656_v33, %v23656_v33 }
 0x528   : > { %v10838_v59 = vsel %vm10792_vm8, %v10418_v35, %v10837_v12  ;;  %v23685_v4 = vsel %vm10226_vm5, %v9371_v6, -inf  ;;  %v7649_v14 = vcombine.high %v7647_v41, %v7647_v41  ;;  %v9330_v1 = vsel %vm8433_vm4, %v23656_v33, -inf }
 0x529   : > { %10936 = vst.msk [vmem:[#allocation3 + $0xb1] sm:$0xf] %vm10920_vm9, %v10838_v59  ;;  %v9385_v10 = vmax.f32 %v9383_v37, %v9384_v42  ;;  %v23691_v9 = vsel %vm10226_vm5, %v9378_v21, -inf  ;;  %v9331_v50 = vrot.slane %v9330_v1, 4  ;;  %v9337_v44 = vsel %vm8433_vm4, %v7648_v36, -inf }
 0x52a   : > { %v9338_v17 = vrot.slane %v9337_v44, 4  ;;  %v9344_v52 = vsel %vm8433_vm4, %v7647_v41, -inf  ;;  %v9351_v7 = vsel %vm8433_vm4, %v7649_v14, -inf  ;;  %v6996_v48 = vmax.f32 %v23633_v54, 0.0 }
 0x52b   : > { %v23700_v33 = vsel %vm10226_vm5, %v9385_v10, -inf  ;;  %v9332_v31 = vmax.f32 %v9330_v1, %v9331_v50  ;;  %v9345_v32 = vrot.slane %v9344_v52, 4  ;;  %v9352_v38 = vrot.slane %v9351_v7, 4 }
 0x52c   : > { %v9339_v22 = vmax.f32 %v9337_v44, %v9338_v17  ;;  %v7684_v57 = vcombine.high %v6996_v48, %v6996_v48  ;;  %v7691_v62 = vrot.slane %v6996_v48, %v22866_v58  ;;  %v6931_v54 = vadd.f32 %v23706_v5, %v23637_v39 }
 0x52d   : > { %v9333_v49 = vrot.slane %v9332_v31, 2  ;;  %v9346_v13 = vmax.f32 %v9344_v52, %v9345_v32  ;;  %v9353_v40 = vmax.f32 %v9351_v7, %v9352_v38  ;;  %v19768_v24 = vadd.f32 %v23423_v53, %v25377_v34 }
 0x52e   : > { %v9340_v20 = vrot.slane %v9339_v22, 2  ;;  %v7698_v19 = vrot.slane %v7684_v57, %v22866_v58  ;;  %v7699_v25 = vcombine.high %v7691_v62, %v7691_v62  ;;  %v9414_v23 = vsel %vm8433_vm4, %v7691_v62, -inf }
 0x52f   : > { %v9334_v26 = vmax.f32 %v9332_v31, %v9333_v49  ;;  %v9347_v47 = vrot.slane %v9346_v13, 2  ;;  %v9354_v43 = vrot.slane %v9353_v40, 2  ;;  %v9415_v8 = vrot.slane %v9414_v23, 4 }
 0x530   : > { %v9341_v18 = vmax.f32 %v9339_v22, %v9340_v20  ;;  %v7700_v46 = vcombine.high %v7698_v19, %v7698_v19  ;;  %v9421_v39 = vsel %vm8433_vm4, %v7699_v25, -inf  ;;  %v9428_v15 = vsel %vm8433_vm4, %v7698_v19, -inf }
 0x531   : > { %v9335_v0 = vrot.slane %v9334_v26, 1  ;;  %v9348_v56 = vmax.f32 %v9346_v13, %v9347_v47  ;;  %v9355_v27 = vmax.f32 %v9353_v40, %v9354_v43  ;;  %v9416_v53 = vmax.f32 %v9414_v23, %v9415_v8 }
 0x532   : > { %v9342_v37 = vrot.slane %v9341_v18, 1  ;;  %v9422_v41 = vrot.slane %v9421_v39, 4  ;;  %v9429_v35 = vrot.slane %v9428_v15, 4  ;;  %v9435_v16 = vsel %vm8433_vm4, %v7700_v46, -inf }
 0x533   : > { %v9336_v6 = vmax.f32 %v9334_v26, %v9335_v0  ;;  %v9349_v12 = vrot.slane %v9348_v56, 1  ;;  %v9356_v21 = vrot.slane %v9355_v27, 1  ;;  %v9417_v42 = vrot.slane %v9416_v53, 2 }
 0x534   : > { %v9343_v36 = vmax.f32 %v9341_v18, %v9342_v37  ;;  %v9423_v59 = vmax.f32 %v9421_v39, %v9422_v41  ;;  %v9430_v14 = vmax.f32 %v9428_v15, %v9429_v35  ;;  %v9436_v1 = vrot.slane %v9435_v16, 4  ;;  %v23734_v39 = vpop.f32.mrb[48].mxu0 }
 0x535   : > { %v9350_v10 = vmax.f32 %v9348_v56, %v9349_v12  ;;  %v9357_v50 = vmax.f32 %v9355_v27, %v9356_v21  ;;  %v10419_v44 = vsel %vm10226_vm5, %v9336_v6, -inf  ;;  %v9418_v17 = vmax.f32 %v9416_v53, %v9417_v42  ;;  %v25379_v27 = vld [vmem:[#allocation17_spill] sm:$0xff] }
 0x536   : > { %v10421_v52 = vmax.f32 %v10419_v44, %v23678_v29  ;;  %v10422_v7 = vsel %vm10226_vm5, %v9343_v36, -inf  ;;  %v9424_v48 = vrot.slane %v9423_v59, 2  ;;  %v9431_v31 = vrot.slane %v9430_v14, 2 }
 0x537   : > { %v10424_v32 = vmax.f32 %v10422_v7, %v23685_v4  ;;  %v10425_v38 = vsel %vm10226_vm5, %v9350_v10, -inf  ;;  %v10428_v22 = vsel %vm10226_vm5, %v9357_v50, -inf  ;;  %v9419_v57 = vrot.slane %v9418_v17, 1 }
 0x538   : > { %v10427_v62 = vmax.f32 %v10425_v38, %v23691_v9  ;;  %v10430_v49 = vmax.f32 %v10428_v22, %v23700_v33  ;;  %v9425_v13 = vmax.f32 %v9423_v59, %v9424_v48  ;;  %v9432_v40 = vmax.f32 %v9430_v14, %v9431_v31 }
 0x539   : > { %v10839_v34 = vsel %vm10788_vm6, %v10424_v32, %v10421_v52  ;;  %v9420_v29 = vmax.f32 %v9418_v17, %v9419_v57  ;;  %v9437_v20 = vmax.f32 %v9435_v16, %v9436_v1  ;;  %v6995_v19 = vmax.f32 %v6931_v54, 0.0 }
 0x53a   : > { %v10840_v25 = vsel %vm10790_vm7, %v10427_v62, %v10839_v34  ;;  %v9426_v23 = vrot.slane %v9425_v13, 1  ;;  %v9433_v4 = vrot.slane %v9432_v40, 1  ;;  %v6934_v26 = vadd.f32 %v23706_v5, %v19768_v24  ;;  %v25378_v24 = vld [vmem:[#allocation16_spill] sm:$0xff] }
 0x53b   : > { %v10841_v47 = vsel %vm10792_vm8, %v10430_v49, %v10840_v25  ;;  %v9438_v43 = vrot.slane %v9437_v20, 2  ;;  %v23730_v9 = vsel %vm10226_vm5, %v9420_v29, -inf  ;;  %v7667_v33 = vcombine.high %v6995_v19, %v6995_v19 }
 0x53c   : > { %10937 = vst.msk [vmem:[#allocation3 + $0xc9] sm:$0xf] %vm10920_vm9, %v10841_v47  ;;  %v9427_v8 = vmax.f32 %v9425_v13, %v9426_v23  ;;  %v9434_v18 = vmax.f32 %v9432_v40, %v9433_v4  ;;  %v7674_v46 = vrot.slane %v6995_v19, %v22866_v58  ;;  %v6998_v54 = vmax.f32 %v6934_v26, 0.0 }
 0x53d   : > { %v9439_v15 = vmax.f32 %v9437_v20, %v9438_v43  ;;  %v7681_v0 = vrot.slane %v7667_v33, %v22866_v58  ;;  %v23739_v56 = vadd.f32 %v23450_v55, %v25378_v24  ;;  %v23743_v53 = vadd.f32 %v23486_v3, %v25379_v27  ;;  %v23753_v55 = vpop.f32.mrb[49].mxu0 }
 0x53e   : > { %v23746_v37 = vsel %vm10226_vm5, %v9427_v8, -inf  ;;  %v23749_v41 = vsel %vm10226_vm5, %v9434_v18, -inf  ;;  %v7682_v35 = vcombine.high %v7674_v46, %v7674_v46  ;;  %v9386_v16 = vsel %vm8433_vm4, %v7674_v46, -inf }
 0x53f   : > { %v9440_v6 = vrot.slane %v9439_v15, 1  ;;  %v7683_v12 = vcombine.high %v7681_v0, %v7681_v0  ;;  %v9387_v21 = vrot.slane %v9386_v16, 4  ;;  %v9400_v42 = vsel %vm8433_vm4, %v7681_v0, -inf }
 0x540   : > { %v9393_v36 = vsel %vm8433_vm4, %v7682_v35, -inf  ;;  %v9401_v3 = vrot.slane %v9400_v42, 4  ;;  %v7718_v59 = vcombine.high %v6998_v54, %v6998_v54  ;;  %v7725_v14 = vrot.slane %v6998_v54, %v22866_v58 }
 0x541   : > { %v9441_v1 = vmax.f32 %v9439_v15, %v9440_v6  ;;  %v9388_v10 = vmax.f32 %v9386_v16, %v9387_v21  ;;  %v9394_v50 = vrot.slane %v9393_v36, 4  ;;  %v9407_v44 = vsel %vm8433_vm4, %v7683_v12, -inf }
 0x542   : > { %v9402_v17 = vmax.f32 %v9400_v42, %v9401_v3  ;;  %v9408_v52 = vrot.slane %v9407_v44, 4  ;;  %v7732_v7 = vrot.slane %v7718_v59, %v22866_v58  ;;  %v7733_v48 = vcombine.high %v7725_v14, %v7725_v14  ;;  %v20454_v59 = vld [vmem:[#allocation3 + $0xa1] ss:$8 sps:$4 sm:$0xff]  }
 0x543   : > { %v23760_v31 = vsel %vm10226_vm5, %v9441_v1, -inf  ;;  %v9389_v32 = vrot.slane %v9388_v10, 2  ;;  %v9395_v38 = vmax.f32 %v9393_v36, %v9394_v50  ;;  %v9470_v22 = vsel %vm8433_vm4, %v7725_v14, -inf  ;;  %19241 = vmatmul.mubr.msk.f32.gmra.mrb[70].mxu1 %vm10226_vm5, %v20454_v59 }
 0x544   : > { %v9403_v57 = vrot.slane %v9402_v17, 2  ;;  %v9409_v62 = vmax.f32 %v9407_v44, %v9408_v52  ;;  %v7734_v49 = vcombine.high %v7732_v7, %v7732_v7  ;;  %v9471_v13 = vrot.slane %v9470_v22, 4 }
 0x545   : > { %v9390_v40 = vmax.f32 %v9388_v10, %v9389_v32  ;;  %v9396_v34 = vrot.slane %v9395_v38, 2  ;;  %v9477_v29 = vsel %vm8433_vm4, %v7733_v48, -inf  ;;  %v9484_v20 = vsel %vm8433_vm4, %v7732_v7, -inf }
 0x546   : > { %v9404_v19 = vmax.f32 %v9402_v17, %v9403_v57  ;;  %v9410_v25 = vrot.slane %v9409_v62, 2  ;;  %v9472_v23 = vmax.f32 %v9470_v22, %v9471_v13  ;;  %v9478_v4 = vrot.slane %v9477_v29, 4 }
 0x547   : > { %v9391_v26 = vrot.slane %v9390_v40, 1  ;;  %v9397_v47 = vmax.f32 %v9395_v38, %v9396_v34  ;;  %v9485_v43 = vrot.slane %v9484_v20, 4  ;;  %v9491_v33 = vsel %vm8433_vm4, %v7734_v49, -inf }
 0x548   : > { %v9405_v8 = vrot.slane %v9404_v19, 1  ;;  %v9411_v18 = vmax.f32 %v9409_v62, %v9410_v25  ;;  %v9473_v46 = vrot.slane %v9472_v23, 2  ;;  %v9479_v54 = vmax.f32 %v9477_v29, %v9478_v4  ;;  %v25380_v4 = vld [vmem:[#allocation18_spill] sm:$0xff] }
 0x549   : > { %v9392_v15 = vmax.f32 %v9390_v40, %v9391_v26  ;;  %v9398_v0 = vrot.slane %v9397_v47, 1  ;;  %v9486_v24 = vmax.f32 %v9484_v20, %v9485_v43  ;;  %v9492_v27 = vrot.slane %v9491_v33, 4 }
 0x54a   : > { %v9406_v35 = vmax.f32 %v9404_v19, %v9405_v8  ;;  %v9412_v16 = vrot.slane %v9411_v18, 1  ;;  %v9474_v6 = vmax.f32 %v9472_v23, %v9473_v46  ;;  %v9480_v12 = vrot.slane %v9479_v54, 2 }
 0x54b   : > { %v9399_v21 = vmax.f32 %v9397_v47, %v9398_v0  ;;  %v10431_v42 = vsel %vm10226_vm5, %v9392_v15, -inf  ;;  %v9487_v36 = vrot.slane %v9486_v24, 2  ;;  %v9493_v3 = vmax.f32 %v9491_v33, %v9492_v27  ;;  %v25381_v27 = vld [vmem:[#allocation19_spill] sm:$0xff] }
 0x54c   : > { %v9413_v14 = vmax.f32 %v9411_v18, %v9412_v16  ;;  %v10433_v1 = vmax.f32 %v10431_v42, %v23730_v9  ;;  %v10437_v10 = vsel %vm10226_vm5, %v9406_v35, -inf  ;;  %v9475_v50 = vrot.slane %v9474_v6, 1 }
 0x54d   : > { %v10434_v44 = vsel %vm10226_vm5, %v9399_v21, -inf  ;;  %v10439_v17 = vmax.f32 %v10437_v10, %v23749_v41  ;;  %v9481_v52 = vmax.f32 %v9479_v54, %v9480_v12  ;;  %v9488_v7 = vmax.f32 %v9486_v24, %v9487_v36 }
 0x54e   : > { %v10436_v48 = vmax.f32 %v10434_v44, %v23746_v37  ;;  %v10440_v32 = vsel %vm10226_vm5, %v9413_v14, -inf  ;;  %v9476_v38 = vmax.f32 %v9474_v6, %v9475_v50  ;;  %v9494_v22 = vrot.slane %v9493_v3, 2 }
 0x54f   : > { %v10442_v57 = vmax.f32 %v10440_v32, %v23760_v31  ;;  %v9482_v9 = vrot.slane %v9481_v52, 1  ;;  %v9489_v62 = vrot.slane %v9488_v7, 1  ;;  %v6933_v49 = vadd.f32 %v23706_v5, %v23739_v56  ;;  %v23784_v31 = vpop.f32.mrb[50].mxu0 }
 0x550   : > { %v10842_v13 = vsel %vm10788_vm6, %v10436_v48, %v10433_v1  ;;  %v9495_v41 = vmax.f32 %v9493_v3, %v9494_v22  ;;  %v23779_v40 = vsel %vm10226_vm5, %v9476_v38, -inf  ;;  %v6936_v37 = vadd.f32 %v23706_v5, %v23743_v53  ;;  %v23801_v15 = vpop.f32.mrb[51].mxu0 }
 0x551   : > { %v10843_v34 = vsel %vm10790_vm7, %v10439_v17, %v10842_v13  ;;  %v9483_v29 = vmax.f32 %v9481_v52, %v9482_v9  ;;  %v9490_v20 = vmax.f32 %v9488_v7, %v9489_v62  ;;  %v6997_v19 = vmax.f32 %v6933_v49, 0.0 }
 0x552   : > { %v10844_v25 = vsel %vm10792_vm8, %v10442_v57, %v10843_v34  ;;  %v9496_v23 = vrot.slane %v9495_v41, 1  ;;  %v7000_v56 = vmax.f32 %v6936_v37, 0.0  ;;  %v19771_v26 = vadd.f32 %v23494_v61, %v25380_v4 }
 0x553   : > { %10938 = vst.msk [vmem:[#allocation3 + $0xd1] sm:$0xf] %vm10920_vm9, %v10844_v25  ;;  %v23791_v47 = vsel %vm10226_vm5, %v9483_v29, -inf  ;;  %v23794_v53 = vsel %vm10226_vm5, %v9490_v20, -inf  ;;  %v7701_v43 = vcombine.high %v6997_v19, %v6997_v19  ;;  %v7708_v33 = vrot.slane %v6997_v19, %v22866_v58 }
 0x554   : > { %v9497_v8 = vmax.f32 %v9495_v41, %v9496_v23  ;;  %v7752_v18 = vcombine.high %v7000_v56, %v7000_v56  ;;  %v7759_v46 = vrot.slane %v7000_v56, %v22866_v58  ;;  %v23799_v54 = vadd.f32 %v23706_v5, %v19771_v26 }
 0x555   : > { %v7715_v61 = vrot.slane %v7701_v43, %v22866_v58  ;;  %v7716_v0 = vcombine.high %v7708_v33, %v7708_v33  ;;  %v9442_v24 = vsel %vm8433_vm4, %v7708_v33, -inf  ;;  %v23807_v35 = vadd.f32 %v23525_v45, %v25381_v27 }
 0x556   : > { %v23810_v16 = vsel %vm10226_vm5, %v9497_v8, -inf  ;;  %v9443_v6 = vrot.slane %v9442_v24, 4  ;;  %v7766_v12 = vrot.slane %v7752_v18, %v22866_v58  ;;  %v7767_v21 = vcombine.high %v7759_v46, %v7759_v46 }
 0x557   : > { %v7717_v42 = vcombine.high %v7715_v61, %v7715_v61  ;;  %v9449_v36 = vsel %vm8433_vm4, %v7716_v0, -inf  ;;  %v9456_v3 = vsel %vm8433_vm4, %v7715_v61, -inf  ;;  %v9526_v59 = vsel %vm8433_vm4, %v7759_v46, -inf }
 0x558   : > { %v9444_v14 = vmax.f32 %v9442_v24, %v9443_v6  ;;  %v9450_v1 = vrot.slane %v9449_v36, 4  ;;  %v9457_v10 = vrot.slane %v9456_v3, 4  ;;  %v7768_v50 = vcombine.high %v7766_v12, %v7766_v12 }
 0x559   : > { %v9463_v45 = vsel %vm8433_vm4, %v7717_v42, -inf  ;;  %v9527_v44 = vrot.slane %v9526_v59, 4  ;;  %v9533_v17 = vsel %vm8433_vm4, %v7767_v21, -inf  ;;  %v9540_v52 = vsel %vm8433_vm4, %v7766_v12, -inf }
 0x55a   : > { %v9445_v7 = vrot.slane %v9444_v14, 2  ;;  %v9451_v48 = vmax.f32 %v9449_v36, %v9450_v1  ;;  %v9458_v32 = vmax.f32 %v9456_v3, %v9457_v10  ;;  %v9464_v38 = vrot.slane %v9463_v45, 4 }
 0x55b   : > { %v9528_v22 = vmax.f32 %v9526_v59, %v9527_v44  ;;  %v9534_v57 = vrot.slane %v9533_v17, 4  ;;  %v9541_v9 = vrot.slane %v9540_v52, 4  ;;  %v9547_v62 = vsel %vm8433_vm4, %v7768_v50, -inf }
 0x55c   : > { %v9446_v49 = vmax.f32 %v9444_v14, %v9445_v7  ;;  %v9452_v13 = vrot.slane %v9451_v48, 2  ;;  %v9459_v41 = vrot.slane %v9458_v32, 2  ;;  %v9465_v37 = vmax.f32 %v9463_v45, %v9464_v38 }
 0x55d   : > { %v9529_v34 = vrot.slane %v9528_v22, 2  ;;  %v9535_v29 = vmax.f32 %v9533_v17, %v9534_v57  ;;  %v9542_v20 = vmax.f32 %v9540_v52, %v9541_v9  ;;  %v9548_v19 = vrot.slane %v9547_v62, 4 }
 0x55e   : > { %v9447_v25 = vrot.slane %v9446_v49, 1  ;;  %v9453_v23 = vmax.f32 %v9451_v48, %v9452_v13  ;;  %v9460_v56 = vmax.f32 %v9458_v32, %v9459_v41  ;;  %v9466_v4 = vrot.slane %v9465_v37, 2 }
 0x55f   : > { %v9530_v26 = vmax.f32 %v9528_v22, %v9529_v34  ;;  %v9536_v43 = vrot.slane %v9535_v29, 2  ;;  %v9543_v33 = vrot.slane %v9542_v20, 2  ;;  %v9549_v8 = vmax.f32 %v9547_v62, %v9548_v19 }
 0x560   : > { %v9448_v18 = vmax.f32 %v9446_v49, %v9447_v25  ;;  %v9454_v46 = vrot.slane %v9453_v23, 1  ;;  %v9461_v61 = vrot.slane %v9460_v56, 1  ;;  %v9467_v0 = vmax.f32 %v9465_v37, %v9466_v4 }
 0x561   : > { %v9531_v24 = vrot.slane %v9530_v26, 1  ;;  %v9537_v27 = vmax.f32 %v9535_v29, %v9536_v43  ;;  %v9544_v6 = vmax.f32 %v9542_v20, %v9543_v33  ;;  %v9550_v12 = vrot.slane %v9549_v8, 2  ;;  %v25383_v20 = vld [vmem:[#allocation21_spill] sm:$0xff] }
 0x562   : > { %v9455_v21 = vmax.f32 %v9453_v23, %v9454_v46  ;;  %v9462_v42 = vmax.f32 %v9460_v56, %v9461_v61  ;;  %v9468_v36 = vrot.slane %v9467_v0, 1  ;;  %v10443_v3 = vsel %vm10226_vm5, %v9448_v18, -inf  ;;  %v25384_v46 = vld [vmem:[#allocation22_spill] sm:$0xff] }
 0x563   : > { %v10445_v59 = vmax.f32 %v10443_v3, %v23779_v40  ;;  %v9532_v14 = vmax.f32 %v9530_v26, %v9531_v24  ;;  %v9538_v1 = vrot.slane %v9537_v27, 1  ;;  %v9545_v10 = vrot.slane %v9544_v6, 1  ;;  %v23854_v26 = vpop.f32.mrb[52].mxu0 }
 0x564   : > { %v9469_v50 = vmax.f32 %v9467_v0, %v9468_v36  ;;  %v10446_v45 = vsel %vm10226_vm5, %v9455_v21, -inf  ;;  %v10449_v44 = vsel %vm10226_vm5, %v9462_v42, -inf  ;;  %v9551_v17 = vmax.f32 %v9549_v8, %v9550_v12  ;;  %v23864_v0 = vpop.f32.mrb[53].mxu0 }
 0x565   : > { %v10448_v52 = vmax.f32 %v10446_v45, %v23791_v47  ;;  %v10451_v7 = vmax.f32 %v10449_v44, %v23794_v53  ;;  %v9539_v48 = vmax.f32 %v9537_v27, %v9538_v1  ;;  %v9546_v32 = vmax.f32 %v9544_v6, %v9545_v10 }
 0x566   : > { %v10452_v38 = vsel %vm10226_vm5, %v9469_v50, -inf  ;;  %v9552_v22 = vrot.slane %v9551_v17, 1  ;;  %v23828_v40 = vsel %vm10226_vm5, %v9532_v14, -inf  ;;  %v6999_v57 = vmax.f32 %v23799_v54, 0.0 }
 0x567   : > { %v10454_v9 = vmax.f32 %v10452_v38, %v23810_v16  ;;  %v10845_v62 = vsel %vm10788_vm6, %v10448_v52, %v10445_v59  ;;  %v23834_v49 = vsel %vm10226_vm5, %v9539_v48, -inf  ;;  %v23837_v47 = vsel %vm10226_vm5, %v9546_v32, -inf  ;;  %v25382_v16 = vld [vmem:[#allocation20_spill] sm:$0xff] }
 0x568   : > { %v10846_v53 = vsel %vm10790_vm7, %v10451_v7, %v10845_v62  ;;  %v9553_v13 = vmax.f32 %v9551_v17, %v9552_v22  ;;  %v7735_v41 = vcombine.high %v6999_v57, %v6999_v57  ;;  %v7742_v37 = vrot.slane %v6999_v57, %v22866_v58 }
 0x569   : > { %v10847_v34 = vsel %vm10792_vm8, %v10454_v9, %v10846_v53  ;;  %v6938_v54 = vadd.f32 %v23706_v5, %v23807_v35  ;;  %v19773_v29 = vadd.f32 %v23548_v28, %v25382_v16  ;;  %v19774_v19 = vadd.f32 %v23573_v2, %v25383_v20 }
 0x56a   : > { %10939 = vst.msk [vmem:[#allocation3 + $0xd9] sm:$0xf] %vm10920_vm9, %v10847_v34  ;;  %v23850_v25 = vsel %vm10226_vm5, %v9553_v13, -inf  ;;  %v7749_v23 = vrot.slane %v7735_v41, %v22866_v58  ;;  %v7750_v56 = vcombine.high %v7742_v37, %v7742_v37  ;;  %v9498_v4 = vsel %vm8433_vm4, %v7742_v37, -inf }
 0x56b   : > { %v9499_v43 = vrot.slane %v9498_v4, 4  ;;  %v7002_v35 = vmax.f32 %v6938_v54, 0.0  ;;  %v6937_v33 = vadd.f32 %v23706_v5, %v19773_v29  ;;  %v6940_v28 = vadd.f32 %v23706_v5, %v19774_v19 }
 0x56c   : > { %v7751_v8 = vcombine.high %v7749_v23, %v7749_v23  ;;  %v9505_v2 = vsel %vm8433_vm4, %v7750_v56, -inf  ;;  %v9512_v18 = vsel %vm8433_vm4, %v7749_v23, -inf  ;;  %v23862_v61 = vadd.f32 %v23586_v63, %v25384_v46 }
 0x56d   : > { %v9500_v24 = vmax.f32 %v9498_v4, %v9499_v43  ;;  %v9506_v27 = vrot.slane %v9505_v2, 4  ;;  %v9513_v6 = vrot.slane %v9512_v18, 4  ;;  %v7786_v12 = vcombine.high %v7002_v35, %v7002_v35 }
 0x56e   : > { %v9519_v21 = vsel %vm8433_vm4, %v7751_v8, -inf  ;;  %v7793_v42 = vrot.slane %v7002_v35, %v22866_v58  ;;  %v23868_v36 = vmax.f32 %v6937_v33, 0.0  ;;  %v23870_v3 = vmax.f32 %v6940_v28, 0.0 }
 0x56f   : > { %v9501_v59 = vrot.slane %v9500_v24, 2  ;;  %v9507_v14 = vmax.f32 %v9505_v2, %v9506_v27  ;;  %v9514_v1 = vmax.f32 %v9512_v18, %v9513_v6  ;;  %v9520_v10 = vrot.slane %v9519_v21, 4  ;;  %v20455_v2 = vld [vmem:[#allocation3 + $0xc1] ss:$8 sps:$4 sm:$0xff]  }
 0x570   : > { %v7800_v63 = vrot.slane %v7786_v12, %v22866_v58  ;;  %v7801_v50 = vcombine.high %v7793_v42, %v7793_v42  ;;  %v9582_v45 = vsel %vm8433_vm4, %v7793_v42, -inf  ;;  %v7769_v44 = vcombine.high %v23868_v36, %v23868_v36  ;;  %19243 = vmatprep.mubr.msk.f32.mxu1 %vm10226_vm5, %v20455_v2 }
 0x571   : > { %v9502_v17 = vmax.f32 %v9500_v24, %v9501_v59  ;;  %v9508_v52 = vrot.slane %v9507_v14, 2  ;;  %v9515_v7 = vrot.slane %v9514_v1, 2  ;;  %v9521_v48 = vmax.f32 %v9519_v21, %v9520_v10 }
 0x572   : > { %v7802_v32 = vcombine.high %v7800_v63, %v7800_v63  ;;  %v9583_v38 = vrot.slane %v9582_v45, 4  ;;  %v9589_v22 = vsel %vm8433_vm4, %v7801_v50, -inf  ;;  %v9596_v57 = vsel %vm8433_vm4, %v7800_v63, -inf }
 0x573   : > { %v9503_v9 = vrot.slane %v9502_v17, 1  ;;  %v9509_v62 = vmax.f32 %v9507_v14, %v9508_v52  ;;  %v9516_v53 = vmax.f32 %v9514_v1, %v9515_v7  ;;  %v9522_v13 = vrot.slane %v9521_v48, 2 }
 0x574   : > { %v9584_v41 = vmax.f32 %v9582_v45, %v9583_v38  ;;  %v9590_v37 = vrot.slane %v9589_v22, 4  ;;  %v9597_v34 = vrot.slane %v9596_v57, 4  ;;  %v9603_v54 = vsel %vm8433_vm4, %v7802_v32, -inf }
 0x575   : > { %v9504_v16 = vmax.f32 %v9502_v17, %v9503_v9  ;;  %v9510_v29 = vrot.slane %v9509_v62, 1  ;;  %v9517_v20 = vrot.slane %v9516_v53, 1  ;;  %v9523_v19 = vmax.f32 %v9521_v48, %v9522_v13 }
 0x576   : > { %v9585_v23 = vrot.slane %v9584_v41, 2  ;;  %v9591_v56 = vmax.f32 %v9589_v22, %v9590_v37  ;;  %v9598_v4 = vmax.f32 %v9596_v57, %v9597_v34  ;;  %v9604_v43 = vrot.slane %v9603_v54, 4  ;;  %v23893_v22 = vpop.f32.mrb[54].mxu0 }
 0x577   : > { %v9511_v35 = vmax.f32 %v9509_v62, %v9510_v29  ;;  %v9518_v33 = vmax.f32 %v9516_v53, %v9517_v20  ;;  %v9524_v28 = vrot.slane %v9523_v19, 1  ;;  %v10455_v8 = vsel %vm10226_vm5, %v9504_v16, -inf }
 0x578   : > { %v10457_v18 = vmax.f32 %v10455_v8, %v23828_v40  ;;  %v9586_v46 = vmax.f32 %v9584_v41, %v9585_v23  ;;  %v9592_v24 = vrot.slane %v9591_v56, 2  ;;  %v9599_v27 = vrot.slane %v9598_v4, 2 }
 0x579   : > { %v9525_v6 = vmax.f32 %v9523_v19, %v9524_v28  ;;  %v10458_v12 = vsel %vm10226_vm5, %v9511_v35, -inf  ;;  %v10461_v21 = vsel %vm10226_vm5, %v9518_v33, -inf  ;;  %v9605_v42 = vmax.f32 %v9603_v54, %v9604_v43  ;;  %v23914_v35 = vpop.f32.mrb[55].mxu0 }
 0x57a   : > { %v10460_v59 = vmax.f32 %v10458_v12, %v23834_v49  ;;  %v10463_v14 = vmax.f32 %v10461_v21, %v23837_v47  ;;  %v9587_v1 = vrot.slane %v9586_v46, 1  ;;  %v9593_v10 = vmax.f32 %v9591_v56, %v9592_v24 }
 0x57b   : > { %v10464_v63 = vsel %vm10226_vm5, %v9525_v6, -inf  ;;  %v9600_v40 = vmax.f32 %v9598_v4, %v9599_v27  ;;  %v9606_v50 = vrot.slane %v9605_v42, 2  ;;  %v7776_v45 = vrot.slane %v23868_v36, %v22866_v58 }
 0x57c   : > { %v10466_v17 = vmax.f32 %v10464_v63, %v23850_v25  ;;  %v10848_v52 = vsel %vm10788_vm6, %v10460_v59, %v10457_v18  ;;  %v9588_v7 = vmax.f32 %v9586_v46, %v9587_v1  ;;  %v9594_v48 = vrot.slane %v9593_v10, 1 }
 0x57d   : > { %v10849_v32 = vsel %vm10790_vm7, %v10463_v14, %v10848_v52  ;;  %v9601_v49 = vrot.slane %v9600_v40, 1  ;;  %v9607_v38 = vmax.f32 %v9605_v42, %v9606_v50  ;;  %v7783_v47 = vrot.slane %v7769_v44, %v22866_v58 }
 0x57e   : > { %v10850_v57 = vsel %vm10792_vm8, %v10466_v17, %v10849_v32  ;;  %v9595_v9 = vmax.f32 %v9593_v10, %v9594_v48  ;;  %v23897_v62 = vsel %vm10226_vm5, %v9588_v7, -inf  ;;  %v7784_v36 = vcombine.high %v7776_v45, %v7776_v45 }
 0x57f   : > { %10940 = vst.msk [vmem:[#allocation3 + $0xe1] sm:$0xf] %vm10920_vm9, %v10850_v57  ;;  %v9602_v25 = vmax.f32 %v9600_v40, %v9601_v49  ;;  %v9608_v53 = vrot.slane %v9607_v38, 1  ;;  %v7785_v13 = vcombine.high %v7783_v47, %v7783_v47  ;;  %v9554_v41 = vsel %vm8433_vm4, %v7776_v45, -inf }
 0x580   : > { %v23902_v37 = vsel %vm10226_vm5, %v9595_v9, -inf  ;;  %v9555_v44 = vrot.slane %v9554_v41, 4  ;;  %v9561_v34 = vsel %vm8433_vm4, %v7784_v36, -inf  ;;  %v9568_v54 = vsel %vm8433_vm4, %v7783_v47, -inf }
 0x581   : > { %v9609_v16 = vmax.f32 %v9607_v38, %v9608_v53  ;;  %v23907_v29 = vsel %vm10226_vm5, %v9602_v25, -inf  ;;  %v9562_v20 = vrot.slane %v9561_v34, 4  ;;  %v9569_v19 = vrot.slane %v9568_v54, 4 }
 0x582   : > { %v9556_v23 = vmax.f32 %v9554_v41, %v9555_v44  ;;  %v9575_v56 = vsel %vm8433_vm4, %v7785_v13, -inf  ;;  %v7820_v4 = vcombine.high %v23870_v3, %v23870_v3  ;;  %v7827_v43 = vrot.slane %v23870_v3, %v22866_v58 }
 0x583   : > { %v23917_v33 = vsel %vm10226_vm5, %v9609_v16, -inf  ;;  %v9563_v28 = vmax.f32 %v9561_v34, %v9562_v20  ;;  %v9570_v8 = vmax.f32 %v9568_v54, %v9569_v19  ;;  %v9576_v2 = vrot.slane %v9575_v56, 4 }
 0x584   : > { %v9557_v18 = vrot.slane %v9556_v23, 2  ;;  %v7834_v46 = vrot.slane %v7820_v4, %v22866_v58  ;;  %v7835_v24 = vcombine.high %v7827_v43, %v7827_v43  ;;  %v9638_v27 = vsel %vm8433_vm4, %v7827_v43, -inf }
 0x585   : > { %v9564_v6 = vrot.slane %v9563_v28, 2  ;;  %v9571_v12 = vrot.slane %v9570_v8, 2  ;;  %v9577_v21 = vmax.f32 %v9575_v56, %v9576_v2  ;;  %v9639_v42 = vrot.slane %v9638_v27, 4 }
 0x586   : > { %v9558_v59 = vmax.f32 %v9556_v23, %v9557_v18  ;;  %v7836_v3 = vcombine.high %v7834_v46, %v7834_v46  ;;  %v9645_v14 = vsel %vm8433_vm4, %v7835_v24, -inf  ;;  %v9652_v1 = vsel %vm8433_vm4, %v7834_v46, -inf }
 0x587   : > { %v9565_v10 = vmax.f32 %v9563_v28, %v9564_v6  ;;  %v9572_v63 = vmax.f32 %v9570_v8, %v9571_v12  ;;  %v9578_v40 = vrot.slane %v9577_v21, 2  ;;  %v9640_v50 = vmax.f32 %v9638_v27, %v9639_v42 }
 0x588   : > { %v9559_v45 = vrot.slane %v9558_v59, 1  ;;  %v9646_v17 = vrot.slane %v9645_v14, 4  ;;  %v9653_v52 = vrot.slane %v9652_v1, 4  ;;  %v9659_v7 = vsel %vm8433_vm4, %v7836_v3, -inf }
 0x589   : > { %v9566_v48 = vrot.slane %v9565_v10, 1  ;;  %v9573_v32 = vrot.slane %v9572_v63, 1  ;;  %v9579_v49 = vmax.f32 %v9577_v21, %v9578_v40  ;;  %v9641_v38 = vrot.slane %v9640_v50, 2 }
 0x58a   : > { %v9560_v47 = vmax.f32 %v9558_v59, %v9559_v45  ;;  %v9647_v57 = vmax.f32 %v9645_v14, %v9646_v17  ;;  %v9654_v9 = vmax.f32 %v9652_v1, %v9653_v52  ;;  %v9660_v36 = vrot.slane %v9659_v7, 4  ;;  %v23936_v59 = vpop.f32.mrb[56].mxu0  ;;  %v25386_v52 = vld [vmem:[#allocation24_spill] sm:$0xff] }
 0x58b   : > { %v9567_v25 = vmax.f32 %v9565_v10, %v9566_v48  ;;  %v9574_v53 = vmax.f32 %v9572_v63, %v9573_v32  ;;  %v9580_v13 = vrot.slane %v9579_v49, 1  ;;  %v9642_v41 = vmax.f32 %v9640_v50, %v9641_v38  ;;  %v25387_v48 = vld [vmem:[#allocation25_spill] sm:$0xff] }
 0x58c   : > { %v10467_v44 = vsel %vm10226_vm5, %v9560_v47, -inf  ;;  %v9648_v34 = vrot.slane %v9647_v57, 2  ;;  %v9655_v54 = vrot.slane %v9654_v9, 2  ;;  %v9661_v16 = vmax.f32 %v9659_v7, %v9660_v36 }
 0x58d   : > { %v9581_v20 = vmax.f32 %v9579_v49, %v9580_v13  ;;  %v10469_v19 = vmax.f32 %v10467_v44, %v23897_v62  ;;  %v10470_v23 = vsel %vm10226_vm5, %v9567_v25, -inf  ;;  %v10473_v56 = vsel %vm10226_vm5, %v9574_v53, -inf }
 0x58e   : > { %v10472_v4 = vmax.f32 %v10470_v23, %v23902_v37  ;;  %v10475_v43 = vmax.f32 %v10473_v56, %v23907_v29  ;;  %v9643_v28 = vrot.slane %v9642_v41, 1  ;;  %v9649_v8 = vmax.f32 %v9647_v57, %v9648_v34 }
 0x58f   : > { %v10476_v2 = vsel %vm10226_vm5, %v9581_v20, -inf  ;;  %v9656_v18 = vmax.f32 %v9654_v9, %v9655_v54  ;;  %v9662_v46 = vrot.slane %v9661_v16, 2  ;;  %v6939_v24 = vadd.f32 %v23706_v5, %v23862_v61  ;;  %v25385_v61 = vld [vmem:[#allocation23_spill] sm:$0xff] }
 0x590   : > { %v10478_v27 = vmax.f32 %v10476_v2, %v23917_v33  ;;  %v10851_v62 = vsel %vm10788_vm6, %v10472_v4, %v10469_v19  ;;  %v9644_v6 = vmax.f32 %v9642_v41, %v9643_v28  ;;  %v9650_v12 = vrot.slane %v9649_v8, 1 }
 0x591   : > { %v10852_v21 = vsel %vm10790_vm7, %v10475_v43, %v10851_v62  ;;  %v9657_v37 = vrot.slane %v9656_v18, 1  ;;  %v9663_v42 = vmax.f32 %v9661_v16, %v9662_v46  ;;  %v7003_v29 = vmax.f32 %v6939_v24, 0.0  ;;  %v23969_v16 = vpop.f32.mrb[57].mxu0 }
 0x592   : > { %v10853_v3 = vsel %vm10792_vm8, %v10478_v27, %v10852_v21  ;;  %v9651_v14 = vmax.f32 %v9649_v8, %v9650_v12  ;;  %v23940_v1 = vsel %vm10226_vm5, %v9644_v6, -inf  ;;  %v19776_v33 = vadd.f32 %v23618_v30, %v25385_v61 }
 0x593   : > { %10941 = vst.msk [vmem:[#allocation3 + $0xf9] sm:$0xf] %vm10920_vm9, %v10853_v3  ;;  %v9658_v10 = vmax.f32 %v9656_v18, %v9657_v37  ;;  %v9664_v63 = vrot.slane %v9663_v42, 1  ;;  %v7803_v40 = vcombine.high %v7003_v29, %v7003_v29  ;;  %v7810_v50 = vrot.slane %v7003_v29, %v22866_v58 }
 0x594   : > { %v23947_v45 = vsel %vm10226_vm5, %v9651_v14, -inf  ;;  %v6942_v17 = vadd.f32 %v23706_v5, %v19776_v33  ;;  %v19777_v7 = vadd.f32 %v23644_v11, %v25386_v52  ;;  %v19778_v32 = vadd.f32 %v23668_v51, %v25387_v48 }
 0x595   : > { %v9665_v49 = vmax.f32 %v9663_v42, %v9664_v63  ;;  %v23955_v30 = vsel %vm10226_vm5, %v9658_v10, -inf  ;;  %v7817_v38 = vrot.slane %v7803_v40, %v22866_v58  ;;  %v7818_v47 = vcombine.high %v7810_v50, %v7810_v50 }
 0x596   : > { %v9610_v57 = vsel %vm8433_vm4, %v7810_v50, -inf  ;;  %v7006_v9 = vmax.f32 %v6942_v17, 0.0  ;;  %v6941_v36 = vadd.f32 %v23706_v5, %v19777_v7  ;;  %v23961_v25 = vadd.f32 %v23706_v5, %v19778_v32  ;;  %v20456_v50 = vld [vmem:[#allocation3 + $0xd1] ss:$8 sps:$4 sm:$0xff]  }
 0x597   : > { %v23964_v11 = vsel %vm10226_vm5, %v9665_v49, -inf  ;;  %v7819_v53 = vcombine.high %v7817_v38, %v7817_v38  ;;  %v9611_v51 = vrot.slane %v9610_v57, 4  ;;  %v9617_v13 = vsel %vm8433_vm4, %v7818_v47, -inf  ;;  %19244 = vmatmul.mubr.msk.f32.gmra.mrb[72].mxu1 %vm10226_vm5, %v20456_v50 }
 0x598   : > { %v9618_v41 = vrot.slane %v9617_v13, 4  ;;  %v9624_v44 = vsel %vm8433_vm4, %v7817_v38, -inf  ;;  %v7854_v34 = vcombine.high %v7006_v9, %v7006_v9  ;;  %v7861_v54 = vrot.slane %v7006_v9, %v22866_v58 }
 0x599   : > { %v9612_v20 = vmax.f32 %v9610_v57, %v9611_v51  ;;  %v9625_v19 = vrot.slane %v9624_v44, 4  ;;  %v9631_v5 = vsel %vm8433_vm4, %v7819_v53, -inf  ;;  %v23972_v23 = vmax.f32 %v6941_v36, 0.0 }
 0x59a   : > { %v9619_v56 = vmax.f32 %v9617_v13, %v9618_v41  ;;  %v9632_v4 = vrot.slane %v9631_v5, 4  ;;  %v7868_v43 = vrot.slane %v7854_v34, %v22866_v58  ;;  %v7869_v28 = vcombine.high %v7861_v54, %v7861_v54 }
 0x59b   : > { %v9613_v8 = vrot.slane %v9612_v20, 2  ;;  %v9626_v2 = vmax.f32 %v9624_v44, %v9625_v19  ;;  %v9694_v18 = vsel %vm8433_vm4, %v7861_v54, -inf  ;;  %v7837_v46 = vcombine.high %v23972_v23, %v23972_v23 }
 0x59c   : > { %v9620_v24 = vrot.slane %v9619_v56, 2  ;;  %v9633_v27 = vmax.f32 %v9631_v5, %v9632_v4  ;;  %v7870_v62 = vcombine.high %v7868_v43, %v7868_v43  ;;  %v9695_v6 = vrot.slane %v9694_v18, 4 }
 0x59d   : > { %v9614_v12 = vmax.f32 %v9612_v20, %v9613_v8  ;;  %v9627_v21 = vrot.slane %v9626_v2, 2  ;;  %v9701_v37 = vsel %vm8433_vm4, %v7869_v28, -inf  ;;  %v9708_v42 = vsel %vm8433_vm4, %v7868_v43, -inf  ;;  %v23987_v28 = vpop.f32.mrb[58].mxu0 }
 0x59e   : > { %v9621_v29 = vmax.f32 %v9619_v56, %v9620_v24  ;;  %v9634_v3 = vrot.slane %v9633_v27, 2  ;;  %v9696_v14 = vmax.f32 %v9694_v18, %v9695_v6  ;;  %v9702_v61 = vrot.slane %v9701_v37, 4 }
 0x59f   : > { %v9615_v33 = vrot.slane %v9614_v12, 1  ;;  %v9628_v10 = vmax.f32 %v9626_v2, %v9627_v21  ;;  %v9709_v63 = vrot.slane %v9708_v42, 4  ;;  %v9715_v40 = vsel %vm8433_vm4, %v7870_v62, -inf }
 0x5a0   : > { %v9622_v17 = vrot.slane %v9621_v29, 1  ;;  %v9635_v52 = vmax.f32 %v9633_v27, %v9634_v3  ;;  %v9697_v7 = vrot.slane %v9696_v14, 2  ;;  %v9703_v48 = vmax.f32 %v9701_v37, %v9702_v61 }
 0x5a1   : > { %v9616_v32 = vmax.f32 %v9614_v12, %v9615_v33  ;;  %v9629_v49 = vrot.slane %v9628_v10, 1  ;;  %v9710_v38 = vmax.f32 %v9708_v42, %v9709_v63  ;;  %v9716_v47 = vrot.slane %v9715_v40, 4 }
 0x5a2   : > { %v9623_v57 = vmax.f32 %v9621_v29, %v9622_v17  ;;  %v9636_v9 = vrot.slane %v9635_v52, 1  ;;  %v9698_v36 = vmax.f32 %v9696_v14, %v9697_v7  ;;  %v9704_v53 = vrot.slane %v9703_v48, 2 }
 0x5a3   : > { %v9630_v51 = vmax.f32 %v9628_v10, %v9629_v49  ;;  %v10479_v13 = vsel %vm10226_vm5, %v9616_v32, -inf  ;;  %v9711_v41 = vrot.slane %v9710_v38, 2  ;;  %v9717_v44 = vmax.f32 %v9715_v40, %v9716_v47 }
 0x5a4   : > { %v9637_v34 = vmax.f32 %v9635_v52, %v9636_v9  ;;  %v10481_v54 = vmax.f32 %v10479_v13, %v23940_v1  ;;  %v10482_v20 = vsel %vm10226_vm5, %v9623_v57, -inf  ;;  %v9699_v19 = vrot.slane %v9698_v36, 1 }
 0x5a5   : > { %v10484_v5 = vmax.f32 %v10482_v20, %v23947_v45  ;;  %v10485_v56 = vsel %vm10226_vm5, %v9630_v51, -inf  ;;  %v9705_v4 = vmax.f32 %v9703_v48, %v9704_v53  ;;  %v9712_v43 = vmax.f32 %v9710_v38, %v9711_v41  ;;  %v25388_v51 = vld [vmem:[#allocation26_spill] sm:$0xff]  ;;  %v24020_v41 = vpop.f32.mrb[59].mxu0 }
 0x5a6   : > { %v10487_v8 = vmax.f32 %v10485_v56, %v23955_v30  ;;  %v10488_v2 = vsel %vm10226_vm5, %v9637_v34, -inf  ;;  %v9700_v18 = vmax.f32 %v9698_v36, %v9699_v19  ;;  %v9718_v24 = vrot.slane %v9717_v44, 2 }
 0x5a7   : > { %v10490_v27 = vmax.f32 %v10488_v2, %v23964_v11  ;;  %v10854_v1 = vsel %vm10788_vm6, %v10484_v5, %v10481_v54  ;;  %v9706_v62 = vrot.slane %v9705_v4, 1  ;;  %v9713_v6 = vrot.slane %v9712_v43, 1 }
 0x5a8   : > { %v10855_v45 = vsel %vm10790_vm7, %v10487_v8, %v10854_v1  ;;  %v9719_v12 = vmax.f32 %v9717_v44, %v9718_v24  ;;  %v23995_v21 = vsel %vm10226_vm5, %v9700_v18, -inf  ;;  %v7844_v37 = vrot.slane %v23972_v23, %v22866_v58 }
 0x5a9   : > { %v10856_v30 = vsel %vm10792_vm8, %v10490_v27, %v10855_v45  ;;  %v9707_v42 = vmax.f32 %v9705_v4, %v9706_v62  ;;  %v9714_v29 = vmax.f32 %v9712_v43, %v9713_v6  ;;  %v7851_v3 = vrot.slane %v7837_v46, %v22866_v58 }
 0x5aa   : > { %10942 = vst.msk [vmem:[#allocation3 + $0x101] sm:$0xf] %vm10920_vm9, %v10856_v30  ;;  %v9720_v11 = vrot.slane %v9719_v12, 1  ;;  %v7852_v14 = vcombine.high %v7844_v37, %v7844_v37  ;;  %v9666_v61 = vsel %vm8433_vm4, %v7844_v37, -inf  ;;  %v7008_v33 = vmax.f32 %v23961_v25, 0.0 }
 0x5ab   : > { %v24005_v10 = vsel %vm10226_vm5, %v9707_v42, -inf  ;;  %v24008_v63 = vsel %vm10226_vm5, %v9714_v29, -inf  ;;  %v7853_v23 = vcombine.high %v7851_v3, %v7851_v3  ;;  %v9667_v40 = vrot.slane %v9666_v61, 4 }
 0x5ac   : > { %v9721_v50 = vmax.f32 %v9719_v12, %v9720_v11  ;;  %v9673_v17 = vsel %vm8433_vm4, %v7852_v14, -inf  ;;  %v9680_v46 = vsel %vm8433_vm4, %v7851_v3, -inf  ;;  %v7888_v52 = vcombine.high %v7008_v33, %v7008_v33 }
 0x5ad   : > { %v9668_v7 = vmax.f32 %v9666_v61, %v9667_v40  ;;  %v9674_v48 = vrot.slane %v9673_v17, 4  ;;  %v9681_v32 = vrot.slane %v9680_v46, 4  ;;  %v9687_v49 = vsel %vm8433_vm4, %v7853_v23, -inf }
 0x5ae   : > { %v24014_v25 = vsel %vm10226_vm5, %v9721_v50, -inf  ;;  %v9688_v38 = vrot.slane %v9687_v49, 4  ;;  %v7895_v47 = vrot.slane %v7008_v33, %v22866_v58  ;;  %v7902_v57 = vrot.slane %v7888_v52, %v22866_v58 }
 0x5af   : > { %v9669_v9 = vrot.slane %v9668_v7, 2  ;;  %v9675_v36 = vmax.f32 %v9673_v17, %v9674_v48  ;;  %v9682_v53 = vmax.f32 %v9680_v46, %v9681_v32  ;;  %v19779_v13 = vadd.f32 %v23697_v60, %v25388_v51 }
 0x5b0   : > { %v9689_v44 = vmax.f32 %v9687_v49, %v9688_v38  ;;  %v7903_v34 = vcombine.high %v7895_v47, %v7895_v47  ;;  %v7904_v54 = vcombine.high %v7902_v57, %v7902_v57  ;;  %v9750_v20 = vsel %vm8433_vm4, %v7895_v47, -inf }
 0x5b1   : > { %v9670_v19 = vmax.f32 %v9668_v7, %v9669_v9  ;;  %v9676_v5 = vrot.slane %v9675_v36, 2  ;;  %v9683_v56 = vrot.slane %v9682_v53, 2  ;;  %v9751_v4 = vrot.slane %v9750_v20, 4 }
 0x5b2   : > { %v9690_v43 = vrot.slane %v9689_v44, 2  ;;  %v9757_v8 = vsel %vm8433_vm4, %v7903_v34, -inf  ;;  %v9764_v2 = vsel %vm8433_vm4, %v7902_v57, -inf  ;;  %v9771_v18 = vsel %vm8433_vm4, %v7904_v54, -inf  ;;  %v24034_v34 = vpop.f32.mrb[60].mxu0 }
 0x5b3   : > { %v9671_v24 = vrot.slane %v9670_v19, 1  ;;  %v9677_v60 = vmax.f32 %v9675_v36, %v9676_v5  ;;  %v9684_v27 = vmax.f32 %v9682_v53, %v9683_v56  ;;  %v9752_v1 = vmax.f32 %v9750_v20, %v9751_v4 }
 0x5b4   : > { %v9691_v62 = vmax.f32 %v9689_v44, %v9690_v43  ;;  %v9758_v6 = vrot.slane %v9757_v8, 4  ;;  %v9765_v45 = vrot.slane %v9764_v2, 4  ;;  %v9772_v12 = vrot.slane %v9771_v18, 4 }
 0x5b5   : > { %v9672_v37 = vmax.f32 %v9670_v19, %v9671_v24  ;;  %v9678_v30 = vrot.slane %v9677_v60, 1  ;;  %v9685_v42 = vrot.slane %v9684_v27, 1  ;;  %v9753_v29 = vrot.slane %v9752_v1, 2  ;;  %v24040_v19 = vld [vmem:[%s25209_s2] ss:$0 sm:$0xff] }
 0x5b6   : > { %v9692_v3 = vrot.slane %v9691_v62, 1  ;;  %v9759_v11 = vmax.f32 %v9757_v8, %v9758_v6  ;;  %v9766_v14 = vmax.f32 %v9764_v2, %v9765_v45  ;;  %v9773_v61 = vmax.f32 %v9771_v18, %v9772_v12 }
 0x5b7   : > { %v9679_v33 = vmax.f32 %v9677_v60, %v9678_v30  ;;  %v9686_v23 = vmax.f32 %v9684_v27, %v9685_v42  ;;  %v10491_v40 = vsel %vm10226_vm5, %v9672_v37, -inf  ;;  %v9754_v50 = vmax.f32 %v9752_v1, %v9753_v29  ;;  %v25390_v27 = vld [vmem:[#allocation28_spill] sm:$0xff]  ;;  %v25391_v1 = vld [vmem:[#allocation29_spill] sm:$0xff] }
 0x5b8   : > { %v9693_v17 = vmax.f32 %v9691_v62, %v9692_v3  ;;  %v10493_v46 = vmax.f32 %v10491_v40, %v23995_v21  ;;  %v9760_v52 = vrot.slane %v9759_v11, 2  ;;  %v9767_v7 = vrot.slane %v9766_v14, 2 }
 0x5b9   : > { %v10494_v48 = vsel %vm10226_vm5, %v9679_v33, -inf  ;;  %v10497_v32 = vsel %vm10226_vm5, %v9686_v23, -inf  ;;  %v9755_v49 = vrot.slane %v9754_v50, 1  ;;  %v9774_v38 = vrot.slane %v9773_v61, 2 }
 0x5ba   : > { %v10496_v47 = vmax.f32 %v10494_v48, %v24005_v10  ;;  %v10499_v57 = vmax.f32 %v10497_v32, %v24008_v63  ;;  %v10500_v9 = vsel %vm10226_vm5, %v9693_v17, -inf  ;;  %v9761_v36 = vmax.f32 %v9759_v11, %v9760_v52  ;;  %v25389_v63 = vld [vmem:[#allocation27_spill] sm:$0xff] }
 0x5bb   : > { %v10502_v53 = vmax.f32 %v10500_v9, %v24014_v25  ;;  %v9756_v51 = vmax.f32 %v9754_v50, %v9755_v49  ;;  %v9768_v44 = vmax.f32 %v9766_v14, %v9767_v7  ;;  %v9775_v21 = vmax.f32 %v9773_v61, %v9774_v38  ;;  %v24078_v7 = vpop.f32.mrb[61].mxu0 }
 0x5bc   : > { %v10857_v54 = vsel %vm10788_vm6, %v10496_v47, %v10493_v46  ;;  %v9762_v20 = vrot.slane %v9761_v36, 1  ;;  %v6943_v10 = vadd.f32 %v24040_v19, %v19779_v13  ;;  %v19780_v5 = vadd.f32 %v23734_v39, %v25389_v63 }
 0x5bd   : > { %v10858_v25 = vsel %vm10790_vm7, %v10499_v57, %v10857_v54  ;;  %v9769_v56 = vrot.slane %v9768_v44, 1  ;;  %v9776_v4 = vrot.slane %v9775_v21, 1  ;;  %v24047_v43 = vsel %vm10226_vm5, %v9756_v51, -inf }
 0x5be   : > { %v10859_v8 = vsel %vm10792_vm8, %v10502_v53, %v10858_v25  ;;  %v9763_v2 = vmax.f32 %v9761_v36, %v9762_v20  ;;  %v7007_v18 = vmax.f32 %v6943_v10, 0.0  ;;  %v6946_v24 = vadd.f32 %v24040_v19, %v19780_v5 }
 0x5bf   : > { %10943 = vst.msk [vmem:[#allocation3 + $0x109] sm:$0xf] %vm10920_vm9, %v10859_v8  ;;  %v9770_v60 = vmax.f32 %v9768_v44, %v9769_v56  ;;  %v9777_v13 = vmax.f32 %v9775_v21, %v9776_v4  ;;  %v19781_v39 = vadd.f32 %v23753_v55, %v25390_v27  ;;  %v19782_v62 = vadd.f32 %v23784_v31, %v25391_v1 }
 0x5c0   : > { %v24057_v6 = vsel %vm10226_vm5, %v9763_v2, -inf  ;;  %v7871_v45 = vcombine.high %v7007_v18, %v7007_v18  ;;  %v7878_v12 = vrot.slane %v7007_v18, %v22866_v58  ;;  %v7010_v37 = vmax.f32 %v6946_v24, 0.0 }
 0x5c1   : > { %v24061_v30 = vsel %vm10226_vm5, %v9770_v60, -inf  ;;  %v24064_v42 = vsel %vm10226_vm5, %v9777_v13, -inf  ;;  %v6945_v29 = vadd.f32 %v24040_v19, %v19781_v39  ;;  %v6948_v55 = vadd.f32 %v24040_v19, %v19782_v62 }
 0x5c2   : > { %v7885_v3 = vrot.slane %v7871_v45, %v22866_v58  ;;  %v7886_v31 = vcombine.high %v7878_v12, %v7878_v12  ;;  %v9722_v11 = vsel %vm8433_vm4, %v7878_v12, -inf  ;;  %v7922_v14 = vcombine.high %v7010_v37, %v7010_v37 }
 0x5c3   : > { %v9723_v61 = vrot.slane %v9722_v11, 4  ;;  %v7929_v33 = vrot.slane %v7010_v37, %v22866_v58  ;;  %v24071_v23 = vmax.f32 %v6945_v29, 0.0  ;;  %v24073_v40 = vmax.f32 %v6948_v55, 0.0  ;;  %v20457_v37 = vld [vmem:[#allocation3 + $0xf1] ss:$8 sps:$4 sm:$0xff]  }
 0x5c4   : > { %v7887_v50 = vcombine.high %v7885_v3, %v7885_v3  ;;  %v9729_v17 = vsel %vm8433_vm4, %v7886_v31, -inf  ;;  %v9736_v46 = vsel %vm8433_vm4, %v7885_v3, -inf  ;;  %v7936_v52 = vrot.slane %v7922_v14, %v22866_v58  ;;  %19246 = vmatprep.mubr.msk.f32.mxu1 %vm10226_vm5, %v20457_v37 }
 0x5c5   : > { %v9724_v48 = vmax.f32 %v9722_v11, %v9723_v61  ;;  %v9730_v32 = vrot.slane %v9729_v17, 4  ;;  %v9737_v49 = vrot.slane %v9736_v46, 4  ;;  %v7937_v38 = vcombine.high %v7929_v33, %v7929_v33 }
 0x5c6   : > { %v9743_v47 = vsel %vm8433_vm4, %v7887_v50, -inf  ;;  %v7938_v57 = vcombine.high %v7936_v52, %v7936_v52  ;;  %v9806_v9 = vsel %vm8433_vm4, %v7929_v33, -inf  ;;  %v9820_v36 = vsel %vm8433_vm4, %v7936_v52, -inf }
 0x5c7   : > { %v9725_v53 = vrot.slane %v9724_v48, 2  ;;  %v9731_v51 = vmax.f32 %v9729_v17, %v9730_v32  ;;  %v9738_v44 = vmax.f32 %v9736_v46, %v9737_v49  ;;  %v9744_v21 = vrot.slane %v9743_v47, 4 }
 0x5c8   : > { %v9807_v54 = vrot.slane %v9806_v9, 4  ;;  %v9813_v20 = vsel %vm8433_vm4, %v7937_v38, -inf  ;;  %v9821_v10 = vrot.slane %v9820_v36, 4  ;;  %v9827_v63 = vsel %vm8433_vm4, %v7938_v57, -inf }
 0x5c9   : > { %v9726_v5 = vmax.f32 %v9724_v48, %v9725_v53  ;;  %v9732_v25 = vrot.slane %v9731_v51, 2  ;;  %v9739_v56 = vrot.slane %v9738_v44, 2  ;;  %v9745_v4 = vmax.f32 %v9743_v47, %v9744_v21 }
 0x5ca   : > { %v9808_v8 = vmax.f32 %v9806_v9, %v9807_v54  ;;  %v9814_v2 = vrot.slane %v9813_v20, 4  ;;  %v9822_v18 = vmax.f32 %v9820_v36, %v9821_v10  ;;  %v9828_v24 = vrot.slane %v9827_v63, 4  ;;  %v24092_v54 = vpop.f32.mrb[62].mxu0 }
 0x5cb   : > { %v9727_v60 = vrot.slane %v9726_v5, 1  ;;  %v9733_v13 = vmax.f32 %v9731_v51, %v9732_v25  ;;  %v9740_v27 = vmax.f32 %v9738_v44, %v9739_v56  ;;  %v9746_v39 = vrot.slane %v9745_v4, 2 }
 0x5cc   : > { %v9809_v1 = vrot.slane %v9808_v8, 2  ;;  %v9815_v62 = vmax.f32 %v9813_v20, %v9814_v2  ;;  %v9823_v45 = vrot.slane %v9822_v18, 2  ;;  %v9829_v12 = vmax.f32 %v9827_v63, %v9828_v24 }
 0x5cd   : > { %v9728_v29 = vmax.f32 %v9726_v5, %v9727_v60  ;;  %v9734_v55 = vrot.slane %v9733_v13, 1  ;;  %v9741_v3 = vrot.slane %v9740_v27, 1  ;;  %v9747_v31 = vmax.f32 %v9745_v4, %v9746_v39 }
 0x5ce   : > { %v9810_v11 = vmax.f32 %v9808_v8, %v9809_v1  ;;  %v9816_v14 = vrot.slane %v9815_v62, 2  ;;  %v9824_v61 = vmax.f32 %v9822_v18, %v9823_v45  ;;  %v9830_v33 = vrot.slane %v9829_v12, 2 }
 0x5cf   : > { %v9735_v50 = vmax.f32 %v9733_v13, %v9734_v55  ;;  %v9742_v17 = vmax.f32 %v9740_v27, %v9741_v3  ;;  %v9748_v46 = vrot.slane %v9747_v31, 1  ;;  %v10503_v52 = vsel %vm10226_vm5, %v9728_v29, -inf }
 0x5d0   : > { %v10505_v48 = vmax.f32 %v10503_v52, %v24047_v43  ;;  %v9811_v32 = vrot.slane %v9810_v11, 1  ;;  %v9817_v49 = vmax.f32 %v9815_v62, %v9816_v14  ;;  %v9825_v38 = vrot.slane %v9824_v61, 1 }
 0x5d1   : > { %v9749_v47 = vmax.f32 %v9747_v31, %v9748_v46  ;;  %v10506_v57 = vsel %vm10226_vm5, %v9735_v50, -inf  ;;  %v10509_v9 = vsel %vm10226_vm5, %v9742_v17, -inf  ;;  %v9831_v36 = vmax.f32 %v9829_v12, %v9830_v33  ;;  %v24126_v31 = vpop.f32.mrb[63].mxu0 }
 0x5d2   : > { %v10508_v53 = vmax.f32 %v10506_v57, %v24057_v6  ;;  %v10511_v51 = vmax.f32 %v10509_v9, %v24061_v30  ;;  %v9812_v44 = vmax.f32 %v9810_v11, %v9811_v32  ;;  %v9818_v21 = vrot.slane %v9817_v49, 1 }
 0x5d3   : > { %v10512_v20 = vsel %vm10226_vm5, %v9749_v47, -inf  ;;  %v9826_v43 = vmax.f32 %v9824_v61, %v9825_v38  ;;  %v9832_v10 = vrot.slane %v9831_v36, 1  ;;  %v7905_v63 = vcombine.high %v24071_v23, %v24071_v23 }
 0x5d4   : > { %v10514_v5 = vmax.f32 %v10512_v20, %v24064_v42  ;;  %v10860_v25 = vsel %vm10788_vm6, %v10508_v53, %v10505_v48  ;;  %v9819_v56 = vmax.f32 %v9817_v49, %v9818_v21  ;;  %v24100_v6 = vsel %vm10226_vm5, %v9812_v44, -inf }
 0x5d5   : > { %v10861_v30 = vsel %vm10790_vm7, %v10511_v51, %v10860_v25  ;;  %v9833_v4 = vmax.f32 %v9831_v36, %v9832_v10  ;;  %v24104_v8 = vsel %vm10226_vm5, %v9826_v43, -inf  ;;  %v7912_v2 = vrot.slane %v24071_v23, %v22866_v58 }
 0x5d6   : > { %v10862_v18 = vsel %vm10792_vm8, %v10514_v5, %v10861_v30  ;;  %v24110_v24 = vsel %vm10226_vm5, %v9819_v56, -inf  ;;  %v7919_v42 = vrot.slane %v7905_v63, %v22866_v58  ;;  %v7956_v60 = vcombine.high %v24073_v40, %v24073_v40 }
 0x5d7   : > { %10944 = vst.msk [vmem:[#allocation3 + $0x111] sm:$0xf] %vm10920_vm9, %v10862_v18  ;;  %v24117_v13 = vsel %vm10226_vm5, %v9833_v4, -inf  ;;  %v7920_v27 = vcombine.high %v7912_v2, %v7912_v2  ;;  %v9778_v39 = vsel %vm8433_vm4, %v7912_v2, -inf  ;;  %v7963_v23 = vrot.slane %v24073_v40, %v22866_v58 }
 0x5d8   : > { %v7921_v1 = vcombine.high %v7919_v42, %v7919_v42  ;;  %v9779_v62 = vrot.slane %v9778_v39, 4  ;;  %v9792_v45 = vsel %vm8433_vm4, %v7919_v42, -inf  ;;  %v7970_v12 = vrot.slane %v7956_v60, %v22866_v58 }
 0x5d9   : > { %v9785_v37 = vsel %vm8433_vm4, %v7920_v27, -inf  ;;  %v9793_v29 = vrot.slane %v9792_v45, 4  ;;  %v7971_v55 = vcombine.high %v7963_v23, %v7963_v23  ;;  %v9862_v3 = vsel %vm8433_vm4, %v7963_v23, -inf }
 0x5da   : > { %v9780_v11 = vmax.f32 %v9778_v39, %v9779_v62  ;;  %v9786_v14 = vrot.slane %v9785_v37, 4  ;;  %v9799_v61 = vsel %vm8433_vm4, %v7921_v1, -inf  ;;  %v7972_v33 = vcombine.high %v7970_v12, %v7970_v12 }
 0x5db   : > { %v9794_v40 = vmax.f32 %v9792_v45, %v9793_v29  ;;  %v9800_v50 = vrot.slane %v9799_v61, 4  ;;  %v9863_v17 = vrot.slane %v9862_v3, 4  ;;  %v9869_v46 = vsel %vm8433_vm4, %v7971_v55, -inf }
 0x5dc   : > { %v9781_v52 = vrot.slane %v9780_v11, 2  ;;  %v9787_v48 = vmax.f32 %v9785_v37, %v9786_v14  ;;  %v9870_v32 = vrot.slane %v9869_v46, 4  ;;  %v9876_v49 = vsel %vm8433_vm4, %v7970_v12, -inf }
 0x5dd   : > { %v9795_v38 = vrot.slane %v9794_v40, 2  ;;  %v9801_v47 = vmax.f32 %v9799_v61, %v9800_v50  ;;  %v9864_v57 = vmax.f32 %v9862_v3, %v9863_v17  ;;  %v9877_v9 = vrot.slane %v9876_v49, 4 }
 0x5de   : > { %v9782_v36 = vmax.f32 %v9780_v11, %v9781_v52  ;;  %v9788_v53 = vrot.slane %v9787_v48, 2  ;;  %v9871_v51 = vmax.f32 %v9869_v46, %v9870_v32  ;;  %v9883_v44 = vsel %vm8433_vm4, %v7972_v33, -inf  ;;  %v20458_v33 = vld [vmem:[#allocation3 + $0x101] ss:$8 sps:$4 sm:$0xff]  }
 0x5df   : > { %v9796_v21 = vmax.f32 %v9794_v40, %v9795_v38  ;;  %v9802_v20 = vrot.slane %v9801_v47, 2  ;;  %v9865_v43 = vrot.slane %v9864_v57, 2  ;;  %v9878_v10 = vmax.f32 %v9876_v49, %v9877_v9  ;;  %19247 = vmatmul.mubr.msk.f32.gmra.mrb[74].mxu1 %vm10226_vm5, %v20458_v33 }
 0x5e0   : > { %v9783_v63 = vrot.slane %v9782_v36, 1  ;;  %v9789_v5 = vmax.f32 %v9787_v48, %v9788_v53  ;;  %v9872_v25 = vrot.slane %v9871_v51, 2  ;;  %v9884_v56 = vrot.slane %v9883_v44, 4 }
 0x5e1   : > { %v9797_v30 = vrot.slane %v9796_v21, 1  ;;  %v9803_v4 = vmax.f32 %v9801_v47, %v9802_v20  ;;  %v9866_v2 = vmax.f32 %v9864_v57, %v9865_v43  ;;  %v9879_v18 = vrot.slane %v9878_v10, 2  ;;  %v25392_v57 = vld [vmem:[#allocation30_spill] sm:$0xff]  ;;  %v25395_v43 = vld [vmem:[#allocation33_spill] sm:$0xff] }
 0x5e2   : > { %v9784_v42 = vmax.f32 %v9782_v36, %v9783_v63  ;;  %v9790_v60 = vrot.slane %v9789_v5, 1  ;;  %v9873_v27 = vmax.f32 %v9871_v51, %v9872_v25  ;;  %v9885_v39 = vmax.f32 %v9883_v44, %v9884_v56  ;;  %v25393_v36 = vld [vmem:[#allocation31_spill] sm:$0xff]  ;;  %v25394_v51 = vld [vmem:[#allocation32_spill] sm:$0xff]  ;;  %v25396_v56 = vld [vmem:[#allocation34_spill] sm:$0xff] }
 0x5e3   : > { %v9798_v23 = vmax.f32 %v9796_v21, %v9797_v30  ;;  %v9804_v1 = vrot.slane %v9803_v4, 1  ;;  %v9867_v62 = vrot.slane %v9866_v2, 1  ;;  %v9880_v45 = vmax.f32 %v9878_v10, %v9879_v18 }
 0x5e4   : > { %v9791_v12 = vmax.f32 %v9789_v5, %v9790_v60  ;;  %v10515_v37 = vsel %vm10226_vm5, %v9784_v42, -inf  ;;  %v9874_v29 = vrot.slane %v9873_v27, 1  ;;  %v9886_v55 = vrot.slane %v9885_v39, 2  ;;  %v25398_v60 = vld [vmem:[#allocation36_spill] sm:$0xff] }
 0x5e5   : > { %v9805_v3 = vmax.f32 %v9803_v4, %v9804_v1  ;;  %v10517_v11 = vmax.f32 %v10515_v37, %v24100_v6  ;;  %v10521_v14 = vsel %vm10226_vm5, %v9798_v23, -inf  ;;  %v9868_v61 = vmax.f32 %v9866_v2, %v9867_v62  ;;  %v25397_v4 = vld [vmem:[#allocation35_spill] sm:$0xff] }
 0x5e6   : > { %v10518_v40 = vsel %vm10226_vm5, %v9791_v12, -inf  ;;  %v10523_v50 = vmax.f32 %v10521_v14, %v24104_v8  ;;  %v9875_v17 = vmax.f32 %v9873_v27, %v9874_v29  ;;  %v9881_v46 = vrot.slane %v9880_v45, 1 }
 0x5e7   : > { %v10520_v52 = vmax.f32 %v10518_v40, %v24110_v24  ;;  %v10524_v48 = vsel %vm10226_vm5, %v9805_v3, -inf  ;;  %v9887_v32 = vmax.f32 %v9885_v39, %v9886_v55  ;;  %v24140_v49 = vsel %vm10226_vm5, %v9868_v61, -inf }
 0x5e8   : > { %v10526_v6 = vmax.f32 %v10524_v48, %v24117_v13  ;;  %v9882_v38 = vmax.f32 %v9880_v45, %v9881_v46  ;;  %v24145_v47 = vsel %vm10226_vm5, %v9875_v17, -inf  ;;  %v19783_v8 = vadd.f32 %v23801_v15, %v25392_v57 }
 0x5e9   : > { %v10863_v9 = vsel %vm10788_vm6, %v10520_v52, %v10517_v11  ;;  %v9888_v24 = vrot.slane %v9887_v32, 1  ;;  %v19784_v53 = vadd.f32 %v23854_v26, %v25393_v36  ;;  %v19785_v44 = vadd.f32 %v23864_v0, %v25394_v51 }
 0x5ea   : > { %v10864_v21 = vsel %vm10790_vm7, %v10523_v50, %v10863_v9  ;;  %v24156_v13 = vsel %vm10226_vm5, %v9882_v38, -inf  ;;  %v6947_v20 = vadd.f32 %v24040_v19, %v19783_v8  ;;  %v19786_v10 = vadd.f32 %v23893_v22, %v25395_v43 }
 0x5eb   : > { %v10865_v15 = vsel %vm10792_vm8, %v10526_v6, %v10864_v21  ;;  %v9889_v63 = vmax.f32 %v9887_v32, %v9888_v24  ;;  %v6950_v5 = vadd.f32 %v24040_v19, %v19784_v53  ;;  %v6949_v26 = vadd.f32 %v24040_v19, %v19785_v44 }
 0x5ec   : > { %10945 = vst.msk [vmem:[#allocation3 + $0x129] sm:$0xf] %vm10920_vm9, %v10865_v15  ;;  %v7011_v0 = vmax.f32 %v6947_v20, 0.0  ;;  %v6952_v25 = vadd.f32 %v24040_v19, %v19786_v10  ;;  %v19787_v30 = vadd.f32 %v23914_v35, %v25396_v56  ;;  %v24170_v2 = vadd.f32 %v23936_v59, %v25397_v4 }
 0x5ed   : > { %v24173_v22 = vsel %vm10226_vm5, %v9889_v63, -inf  ;;  %v7014_v18 = vmax.f32 %v6950_v5, 0.0  ;;  %v24175_v42 = vmax.f32 %v6949_v26, 0.0  ;;  %v24179_v27 = vadd.f32 %v23969_v16, %v25398_v60 }
 0x5ee   : > { %v7939_v39 = vcombine.high %v7011_v0, %v7011_v0  ;;  %v7946_v23 = vrot.slane %v7011_v0, %v22866_v58  ;;  %v24182_v1 = vmax.f32 %v6952_v25, 0.0  ;;  %v24185_v35 = vadd.f32 %v24040_v19, %v19787_v30 }
 0x5ef   : > { %v7990_v59 = vcombine.high %v7014_v18, %v7014_v18  ;;  %v7997_v62 = vrot.slane %v7014_v18, %v22866_v58  ;;  %v7973_v45 = vcombine.high %v24175_v42, %v24175_v42  ;;  %v24192_v12 = vrot.slane %v24175_v42, %v22866_v58 }
 0x5f0   : > { %v7953_v16 = vrot.slane %v7939_v39, %v22866_v58  ;;  %v7954_v37 = vcombine.high %v7946_v23, %v7946_v23  ;;  %v9834_v29 = vsel %vm8433_vm4, %v7946_v23, -inf  ;;  %v8024_v55 = vcombine.high %v24182_v1, %v24182_v1 }
 0x5f1   : > { %v9835_v3 = vrot.slane %v9834_v29, 4  ;;  %v8004_v11 = vrot.slane %v7990_v59, %v22866_v58  ;;  %v8005_v14 = vcombine.high %v7997_v62, %v7997_v62  ;;  %v9918_v61 = vsel %vm8433_vm4, %v7997_v62, -inf }
 0x5f2   : > { %v7955_v33 = vcombine.high %v7953_v16, %v7953_v16  ;;  %v9841_v40 = vsel %vm8433_vm4, %v7954_v37, -inf  ;;  %v9848_v50 = vsel %vm8433_vm4, %v7953_v16, -inf  ;;  %v9919_v17 = vrot.slane %v9918_v61, 4 }
 0x5f3   : > { %v9836_v46 = vmax.f32 %v9834_v29, %v9835_v3  ;;  %v9842_v52 = vrot.slane %v9841_v40, 4  ;;  %v9849_v48 = vrot.slane %v9848_v50, 4  ;;  %v8006_v32 = vcombine.high %v8004_v11, %v8004_v11  ;;  %v20459_v6 = vld [vmem:[#allocation3 + $0x121] ss:$8 sps:$4 sm:$0xff]  }
 0x5f4   : > { %v9855_v38 = vsel %vm8433_vm4, %v7955_v33, -inf  ;;  %v9920_v57 = vmax.f32 %v9918_v61, %v9919_v17  ;;  %v9925_v8 = vsel %vm8433_vm4, %v8005_v14, -inf  ;;  %v9932_v9 = vsel %vm8433_vm4, %v8004_v11, -inf  ;;  %19249 = vmatprep.mubr.msk.f32.mxu1 %vm10226_vm5, %v20459_v6 }
 0x5f5   : > { %v9837_v24 = vrot.slane %v9836_v46, 2  ;;  %v9843_v36 = vmax.f32 %v9841_v40, %v9842_v52  ;;  %v9850_v53 = vmax.f32 %v9848_v50, %v9849_v48  ;;  %v9856_v51 = vrot.slane %v9855_v38, 4 }
 0x5f6   : > { %v9921_v44 = vrot.slane %v9920_v57, 2  ;;  %v9926_v21 = vrot.slane %v9925_v8, 4  ;;  %v9933_v20 = vrot.slane %v9932_v9, 4  ;;  %v9939_v43 = vsel %vm8433_vm4, %v8006_v32, -inf }
 0x5f7   : > { %v9838_v10 = vmax.f32 %v9836_v46, %v9837_v24  ;;  %v9844_v15 = vrot.slane %v9843_v36, 2  ;;  %v9851_v63 = vrot.slane %v9850_v53, 2  ;;  %v9857_v5 = vmax.f32 %v9855_v38, %v9856_v51 }
 0x5f8   : > { %v9922_v26 = vmax.f32 %v9920_v57, %v9921_v44  ;;  %v9927_v0 = vmax.f32 %v9925_v8, %v9926_v21  ;;  %v9934_v25 = vmax.f32 %v9932_v9, %v9933_v20  ;;  %v9940_v56 = vrot.slane %v9939_v43, 4 }
 0x5f9   : > { %v9839_v30 = vrot.slane %v9838_v10, 1  ;;  %v9845_v4 = vmax.f32 %v9843_v36, %v9844_v15  ;;  %v9852_v18 = vmax.f32 %v9850_v53, %v9851_v63  ;;  %v9858_v60 = vrot.slane %v9857_v5, 2 }
 0x5fa   : > { %v9923_v39 = vrot.slane %v9922_v26, 1  ;;  %v9928_v23 = vrot.slane %v9927_v0, 2  ;;  %v9935_v59 = vrot.slane %v9934_v25, 2  ;;  %v9941_v62 = vmax.f32 %v9939_v43, %v9940_v56 }
 0x5fb   : > { %v9840_v16 = vmax.f32 %v9838_v10, %v9839_v30  ;;  %v9846_v37 = vrot.slane %v9845_v4, 1  ;;  %v9853_v29 = vrot.slane %v9852_v18, 1  ;;  %v9859_v3 = vmax.f32 %v9857_v5, %v9858_v60 }
 0x5fc   : > { %v9924_v11 = vmax.f32 %v9922_v26, %v9923_v39  ;;  %v9929_v14 = vmax.f32 %v9927_v0, %v9928_v23  ;;  %v9936_v61 = vmax.f32 %v9934_v25, %v9935_v59  ;;  %v9942_v33 = vrot.slane %v9941_v62, 2 }
 0x5fd   : > { %v9847_v40 = vmax.f32 %v9845_v4, %v9846_v37  ;;  %v9854_v50 = vmax.f32 %v9852_v18, %v9853_v29  ;;  %v9860_v17 = vrot.slane %v9859_v3, 1  ;;  %v10527_v46 = vsel %vm10226_vm5, %v9840_v16, -inf }
 0x5fe   : > { %v10529_v52 = vmax.f32 %v10527_v46, %v24140_v49  ;;  %v9930_v48 = vrot.slane %v9929_v14, 1  ;;  %v9937_v32 = vrot.slane %v9936_v61, 1  ;;  %v9943_v6 = vmax.f32 %v9941_v62, %v9942_v33 }
 0x5ff   : > { %v9861_v38 = vmax.f32 %v9859_v3, %v9860_v17  ;;  %v10530_v57 = vsel %vm10226_vm5, %v9847_v40, -inf  ;;  %v10533_v8 = vsel %vm10226_vm5, %v9854_v50, -inf  ;;  %v24212_v9 = vsel %vm10226_vm5, %v9924_v11, -inf }
 0x600   : > { %v10532_v24 = vmax.f32 %v10530_v57, %v24145_v47  ;;  %v10535_v36 = vmax.f32 %v10533_v8, %v24156_v13  ;;  %v9931_v53 = vmax.f32 %v9929_v14, %v9930_v48  ;;  %v9938_v51 = vmax.f32 %v9936_v61, %v9937_v32 }
 0x601   : > { %v10536_v44 = vsel %vm10226_vm5, %v9861_v38, -inf  ;;  %v9944_v49 = vrot.slane %v9943_v6, 1  ;;  %v7987_v21 = vrot.slane %v7973_v45, %v22866_v58  ;;  %v7988_v20 = vcombine.high %v24192_v12, %v24192_v12 }
 0x602   : > { %v10538_v43 = vmax.f32 %v10536_v44, %v24173_v22  ;;  %v10866_v10 = vsel %vm10788_vm6, %v10532_v24, %v10529_v52  ;;  %v24226_v47 = vsel %vm10226_vm5, %v9931_v53, -inf  ;;  %v24229_v13 = vsel %vm10226_vm5, %v9938_v51, -inf }
 0x603   : > { %v10867_v15 = vsel %vm10790_vm7, %v10535_v36, %v10866_v10  ;;  %v9945_v63 = vmax.f32 %v9943_v6, %v9944_v49  ;;  %v7989_v5 = vcombine.high %v7987_v21, %v7987_v21  ;;  %v9890_v42 = vsel %vm8433_vm4, %v24192_v12, -inf }
 0x604   : > { %v10868_v45 = vsel %vm10792_vm8, %v10538_v43, %v10867_v15  ;;  %v9891_v26 = vrot.slane %v9890_v42, 4  ;;  %v9897_v22 = vsel %vm8433_vm4, %v7988_v20, -inf  ;;  %v9904_v0 = vsel %vm8433_vm4, %v7987_v21, -inf }
 0x605   : > { %10946 = vst.msk [vmem:[#allocation3 + $0x131] sm:$0xf] %vm10920_vm9, %v10868_v45  ;;  %v24239_v25 = vsel %vm10226_vm5, %v9945_v63, -inf  ;;  %v9898_v56 = vrot.slane %v9897_v22, 4  ;;  %v9905_v30 = vrot.slane %v9904_v0, 4  ;;  %v9911_v4 = vsel %vm8433_vm4, %v7989_v5, -inf }
 0x606   : > { %v9892_v18 = vmax.f32 %v9890_v42, %v9891_v26  ;;  %v9912_v60 = vrot.slane %v9911_v4, 4  ;;  %v8031_v12 = vrot.slane %v24182_v1, %v22866_v58  ;;  %v8038_v39 = vrot.slane %v8024_v55, %v22866_v58 }
 0x607   : > { %v9899_v23 = vmax.f32 %v9897_v22, %v9898_v56  ;;  %v9906_v59 = vmax.f32 %v9904_v0, %v9905_v30  ;;  %v7015_v62 = vmax.f32 %v24185_v35, 0.0  ;;  %v24251_v16 = vadd.f32 %v24040_v19, %v24170_v2 }
 0x608   : > { %v9893_v37 = vrot.slane %v9892_v18, 2  ;;  %v9913_v29 = vmax.f32 %v9911_v4, %v9912_v60  ;;  %v8039_v3 = vcombine.high %v8031_v12, %v8031_v12  ;;  %v8040_v11 = vcombine.high %v8038_v39, %v8038_v39 }
 0x609   : > { %v9900_v14 = vrot.slane %v9899_v23, 2  ;;  %v9907_v61 = vrot.slane %v9906_v59, 2  ;;  %v9974_v33 = vsel %vm8433_vm4, %v8031_v12, -inf  ;;  %v9988_v40 = vsel %vm8433_vm4, %v8038_v39, -inf }
 0x60a   : > { %v9894_v1 = vmax.f32 %v9892_v18, %v9893_v37  ;;  %v9914_v55 = vrot.slane %v9913_v29, 2  ;;  %v9975_v50 = vrot.slane %v9974_v33, 4  ;;  %v9981_v17 = vsel %vm8433_vm4, %v8039_v3, -inf }
 0x60b   : > { %v9901_v35 = vmax.f32 %v9899_v23, %v9900_v14  ;;  %v9908_v46 = vmax.f32 %v9906_v59, %v9907_v61  ;;  %v9982_v52 = vrot.slane %v9981_v17, 4  ;;  %v9989_v2 = vrot.slane %v9988_v40, 4 }
 0x60c   : > { %v9895_v48 = vrot.slane %v9894_v1, 1  ;;  %v9915_v32 = vmax.f32 %v9913_v29, %v9914_v55  ;;  %v9976_v6 = vmax.f32 %v9974_v33, %v9975_v50  ;;  %v9995_v38 = vsel %vm8433_vm4, %v8040_v11, -inf }
 0x60d   : > { %v9902_v57 = vrot.slane %v9901_v35, 1  ;;  %v9909_v8 = vrot.slane %v9908_v46, 1  ;;  %v9983_v24 = vmax.f32 %v9981_v17, %v9982_v52  ;;  %v9990_v36 = vmax.f32 %v9988_v40, %v9989_v2 }
 0x60e   : > { %v9896_v53 = vmax.f32 %v9894_v1, %v9895_v48  ;;  %v9916_v51 = vrot.slane %v9915_v32, 1  ;;  %v9977_v44 = vrot.slane %v9976_v6, 2  ;;  %v9996_v49 = vrot.slane %v9995_v38, 4 }
 0x60f   : > { %v9903_v21 = vmax.f32 %v9901_v35, %v9902_v57  ;;  %v9910_v20 = vmax.f32 %v9908_v46, %v9909_v8  ;;  %v9984_v43 = vrot.slane %v9983_v24, 2  ;;  %v9991_v10 = vrot.slane %v9990_v36, 2 }
 0x610   : > { %v9917_v15 = vmax.f32 %v9915_v32, %v9916_v51  ;;  %v10539_v63 = vsel %vm10226_vm5, %v9896_v53, -inf  ;;  %v9978_v5 = vmax.f32 %v9976_v6, %v9977_v44  ;;  %v9997_v42 = vmax.f32 %v9995_v38, %v9996_v49 }
 0x611   : > { %v10541_v45 = vmax.f32 %v10539_v63, %v24212_v9  ;;  %v10542_v26 = vsel %vm10226_vm5, %v9903_v21, -inf  ;;  %v10545_v22 = vsel %vm10226_vm5, %v9910_v20, -inf  ;;  %v9985_v0 = vmax.f32 %v9983_v24, %v9984_v43  ;;  %v25399_v63 = vld [vmem:[#allocation39_spill] sm:$0xff] }
 0x612   : > { %v10544_v56 = vmax.f32 %v10542_v26, %v24226_v47  ;;  %v10547_v30 = vmax.f32 %v10545_v22, %v24229_v13  ;;  %v10548_v4 = vsel %vm10226_vm5, %v9917_v15, -inf  ;;  %v9979_v18 = vrot.slane %v9978_v5, 1 }
 0x613   : > { %v10550_v60 = vmax.f32 %v10548_v4, %v24239_v25  ;;  %v9986_v12 = vrot.slane %v9985_v0, 1  ;;  %v9992_v39 = vmax.f32 %v9990_v36, %v9991_v10  ;;  %v9998_v23 = vrot.slane %v9997_v42, 2 }
 0x614   : > { %v10869_v59 = vsel %vm10788_vm6, %v10544_v56, %v10541_v45  ;;  %v9980_v9 = vmax.f32 %v9978_v5, %v9979_v18  ;;  %v8007_v37 = vcombine.high %v7015_v62, %v7015_v62  ;;  %v8014_v29 = vrot.slane %v7015_v62, %v22866_v58 }
 0x615   : > { %v10870_v3 = vsel %vm10790_vm7, %v10547_v30, %v10869_v59  ;;  %v9987_v11 = vmax.f32 %v9985_v0, %v9986_v12  ;;  %v9993_v47 = vrot.slane %v9992_v39, 1  ;;  %v9999_v14 = vmax.f32 %v9997_v42, %v9998_v23 }
 0x616   : > { %v10871_v13 = vsel %vm10792_vm8, %v10550_v60, %v10870_v3  ;;  %v24270_v61 = vsel %vm10226_vm5, %v9980_v9, -inf  ;;  %v8021_v25 = vrot.slane %v8007_v37, %v22866_v58  ;;  %v8022_v33 = vcombine.high %v8014_v29, %v8014_v29 }
 0x617   : > { %10947 = vst.msk [vmem:[#allocation3 + $0x139] sm:$0xf] %vm10920_vm9, %v10871_v13  ;;  %v9994_v40 = vmax.f32 %v9992_v39, %v9993_v47  ;;  %v10000_v1 = vrot.slane %v9999_v14, 1  ;;  %v24275_v55 = vsel %vm10226_vm5, %v9987_v11, -inf  ;;  %v9946_v62 = vsel %vm8433_vm4, %v8014_v29, -inf }
 0x618   : > { %v8023_v50 = vcombine.high %v8021_v25, %v8021_v25  ;;  %v9947_v17 = vrot.slane %v9946_v62, 4  ;;  %v9953_v35 = vsel %vm8433_vm4, %v8022_v33, -inf  ;;  %v9960_v46 = vsel %vm8433_vm4, %v8021_v25, -inf }
 0x619   : > { %v10001_v52 = vmax.f32 %v9999_v14, %v10000_v1  ;;  %v24281_v2 = vsel %vm10226_vm5, %v9994_v40, -inf  ;;  %v9954_v48 = vrot.slane %v9953_v35, 4  ;;  %v9961_v32 = vrot.slane %v9960_v46, 4 }
 0x61a   : > { %v9948_v6 = vmax.f32 %v9946_v62, %v9947_v17  ;;  %v9967_v38 = vsel %vm8433_vm4, %v8023_v50, -inf  ;;  %v7018_v57 = vmax.f32 %v24251_v16, 0.0  ;;  %v6953_v8 = vadd.f32 %v24040_v19, %v24179_v27 }
 0x61b   : > { %v24288_v24 = vsel %vm10226_vm5, %v10001_v52, -inf  ;;  %v9955_v36 = vmax.f32 %v9953_v35, %v9954_v48  ;;  %v9962_v53 = vmax.f32 %v9960_v46, %v9961_v32  ;;  %v9968_v51 = vrot.slane %v9967_v38, 4 }
 0x61c   : > { %v9949_v44 = vrot.slane %v9948_v6, 2  ;;  %v8058_v49 = vcombine.high %v7018_v57, %v7018_v57  ;;  %v8065_v21 = vrot.slane %v7018_v57, %v22866_v58  ;;  %v7017_v20 = vmax.f32 %v6953_v8, 0.0 }
 0x61d   : > { %v9956_v43 = vrot.slane %v9955_v36, 2  ;;  %v9963_v10 = vrot.slane %v9962_v53, 2  ;;  %v9969_v15 = vmax.f32 %v9967_v38, %v9968_v51  ;;  %v24293_v16 = vadd.f32 %v23987_v28, %v25399_v63 }
 0x61e   : > { %v9950_v5 = vmax.f32 %v9948_v6, %v9949_v44  ;;  %v8072_v19 = vrot.slane %v8058_v49, %v22866_v58  ;;  %v8073_v27 = vcombine.high %v8065_v21, %v8065_v21  ;;  %v10030_v42 = vsel %vm8433_vm4, %v8065_v21, -inf  ;;  %v20460_v45 = vld [vmem:[#allocation3 + $0x131] ss:$8 sps:$4 sm:$0xff]  }
 0x61f   : > { %v9957_v26 = vmax.f32 %v9955_v36, %v9956_v43  ;;  %v9964_v22 = vmax.f32 %v9962_v53, %v9963_v10  ;;  %v9970_v0 = vrot.slane %v9969_v15, 2  ;;  %v10031_v56 = vrot.slane %v10030_v42, 4  ;;  %19250 = vmatmul.mubr.msk.f32.gmra.mrb[76].mxu1 %vm10226_vm5, %v20460_v45 }
 0x620   : > { %v9951_v30 = vrot.slane %v9950_v5, 1  ;;  %v8074_v4 = vcombine.high %v8072_v19, %v8072_v19  ;;  %v10037_v18 = vsel %vm8433_vm4, %v8073_v27, -inf  ;;  %v10044_v60 = vsel %vm8433_vm4, %v8072_v19, -inf }
 0x621   : > { %v9958_v28 = vrot.slane %v9957_v26, 1  ;;  %v9965_v12 = vrot.slane %v9964_v22, 1  ;;  %v9971_v39 = vmax.f32 %v9969_v15, %v9970_v0  ;;  %v10032_v23 = vmax.f32 %v10030_v42, %v10031_v56 }
 0x622   : > { %v9952_v59 = vmax.f32 %v9950_v5, %v9951_v30  ;;  %v10038_v9 = vrot.slane %v10037_v18, 4  ;;  %v10045_v37 = vrot.slane %v10044_v60, 4  ;;  %v10051_v29 = vsel %vm8433_vm4, %v8074_v4, -inf }
 0x623   : > { %v9959_v3 = vmax.f32 %v9957_v26, %v9958_v28  ;;  %v9966_v11 = vmax.f32 %v9964_v22, %v9965_v12  ;;  %v9972_v47 = vrot.slane %v9971_v39, 1  ;;  %v10033_v14 = vrot.slane %v10032_v23, 2 }
 0x624   : > { %v10551_v13 = vsel %vm10226_vm5, %v9952_v59, -inf  ;;  %v10039_v25 = vmax.f32 %v10037_v18, %v10038_v9  ;;  %v10046_v33 = vmax.f32 %v10044_v60, %v10045_v37  ;;  %v10052_v40 = vrot.slane %v10051_v29, 4 }
 0x625   : > { %v9973_v1 = vmax.f32 %v9971_v39, %v9972_v47  ;;  %v10553_v62 = vmax.f32 %v10551_v13, %v24270_v61  ;;  %v10554_v50 = vsel %vm10226_vm5, %v9959_v3, -inf  ;;  %v10557_v17 = vsel %vm10226_vm5, %v9966_v11, -inf  ;;  %v24329_v39 = vld [vmem:[%s25209_s2] ss:$0 sm:$0xff]  ;;  %v25400_v47 = vld [vmem:[#allocation40_spill] sm:$0xff]  ;;  %v25401_v13 = vld [vmem:[#allocation41_spill] sm:$0xff] }
 0x626   : > { %v10556_v35 = vmax.f32 %v10554_v50, %v24275_v55  ;;  %v10559_v46 = vmax.f32 %v10557_v17, %v24281_v2  ;;  %v10034_v52 = vmax.f32 %v10032_v23, %v10033_v14  ;;  %v10040_v48 = vrot.slane %v10039_v25, 2 }
 0x627   : > { %v10560_v32 = vsel %vm10226_vm5, %v9973_v1, -inf  ;;  %v10047_v6 = vrot.slane %v10046_v33, 2  ;;  %v10053_v38 = vmax.f32 %v10051_v29, %v10052_v40  ;;  %v8041_v57 = vcombine.high %v7017_v20, %v7017_v20 }
 0x628   : > { %v10562_v8 = vmax.f32 %v10560_v32, %v24288_v24  ;;  %v10872_v36 = vsel %vm10788_vm6, %v10556_v35, %v10553_v62  ;;  %v10035_v61 = vrot.slane %v10034_v52, 1  ;;  %v10041_v53 = vmax.f32 %v10039_v25, %v10040_v48 }
 0x629   : > { %v10873_v51 = vsel %vm10790_vm7, %v10559_v46, %v10872_v36  ;;  %v10048_v44 = vmax.f32 %v10046_v33, %v10047_v6  ;;  %v10054_v49 = vrot.slane %v10053_v38, 2  ;;  %v8048_v55 = vrot.slane %v7017_v20, %v22866_v58 }
 0x62a   : > { %v10874_v2 = vsel %vm10792_vm8, %v10562_v8, %v10873_v51  ;;  %v10036_v21 = vmax.f32 %v10034_v52, %v10035_v61  ;;  %v10042_v43 = vrot.slane %v10041_v53, 1  ;;  %v8055_v10 = vrot.slane %v8041_v57, %v22866_v58 }
 0x62b   : > { %10948 = vst.msk [vmem:[#allocation3 + $0x141] sm:$0xf] %vm10920_vm9, %v10874_v2  ;;  %v10049_v15 = vrot.slane %v10048_v44, 1  ;;  %v10055_v24 = vmax.f32 %v10053_v38, %v10054_v49  ;;  %v8056_v63 = vcombine.high %v8048_v55, %v8048_v55  ;;  %v10002_v5 = vsel %vm8433_vm4, %v8048_v55, -inf }
 0x62c   : > { %v10043_v19 = vmax.f32 %v10041_v53, %v10042_v43  ;;  %v24317_v27 = vsel %vm10226_vm5, %v10036_v21, -inf  ;;  %v8057_v42 = vcombine.high %v8055_v10, %v8055_v10  ;;  %v10003_v45 = vrot.slane %v10002_v5, 4 }
 0x62d   : > { %v10050_v20 = vmax.f32 %v10048_v44, %v10049_v15  ;;  %v10056_v26 = vrot.slane %v10055_v24, 1  ;;  %v10009_v22 = vsel %vm8433_vm4, %v8056_v63, -inf  ;;  %v10016_v0 = vsel %vm8433_vm4, %v8055_v10, -inf }
 0x62e   : > { %v24322_v56 = vsel %vm10226_vm5, %v10043_v19, -inf  ;;  %v10004_v30 = vmax.f32 %v10002_v5, %v10003_v45  ;;  %v10010_v4 = vrot.slane %v10009_v22, 4  ;;  %v10017_v18 = vrot.slane %v10016_v0, 4 }
 0x62f   : > { %v10057_v60 = vmax.f32 %v10055_v24, %v10056_v26  ;;  %v10570_v28 = vsel %vm10226_vm5, %v10050_v20, -inf  ;;  %v10023_v12 = vsel %vm8433_vm4, %v8057_v42, -inf  ;;  %v6956_v23 = vadd.f32 %v24329_v39, %v24293_v16 }
 0x630   : > { %v10005_v59 = vrot.slane %v10004_v30, 2  ;;  %v10011_v9 = vmax.f32 %v10009_v22, %v10010_v4  ;;  %v10018_v37 = vmax.f32 %v10016_v0, %v10017_v18  ;;  %v10024_v29 = vrot.slane %v10023_v12, 4 }
 0x631   : > { %v10573_v3 = vsel %vm10226_vm5, %v10057_v60, -inf  ;;  %v7020_v11 = vmax.f32 %v6956_v23, 0.0  ;;  %v19791_v14 = vadd.f32 %v24020_v41, %v25400_v47  ;;  %v19792_v25 = vadd.f32 %v24034_v34, %v25401_v13 }
 0x632   : > { %v10006_v33 = vmax.f32 %v10004_v30, %v10005_v59  ;;  %v10012_v40 = vrot.slane %v10011_v9, 2  ;;  %v10019_v1 = vrot.slane %v10018_v37, 2  ;;  %v10025_v62 = vmax.f32 %v10023_v12, %v10024_v29 }
 0x633   : > { %v8092_v50 = vcombine.high %v7020_v11, %v7020_v11  ;;  %v8099_v16 = vrot.slane %v7020_v11, %v22866_v58  ;;  %v6955_v17 = vadd.f32 %v24329_v39, %v19791_v14  ;;  %v24341_v35 = vadd.f32 %v24329_v39, %v19792_v25 }
 0x634   : > { %v10007_v46 = vrot.slane %v10006_v33, 1  ;;  %v10013_v52 = vmax.f32 %v10011_v9, %v10012_v40  ;;  %v10020_v48 = vmax.f32 %v10018_v37, %v10019_v1  ;;  %v10026_v32 = vrot.slane %v10025_v62, 2 }
 0x635   : > { %v8106_v41 = vrot.slane %v8092_v50, %v22866_v58  ;;  %v8107_v6 = vcombine.high %v8099_v16, %v8099_v16  ;;  %v10086_v34 = vsel %vm8433_vm4, %v8099_v16, -inf  ;;  %v7019_v38 = vmax.f32 %v6955_v17, 0.0 }
 0x636   : > { %v10008_v57 = vmax.f32 %v10006_v33, %v10007_v46  ;;  %v10014_v8 = vrot.slane %v10013_v52, 1  ;;  %v10021_v36 = vrot.slane %v10020_v48, 1  ;;  %v10027_v61 = vmax.f32 %v10025_v62, %v10026_v32 }
 0x637   : > { %v8108_v53 = vcombine.high %v8106_v41, %v8106_v41  ;;  %v10087_v51 = vrot.slane %v10086_v34, 4  ;;  %v10093_v44 = vsel %vm8433_vm4, %v8107_v6, -inf  ;;  %v10100_v49 = vsel %vm8433_vm4, %v8106_v41, -inf }
 0x638   : > { %v10015_v55 = vmax.f32 %v10013_v52, %v10014_v8  ;;  %v10022_v2 = vmax.f32 %v10020_v48, %v10021_v36  ;;  %v10028_v21 = vrot.slane %v10027_v61, 1  ;;  %v10563_v43 = vsel %vm10226_vm5, %v10008_v57, -inf }
 0x639   : > { %v10565_v10 = vmax.f32 %v10563_v43, %v24317_v27  ;;  %v10088_v15 = vmax.f32 %v10086_v34, %v10087_v51  ;;  %v10094_v24 = vrot.slane %v10093_v44, 4  ;;  %v10101_v63 = vrot.slane %v10100_v49, 4 }
 0x63a   : > { %v10029_v5 = vmax.f32 %v10027_v61, %v10028_v21  ;;  %v10566_v19 = vsel %vm10226_vm5, %v10015_v55, -inf  ;;  %v10569_v42 = vsel %vm10226_vm5, %v10022_v2, -inf  ;;  %v10107_v45 = vsel %vm8433_vm4, %v8108_v53, -inf }
 0x63b   : > { %v10568_v20 = vmax.f32 %v10566_v19, %v24322_v56  ;;  %v10571_v26 = vmax.f32 %v10569_v42, %v10570_v28  ;;  %v10089_v22 = vrot.slane %v10088_v15, 2  ;;  %v10095_v0 = vmax.f32 %v10093_v44, %v10094_v24 }
 0x63c   : > { %v10572_v30 = vsel %vm10226_vm5, %v10029_v5, -inf  ;;  %v10102_v4 = vmax.f32 %v10100_v49, %v10101_v63  ;;  %v10108_v18 = vrot.slane %v10107_v45, 4  ;;  %v8075_v27 = vcombine.high %v7019_v38, %v7019_v38 }
 0x63d   : > { %v10574_v60 = vmax.f32 %v10572_v30, %v10573_v3  ;;  %v10875_v12 = vsel %vm10788_vm6, %v10568_v20, %v10565_v10  ;;  %v10090_v23 = vmax.f32 %v10088_v15, %v10089_v22  ;;  %v10096_v59 = vrot.slane %v10095_v0, 2  ;;  %v25402_v15 = vld [vmem:[#allocation43_spill] sm:$0xff] }
 0x63e   : > { %v10876_v9 = vsel %vm10790_vm7, %v10571_v26, %v10875_v12  ;;  %v10103_v37 = vrot.slane %v10102_v4, 2  ;;  %v10109_v29 = vmax.f32 %v10107_v45, %v10108_v18  ;;  %v8082_v11 = vrot.slane %v7019_v38, %v22866_v58 }
 0x63f   : > { %v10877_v56 = vsel %vm10792_vm8, %v10574_v60, %v10876_v9  ;;  %v10091_v28 = vrot.slane %v10090_v23, 1  ;;  %v10097_v47 = vmax.f32 %v10095_v0, %v10096_v59  ;;  %v8089_v14 = vrot.slane %v8075_v27, %v22866_v58 }
 0x640   : > { %10949 = vst.msk [vmem:[#allocation3 + $0x159] sm:$0xf] %vm10920_vm9, %v10877_v56  ;;  %v10104_v13 = vmax.f32 %v10102_v4, %v10103_v37  ;;  %v10110_v3 = vrot.slane %v10109_v29, 2  ;;  %v8090_v25 = vcombine.high %v8082_v11, %v8082_v11  ;;  %v10058_v33 = vsel %vm8433_vm4, %v8082_v11, -inf }
 0x641   : > { %v10092_v40 = vmax.f32 %v10090_v23, %v10091_v28  ;;  %v10098_v1 = vrot.slane %v10097_v47, 1  ;;  %v8091_v62 = vcombine.high %v8089_v14, %v8089_v14  ;;  %v10059_v50 = vrot.slane %v10058_v33, 4 }
 0x642   : > { %v10105_v16 = vrot.slane %v10104_v13, 1  ;;  %v10111_v17 = vmax.f32 %v10109_v29, %v10110_v3  ;;  %v10065_v46 = vsel %vm8433_vm4, %v8090_v25, -inf  ;;  %v10072_v52 = vsel %vm8433_vm4, %v8089_v14, -inf }
 0x643   : > { %v10099_v48 = vmax.f32 %v10097_v47, %v10098_v1  ;;  %v24364_v32 = vsel %vm10226_vm5, %v10092_v40, -inf  ;;  %v10060_v41 = vmax.f32 %v10058_v33, %v10059_v50  ;;  %v10066_v6 = vrot.slane %v10065_v46, 4 }
 0x644   : > { %v10106_v34 = vmax.f32 %v10104_v13, %v10105_v16  ;;  %v10112_v38 = vrot.slane %v10111_v17, 1  ;;  %v10073_v57 = vrot.slane %v10072_v52, 4  ;;  %v10079_v8 = vsel %vm8433_vm4, %v8091_v62, -inf }
 0x645   : > { %v10579_v36 = vsel %vm10226_vm5, %v10099_v48, -inf  ;;  %v10061_v61 = vrot.slane %v10060_v41, 2  ;;  %v10067_v53 = vmax.f32 %v10065_v46, %v10066_v6  ;;  %v10080_v51 = vrot.slane %v10079_v8, 4 }
 0x646   : > { %v10113_v44 = vmax.f32 %v10111_v17, %v10112_v38  ;;  %v10582_v49 = vsel %vm10226_vm5, %v10106_v34, -inf  ;;  %v10074_v55 = vmax.f32 %v10072_v52, %v10073_v57  ;;  %v7022_v2 = vmax.f32 %v24341_v35, 0.0 }
 0x647   : > { %v10062_v21 = vmax.f32 %v10060_v41, %v10061_v61  ;;  %v10068_v43 = vrot.slane %v10067_v53, 2  ;;  %v10081_v10 = vmax.f32 %v10079_v8, %v10080_v51  ;;  %v19793_v24 = vadd.f32 %v24078_v7, %v25402_v15  ;;  %v20461_v63 = vld [vmem:[#allocation3 + $0x151] ss:$8 sps:$4 sm:$0xff]  }
 0x648   : > { %v10585_v5 = vsel %vm10226_vm5, %v10113_v44, -inf  ;;  %v10075_v19 = vrot.slane %v10074_v55, 2  ;;  %v8126_v42 = vcombine.high %v7022_v2, %v7022_v2  ;;  %v8133_v45 = vrot.slane %v7022_v2, %v22866_v58  ;;  %19252 = vmatprep.mubr.msk.f32.mxu1 %vm10226_vm5, %v20461_v63 }
 0x649   : > { %v10063_v20 = vrot.slane %v10062_v21, 1  ;;  %v10069_v26 = vmax.f32 %v10067_v53, %v10068_v43  ;;  %v10082_v22 = vrot.slane %v10081_v10, 2  ;;  %v6957_v0 = vadd.f32 %v24329_v39, %v19793_v24 }
 0x64a   : > { %v10076_v35 = vmax.f32 %v10074_v55, %v10075_v19  ;;  %v8140_v30 = vrot.slane %v8126_v42, %v22866_v58  ;;  %v8141_v4 = vcombine.high %v8133_v45, %v8133_v45  ;;  %v10142_v7 = vsel %vm8433_vm4, %v8133_v45, -inf  ;;  %v25403_v55 = vld [vmem:[#allocation44_spill] sm:$0xff] }
 0x64b   : > { %v10064_v18 = vmax.f32 %v10062_v21, %v10063_v20  ;;  %v10070_v27 = vrot.slane %v10069_v26, 1  ;;  %v10083_v60 = vmax.f32 %v10081_v10, %v10082_v22  ;;  %v10143_v12 = vrot.slane %v10142_v7, 4 }
 0x64c   : > { %v10077_v23 = vrot.slane %v10076_v35, 1  ;;  %v8142_v59 = vcombine.high %v8140_v30, %v8140_v30  ;;  %v10149_v9 = vsel %vm8433_vm4, %v8141_v4, -inf  ;;  %v10156_v37 = vsel %vm8433_vm4, %v8140_v30, -inf }
 0x64d   : > { %v10071_v29 = vmax.f32 %v10069_v26, %v10070_v27  ;;  %v10084_v11 = vrot.slane %v10083_v60, 1  ;;  %v10575_v56 = vsel %vm10226_vm5, %v10064_v18, -inf  ;;  %v10144_v28 = vmax.f32 %v10142_v7, %v10143_v12 }
 0x64e   : > { %v10078_v47 = vmax.f32 %v10076_v35, %v10077_v23  ;;  %v10577_v14 = vmax.f32 %v10575_v56, %v24364_v32  ;;  %v10150_v13 = vrot.slane %v10149_v9, 4  ;;  %v10157_v3 = vrot.slane %v10156_v37, 4 }
 0x64f   : > { %v10085_v25 = vmax.f32 %v10083_v60, %v10084_v11  ;;  %v10578_v33 = vsel %vm10226_vm5, %v10071_v29, -inf  ;;  %v10145_v40 = vrot.slane %v10144_v28, 2  ;;  %v10163_v1 = vsel %vm8433_vm4, %v8142_v59, -inf }
 0x650   : > { %v10580_v62 = vmax.f32 %v10578_v33, %v10579_v36  ;;  %v10581_v50 = vsel %vm10226_vm5, %v10078_v47, -inf  ;;  %v10151_v16 = vmax.f32 %v10149_v9, %v10150_v13  ;;  %v10158_v17 = vmax.f32 %v10156_v37, %v10157_v3 }
 0x651   : > { %v10583_v46 = vmax.f32 %v10581_v50, %v10582_v49  ;;  %v10584_v52 = vsel %vm10226_vm5, %v10085_v25, -inf  ;;  %v10146_v48 = vmax.f32 %v10144_v28, %v10145_v40  ;;  %v10164_v41 = vrot.slane %v10163_v1, 4 }
 0x652   : > { %v10586_v6 = vmax.f32 %v10584_v52, %v10585_v5  ;;  %v10878_v32 = vsel %vm10788_vm6, %v10580_v62, %v10577_v14  ;;  %v10152_v34 = vrot.slane %v10151_v16, 2  ;;  %v10159_v38 = vrot.slane %v10158_v17, 2  ;;  %v25404_v5 = vld [vmem:[#allocation45_spill] sm:$0xff] }
 0x653   : > { %v10879_v57 = vsel %vm10790_vm7, %v10583_v46, %v10878_v32  ;;  %v10147_v8 = vrot.slane %v10146_v48, 1  ;;  %v10165_v61 = vmax.f32 %v10163_v1, %v10164_v41  ;;  %v7021_v53 = vmax.f32 %v6957_v0, 0.0 }
 0x654   : > { %v10880_v36 = vsel %vm10792_vm8, %v10586_v6, %v10879_v57  ;;  %v10153_v51 = vmax.f32 %v10151_v16, %v10152_v34  ;;  %v10160_v44 = vmax.f32 %v10158_v17, %v10159_v38  ;;  %v19794_v49 = vadd.f32 %v24092_v54, %v25403_v55 }
 0x655   : > { %10950 = vst.msk [vmem:[#allocation3 + $0x161] sm:$0xf] %vm10920_vm9, %v10880_v36  ;;  %v10148_v2 = vmax.f32 %v10146_v48, %v10147_v8  ;;  %v10166_v21 = vrot.slane %v10165_v61, 2  ;;  %v8109_v43 = vcombine.high %v7021_v53, %v7021_v53  ;;  %v8116_v10 = vrot.slane %v7021_v53, %v22866_v58 }
 0x656   : > { %v10154_v15 = vrot.slane %v10153_v51, 1  ;;  %v10161_v24 = vrot.slane %v10160_v44, 1  ;;  %v6960_v63 = vadd.f32 %v24329_v39, %v19794_v49  ;;  %v19795_v19 = vadd.f32 %v24126_v31, %v25404_v5 }
 0x657   : > { %v10167_v42 = vmax.f32 %v10165_v61, %v10166_v21  ;;  %v24397_v45 = vsel %vm10226_vm5, %v10148_v2, -inf  ;;  %v8123_v54 = vrot.slane %v8109_v43, %v22866_v58  ;;  %v8124_v20 = vcombine.high %v8116_v10, %v8116_v10 }
 0x658   : > { %v10155_v26 = vmax.f32 %v10153_v51, %v10154_v15  ;;  %v10162_v22 = vmax.f32 %v10160_v44, %v10161_v24  ;;  %v10114_v0 = vsel %vm8433_vm4, %v8116_v10, -inf  ;;  %v7024_v35 = vmax.f32 %v6960_v63, 0.0 }
 0x659   : > { %v10168_v30 = vrot.slane %v10167_v42, 1  ;;  %v8125_v4 = vcombine.high %v8123_v54, %v8123_v54  ;;  %v10115_v7 = vrot.slane %v10114_v0, 4  ;;  %v10121_v18 = vsel %vm8433_vm4, %v8124_v20, -inf }
 0x65a   : > { %v10591_v27 = vsel %vm10226_vm5, %v10155_v26, -inf  ;;  %v10594_v31 = vsel %vm10226_vm5, %v10162_v22, -inf  ;;  %v10122_v60 = vrot.slane %v10121_v18, 4  ;;  %v10128_v12 = vsel %vm8433_vm4, %v8123_v54, -inf }
 0x65b   : > { %v10169_v23 = vmax.f32 %v10167_v42, %v10168_v30  ;;  %v10116_v59 = vmax.f32 %v10114_v0, %v10115_v7  ;;  %v10129_v9 = vrot.slane %v10128_v12, 4  ;;  %v10135_v37 = vsel %vm8433_vm4, %v8125_v4, -inf  ;;  %v10985_v4 = vld [vmem:[%s25210_s3] sm:$0xff] }
 0x65c   : > { %v10123_v29 = vmax.f32 %v10121_v18, %v10122_v60  ;;  %v10136_v11 = vrot.slane %v10135_v37, 4  ;;  %v8160_v56 = vcombine.high %v7024_v35, %v7024_v35  ;;  %v8167_v28 = vrot.slane %v7024_v35, %v22866_v58 }
 0x65d   : > { %v10597_v47 = vsel %vm10226_vm5, %v10169_v23, -inf  ;;  %v10117_v14 = vrot.slane %v10116_v59, 2  ;;  %v10130_v13 = vmax.f32 %v10128_v12, %v10129_v9  ;;  %v6959_v16 = vadd.f32 %v24329_v39, %v19795_v19 }
 0x65e   : > { %v10124_v3 = vrot.slane %v10123_v29, 2  ;;  %v10137_v25 = vmax.f32 %v10135_v37, %v10136_v11  ;;  %v8174_v33 = vrot.slane %v8160_v56, %v22866_v58  ;;  %v8175_v40 = vcombine.high %v8167_v28, %v8167_v28 }
 0x65f   : > { %v10118_v1 = vmax.f32 %v10116_v59, %v10117_v14  ;;  %v10131_v62 = vrot.slane %v10130_v13, 2  ;;  %v10198_v50 = vsel %vm8433_vm4, %v8167_v28, -inf  ;;  %v7023_v49 = vmax.f32 %v6959_v16, 0.0 }
 0x660   : > { %v10125_v17 = vmax.f32 %v10123_v29, %v10124_v3  ;;  %v10138_v46 = vrot.slane %v10137_v25, 2  ;;  %v8176_v52 = vcombine.high %v8174_v33, %v8174_v33  ;;  %v10199_v48 = vrot.slane %v10198_v50, 4  ;;  %v17319_v3 = vld [vmem:[%s25210_s3 + $0x28] sm:$0xff] }
 0x661   : > { %v10119_v41 = vrot.slane %v10118_v1, 1  ;;  %v10132_v6 = vmax.f32 %v10130_v13, %v10131_v62  ;;  %v10205_v32 = vsel %vm8433_vm4, %v8175_v40, -inf  ;;  %v10212_v34 = vsel %vm8433_vm4, %v8174_v33, -inf  ;;  %v17318_v13 = vld [vmem:[%s25210_s3 + $0x20] sm:$0xff] }
 0x662   : > { %v10126_v38 = vrot.slane %v10125_v17, 1  ;;  %v10139_v57 = vmax.f32 %v10137_v25, %v10138_v46  ;;  %v10206_v8 = vrot.slane %v10205_v32, 4  ;;  %v10213_v36 = vrot.slane %v10212_v34, 4 }
 0x663   : > { %v10120_v61 = vmax.f32 %v10118_v1, %v10119_v41  ;;  %v10133_v53 = vrot.slane %v10132_v6, 1  ;;  %v10219_v51 = vsel %vm8433_vm4, %v8176_v52, -inf  ;;  %v10200_v55 = vmax.f32 %v10198_v50, %v10199_v48 }
 0x664   : > { %v10127_v44 = vmax.f32 %v10125_v17, %v10126_v38  ;;  %v10140_v39 = vrot.slane %v10139_v57, 1  ;;  %v10214_v43 = vmax.f32 %v10212_v34, %v10213_v36  ;;  %v10220_v10 = vrot.slane %v10219_v51, 4  ;;  %v20463_v34 = vld [vmem:[#allocation3] ss:$8 sps:$4 sm:$0xff]  }
 0x665   : > { %v10134_v2 = vmax.f32 %v10132_v6, %v10133_v53  ;;  %v10587_v21 = vsel %vm10226_vm5, %v10120_v61, -inf  ;;  %v10207_v5 = vmax.f32 %v10205_v32, %v10206_v8  ;;  %v10201_v26 = vrot.slane %v10200_v55, 2 }
 0x666   : > { %v10141_v15 = vmax.f32 %v10139_v57, %v10140_v39  ;;  %v10589_v24 = vmax.f32 %v10587_v21, %v24397_v45  ;;  %v10590_v63 = vsel %vm10226_vm5, %v10127_v44, -inf  ;;  %v10221_v22 = vmax.f32 %v10219_v51, %v10220_v10  ;;  %v10986_v45 = vld [vmem:[%s25210_s3 + $0x8] sm:$0xff]  ;;  %v17336_v44 = vld [vmem:[%s25210_s3 + $0x30] sm:$0xff]  ;;  %v17337_v39 = vld [vmem:[%s25210_s3 + $0x38] sm:$0xff] }
 0x667   : > { %v10592_v19 = vmax.f32 %v10590_v63, %v10591_v27  ;;  %v10593_v42 = vsel %vm10226_vm5, %v10134_v2, -inf  ;;  %v10215_v30 = vrot.slane %v10214_v43, 2  ;;  %v10208_v18 = vrot.slane %v10207_v5, 2  ;;  %v20464_v21 = vld [vmem:[#allocation3 + $0x10] ss:$8 sps:$4 sm:$0xff]  }
 0x668   : > { %v10595_v54 = vmax.f32 %v10593_v42, %v10594_v31  ;;  %v10596_v20 = vsel %vm10226_vm5, %v10141_v15, -inf  ;;  %v8143_v27 = vcombine.high %v7023_v49, %v7023_v49  ;;  %v10222_v60 = vrot.slane %v10221_v22, 2 }
 0x669   : > { %v10598_v0 = vmax.f32 %v10596_v20, %v10597_v47  ;;  %v10881_v35 = vsel %vm10788_vm6, %v10592_v19, %v10589_v24  ;;  %v8150_v12 = vrot.slane %v7023_v49, %v22866_v58  ;;  %v10202_v23 = vmax.f32 %v10200_v55, %v10201_v26  ;;  %v20465_v26 = vld [vmem:[#allocation3 + $0x30] ss:$8 sps:$4 sm:$0xff]  }
 0x66a   : > { %v10882_v7 = vsel %vm10790_vm7, %v10595_v54, %v10881_v35  ;;  %v8157_v59 = vrot.slane %v8143_v27, %v22866_v58  ;;  %v19620_v9 = vpack.c.bf16 %v10986_v45, %v10985_v4  ;;  %v10216_v37 = vmax.f32 %v10214_v43, %v10215_v30 }
 0x66b   : > { %v10883_v31 = vsel %vm10792_vm8, %v10598_v0, %v10882_v7  ;;  %v8158_v29 = vcombine.high %v8150_v12, %v8150_v12  ;;  %v10170_v11 = vsel %vm8433_vm4, %v8150_v12, -inf  ;;  %v10209_v56 = vmax.f32 %v10207_v5, %v10208_v18 }
 0x66c   : > { %10951 = vst.msk [vmem:[#allocation3 + $0x169] sm:$0xf] %vm10920_vm9, %v10883_v31  ;;  %v8159_v28 = vcombine.high %v8157_v59, %v8157_v59  ;;  %v10171_v47 = vrot.slane %v10170_v11, 4  ;;  %v10184_v14 = vsel %vm8433_vm4, %v8157_v59, -inf  ;;  %19621 = vmatprep.subr.bf16.mxu1 %v19620_v9  ;;  %v10223_v25 = vmax.f32 %v10221_v22, %v10222_v60  ;;  %v20466_v60 = vld [vmem:[#allocation3 + $0x40] ss:$8 sps:$4 sm:$0xff]  }
 0x66d   : > { %v10177_v33 = vsel %vm8433_vm4, %v8158_v29, -inf  ;;  %v10185_v40 = vrot.slane %v10184_v14, 4  ;;  %19623 = vmatpush3.bf16.msra.mxu1 %v19620_v9  ;;  %v10203_v1 = vrot.slane %v10202_v23, 1  ;;  %v10217_v17 = vrot.slane %v10216_v37, 1  ;;  %v20467_v59 = vld [vmem:[#allocation3 + $0x60] ss:$8 sps:$4 sm:$0xff]  }
 0x66e   : > { %v10172_v62 = vmax.f32 %v10170_v11, %v10171_v47  ;;  %v10178_v50 = vrot.slane %v10177_v33, 4  ;;  %v10191_v16 = vsel %vm8433_vm4, %v8159_v28, -inf  ;;  %v19624_v48 = vpack.c.bf16 %v17319_v3, %v17318_v13  ;;  %v20469_v47 = vld [vmem:[#allocation3 + $0x90] ss:$8 sps:$4 sm:$0xff]   ;;  %v20470_v13 = vld [vmem:[#allocation3 + $0xa0] ss:$8 sps:$4 sm:$0xff]  }
 0x66f   : > { %v10186_v46 = vmax.f32 %v10184_v14, %v10185_v40  ;;  %v10192_v52 = vrot.slane %v10191_v16, 4  ;;  %v10210_v41 = vrot.slane %v10209_v56, 1  ;;  %v10224_v38 = vrot.slane %v10223_v25, 1  ;;  %v20471_v3 = vld [vmem:[#allocation3 + $0xc0] ss:$8 sps:$4 sm:$0xff]  }
 0x670   : > { %v10173_v6 = vrot.slane %v10172_v62, 2  ;;  %v10179_v32 = vmax.f32 %v10177_v33, %v10178_v50  ;;  %19625 = vmatprep.subr.bf16.mxu1 %v19624_v48  ;;  %v10204_v53 = vmax.f32 %v10202_v23, %v10203_v1  ;;  %v10218_v55 = vmax.f32 %v10216_v37, %v10217_v17  ;;  %v20473_v33 = vld [vmem:[#allocation3 + $0xf0] ss:$8 sps:$4 sm:$0xff]   ;;  %v20474_v40 = vld [vmem:[#allocation3 + $0x100] ss:$8 sps:$4 sm:$0xff]  }
 0x671   : > { %v10187_v57 = vrot.slane %v10186_v46, 2  ;;  %v10193_v8 = vmax.f32 %v10191_v16, %v10192_v52  ;;  %v10211_v43 = vmax.f32 %v10209_v56, %v10210_v41  ;;  %v10225_v24 = vmax.f32 %v10223_v25, %v10224_v38  ;;  %v20468_v56 = vld [vmem:[#allocation3 + $0x70] ss:$8 sps:$4 sm:$0xff]   ;;  %v20475_v1 = vld [vmem:[#allocation3 + $0x120] ss:$8 sps:$4 sm:$0xff]  }
 0x672   : > { %v10174_v36 = vmax.f32 %v10172_v62, %v10173_v6  ;;  %v10180_v51 = vrot.slane %v10179_v32, 2  ;;  %v19628_v19 = vpack.c.bf16 %v17337_v39, %v17336_v44  ;;  %v10600_v42 = vsel %vm10226_vm5, %v10204_v53, -inf  ;;  %v20472_v25 = vld [vmem:[#allocation3 + $0xd0] ss:$8 sps:$4 sm:$0xff]   ;;  %v20479_v17 = vld [vmem:[#allocation3 + $0x2] ss:$8 sps:$4 sm:$0xff]  }
 0x673   : > { %v20462_v61 = vld [vmem:[#allocation3 + $0x161] ss:$8 sps:$4 sm:$0xff]   ;;  %v10188_v49 = vmax.f32 %v10186_v46, %v10187_v57  ;;  %v10194_v2 = vrot.slane %v10193_v8, 2  ;;  %v10606_v22 = vsel %vm10226_vm5, %v10218_v55, -inf  ;;  %v10603_v30 = vsel %vm10226_vm5, %v10211_v43, -inf  ;;  %v17373_v43 = vld [vmem:[%s25210_s3 + $0x58] sm:$0xff] }
 0x674   : > { %19253 = vmatmul.mubr.msk.f32.gmra.mrb[78].mxu1 %vm10226_vm5, %v20462_v61  ;;  %v10175_v10 = vrot.slane %v10174_v36, 1  ;;  %v10181_v15 = vmax.f32 %v10179_v32, %v10180_v51  ;;  %v10609_v7 = vsel %vm10226_vm5, %v10225_v24, -inf  ;;  %v20476_v62 = vld [vmem:[#allocation3 + $0x130] ss:$8 sps:$4 sm:$0xff]   ;;  %v20478_v16 = vld [vmem:[#allocation3 + $0x160] ss:$8 sps:$4 sm:$0xff]  }
 0x675   : > { %19259 = vmatprep.mubr.msk.f32.mxu1 %vm10226_vm5, %v20463_v34  ;;  %v10189_v63 = vrot.slane %v10188_v49, 1  ;;  %v10195_v5 = vmax.f32 %v10193_v8, %v10194_v2  ;;  %v20477_v50 = vld [vmem:[#allocation3 + $0x150] ss:$8 sps:$4 sm:$0xff]   ;;  %v17354_v46 = vld [vmem:[%s25210_s3 + $0x40] sm:$0xff]  ;;  %v17355_v52 = vld [vmem:[%s25210_s3 + $0x48] sm:$0xff] }
 0x676   : > { %v10176_v54 = vmax.f32 %v10174_v36, %v10175_v10  ;;  %v10182_v20 = vrot.slane %v10181_v15, 1  ;;  %v19632_v41 = vpack.c.bf16 %v17355_v52, %v17354_v46  ;;  %v20481_v6 = vld [vmem:[#allocation3 + $0x32] ss:$8 sps:$4 sm:$0xff]   ;;  %v20482_v32 = vld [vmem:[#allocation3 + $0x42] ss:$8 sps:$4 sm:$0xff]  }
 0x677   : > { %v10190_v0 = vmax.f32 %v10188_v49, %v10189_v63  ;;  %v10196_v35 = vrot.slane %v10195_v5, 1  ;;  %v20483_v34 = vld [vmem:[#allocation3 + $0x62] ss:$8 sps:$4 sm:$0xff]   ;;  %v20484_v38 = vld [vmem:[#allocation3 + $0x72] ss:$8 sps:$4 sm:$0xff]  }
 0x678   : > { %19260 = vmatmul.mubr.msk.f32.vlgmr.msra.gmra.mrb[64].mxu1 %vm10226_vm5, %v20464_v21  ;;  %v10183_v4 = vmax.f32 %v10181_v15, %v10182_v20  ;;  %v10599_v45 = vsel %vm10226_vm5, %v10176_v54, -inf  ;;  %v20485_v57 = vld [vmem:[#allocation3 + $0x92] ss:$8 sps:$4 sm:$0xff]   ;;  %v20486_v8 = vld [vmem:[#allocation3 + $0xa2] ss:$8 sps:$4 sm:$0xff]  }
 0x679   : > { %19627 = vmatpush3.bf16.msra.mxu1 %v19624_v48  ;;  %19262 = vmatprep.mubr.msk.f32.mxu1 %vm10226_vm5, %v20465_v26  ;;  %v10197_v18 = vmax.f32 %v10195_v5, %v10196_v35  ;;  %v10601_v27 = vmax.f32 %v10599_v45, %v10600_v42  ;;  %v10605_v31 = vsel %vm10226_vm5, %v10190_v0, -inf  ;;  %v20480_v48 = vld [vmem:[#allocation3 + $0x12] ss:$8 sps:$4 sm:$0xff]   ;;  %v20487_v61 = vld [vmem:[#allocation3 + $0xc2] ss:$8 sps:$4 sm:$0xff]  }
 0x67a   : > { %19629 = vmatprep.subr.bf16.mxu1 %v19628_v19  ;;  %v10602_v12 = vsel %vm10226_vm5, %v10183_v4, -inf  ;;  %v10607_v23 = vmax.f32 %v10605_v31, %v10606_v22  ;;  %v20488_v53 = vld [vmem:[#allocation3 + $0xd2] ss:$8 sps:$4 sm:$0xff]   ;;  %v20490_v51 = vld [vmem:[#allocation3 + $0x102] ss:$8 sps:$4 sm:$0xff]  }
 0x67b   : > { %v10604_v9 = vmax.f32 %v10602_v12, %v10603_v30  ;;  %v10608_v37 = vsel %vm10226_vm5, %v10197_v18, -inf  ;;  %v20489_v36 = vld [vmem:[#allocation3 + $0xf2] ss:$8 sps:$4 sm:$0xff]   ;;  %v20491_v44 = vld [vmem:[#allocation3 + $0x122] ss:$8 sps:$4 sm:$0xff]  }
 0x67c   : > { %19263 = vmatmul.mubr.msk.f32.gmra.mrb[66].mxu1 %vm10226_vm5, %v20466_v60  ;;  %v10610_v29 = vmax.f32 %v10608_v37, %v10609_v7  ;;  %v20492_v39 = vld [vmem:[#allocation3 + $0x132] ss:$8 sps:$4 sm:$0xff]   ;;  %v20494_v49 = vld [vmem:[#allocation3 + $0x162] ss:$8 sps:$4 sm:$0xff]  }
 0x67d   : > { %19265 = vmatprep.mubr.msk.f32.mxu1 %vm10226_vm5, %v20467_v59  ;;  %v10884_v11 = vsel %vm10788_vm6, %v10604_v9, %v10601_v27  ;;  %v20493_v55 = vld [vmem:[#allocation3 + $0x152] ss:$8 sps:$4 sm:$0xff]   ;;  %v17390_v18 = vld [vmem:[%s25210_s3 + $0x60] sm:$0xff]  ;;  %v17391_v27 = vld [vmem:[%s25210_s3 + $0x68] sm:$0xff] }
 0x67e   : > { %v10885_v28 = vsel %vm10790_vm7, %v10607_v23, %v10884_v11  ;;  %v20495_v2 = vld [vmem:[#allocation3 + $0x8] ss:$8 sps:$4 sm:$0xff]   ;;  %v20496_v10 = vld [vmem:[#allocation3 + $0x18] ss:$8 sps:$4 sm:$0xff]   ;;  %v19640_v60 = vpack.c.bf16 %v17391_v27, %v17390_v18 }
 0x67f   : > { %v10886_v14 = vsel %vm10792_vm8, %v10610_v29, %v10885_v28  ;;  %v17372_v21 = vld [vmem:[%s25210_s3 + $0x50] sm:$0xff]  ;;  %v20497_v24 = vld [vmem:[#allocation3 + $0x38] ss:$8 sps:$4 sm:$0xff]  }
 0x680   : > { %19266 = vmatmul.mubr.msk.f32.gmra.mrb[68].mxu1 %vm10226_vm5, %v20468_v56  ;;  %10952 = vst.msk [vmem:[#allocation3 + $0x171] sm:$0xf] %vm10920_vm9, %v10886_v14  ;;  %v19636_v15 = vpack.c.bf16 %v17373_v43, %v17372_v21  ;;  %v20498_v63 = vld [vmem:[#allocation3 + $0x48] ss:$8 sps:$4 sm:$0xff]   ;;  %v20501_v42 = vld [vmem:[#allocation3 + $0x98] ss:$8 sps:$4 sm:$0xff]  }
 0x681   : > { %19268 = vmatprep.mubr.msk.f32.mxu1 %vm10226_vm5, %v20469_v47  ;;  %v20499_v5 = vld [vmem:[#allocation3 + $0x68] ss:$8 sps:$4 sm:$0xff]   ;;  %v20504_v26 = vld [vmem:[#allocation3 + $0xd8] ss:$8 sps:$4 sm:$0xff]  }
 0x682   : > { %v20502_v54 = vld [vmem:[#allocation3 + $0xa8] ss:$8 sps:$4 sm:$0xff]   ;;  %v20505_v22 = vld [vmem:[#allocation3 + $0xf8] ss:$8 sps:$4 sm:$0xff]  }
 0x683   : > { %v20503_v20 = vld [vmem:[#allocation3 + $0xc8] ss:$8 sps:$4 sm:$0xff]   ;;  %v20508_v30 = vld [vmem:[#allocation3 + $0x138] ss:$8 sps:$4 sm:$0xff]  }
 0x684   : > { %19269 = vmatmul.mubr.msk.f32.gmra.mrb[70].mxu1 %vm10226_vm5, %v20470_v13  ;;  %v20506_v0 = vld [vmem:[#allocation3 + $0x108] ss:$8 sps:$4 sm:$0xff]   ;;  %v20509_v4 = vld [vmem:[#allocation3 + $0x158] ss:$8 sps:$4 sm:$0xff]  }
 0x685   : > { %19271 = vmatprep.mubr.msk.f32.mxu1 %vm10226_vm5, %v20471_v3  ;;  %v20507_v35 = vld [vmem:[#allocation3 + $0x128] ss:$8 sps:$4 sm:$0xff]   ;;  %v20512_v31 = vld [vmem:[#allocation3 + $0x19] ss:$8 sps:$4 sm:$0xff]  }
 0x686   : > { %v20511_v7 = vld [vmem:[#allocation3 + $0x9] ss:$8 sps:$4 sm:$0xff]   ;;  %v20513_v12 = vld [vmem:[#allocation3 + $0x39] ss:$8 sps:$4 sm:$0xff]  }
 0x687   : > { %v20510_v45 = vld [vmem:[#allocation3 + $0x168] ss:$8 sps:$4 sm:$0xff]   ;;  %v20516_v9 = vld [vmem:[#allocation3 + $0x79] ss:$8 sps:$4 sm:$0xff]  }
 0x688   : > { %19272 = vmatmul.mubr.msk.f32.gmra.mrb[72].mxu1 %vm10226_vm5, %v20472_v25  ;;  %v20514_v23 = vld [vmem:[#allocation3 + $0x49] ss:$8 sps:$4 sm:$0xff]   ;;  %v20517_v37 = vld [vmem:[#allocation3 + $0x99] ss:$8 sps:$4 sm:$0xff]  }
 0x689   : > { %19274 = vmatprep.mubr.msk.f32.mxu1 %vm10226_vm5, %v20473_v33  ;;  %v20515_v59 = vld [vmem:[#allocation3 + $0x69] ss:$8 sps:$4 sm:$0xff]   ;;  %v20520_v56 = vld [vmem:[#allocation3 + $0xd9] ss:$8 sps:$4 sm:$0xff]  }
 0x68a   : > { %v20518_v29 = vld [vmem:[#allocation3 + $0xa9] ss:$8 sps:$4 sm:$0xff]   ;;  %v20521_v28 = vld [vmem:[#allocation3 + $0xf9] ss:$8 sps:$4 sm:$0xff]  }
 0x68b   : > { %v20519_v11 = vld [vmem:[#allocation3 + $0xc9] ss:$8 sps:$4 sm:$0xff]   ;;  %v20524_v13 = vld [vmem:[#allocation3 + $0x139] ss:$8 sps:$4 sm:$0xff]  }
 0x68c   : > { %19275 = vmatmul.mubr.msk.f32.gmra.mrb[74].mxu1 %vm10226_vm5, %v20474_v40  ;;  %v20522_v47 = vld [vmem:[#allocation3 + $0x109] ss:$8 sps:$4 sm:$0xff]   ;;  %v20525_v3 = vld [vmem:[#allocation3 + $0x159] ss:$8 sps:$4 sm:$0xff]  }
 0x68d   : > { %19277 = vmatprep.mubr.msk.f32.mxu1 %vm10226_vm5, %v20475_v1  ;;  %v20523_v14 = vld [vmem:[#allocation3 + $0x129] ss:$8 sps:$4 sm:$0xff]   ;;  %v17409_v1 = vld [vmem:[%s25210_s3 + $0x78] sm:$0xff] }
 0x68e   : > { %v20526_v25 = vld [vmem:[#allocation3 + $0x169] ss:$8 sps:$4 sm:$0xff]   ;;  %v20532_v52 = vld [vmem:[#allocation3 + $0x7a] ss:$8 sps:$4 sm:$0xff]  }
 0x68f   : > { %v20527_v33 = vld [vmem:[#allocation3 + $0xa] ss:$8 sps:$4 sm:$0xff]  }
 0x690   : > { %19278 = vmatmul.mubr.msk.f32.gmra.mrb[76].mxu1 %vm10226_vm5, %v20476_v62  ;;  %v17408_v40 = vld [vmem:[%s25210_s3 + $0x70] sm:$0xff]  ;;  %v20528_v62 = vld [vmem:[#allocation3 + $0x1a] ss:$8 sps:$4 sm:$0xff]  }
 0x691   : > { %19280 = vmatprep.mubr.msk.f32.mxu1 %vm10226_vm5, %v20477_v50  ;;  %v19644_v50 = vpack.c.bf16 %v17409_v1, %v17408_v40  ;;  %v20531_v46 = vld [vmem:[#allocation3 + $0x6a] ss:$8 sps:$4 sm:$0xff]  }
 0x692   : > { %v20547_v21 = vld [vmem:[#allocation3 + $0x70] ss:$8 sps:$4 sm:$0xff]   ;;  %v20548_v43 = vld [vmem:[#allocation3 + $0x80] ss:$8 sps:$4 sm:$0xff]  }
 0x693   : > { %v20566_v18 = vld [vmem:[#allocation3 + $0xb1] ss:$8 sps:$4 sm:$0xff]   ;;  %v20585_v40 = vld [vmem:[#allocation3 + $0x102] ss:$8 sps:$4 sm:$0xff]  }
 0x694   : > { %19281 = vmatmul.mubr.msk.f32.gmra.mrb[78].mxu1 %vm10226_vm5, %v20478_v16  ;;  %v20529_v16 = vld [vmem:[#allocation3 + $0x3a] ss:$8 sps:$4 sm:$0xff]  }
 0x695   : > { %19287 = vmatprep.mubr.msk.f32.mxu1 %vm10226_vm5, %v20479_v17  ;;  %v20530_v17 = vld [vmem:[#allocation3 + $0x4a] ss:$8 sps:$4 sm:$0xff]  }
 0x696   : > { %v20567_v27 = vld [vmem:[#allocation3 + $0xd1] ss:$8 sps:$4 sm:$0xff]  }
 0x697   : > { %v20586_v1 = vld [vmem:[#allocation3 + $0x112] ss:$8 sps:$4 sm:$0xff]  }
 0x698   : > { %19288 = vmatmul.mubr.msk.f32.vlgmr.msra.gmra.mrb[64].mxu1 %vm10226_vm5, %v20480_v48  ;;  %v20533_v48 = vld [vmem:[#allocation3 + $0x9a] ss:$8 sps:$4 sm:$0xff]  }
 0x699   : > { %19631 = vmatpush3.bf16.msra.mxu1 %v19628_v19  ;;  %19290 = vmatprep.mubr.msk.f32.mxu1 %vm10226_vm5, %v20481_v6  ;;  %v20500_v19 = vld [vmem:[#allocation3 + $0x78] ss:$8 sps:$4 sm:$0xff]   ;;  %v20535_v6 = vld [vmem:[#allocation3 + $0xca] ss:$8 sps:$4 sm:$0xff]  }
 0x69a   : > { %19633 = vmatprep.subr.bf16.mxu1 %v19632_v41 }
 0x69c   : > { %19291 = vmatmul.mubr.msk.f32.gmra.mrb[66].mxu1 %vm10226_vm5, %v20482_v32  ;;  %v20536_v32 = vld [vmem:[#allocation3 + $0xda] ss:$8 sps:$4 sm:$0xff]  }
 0x69d   : > { %19293 = vmatprep.mubr.msk.f32.mxu1 %vm10226_vm5, %v20483_v34  ;;  %v20537_v34 = vld [vmem:[#allocation3 + $0xfa] ss:$8 sps:$4 sm:$0xff]  }
 0x6a0   : > { %19294 = vmatmul.mubr.msk.f32.gmra.mrb[68].mxu1 %vm10226_vm5, %v20484_v38  ;;  %v20538_v38 = vld [vmem:[#allocation3 + $0x10a] ss:$8 sps:$4 sm:$0xff]  }
 0x6a1   : > { %19296 = vmatprep.mubr.msk.f32.mxu1 %vm10226_vm5, %v20485_v57  ;;  %v20539_v57 = vld [vmem:[#allocation3 + $0x12a] ss:$8 sps:$4 sm:$0xff]  }
 0x6a4   : > { %19297 = vmatmul.mubr.msk.f32.gmra.mrb[70].mxu1 %vm10226_vm5, %v20486_v8  ;;  %v20540_v8 = vld [vmem:[#allocation3 + $0x13a] ss:$8 sps:$4 sm:$0xff]  }
 0x6a5   : > { %19299 = vmatprep.mubr.msk.f32.mxu1 %vm10226_vm5, %v20487_v61  ;;  %v20541_v61 = vld [vmem:[#allocation3 + $0x15a] ss:$8 sps:$4 sm:$0xff]  }
 0x6a8   : > { %19300 = vmatmul.mubr.msk.f32.gmra.mrb[72].mxu1 %vm10226_vm5, %v20488_v53  ;;  %v20542_v53 = vld [vmem:[#allocation3 + $0x16a] ss:$8 sps:$4 sm:$0xff]  }
 0x6a9   : > { %19302 = vmatprep.mubr.msk.f32.mxu1 %vm10226_vm5, %v20489_v36  ;;  %v20543_v36 = vld [vmem:[#allocation3 + $0x10] ss:$8 sps:$4 sm:$0xff]  }
 0x6ac   : > { %19303 = vmatmul.mubr.msk.f32.gmra.mrb[74].mxu1 %vm10226_vm5, %v20490_v51  ;;  %v17426_v51 = vld [vmem:[%s25210_s3 + $0x80] sm:$0xff] }
 0x6ad   : > { %19305 = vmatprep.mubr.msk.f32.mxu1 %vm10226_vm5, %v20491_v44  ;;  %v17427_v44 = vld [vmem:[%s25210_s3 + $0x88] sm:$0xff] }
 0x6b0   : > { %19306 = vmatmul.mubr.msk.f32.gmra.mrb[76].mxu1 %vm10226_vm5, %v20492_v39  ;;  %v20544_v39 = vld [vmem:[#allocation3 + $0x20] ss:$8 sps:$4 sm:$0xff]  }
 0x6b1   : > { %19308 = vmatprep.mubr.msk.f32.mxu1 %vm10226_vm5, %v20493_v55  ;;  %v19648_v55 = vpack.c.bf16 %v17427_v44, %v17426_v51 }
 0x6b4   : > { %19309 = vmatmul.mubr.msk.f32.gmra.mrb[78].mxu1 %vm10226_vm5, %v20494_v49  ;;  %v20545_v49 = vld [vmem:[#allocation3 + $0x40] ss:$8 sps:$4 sm:$0xff]  }
 0x6b5   : > { %19315 = vmatprep.mubr.msk.f32.mxu1 %vm10226_vm5, %v20495_v2  ;;  %v20546_v2 = vld [vmem:[#allocation3 + $0x50] ss:$8 sps:$4 sm:$0xff]  }
 0x6b8   : > { %19316 = vmatmul.mubr.msk.f32.vlgmr.msra.gmra.mrb[64].mxu1 %vm10226_vm5, %v20496_v10  ;;  %v20549_v10 = vld [vmem:[#allocation3 + $0xa0] ss:$8 sps:$4 sm:$0xff]  }
 0x6b9   : > { %19635 = vmatpush3.bf16.msra.mxu1 %v19632_v41  ;;  %19318 = vmatprep.mubr.msk.f32.mxu1 %vm10226_vm5, %v20497_v24  ;;  %v20534_v41 = vld [vmem:[#allocation3 + $0xaa] ss:$8 sps:$4 sm:$0xff]  }
 0x6ba   : > { %19637 = vmatprep.subr.bf16.mxu1 %v19636_v15  ;;  %v20551_v24 = vld [vmem:[#allocation3 + $0xd0] ss:$8 sps:$4 sm:$0xff]  }
 0x6bc   : > { %19319 = vmatmul.mubr.msk.f32.gmra.mrb[66].mxu1 %vm10226_vm5, %v20498_v63  ;;  %v20552_v63 = vld [vmem:[#allocation3 + $0xe0] ss:$8 sps:$4 sm:$0xff]  }
 0x6bd   : > { %19321 = vmatprep.mubr.msk.f32.mxu1 %vm10226_vm5, %v20499_v5  ;;  %v20553_v5 = vld [vmem:[#allocation3 + $0x100] ss:$8 sps:$4 sm:$0xff]  }
 0x6c0   : > { %19322 = vmatmul.mubr.msk.f32.gmra.mrb[68].mxu1 %vm10226_vm5, %v20500_v19  ;;  %v20554_v19 = vld [vmem:[#allocation3 + $0x110] ss:$8 sps:$4 sm:$0xff]  }
 0x6c1   : > { %19324 = vmatprep.mubr.msk.f32.mxu1 %vm10226_vm5, %v20501_v42  ;;  %v20555_v42 = vld [vmem:[#allocation3 + $0x130] ss:$8 sps:$4 sm:$0xff]  }
 0x6c4   : > { %19325 = vmatmul.mubr.msk.f32.gmra.mrb[70].mxu1 %vm10226_vm5, %v20502_v54  ;;  %v20556_v54 = vld [vmem:[#allocation3 + $0x140] ss:$8 sps:$4 sm:$0xff]  }
 0x6c5   : > { %19327 = vmatprep.mubr.msk.f32.mxu1 %vm10226_vm5, %v20503_v20  ;;  %v20557_v20 = vld [vmem:[#allocation3 + $0x160] ss:$8 sps:$4 sm:$0xff]  }
 0x6c8   : > { %19328 = vmatmul.mubr.msk.f32.gmra.mrb[72].mxu1 %vm10226_vm5, %v20504_v26  ;;  %v20558_v26 = vld [vmem:[#allocation3 + $0x170] ss:$8 sps:$4 sm:$0xff]  }
 0x6c9   : > { %19330 = vmatprep.mubr.msk.f32.mxu1 %vm10226_vm5, %v20505_v22  ;;  %v20559_v22 = vld [vmem:[#allocation3 + $0x11] ss:$8 sps:$4 sm:$0xff]  }
 0x6cc   : > { %19331 = vmatmul.mubr.msk.f32.gmra.mrb[74].mxu1 %vm10226_vm5, %v20506_v0  ;;  %v20560_v0 = vld [vmem:[#allocation3 + $0x21] ss:$8 sps:$4 sm:$0xff]  }
 0x6cd   : > { %19333 = vmatprep.mubr.msk.f32.mxu1 %vm10226_vm5, %v20507_v35  ;;  %v20561_v35 = vld [vmem:[#allocation3 + $0x41] ss:$8 sps:$4 sm:$0xff]  }
 0x6d0   : > { %19334 = vmatmul.mubr.msk.f32.gmra.mrb[76].mxu1 %vm10226_vm5, %v20508_v30  ;;  %v20562_v30 = vld [vmem:[#allocation3 + $0x51] ss:$8 sps:$4 sm:$0xff]  }
 0x6d1   : > { %19336 = vmatprep.mubr.msk.f32.mxu1 %vm10226_vm5, %v20509_v4  ;;  %v20563_v4 = vld [vmem:[#allocation3 + $0x71] ss:$8 sps:$4 sm:$0xff]  }
 0x6d4   : > { %19337 = vmatmul.mubr.msk.f32.gmra.mrb[78].mxu1 %vm10226_vm5, %v20510_v45  ;;  %v20564_v45 = vld [vmem:[#allocation3 + $0x81] ss:$8 sps:$4 sm:$0xff]  }
 0x6d5   : > { %19343 = vmatprep.mubr.msk.f32.mxu1 %vm10226_vm5, %v20511_v7  ;;  %v20565_v7 = vld [vmem:[#allocation3 + $0xa1] ss:$8 sps:$4 sm:$0xff]  }
 0x6d8   : > { %19344 = vmatmul.mubr.msk.f32.vlgmr.msra.gmra.mrb[64].mxu1 %vm10226_vm5, %v20512_v31  ;;  %v20568_v31 = vld [vmem:[#allocation3 + $0xe1] ss:$8 sps:$4 sm:$0xff]  }
 0x6d9   : > { %19639 = vmatpush3.bf16.msra.mxu1 %v19636_v15  ;;  %19346 = vmatprep.mubr.msk.f32.mxu1 %vm10226_vm5, %v20513_v12  ;;  %v20550_v15 = vld [vmem:[#allocation3 + $0xb0] ss:$8 sps:$4 sm:$0xff]  }
 0x6da   : > { %19641 = vmatprep.subr.bf16.mxu1 %v19640_v60  ;;  %v20570_v12 = vld [vmem:[#allocation3 + $0x111] ss:$8 sps:$4 sm:$0xff]  }
 0x6dc   : > { %19347 = vmatmul.mubr.msk.f32.gmra.mrb[66].mxu1 %vm10226_vm5, %v20514_v23  ;;  %v20571_v23 = vld [vmem:[#allocation3 + $0x131] ss:$8 sps:$4 sm:$0xff]  }
 0x6dd   : > { %19349 = vmatprep.mubr.msk.f32.mxu1 %vm10226_vm5, %v20515_v59  ;;  %v20572_v59 = vld [vmem:[#allocation3 + $0x141] ss:$8 sps:$4 sm:$0xff]  }
 0x6e0   : > { %19350 = vmatmul.mubr.msk.f32.gmra.mrb[68].mxu1 %vm10226_vm5, %v20516_v9  ;;  %v20573_v9 = vld [vmem:[#allocation3 + $0x161] ss:$8 sps:$4 sm:$0xff]  }
 0x6e1   : > { %19352 = vmatprep.mubr.msk.f32.mxu1 %vm10226_vm5, %v20517_v37  ;;  %v20574_v37 = vld [vmem:[#allocation3 + $0x171] ss:$8 sps:$4 sm:$0xff]  }
 0x6e4   : > { %19353 = vmatmul.mubr.msk.f32.gmra.mrb[70].mxu1 %vm10226_vm5, %v20518_v29  ;;  %v20575_v29 = vld [vmem:[#allocation3 + $0x12] ss:$8 sps:$4 sm:$0xff]  }
 0x6e5   : > { %19355 = vmatprep.mubr.msk.f32.mxu1 %vm10226_vm5, %v20519_v11  ;;  %v20576_v11 = vld [vmem:[#allocation3 + $0x22] ss:$8 sps:$4 sm:$0xff]  }
 0x6e8   : > { %19356 = vmatmul.mubr.msk.f32.gmra.mrb[72].mxu1 %vm10226_vm5, %v20520_v56  ;;  %v20577_v56 = vld [vmem:[#allocation3 + $0x42] ss:$8 sps:$4 sm:$0xff]  }
 0x6e9   : > { %19358 = vmatprep.mubr.msk.f32.mxu1 %vm10226_vm5, %v20521_v28  ;;  %v20578_v28 = vld [vmem:[#allocation3 + $0x52] ss:$8 sps:$4 sm:$0xff]  }
 0x6ec   : > { %19359 = vmatmul.mubr.msk.f32.gmra.mrb[74].mxu1 %vm10226_vm5, %v20522_v47  ;;  %v20579_v47 = vld [vmem:[#allocation3 + $0x72] ss:$8 sps:$4 sm:$0xff]  }
 0x6ed   : > { %19361 = vmatprep.mubr.msk.f32.mxu1 %vm10226_vm5, %v20523_v14  ;;  %v20580_v14 = vld [vmem:[#allocation3 + $0x82] ss:$8 sps:$4 sm:$0xff]  }
 0x6f0   : > { %19362 = vmatmul.mubr.msk.f32.gmra.mrb[76].mxu1 %vm10226_vm5, %v20524_v13  ;;  %v20581_v13 = vld [vmem:[#allocation3 + $0xa2] ss:$8 sps:$4 sm:$0xff]  }
 0x6f1   : > { %19364 = vmatprep.mubr.msk.f32.mxu1 %vm10226_vm5, %v20525_v3  ;;  %v20582_v3 = vld [vmem:[#allocation3 + $0xb2] ss:$8 sps:$4 sm:$0xff]  }
 0x6f4   : > { %19365 = vmatmul.mubr.msk.f32.gmra.mrb[78].mxu1 %vm10226_vm5, %v20526_v25  ;;  %v20583_v25 = vld [vmem:[#allocation3 + $0xd2] ss:$8 sps:$4 sm:$0xff]  }
 0x6f5   : > { %19371 = vmatprep.mubr.msk.f32.mxu1 %vm10226_vm5, %v20527_v33  ;;  %v20584_v33 = vld [vmem:[#allocation3 + $0xe2] ss:$8 sps:$4 sm:$0xff]  }
 0x6f8   : > { %19372 = vmatmul.mubr.msk.f32.vlgmr.msra.gmra.mrb[64].mxu1 %vm10226_vm5, %v20528_v62  ;;  %v20587_v62 = vld [vmem:[#allocation3 + $0x132] ss:$8 sps:$4 sm:$0xff]  }
 0x6f9   : > { %19643 = vmatpush3.bf16.msra.mxu1 %v19640_v60  ;;  %19374 = vmatprep.mubr.msk.f32.mxu1 %vm10226_vm5, %v20529_v16  ;;  %v20569_v60 = vld [vmem:[#allocation3 + $0x101] ss:$8 sps:$4 sm:$0xff]  }
 0x6fa   : > { %19645 = vmatprep.subr.bf16.mxu1 %v19644_v50  ;;  %v20589_v16 = vld [vmem:[#allocation3 + $0x162] ss:$8 sps:$4 sm:$0xff]  }
 0x6fc   : > { %19375 = vmatmul.mubr.msk.f32.gmra.mrb[66].mxu1 %vm10226_vm5, %v20530_v17  ;;  %v20590_v17 = vld [vmem:[#allocation3 + $0x172] ss:$8 sps:$4 sm:$0xff]  }
 0x6fd   : > { %19377 = vmatprep.mubr.msk.f32.mxu1 %vm10226_vm5, %v20531_v46  ;;  %v25405_v46 = vmov 0.0  }
 0x6fe   : > { %14345 = vst.msk [vmem:[#allocation4 + $0x8] sm:$0xf] %vm14342_vm10, %v25405_v46  ;;  %14343 = vst.msk [vmem:[#allocation4] sm:$0xf] %vm14342_vm10, %v25405_v46 }
 0x6ff   : > { %14344 = vst.msk [vmem:[#allocation4 + $0x4] sm:$0xf] %vm14342_vm10, %v25405_v46  ;;  %14346 = vst.msk [vmem:[#allocation4 + $0xc] sm:$0xf] %vm14342_vm10, %v25405_v46 }
 0x700   : > { %19378 = vmatmul.mubr.msk.f32.gmra.mrb[68].mxu1 %vm10226_vm5, %v20532_v52  ;;  %14347 = vst.msk [vmem:[#allocation4 + $0x10] sm:$0xf] %vm14342_vm10, %v25405_v46  ;;  %14348 = vst.msk [vmem:[#allocation4 + $0x14] sm:$0xf] %vm14342_vm10, %v25405_v46  ;;  %v24685_v52 = vld [vmem:[%s25211_s4] ss:$0 sm:$0xff] }
 0x701   : > { %19380 = vmatprep.mubr.msk.f32.mxu1 %vm10226_vm5, %v20533_v48  ;;  %14349 = vst.msk [vmem:[#allocation4 + $0x18] sm:$0xf] %vm14342_vm10, %v25405_v46  ;;  %14350 = vst.msk [vmem:[#allocation4 + $0x1c] sm:$0xf] %vm14342_vm10, %v25405_v46 }
 0x702   : > { %14351 = vst.msk [vmem:[#allocation4 + $0x20] sm:$0xf] %vm14342_vm10, %v25405_v46  ;;  %14352 = vst.msk [vmem:[#allocation4 + $0x24] sm:$0xf] %vm14342_vm10, %v25405_v46 }
 0x703   : > { %14353 = vst.msk [vmem:[#allocation4 + $0x28] sm:$0xf] %vm14342_vm10, %v25405_v46  ;;  %14354 = vst.msk [vmem:[#allocation4 + $0x2c] sm:$0xf] %vm14342_vm10, %v25405_v46 }
 0x704   : > { %19381 = vmatmul.mubr.msk.f32.gmra.mrb[70].mxu1 %vm10226_vm5, %v20534_v41  ;;  %14355 = vst.msk [vmem:[#allocation4 + $0x30] sm:$0xf] %vm14342_vm10, %v25405_v46  ;;  %14356 = vst.msk [vmem:[#allocation4 + $0x34] sm:$0xf] %vm14342_vm10, %v25405_v46 }
 0x705   : > { %19383 = vmatprep.mubr.msk.f32.mxu1 %vm10226_vm5, %v20535_v6  ;;  %14357 = vst.msk [vmem:[#allocation4 + $0x38] sm:$0xf] %vm14342_vm10, %v25405_v46  ;;  %14358 = vst.msk [vmem:[#allocation4 + $0x3c] sm:$0xf] %vm14342_vm10, %v25405_v46 }
 0x706   : > { %14359 = vst.msk [vmem:[#allocation4 + $0x40] sm:$0xf] %vm14342_vm10, %v25405_v46  ;;  %14360 = vst.msk [vmem:[#allocation4 + $0x44] sm:$0xf] %vm14342_vm10, %v25405_v46 }
 0x707   : > { %14361 = vst.msk [vmem:[#allocation4 + $0x48] sm:$0xf] %vm14342_vm10, %v25405_v46  ;;  %14362 = vst.msk [vmem:[#allocation4 + $0x4c] sm:$0xf] %vm14342_vm10, %v25405_v46 }
 0x708   : > { %19384 = vmatmul.mubr.msk.f32.gmra.mrb[72].mxu1 %vm10226_vm5, %v20536_v32  ;;  %14363 = vst.msk [vmem:[#allocation4 + $0x50] sm:$0xf] %vm14342_vm10, %v25405_v46  ;;  %14364 = vst.msk [vmem:[#allocation4 + $0x54] sm:$0xf] %vm14342_vm10, %v25405_v46 }
 0x709   : > { %19386 = vmatprep.mubr.msk.f32.mxu1 %vm10226_vm5, %v20537_v34  ;;  %14365 = vst.msk [vmem:[#allocation4 + $0x58] sm:$0xf] %vm14342_vm10, %v25405_v46  ;;  %14366 = vst.msk [vmem:[#allocation4 + $0x5c] sm:$0xf] %vm14342_vm10, %v25405_v46 }
 0x70a   : > { %14367 = vst.msk [vmem:[#allocation4 + $0x60] sm:$0xf] %vm14342_vm10, %v25405_v46  ;;  %14368 = vst.msk [vmem:[#allocation4 + $0x64] sm:$0xf] %vm14342_vm10, %v25405_v46 }
 0x70b   : > { %14369 = vst.msk [vmem:[#allocation4 + $0x68] sm:$0xf] %vm14342_vm10, %v25405_v46  ;;  %14370 = vst.msk [vmem:[#allocation4 + $0x6c] sm:$0xf] %vm14342_vm10, %v25405_v46 }
 0x70c   : > { %19387 = vmatmul.mubr.msk.f32.gmra.mrb[74].mxu1 %vm10226_vm5, %v20538_v38  ;;  %14371 = vst.msk [vmem:[#allocation4 + $0x70] sm:$0xf] %vm14342_vm10, %v25405_v46  ;;  %14372 = vst.msk [vmem:[#allocation4 + $0x74] sm:$0xf] %vm14342_vm10, %v25405_v46 }
 0x70d   : > { %19389 = vmatprep.mubr.msk.f32.mxu1 %vm10226_vm5, %v20539_v57  ;;  %14373 = vst.msk [vmem:[#allocation4 + $0x78] sm:$0xf] %vm14342_vm10, %v25405_v46  ;;  %14374 = vst.msk [vmem:[#allocation4 + $0x7c] sm:$0xf] %vm14342_vm10, %v25405_v46 }
 0x710   : > { %19390 = vmatmul.mubr.msk.f32.gmra.mrb[76].mxu1 %vm10226_vm5, %v20540_v8 }
 0x711   : > { %19392 = vmatprep.mubr.msk.f32.mxu1 %vm10226_vm5, %v20541_v61 }
 0x714   : > { %19393 = vmatmul.mubr.msk.f32.gmra.mrb[78].mxu1 %vm10226_vm5, %v20542_v53 }
 0x715   : > { %19399 = vmatprep.mubr.msk.f32.mxu1 %vm10226_vm5, %v20543_v36 }
 0x718   : > { %19400 = vmatmul.mubr.msk.f32.vlgmr.msra.gmra.mrb[64].mxu1 %vm10226_vm5, %v20544_v39 }
 0x719   : > { %19647 = vmatpush3.bf16.msra.mxu1 %v19644_v50  ;;  %19402 = vmatprep.mubr.msk.f32.mxu1 %vm10226_vm5, %v20545_v49  ;;  %v20588_v50 = vld [vmem:[#allocation3 + $0x142] ss:$8 sps:$4 sm:$0xff]  }
 0x71a   : > { %19649 = vmatprep.subr.bf16.mxu1 %v19648_v55 }
 0x71c   : > { %19403 = vmatmul.mubr.msk.f32.gmra.mrb[66].mxu1 %vm10226_vm5, %v20546_v2 }
 0x71d   : > { %19405 = vmatprep.mubr.msk.f32.mxu1 %vm10226_vm5, %v20547_v21 }
 0x720   : > { %19406 = vmatmul.mubr.msk.f32.gmra.mrb[68].mxu1 %vm10226_vm5, %v20548_v43 }
 0x721   : > { %19408 = vmatprep.mubr.msk.f32.mxu1 %vm10226_vm5, %v20549_v10 }
 0x724   : > { %19409 = vmatmul.mubr.msk.f32.gmra.mrb[70].mxu1 %vm10226_vm5, %v20550_v15 }
 0x725   : > { %19411 = vmatprep.mubr.msk.f32.mxu1 %vm10226_vm5, %v20551_v24 }
 0x728   : > { %19412 = vmatmul.mubr.msk.f32.gmra.mrb[72].mxu1 %vm10226_vm5, %v20552_v63 }
 0x729   : > { %19414 = vmatprep.mubr.msk.f32.mxu1 %vm10226_vm5, %v20553_v5 }
 0x72c   : > { %19415 = vmatmul.mubr.msk.f32.gmra.mrb[74].mxu1 %vm10226_vm5, %v20554_v19 }
 0x72d   : > { %19417 = vmatprep.mubr.msk.f32.mxu1 %vm10226_vm5, %v20555_v42 }
 0x730   : > { %19418 = vmatmul.mubr.msk.f32.gmra.mrb[76].mxu1 %vm10226_vm5, %v20556_v54 }
 0x731   : > { %19420 = vmatprep.mubr.msk.f32.mxu1 %vm10226_vm5, %v20557_v20 }
 0x734   : > { %19421 = vmatmul.mubr.msk.f32.gmra.mrb[78].mxu1 %vm10226_vm5, %v20558_v26 }
 0x735   : > { %19427 = vmatprep.mubr.msk.f32.mxu1 %vm10226_vm5, %v20559_v22 }
 0x738   : > { %19428 = vmatmul.mubr.msk.f32.vlgmr.msra.gmra.mrb[64].mxu1 %vm10226_vm5, %v20560_v0 }
 0x739   : > { %19651 = vmatpush3.bf16.msra.mxu1 %v19648_v55  ;;  %19430 = vmatprep.mubr.msk.f32.mxu1 %vm10226_vm5, %v20561_v35 }
 0x73c   : > { %19431 = vmatmul.mubr.msk.f32.gmra.mrb[66].mxu1 %vm10226_vm5, %v20562_v30 }
 0x73d   : > { %19433 = vmatprep.mubr.msk.f32.mxu1 %vm10226_vm5, %v20563_v4 }
 0x740   : > { %19434 = vmatmul.mubr.msk.f32.gmra.mrb[68].mxu1 %vm10226_vm5, %v20564_v45 }
 0x741   : > { %19436 = vmatprep.mubr.msk.f32.mxu1 %vm10226_vm5, %v20565_v7 }
 0x744   : > { %19437 = vmatmul.mubr.msk.f32.gmra.mrb[70].mxu1 %vm10226_vm5, %v20566_v18 }
 0x745   : > { %19439 = vmatprep.mubr.msk.f32.mxu1 %vm10226_vm5, %v20567_v27 }
 0x748   : > { %19440 = vmatmul.mubr.msk.f32.gmra.mrb[72].mxu1 %vm10226_vm5, %v20568_v31 }
 0x749   : > { %19442 = vmatprep.mubr.msk.f32.mxu1 %vm10226_vm5, %v20569_v60 }
 0x74c   : > { %19443 = vmatmul.mubr.msk.f32.gmra.mrb[74].mxu1 %vm10226_vm5, %v20570_v12 }
 0x74d   : > { %19445 = vmatprep.mubr.msk.f32.mxu1 %vm10226_vm5, %v20571_v23 }
 0x750   : > { %19446 = vmatmul.mubr.msk.f32.gmra.mrb[76].mxu1 %vm10226_vm5, %v20572_v59 }
 0x751   : > { %19448 = vmatprep.mubr.msk.f32.mxu1 %vm10226_vm5, %v20573_v9 }
 0x754   : > { %19449 = vmatmul.mubr.msk.f32.gmra.mrb[78].mxu1 %vm10226_vm5, %v20574_v37 }
 0x755   : > { %19455 = vmatprep.mubr.msk.f32.mxu1 %vm10226_vm5, %v20575_v29 }
 0x758   : > { %19456 = vmatmul.mubr.msk.f32.vlgmr.msra.gmra.mrb[64].mxu1 %vm10226_vm5, %v20576_v11 }
 0x759   : > { %19458 = vmatprep.mubr.msk.f32.mxu1 %vm10226_vm5, %v20577_v56 }
 0x75c   : > { %19459 = vmatmul.mubr.msk.f32.gmra.mrb[66].mxu1 %vm10226_vm5, %v20578_v28 }
 0x75d   : > { %19461 = vmatprep.mubr.msk.f32.mxu1 %vm10226_vm5, %v20579_v47 }
 0x760   : > { %19462 = vmatmul.mubr.msk.f32.gmra.mrb[68].mxu1 %vm10226_vm5, %v20580_v14 }
 0x761   : > { %19464 = vmatprep.mubr.msk.f32.mxu1 %vm10226_vm5, %v20581_v13 }
 0x764   : > { %19465 = vmatmul.mubr.msk.f32.gmra.mrb[70].mxu1 %vm10226_vm5, %v20582_v3 }
 0x765   : > { %19467 = vmatprep.mubr.msk.f32.mxu1 %vm10226_vm5, %v20583_v25 }
 0x768   : > { %19468 = vmatmul.mubr.msk.f32.gmra.mrb[72].mxu1 %vm10226_vm5, %v20584_v33 }
 0x769   : > { %19470 = vmatprep.mubr.msk.f32.mxu1 %vm10226_vm5, %v20585_v40 }
 0x76c   : > { %19471 = vmatmul.mubr.msk.f32.gmra.mrb[74].mxu1 %vm10226_vm5, %v20586_v1 }
 0x76d   : > { %19473 = vmatprep.mubr.msk.f32.mxu1 %vm10226_vm5, %v20587_v62 }
 0x770   : > { %19474 = vmatmul.mubr.msk.f32.gmra.mrb[76].mxu1 %vm10226_vm5, %v20588_v50 }
 0x771   : > { %19476 = vmatprep.mubr.msk.f32.mxu1 %vm10226_vm5, %v20589_v16 }
 0x774   : > { %19477 = vmatmul.mubr.msk.f32.gmra.mrb[78].mxu1 %vm10226_vm5, %v20590_v17 }
 0x82b   : > { %v19457_v48 = vpop.f32.mrb[64].mxu1 }
 0x82c   : > { %v13413_v41 = vadd.f32 %v19457_v48, %v24685_v52  ;;  %v13310_v6 = vpop.f32.mrb[65].mxu1 }
 0x82d   : > { %v13412_v32 = vadd.f32 %v24685_v52, %v13310_v6 }
 0x82e   : > { %v13429_v34 = vmax.f32 %v13413_v41, 0.0 }
 0x82f   : > { %v13428_v38 = vmax.f32 %v13412_v32, 0.0  ;;  %v19460_v57 = vpop.f32.mrb[66].mxu1 }
 0x830   : > { %v13477_v8 = vcombine.high %v13429_v34, %v13429_v34  ;;  %v13484_v61 = vrot.slane %v13429_v34, %v22866_v58  ;;  %v13415_v53 = vadd.f32 %v19460_v57, %v24685_v52  ;;  %v13320_v36 = vpop.f32.mrb[67].mxu1 }
 0x831   : > { %v13460_v51 = vcombine.high %v13428_v38, %v13428_v38  ;;  %v13467_v44 = vrot.slane %v13428_v38, %v22866_v58  ;;  %v24693_v39 = vadd.f32 %v24685_v52, %v13320_v36 }
 0x832   : > { %v13491_v55 = vrot.slane %v13477_v8, %v22866_v58  ;;  %v13492_v49 = vcombine.high %v13484_v61, %v13484_v61  ;;  %v13825_v2 = vsel %vm13796_vm11, %v13484_v61, -inf  ;;  %v24697_v21 = vmax.f32 %v13415_v53, 0.0 }
 0x833   : > { %v13826_v43 = vrot.slane %v13825_v2, 4  ;;  %v13474_v10 = vrot.slane %v13460_v51, %v22866_v58  ;;  %v13475_v15 = vcombine.high %v13467_v44, %v13467_v44  ;;  %v13797_v24 = vsel %vm13796_vm11, %v13467_v44, -inf  ;;  %v24701_v63 = vpop.f32.mrb[68].mxu1 }
 0x834   : > { %v13493_v5 = vcombine.high %v13491_v55, %v13491_v55  ;;  %v13832_v19 = vsel %vm13796_vm11, %v13492_v49, -inf  ;;  %v13839_v42 = vsel %vm13796_vm11, %v13491_v55, -inf  ;;  %v13798_v54 = vrot.slane %v13797_v24, 4  ;;  %v24705_v20 = vpop.f32.mrb[69].mxu1 }
 0x835   : > { %v13827_v26 = vmax.f32 %v13825_v2, %v13826_v43  ;;  %v13833_v22 = vrot.slane %v13832_v19, 4  ;;  %v13840_v0 = vrot.slane %v13839_v42, 4  ;;  %v13476_v35 = vcombine.high %v13474_v10, %v13474_v10 }
 0x836   : > { %v13846_v30 = vsel %vm13796_vm11, %v13493_v5, -inf  ;;  %v13799_v4 = vmax.f32 %v13797_v24, %v13798_v54  ;;  %v13804_v45 = vsel %vm13796_vm11, %v13475_v15, -inf  ;;  %v13811_v7 = vsel %vm13796_vm11, %v13474_v10, -inf }
 0x837   : > { %v13828_v18 = vrot.slane %v13827_v26, 2  ;;  %v13834_v27 = vmax.f32 %v13832_v19, %v13833_v22  ;;  %v13841_v31 = vmax.f32 %v13839_v42, %v13840_v0  ;;  %v13847_v60 = vrot.slane %v13846_v30, 4  ;;  %v24710_v12 = vpop.f32.mrb[70].mxu1 }
 0x838   : > { %v13800_v23 = vrot.slane %v13799_v4, 2  ;;  %v13805_v59 = vrot.slane %v13804_v45, 4  ;;  %v13812_v9 = vrot.slane %v13811_v7, 4  ;;  %v13818_v37 = vsel %vm13796_vm11, %v13476_v35, -inf  ;;  %v24713_v29 = vpop.f32.mrb[71].mxu1 }
 0x839   : > { %v13829_v11 = vmax.f32 %v13827_v26, %v13828_v18  ;;  %v13835_v56 = vrot.slane %v13834_v27, 2  ;;  %v13842_v28 = vrot.slane %v13841_v31, 2  ;;  %v13848_v47 = vmax.f32 %v13846_v30, %v13847_v60 }
 0x83a   : > { %v13801_v14 = vmax.f32 %v13799_v4, %v13800_v23  ;;  %v13806_v13 = vmax.f32 %v13804_v45, %v13805_v59  ;;  %v13813_v3 = vmax.f32 %v13811_v7, %v13812_v9  ;;  %v13819_v25 = vrot.slane %v13818_v37, 4 }
 0x83b   : > { %v13830_v33 = vrot.slane %v13829_v11, 1  ;;  %v13836_v40 = vmax.f32 %v13834_v27, %v13835_v56  ;;  %v13843_v1 = vmax.f32 %v13841_v31, %v13842_v28  ;;  %v13849_v62 = vrot.slane %v13848_v47, 2  ;;  %v24715_v50 = vpop.f32.mrb[72].mxu1 }
 0x83c   : > { %v13802_v16 = vrot.slane %v13801_v14, 1  ;;  %v13807_v17 = vrot.slane %v13806_v13, 2  ;;  %v13814_v48 = vrot.slane %v13813_v3, 2  ;;  %v13820_v41 = vmax.f32 %v13818_v37, %v13819_v25  ;;  %v24717_v6 = vpop.f32.mrb[73].mxu1 }
 0x83d   : > { %v13831_v32 = vmax.f32 %v13829_v11, %v13830_v33  ;;  %v13837_v34 = vrot.slane %v13836_v40, 1  ;;  %v13844_v38 = vrot.slane %v13843_v1, 1  ;;  %v13850_v57 = vmax.f32 %v13848_v47, %v13849_v62 }
 0x83e   : > { %v13803_v8 = vmax.f32 %v13801_v14, %v13802_v16  ;;  %v13808_v61 = vmax.f32 %v13806_v13, %v13807_v17  ;;  %v13815_v53 = vmax.f32 %v13813_v3, %v13814_v48  ;;  %v13821_v36 = vrot.slane %v13820_v41, 2 }
 0x83f   : > { %v13838_v51 = vmax.f32 %v13836_v40, %v13837_v34  ;;  %v13845_v44 = vmax.f32 %v13843_v1, %v13844_v38  ;;  %v13851_v55 = vrot.slane %v13850_v57, 1  ;;  %v14252_v49 = vsel %vm14245_vm12, %v13831_v32, -inf  ;;  %v24720_v2 = vpop.f32.mrb[74].mxu1 }
 0x840   : > { %v13809_v43 = vrot.slane %v13808_v61, 1  ;;  %v13816_v10 = vrot.slane %v13815_v53, 1  ;;  %v13822_v15 = vmax.f32 %v13820_v41, %v13821_v36  ;;  %v14246_v24 = vsel %vm14245_vm12, %v13803_v8, -inf  ;;  %v24723_v5 = vpop.f32.mrb[75].mxu1 }
 0x841   : > { %v13852_v19 = vmax.f32 %v13850_v57, %v13851_v55  ;;  %v14253_v42 = vsel %vm14245_vm12, %v13845_v44, -inf  ;;  %v14255_v54 = vsel %vm14245_vm12, %v13838_v51, -inf  ;;  %v13511_v26 = vcombine.high %v24697_v21, %v24697_v21 }
 0x842   : > { %v14254_v22 = vmax.f32 %v14252_v49, %v14253_v42  ;;  %v13810_v0 = vmax.f32 %v13808_v61, %v13809_v43  ;;  %v13817_v35 = vmax.f32 %v13815_v53, %v13816_v10  ;;  %v13823_v30 = vrot.slane %v13822_v15, 1 }
 0x843   : > { %v14256_v4 = vsel %vm14245_vm12, %v13852_v19, -inf  ;;  %v13518_v45 = vrot.slane %v24697_v21, %v22866_v58  ;;  %v13525_v7 = vrot.slane %v13511_v26, %v22866_v58  ;;  %v13430_v18 = vmax.f32 %v24693_v39, 0.0  ;;  %v24734_v27 = vpop.f32.mrb[76].mxu1 }
 0x844   : > { %v14257_v31 = vmax.f32 %v14255_v54, %v14256_v4  ;;  %v13824_v60 = vmax.f32 %v13822_v15, %v13823_v30  ;;  %v14247_v23 = vsel %vm14245_vm12, %v13817_v35, -inf  ;;  %v14249_v59 = vsel %vm14245_vm12, %v13810_v0, -inf  ;;  %v24738_v9 = vpop.f32.mrb[77].mxu1 }
 0x845   : > { %v14248_v37 = vmax.f32 %v14246_v24, %v14247_v23  ;;  %v13526_v11 = vcombine.high %v13518_v45, %v13518_v45  ;;  %v13527_v56 = vcombine.high %v13525_v7, %v13525_v7  ;;  %v13881_v28 = vsel %vm13796_vm11, %v13518_v45, -inf }
 0x846   : > { %v14408_v21 = vsel %vm10788_vm6, %v14257_v31, %v14254_v22  ;;  %v14250_v47 = vsel %vm14245_vm12, %v13824_v60, -inf  ;;  %v13882_v39 = vrot.slane %v13881_v28, 4  ;;  %v13895_v14 = vsel %vm13796_vm11, %v13525_v7, -inf }
 0x847   : > { %14441 = vst.msk [vmem:[#allocation4 + $0x9] sm:$0x3] %vm13796_vm11, %v14408_v21  ;;  %v14251_v13 = vmax.f32 %v14249_v59, %v14250_v47  ;;  %v13888_v3 = vsel %vm13796_vm11, %v13526_v11, -inf  ;;  %v13896_v25 = vrot.slane %v13895_v14, 4  ;;  %v13902_v33 = vsel %vm13796_vm11, %v13527_v56, -inf  ;;  %v24747_v40 = vpop.f32.mrb[78].mxu1 }
 0x848   : > { %v13883_v1 = vmax.f32 %v13881_v28, %v13882_v39  ;;  %v13889_v62 = vrot.slane %v13888_v3, 4  ;;  %v13903_v16 = vrot.slane %v13902_v33, 4  ;;  %v13494_v17 = vcombine.high %v13430_v18, %v13430_v18  ;;  %v24749_v48 = vpop.f32.mrb[79].mxu1 }
 0x849   : > { %v14407_v41 = vsel %vm10788_vm6, %v14251_v13, %v14248_v37  ;;  %v13897_v32 = vmax.f32 %v13895_v14, %v13896_v25  ;;  %v13501_v34 = vrot.slane %v13430_v18, %v22866_v58  ;;  %v13417_v38 = vadd.f32 %v24701_v63, %v24685_v52 }
 0x84a   : > { %14440 = vst.msk [vmem:[#allocation4 + $0x5] sm:$0x3] %vm13796_vm11, %v14407_v41  ;;  %v13884_v57 = vrot.slane %v13883_v1, 2  ;;  %v13890_v8 = vmax.f32 %v13888_v3, %v13889_v62  ;;  %v13904_v61 = vmax.f32 %v13902_v33, %v13903_v16  ;;  %v13508_v53 = vrot.slane %v13494_v17, %v22866_v58 }
 0x84b   : > { %v13898_v36 = vrot.slane %v13897_v32, 2  ;;  %v13509_v51 = vcombine.high %v13501_v34, %v13501_v34  ;;  %v13853_v44 = vsel %vm13796_vm11, %v13501_v34, -inf  ;;  %v13433_v55 = vmax.f32 %v13417_v38, 0.0 }
 0x84c   : > { %v13885_v49 = vmax.f32 %v13883_v1, %v13884_v57  ;;  %v13891_v43 = vrot.slane %v13890_v8, 2  ;;  %v13905_v10 = vrot.slane %v13904_v61, 2  ;;  %v13510_v15 = vcombine.high %v13508_v53, %v13508_v53 }
 0x84d   : > { %v13899_v24 = vmax.f32 %v13897_v32, %v13898_v36  ;;  %v13854_v19 = vrot.slane %v13853_v44, 4  ;;  %v13860_v63 = vsel %vm13796_vm11, %v13509_v51, -inf  ;;  %v13867_v42 = vsel %vm13796_vm11, %v13508_v53, -inf }
 0x84e   : > { %v13886_v54 = vrot.slane %v13885_v49, 1  ;;  %v13892_v26 = vmax.f32 %v13890_v8, %v13891_v43  ;;  %v13906_v22 = vmax.f32 %v13904_v61, %v13905_v10  ;;  %v13861_v0 = vrot.slane %v13860_v63, 4 }
 0x84f   : > { %v13900_v35 = vrot.slane %v13899_v24, 1  ;;  %v13855_v30 = vmax.f32 %v13853_v44, %v13854_v19  ;;  %v13868_v4 = vrot.slane %v13867_v42, 4  ;;  %v13874_v45 = vsel %vm13796_vm11, %v13510_v15, -inf }
 0x850   : > { %v13887_v7 = vmax.f32 %v13885_v49, %v13886_v54  ;;  %v13893_v18 = vrot.slane %v13892_v26, 1  ;;  %v13907_v31 = vrot.slane %v13906_v22, 1  ;;  %v13862_v60 = vmax.f32 %v13860_v63, %v13861_v0 }
 0x851   : > { %v13901_v23 = vmax.f32 %v13899_v24, %v13900_v35  ;;  %v13856_v59 = vrot.slane %v13855_v30, 2  ;;  %v13869_v37 = vmax.f32 %v13867_v42, %v13868_v4  ;;  %v13875_v11 = vrot.slane %v13874_v45, 4 }
 0x852   : > { %v13894_v56 = vmax.f32 %v13892_v26, %v13893_v18  ;;  %v13908_v28 = vmax.f32 %v13906_v22, %v13907_v31  ;;  %v14264_v21 = vsel %vm14245_vm12, %v13887_v7, -inf  ;;  %v13863_v47 = vrot.slane %v13862_v60, 2 }
 0x853   : > { %v14265_v39 = vsel %vm14245_vm12, %v13901_v23, -inf  ;;  %v13857_v14 = vmax.f32 %v13855_v30, %v13856_v59  ;;  %v13870_v13 = vrot.slane %v13869_v37, 2  ;;  %v13876_v3 = vmax.f32 %v13874_v45, %v13875_v11 }
 0x854   : > { %v14266_v25 = vmax.f32 %v14264_v21, %v14265_v39  ;;  %v14267_v33 = vsel %vm14245_vm12, %v13894_v56, -inf  ;;  %v14268_v1 = vsel %vm14245_vm12, %v13908_v28, -inf  ;;  %v13864_v62 = vmax.f32 %v13862_v60, %v13863_v47 }
 0x855   : > { %v14269_v16 = vmax.f32 %v14267_v33, %v14268_v1  ;;  %v13858_v17 = vrot.slane %v13857_v14, 1  ;;  %v13871_v41 = vmax.f32 %v13869_v37, %v13870_v13  ;;  %v13877_v32 = vrot.slane %v13876_v3, 2 }
 0x856   : > { %v13865_v34 = vrot.slane %v13864_v62, 1  ;;  %v13545_v38 = vcombine.high %v13433_v55, %v13433_v55  ;;  %v13552_v57 = vrot.slane %v13433_v55, %v22866_v58  ;;  %v13416_v8 = vadd.f32 %v24685_v52, %v24705_v20 }
 0x857   : > { %v14410_v61 = vsel %vm10788_vm6, %v14269_v16, %v14266_v25  ;;  %v13859_v53 = vmax.f32 %v13857_v14, %v13858_v17  ;;  %v13872_v36 = vrot.slane %v13871_v41, 1  ;;  %v13878_v51 = vmax.f32 %v13876_v3, %v13877_v32 }
 0x858   : > { %14443 = vst.msk [vmem:[#allocation4 + $0x19] sm:$0x3] %vm13796_vm11, %v14410_v61  ;;  %v13866_v44 = vmax.f32 %v13864_v62, %v13865_v34  ;;  %v13559_v49 = vrot.slane %v13545_v38, %v22866_v58  ;;  %v13560_v43 = vcombine.high %v13552_v57, %v13552_v57  ;;  %v13937_v10 = vsel %vm13796_vm11, %v13552_v57, -inf }
 0x859   : > { %v13873_v15 = vmax.f32 %v13871_v41, %v13872_v36  ;;  %v13879_v24 = vrot.slane %v13878_v51, 1  ;;  %v14258_v55 = vsel %vm14245_vm12, %v13859_v53, -inf  ;;  %v13938_v19 = vrot.slane %v13937_v10, 4 }
 0x85a   : > { %v14261_v20 = vsel %vm14245_vm12, %v13866_v44, -inf  ;;  %v13561_v63 = vcombine.high %v13559_v49, %v13559_v49  ;;  %v13944_v42 = vsel %vm13796_vm11, %v13560_v43, -inf  ;;  %v13951_v54 = vsel %vm13796_vm11, %v13559_v49, -inf }
 0x85b   : > { %v13880_v26 = vmax.f32 %v13878_v51, %v13879_v24  ;;  %v14259_v22 = vsel %vm14245_vm12, %v13873_v15, -inf  ;;  %v13939_v0 = vmax.f32 %v13937_v10, %v13938_v19  ;;  %v13945_v35 = vrot.slane %v13944_v42, 4 }
 0x85c   : > { %v14260_v30 = vmax.f32 %v14258_v55, %v14259_v22  ;;  %v13952_v4 = vrot.slane %v13951_v54, 4  ;;  %v13958_v45 = vsel %vm13796_vm11, %v13561_v63, -inf  ;;  %v13432_v7 = vmax.f32 %v13416_v8, 0.0 }
 0x85d   : > { %v14262_v18 = vsel %vm14245_vm12, %v13880_v26, -inf  ;;  %v13940_v31 = vrot.slane %v13939_v0, 2  ;;  %v13946_v60 = vmax.f32 %v13944_v42, %v13945_v35  ;;  %v13959_v23 = vrot.slane %v13958_v45, 4 }
 0x85e   : > { %v14263_v59 = vmax.f32 %v14261_v20, %v14262_v18  ;;  %v13953_v37 = vmax.f32 %v13951_v54, %v13952_v4  ;;  %v13528_v11 = vcombine.high %v13432_v7, %v13432_v7  ;;  %v13535_v56 = vrot.slane %v13432_v7, %v22866_v58 }
 0x85f   : > { %v13941_v28 = vmax.f32 %v13939_v0, %v13940_v31  ;;  %v13947_v21 = vrot.slane %v13946_v60, 2  ;;  %v13960_v47 = vmax.f32 %v13958_v45, %v13959_v23  ;;  %v13419_v39 = vadd.f32 %v24710_v12, %v24685_v52 }
 0x860   : > { %v14409_v14 = vsel %vm10788_vm6, %v14263_v59, %v14260_v30  ;;  %v13954_v13 = vrot.slane %v13953_v37, 2  ;;  %v13542_v3 = vrot.slane %v13528_v11, %v22866_v58  ;;  %v13543_v25 = vcombine.high %v13535_v56, %v13535_v56 }
 0x861   : > { %14442 = vst.msk [vmem:[#allocation4 + $0x15] sm:$0x3] %vm13796_vm11, %v14409_v14  ;;  %v13942_v33 = vrot.slane %v13941_v28, 1  ;;  %v13948_v1 = vmax.f32 %v13946_v60, %v13947_v21  ;;  %v13961_v62 = vrot.slane %v13960_v47, 2  ;;  %v13909_v16 = vsel %vm13796_vm11, %v13535_v56, -inf }
 0x862   : > { %v13955_v17 = vmax.f32 %v13953_v37, %v13954_v13  ;;  %v13544_v41 = vcombine.high %v13542_v3, %v13542_v3  ;;  %v13910_v32 = vrot.slane %v13909_v16, 4  ;;  %v13916_v34 = vsel %vm13796_vm11, %v13543_v25, -inf }
 0x863   : > { %v13943_v38 = vmax.f32 %v13941_v28, %v13942_v33  ;;  %v13949_v12 = vrot.slane %v13948_v1, 1  ;;  %v13962_v57 = vmax.f32 %v13960_v47, %v13961_v62  ;;  %v13917_v8 = vrot.slane %v13916_v34, 4 }
 0x864   : > { %v13956_v61 = vrot.slane %v13955_v17, 1  ;;  %v13911_v53 = vmax.f32 %v13909_v16, %v13910_v32  ;;  %v13923_v36 = vsel %vm13796_vm11, %v13542_v3, -inf  ;;  %v13930_v51 = vsel %vm13796_vm11, %v13544_v41, -inf }
 0x865   : > { %v13950_v44 = vmax.f32 %v13948_v1, %v13949_v12  ;;  %v13963_v49 = vrot.slane %v13962_v57, 1  ;;  %v14276_v43 = vsel %vm14245_vm12, %v13943_v38, -inf  ;;  %v13918_v10 = vmax.f32 %v13916_v34, %v13917_v8 }
 0x866   : > { %v13957_v15 = vmax.f32 %v13955_v17, %v13956_v61  ;;  %v13912_v24 = vrot.slane %v13911_v53, 2  ;;  %v13924_v55 = vrot.slane %v13923_v36, 4  ;;  %v13931_v19 = vrot.slane %v13930_v51, 4 }
 0x867   : > { %v13964_v20 = vmax.f32 %v13962_v57, %v13963_v49  ;;  %v14279_v63 = vsel %vm14245_vm12, %v13950_v44, -inf  ;;  %v13919_v42 = vrot.slane %v13918_v10, 2  ;;  %v13435_v54 = vmax.f32 %v13419_v39, 0.0 }
 0x868   : > { %v14277_v26 = vsel %vm14245_vm12, %v13957_v15, -inf  ;;  %v13913_v22 = vmax.f32 %v13911_v53, %v13912_v24  ;;  %v13925_v0 = vmax.f32 %v13923_v36, %v13924_v55  ;;  %v13932_v35 = vmax.f32 %v13930_v51, %v13931_v19 }
 0x869   : > { %v14278_v30 = vmax.f32 %v14276_v43, %v14277_v26  ;;  %v14280_v4 = vsel %vm14245_vm12, %v13964_v20, -inf  ;;  %v13920_v45 = vmax.f32 %v13918_v10, %v13919_v42  ;;  %v13579_v7 = vcombine.high %v13435_v54, %v13435_v54 }
 0x86a   : > { %v14281_v18 = vmax.f32 %v14279_v63, %v14280_v4  ;;  %v13914_v31 = vrot.slane %v13913_v22, 1  ;;  %v13926_v60 = vrot.slane %v13925_v0, 2  ;;  %v13933_v23 = vrot.slane %v13932_v35, 2 }
 0x86b   : > { %v13921_v59 = vrot.slane %v13920_v45, 1  ;;  %v13586_v37 = vrot.slane %v13435_v54, %v22866_v58  ;;  %v13593_v11 = vrot.slane %v13579_v7, %v22866_v58  ;;  %v13418_v56 = vadd.f32 %v24685_v52, %v24713_v29 }
 0x86c   : > { %v14412_v28 = vsel %vm10788_vm6, %v14281_v18, %v14278_v30  ;;  %v13915_v21 = vmax.f32 %v13913_v22, %v13914_v31  ;;  %v13927_v47 = vmax.f32 %v13925_v0, %v13926_v60  ;;  %v13934_v39 = vmax.f32 %v13932_v35, %v13933_v23 }
 0x86d   : > { %14445 = vst.msk [vmem:[#allocation4 + $0x29] sm:$0x3] %vm13796_vm11, %v14412_v28  ;;  %v13922_v14 = vmax.f32 %v13920_v45, %v13921_v59  ;;  %v13594_v13 = vcombine.high %v13586_v37, %v13586_v37  ;;  %v13595_v3 = vcombine.high %v13593_v11, %v13593_v11  ;;  %v13993_v25 = vsel %vm13796_vm11, %v13586_v37, -inf }
 0x86e   : > { %v13928_v33 = vrot.slane %v13927_v47, 1  ;;  %v13935_v1 = vrot.slane %v13934_v39, 1  ;;  %v14270_v62 = vsel %vm14245_vm12, %v13915_v21, -inf  ;;  %v13994_v16 = vrot.slane %v13993_v25, 4 }
 0x86f   : > { %v14273_v17 = vsel %vm14245_vm12, %v13922_v14, -inf  ;;  %v14000_v29 = vsel %vm13796_vm11, %v13594_v13, -inf  ;;  %v14007_v41 = vsel %vm13796_vm11, %v13593_v11, -inf  ;;  %v14014_v32 = vsel %vm13796_vm11, %v13595_v3, -inf }
 0x870   : > { %v13929_v34 = vmax.f32 %v13927_v47, %v13928_v33  ;;  %v13936_v38 = vmax.f32 %v13934_v39, %v13935_v1  ;;  %v13995_v12 = vmax.f32 %v13993_v25, %v13994_v16  ;;  %v14001_v57 = vrot.slane %v14000_v29, 4 }
 0x871   : > { %v14008_v8 = vrot.slane %v14007_v41, 4  ;;  %v14015_v61 = vrot.slane %v14014_v32, 4  ;;  %v13434_v53 = vmax.f32 %v13418_v56, 0.0  ;;  %v13421_v36 = vadd.f32 %v24715_v50, %v24685_v52 }
 0x872   : > { %v14271_v51 = vsel %vm14245_vm12, %v13929_v34, -inf  ;;  %v14274_v44 = vsel %vm14245_vm12, %v13936_v38, -inf  ;;  %v13996_v49 = vrot.slane %v13995_v12, 2  ;;  %v14002_v43 = vmax.f32 %v14000_v29, %v14001_v57 }
 0x873   : > { %v14272_v10 = vmax.f32 %v14270_v62, %v14271_v51  ;;  %v14275_v15 = vmax.f32 %v14273_v17, %v14274_v44  ;;  %v14009_v24 = vmax.f32 %v14007_v41, %v14008_v8  ;;  %v14016_v55 = vmax.f32 %v14014_v32, %v14015_v61 }
 0x874   : > { %v13997_v19 = vmax.f32 %v13995_v12, %v13996_v49  ;;  %v14003_v20 = vrot.slane %v14002_v43, 2  ;;  %v13562_v63 = vcombine.high %v13434_v53, %v13434_v53  ;;  %v13569_v42 = vrot.slane %v13434_v53, %v22866_v58 }
 0x875   : > { %v14411_v54 = vsel %vm10788_vm6, %v14275_v15, %v14272_v10  ;;  %v14010_v26 = vrot.slane %v14009_v24, 2  ;;  %v14017_v22 = vrot.slane %v14016_v55, 2  ;;  %v13437_v50 = vmax.f32 %v13421_v36, 0.0 }
 0x876   : > { %14444 = vst.msk [vmem:[#allocation4 + $0x25] sm:$0x3] %vm13796_vm11, %v14411_v54  ;;  %v13998_v0 = vrot.slane %v13997_v19, 1  ;;  %v14004_v35 = vmax.f32 %v14002_v43, %v14003_v20  ;;  %v13576_v30 = vrot.slane %v13562_v63, %v22866_v58  ;;  %v13577_v4 = vcombine.high %v13569_v42, %v13569_v42 }
 0x877   : > { %v14011_v45 = vmax.f32 %v14009_v24, %v14010_v26  ;;  %v14018_v7 = vmax.f32 %v14016_v55, %v14017_v22  ;;  %v13965_v18 = vsel %vm13796_vm11, %v13569_v42, -inf  ;;  %v13613_v31 = vcombine.high %v13437_v50, %v13437_v50 }
 0x878   : > { %v13999_v60 = vmax.f32 %v13997_v19, %v13998_v0  ;;  %v14005_v23 = vrot.slane %v14004_v35, 1  ;;  %v13578_v59 = vcombine.high %v13576_v30, %v13576_v30  ;;  %v13966_v37 = vrot.slane %v13965_v18, 4 }
 0x879   : > { %v14012_v11 = vrot.slane %v14011_v45, 1  ;;  %v14019_v56 = vrot.slane %v14018_v7, 1  ;;  %v13972_v28 = vsel %vm13796_vm11, %v13577_v4, -inf  ;;  %v13979_v21 = vsel %vm13796_vm11, %v13576_v30, -inf }
 0x87a   : > { %v14006_v47 = vmax.f32 %v14004_v35, %v14005_v23  ;;  %v14288_v39 = vsel %vm14245_vm12, %v13999_v60, -inf  ;;  %v13967_v14 = vmax.f32 %v13965_v18, %v13966_v37  ;;  %v13973_v13 = vrot.slane %v13972_v28, 4 }
 0x87b   : > { %v14013_v3 = vmax.f32 %v14011_v45, %v14012_v11  ;;  %v14020_v25 = vmax.f32 %v14018_v7, %v14019_v56  ;;  %v13980_v33 = vrot.slane %v13979_v21, 4  ;;  %v13986_v1 = vsel %vm13796_vm11, %v13578_v59, -inf }
 0x87c   : > { %v14291_v62 = vsel %vm14245_vm12, %v14006_v47, -inf  ;;  %v13968_v16 = vrot.slane %v13967_v14, 2  ;;  %v13974_v17 = vmax.f32 %v13972_v28, %v13973_v13  ;;  %v13987_v29 = vrot.slane %v13986_v1, 4 }
 0x87d   : > { %v14289_v41 = vsel %vm14245_vm12, %v14013_v3, -inf  ;;  %v14292_v32 = vsel %vm14245_vm12, %v14020_v25, -inf  ;;  %v13981_v34 = vmax.f32 %v13979_v21, %v13980_v33  ;;  %v13620_v38 = vrot.slane %v13437_v50, %v22866_v58 }
 0x87e   : > { %v14290_v12 = vmax.f32 %v14288_v39, %v14289_v41  ;;  %v14293_v57 = vmax.f32 %v14291_v62, %v14292_v32  ;;  %v13969_v8 = vmax.f32 %v13967_v14, %v13968_v16  ;;  %v13975_v61 = vrot.slane %v13974_v17, 2 }
 0x87f   : > { %v13982_v53 = vrot.slane %v13981_v34, 2  ;;  %v13988_v36 = vmax.f32 %v13986_v1, %v13987_v29  ;;  %v13627_v51 = vrot.slane %v13613_v31, %v22866_v58  ;;  %v13628_v44 = vcombine.high %v13620_v38, %v13620_v38 }
 0x880   : > { %v14414_v49 = vsel %vm10788_vm6, %v14293_v57, %v14290_v12  ;;  %v13970_v43 = vrot.slane %v13969_v8, 1  ;;  %v13976_v10 = vmax.f32 %v13974_v17, %v13975_v61  ;;  %v14049_v15 = vsel %vm13796_vm11, %v13620_v38, -inf }
 0x881   : > { %14447 = vst.msk [vmem:[#allocation4 + $0x39] sm:$0x3] %vm13796_vm11, %v14414_v49  ;;  %v13983_v24 = vmax.f32 %v13981_v34, %v13982_v53  ;;  %v13989_v55 = vrot.slane %v13988_v36, 2  ;;  %v13629_v19 = vcombine.high %v13627_v51, %v13627_v51  ;;  %v14050_v20 = vrot.slane %v14049_v15, 4 }
 0x882   : > { %v13971_v63 = vmax.f32 %v13969_v8, %v13970_v43  ;;  %v13977_v42 = vrot.slane %v13976_v10, 1  ;;  %v14056_v54 = vsel %vm13796_vm11, %v13628_v44, -inf  ;;  %v14063_v26 = vsel %vm13796_vm11, %v13627_v51, -inf }
 0x883   : > { %v13984_v22 = vrot.slane %v13983_v24, 1  ;;  %v13990_v50 = vmax.f32 %v13988_v36, %v13989_v55  ;;  %v14051_v0 = vmax.f32 %v14049_v15, %v14050_v20  ;;  %v14057_v35 = vrot.slane %v14056_v54, 4 }
 0x884   : > { %v13978_v30 = vmax.f32 %v13976_v10, %v13977_v42  ;;  %v14282_v4 = vsel %vm14245_vm12, %v13971_v63, -inf  ;;  %v14064_v45 = vrot.slane %v14063_v26, 4  ;;  %v14070_v7 = vsel %vm13796_vm11, %v13629_v19, -inf }
 0x885   : > { %v13985_v18 = vmax.f32 %v13983_v24, %v13984_v22  ;;  %v13991_v31 = vrot.slane %v13990_v50, 1  ;;  %v14052_v60 = vrot.slane %v14051_v0, 2  ;;  %v14058_v23 = vmax.f32 %v14056_v54, %v14057_v35 }
 0x886   : > { %v14285_v59 = vsel %vm14245_vm12, %v13978_v30, -inf  ;;  %v14065_v37 = vmax.f32 %v14063_v26, %v14064_v45  ;;  %v14071_v11 = vrot.slane %v14070_v7, 4  ;;  %v13420_v56 = vadd.f32 %v24685_v52, %v24717_v6 }
 0x887   : > { %v13992_v28 = vmax.f32 %v13990_v50, %v13991_v31  ;;  %v14283_v21 = vsel %vm14245_vm12, %v13985_v18, -inf  ;;  %v14053_v47 = vmax.f32 %v14051_v0, %v14052_v60  ;;  %v14059_v39 = vrot.slane %v14058_v23, 2 }
 0x888   : > { %v14284_v14 = vmax.f32 %v14282_v4, %v14283_v21  ;;  %v14066_v13 = vrot.slane %v14065_v37, 2  ;;  %v14072_v3 = vmax.f32 %v14070_v7, %v14071_v11  ;;  %v13436_v25 = vmax.f32 %v13420_v56, 0.0 }
 0x889   : > { %v14286_v33 = vsel %vm14245_vm12, %v13992_v28, -inf  ;;  %v14054_v1 = vrot.slane %v14053_v47, 1  ;;  %v14060_v62 = vmax.f32 %v14058_v23, %v14059_v39  ;;  %v13423_v16 = vadd.f32 %v24720_v2, %v24685_v52 }
 0x88a   : > { %v14287_v17 = vmax.f32 %v14285_v59, %v14286_v33  ;;  %v14067_v29 = vmax.f32 %v14065_v37, %v14066_v13  ;;  %v14073_v41 = vrot.slane %v14072_v3, 2  ;;  %v13596_v6 = vcombine.high %v13436_v25, %v13436_v25 }
 0x88b   : > { %v14055_v32 = vmax.f32 %v14053_v47, %v14054_v1  ;;  %v14061_v34 = vrot.slane %v14060_v62, 1  ;;  %v13603_v38 = vrot.slane %v13436_v25, %v22866_v58  ;;  %v13439_v12 = vmax.f32 %v13423_v16, 0.0 }
 0x88c   : > { %v14413_v57 = vsel %vm10788_vm6, %v14287_v17, %v14284_v14  ;;  %v14068_v8 = vrot.slane %v14067_v29, 1  ;;  %v14074_v61 = vmax.f32 %v14072_v3, %v14073_v41  ;;  %v13610_v53 = vrot.slane %v13596_v6, %v22866_v58 }
 0x88d   : > { %14446 = vst.msk [vmem:[#allocation4 + $0x35] sm:$0x3] %vm13796_vm11, %v14413_v57  ;;  %v14062_v36 = vmax.f32 %v14060_v62, %v14061_v34  ;;  %v14300_v52 = vsel %vm14245_vm12, %v14055_v32, -inf  ;;  %v13611_v2 = vcombine.high %v13603_v38, %v13603_v38  ;;  %v14021_v51 = vsel %vm13796_vm11, %v13603_v38, -inf }
 0x88e   : > { %v14069_v44 = vmax.f32 %v14067_v29, %v14068_v8  ;;  %v14075_v49 = vrot.slane %v14074_v61, 1  ;;  %v13612_v43 = vcombine.high %v13610_v53, %v13610_v53  ;;  %v14022_v10 = vrot.slane %v14021_v51, 4 }
 0x88f   : > { %v14303_v15 = vsel %vm14245_vm12, %v14062_v36, -inf  ;;  %v14028_v24 = vsel %vm13796_vm11, %v13611_v2, -inf  ;;  %v14035_v55 = vsel %vm13796_vm11, %v13610_v53, -inf  ;;  %v13647_v19 = vcombine.high %v13439_v12, %v13439_v12 }
 0x890   : > { %v14076_v20 = vmax.f32 %v14074_v61, %v14075_v49  ;;  %v14301_v63 = vsel %vm14245_vm12, %v14069_v44, -inf  ;;  %v14023_v42 = vmax.f32 %v14021_v51, %v14022_v10  ;;  %v14029_v54 = vrot.slane %v14028_v24, 4 }
 0x891   : > { %v14302_v26 = vmax.f32 %v14300_v52, %v14301_v63  ;;  %v14036_v22 = vrot.slane %v14035_v55, 4  ;;  %v14042_v50 = vsel %vm13796_vm11, %v13612_v43, -inf  ;;  %v13654_v0 = vrot.slane %v13439_v12, %v22866_v58  ;;  %v24862_v43 = vld [vmem:[%s25211_s4] ss:$0 sm:$0xff] }
 0x892   : > { %v14304_v35 = vsel %vm14245_vm12, %v14076_v20, -inf  ;;  %v14024_v30 = vrot.slane %v14023_v42, 2  ;;  %v14030_v4 = vmax.f32 %v14028_v24, %v14029_v54  ;;  %v14043_v45 = vrot.slane %v14042_v50, 4 }
 0x893   : > { %v14305_v7 = vmax.f32 %v14303_v15, %v14304_v35  ;;  %v14037_v18 = vmax.f32 %v14035_v55, %v14036_v22  ;;  %v13661_v31 = vrot.slane %v13647_v19, %v22866_v58  ;;  %v13662_v60 = vcombine.high %v13654_v0, %v13654_v0 }
 0x894   : > { %v14025_v23 = vmax.f32 %v14023_v42, %v14024_v30  ;;  %v14031_v59 = vrot.slane %v14030_v4, 2  ;;  %v14044_v37 = vmax.f32 %v14042_v50, %v14043_v45  ;;  %v14105_v11 = vsel %vm13796_vm11, %v13654_v0, -inf }
 0x895   : > { %v14416_v56 = vsel %vm10788_vm6, %v14305_v7, %v14302_v26  ;;  %v14038_v28 = vrot.slane %v14037_v18, 2  ;;  %v13663_v21 = vcombine.high %v13661_v31, %v13661_v31  ;;  %v14106_v47 = vrot.slane %v14105_v11, 4 }
 0x896   : > { %14449 = vst.msk [vmem:[#allocation4 + $0x49] sm:$0x3] %vm13796_vm11, %v14416_v56  ;;  %v14026_v39 = vrot.slane %v14025_v23, 1  ;;  %v14032_v14 = vmax.f32 %v14030_v4, %v14031_v59  ;;  %v14045_v13 = vrot.slane %v14044_v37, 2  ;;  %v14112_v3 = vsel %vm13796_vm11, %v13662_v60, -inf }
 0x897   : > { %v14039_v25 = vmax.f32 %v14037_v18, %v14038_v28  ;;  %v14107_v33 = vmax.f32 %v14105_v11, %v14106_v47  ;;  %v14113_v1 = vrot.slane %v14112_v3, 4  ;;  %v14119_v62 = vsel %vm13796_vm11, %v13661_v31, -inf }
 0x898   : > { %v14027_v16 = vmax.f32 %v14025_v23, %v14026_v39  ;;  %v14033_v17 = vrot.slane %v14032_v14, 1  ;;  %v14046_v29 = vmax.f32 %v14044_v37, %v14045_v13  ;;  %v14120_v41 = vrot.slane %v14119_v62, 4 }
 0x899   : > { %v14040_v6 = vrot.slane %v14039_v25, 1  ;;  %v14108_v32 = vrot.slane %v14107_v33, 2  ;;  %v14114_v34 = vmax.f32 %v14112_v3, %v14113_v1  ;;  %v14126_v38 = vsel %vm13796_vm11, %v13663_v21, -inf }
 0x89a   : > { %v14034_v12 = vmax.f32 %v14032_v14, %v14033_v17  ;;  %v14047_v57 = vrot.slane %v14046_v29, 1  ;;  %v14294_v8 = vsel %vm14245_vm12, %v14027_v16, -inf  ;;  %v14121_v61 = vmax.f32 %v14119_v62, %v14120_v41 }
 0x89b   : > { %v14041_v53 = vmax.f32 %v14039_v25, %v14040_v6  ;;  %v14109_v36 = vmax.f32 %v14107_v33, %v14108_v32  ;;  %v14115_v52 = vrot.slane %v14114_v34, 2  ;;  %v14127_v2 = vrot.slane %v14126_v38, 4 }
 0x89c   : > { %v14048_v51 = vmax.f32 %v14046_v29, %v14047_v57  ;;  %v14297_v44 = vsel %vm14245_vm12, %v14034_v12, -inf  ;;  %v14122_v49 = vrot.slane %v14121_v61, 2  ;;  %v13422_v10 = vadd.f32 %v24862_v43, %v24723_v5 }
 0x89d   : > { %v14295_v15 = vsel %vm14245_vm12, %v14041_v53, -inf  ;;  %v14110_v24 = vrot.slane %v14109_v36, 1  ;;  %v14116_v55 = vmax.f32 %v14114_v34, %v14115_v52  ;;  %v14128_v19 = vmax.f32 %v14126_v38, %v14127_v2 }
 0x89e   : > { %v14296_v20 = vmax.f32 %v14294_v8, %v14295_v15  ;;  %v14298_v63 = vsel %vm14245_vm12, %v14048_v51, -inf  ;;  %v14123_v42 = vmax.f32 %v14121_v61, %v14122_v49  ;;  %v13438_v54 = vmax.f32 %v13422_v10, 0.0 }
 0x89f   : > { %v14299_v26 = vmax.f32 %v14297_v44, %v14298_v63  ;;  %v14111_v22 = vmax.f32 %v14109_v36, %v14110_v24  ;;  %v14117_v50 = vrot.slane %v14116_v55, 1  ;;  %v14129_v0 = vrot.slane %v14128_v19, 2 }
 0x8a0   : > { %v14124_v35 = vrot.slane %v14123_v42, 1  ;;  %v13630_v30 = vcombine.high %v13438_v54, %v13438_v54  ;;  %v13637_v4 = vrot.slane %v13438_v54, %v22866_v58  ;;  %v13425_v5 = vadd.f32 %v24862_v43, %v24734_v27 }
 0x8a1   : > { %v14415_v45 = vsel %vm10788_vm6, %v14299_v26, %v14296_v20  ;;  %v14118_v7 = vmax.f32 %v14116_v55, %v14117_v50  ;;  %v14130_v18 = vmax.f32 %v14128_v19, %v14129_v0  ;;  %v14312_v31 = vsel %vm14245_vm12, %v14111_v22, -inf }
 0x8a2   : > { %14448 = vst.msk [vmem:[#allocation4 + $0x45] sm:$0x3] %vm13796_vm11, %v14415_v45  ;;  %v14125_v60 = vmax.f32 %v14123_v42, %v14124_v35  ;;  %v13644_v23 = vrot.slane %v13630_v30, %v22866_v58  ;;  %v13645_v59 = vcombine.high %v13637_v4, %v13637_v4  ;;  %v14077_v37 = vsel %vm13796_vm11, %v13637_v4, -inf }
 0x8a3   : > { %v14131_v11 = vrot.slane %v14130_v18, 1  ;;  %v14315_v56 = vsel %vm14245_vm12, %v14118_v7, -inf  ;;  %v14078_v28 = vrot.slane %v14077_v37, 4  ;;  %v13441_v21 = vmax.f32 %v13425_v5, 0.0 }
 0x8a4   : > { %v14313_v27 = vsel %vm14245_vm12, %v14125_v60, -inf  ;;  %v13646_v47 = vcombine.high %v13644_v23, %v13644_v23  ;;  %v14084_v39 = vsel %vm13796_vm11, %v13645_v59, -inf  ;;  %v14091_v14 = vsel %vm13796_vm11, %v13644_v23, -inf }
 0x8a5   : > { %v14132_v13 = vmax.f32 %v14130_v18, %v14131_v11  ;;  %v14314_v3 = vmax.f32 %v14312_v31, %v14313_v27  ;;  %v14079_v25 = vmax.f32 %v14077_v37, %v14078_v28  ;;  %v14085_v33 = vrot.slane %v14084_v39, 4 }
 0x8a6   : > { %v14092_v1 = vrot.slane %v14091_v14, 4  ;;  %v14098_v62 = vsel %vm13796_vm11, %v13646_v47, -inf  ;;  %v13681_v16 = vcombine.high %v13441_v21, %v13441_v21  ;;  %v13688_v17 = vrot.slane %v13441_v21, %v22866_v58 }
 0x8a7   : > { %v14316_v29 = vsel %vm14245_vm12, %v14132_v13, -inf  ;;  %v14080_v41 = vrot.slane %v14079_v25, 2  ;;  %v14086_v6 = vmax.f32 %v14084_v39, %v14085_v33  ;;  %v14099_v32 = vrot.slane %v14098_v62, 4 }
 0x8a8   : > { %v14317_v34 = vmax.f32 %v14315_v56, %v14316_v29  ;;  %v14093_v38 = vmax.f32 %v14091_v14, %v14092_v1  ;;  %v13695_v12 = vrot.slane %v13681_v16, %v22866_v58  ;;  %v13696_v57 = vcombine.high %v13688_v17, %v13688_v17 }
 0x8a9   : > { %v14081_v8 = vmax.f32 %v14079_v25, %v14080_v41  ;;  %v14087_v61 = vrot.slane %v14086_v6, 2  ;;  %v14100_v53 = vmax.f32 %v14098_v62, %v14099_v32  ;;  %v14161_v36 = vsel %vm13796_vm11, %v13688_v17, -inf }
 0x8aa   : > { %v14418_v52 = vsel %vm10788_vm6, %v14317_v34, %v14314_v3  ;;  %v14094_v2 = vrot.slane %v14093_v38, 2  ;;  %v13697_v51 = vcombine.high %v13695_v12, %v13695_v12  ;;  %v14162_v44 = vrot.slane %v14161_v36, 4 }
 0x8ab   : > { %14451 = vst.msk [vmem:[#allocation4 + $0x59] sm:$0x3] %vm13796_vm11, %v14418_v52  ;;  %v14082_v49 = vrot.slane %v14081_v8, 1  ;;  %v14088_v10 = vmax.f32 %v14086_v6, %v14087_v61  ;;  %v14101_v15 = vrot.slane %v14100_v53, 2  ;;  %v14168_v24 = vsel %vm13796_vm11, %v13696_v57, -inf }
 0x8ac   : > { %v14095_v55 = vmax.f32 %v14093_v38, %v14094_v2  ;;  %v14163_v19 = vmax.f32 %v14161_v36, %v14162_v44  ;;  %v14169_v20 = vrot.slane %v14168_v24, 4  ;;  %v14175_v63 = vsel %vm13796_vm11, %v13695_v12, -inf }
 0x8ad   : > { %v14083_v42 = vmax.f32 %v14081_v8, %v14082_v49  ;;  %v14089_v54 = vrot.slane %v14088_v10, 1  ;;  %v14102_v26 = vmax.f32 %v14100_v53, %v14101_v15  ;;  %v14176_v22 = vrot.slane %v14175_v63, 4 }
 0x8ae   : > { %v14096_v50 = vrot.slane %v14095_v55, 1  ;;  %v14164_v0 = vrot.slane %v14163_v19, 2  ;;  %v14170_v35 = vmax.f32 %v14168_v24, %v14169_v20  ;;  %v14182_v30 = vsel %vm13796_vm11, %v13697_v51, -inf }
 0x8af   : > { %v14090_v4 = vmax.f32 %v14088_v10, %v14089_v54  ;;  %v14103_v5 = vrot.slane %v14102_v26, 1  ;;  %v14306_v45 = vsel %vm14245_vm12, %v14083_v42, -inf  ;;  %v14177_v7 = vmax.f32 %v14175_v63, %v14176_v22 }
 0x8b0   : > { %v14097_v18 = vmax.f32 %v14095_v55, %v14096_v50  ;;  %v14165_v31 = vmax.f32 %v14163_v19, %v14164_v0  ;;  %v14171_v60 = vrot.slane %v14170_v35, 2  ;;  %v14183_v23 = vrot.slane %v14182_v30, 4 }
 0x8b1   : > { %v14104_v59 = vmax.f32 %v14102_v26, %v14103_v5  ;;  %v14309_v37 = vsel %vm14245_vm12, %v14090_v4, -inf  ;;  %v14178_v11 = vrot.slane %v14177_v7, 2  ;;  %v13424_v56 = vadd.f32 %v24862_v43, %v24738_v9 }
 0x8b2   : > { %v14307_v28 = vsel %vm14245_vm12, %v14097_v18, -inf  ;;  %v14166_v21 = vrot.slane %v14165_v31, 1  ;;  %v14172_v27 = vmax.f32 %v14170_v35, %v14171_v60  ;;  %v14184_v47 = vmax.f32 %v14182_v30, %v14183_v23 }
 0x8b3   : > { %v14308_v39 = vmax.f32 %v14306_v45, %v14307_v28  ;;  %v14310_v14 = vsel %vm14245_vm12, %v14104_v59, -inf  ;;  %v14179_v13 = vmax.f32 %v14177_v7, %v14178_v11  ;;  %v13440_v3 = vmax.f32 %v13424_v56, 0.0 }
 0x8b4   : > { %v14311_v25 = vmax.f32 %v14309_v37, %v14310_v14  ;;  %v14167_v33 = vmax.f32 %v14165_v31, %v14166_v21  ;;  %v14173_v1 = vrot.slane %v14172_v27, 1  ;;  %v14185_v62 = vrot.slane %v14184_v47, 2 }
 0x8b5   : > { %v14180_v16 = vrot.slane %v14179_v13, 1  ;;  %v13664_v17 = vcombine.high %v13440_v3, %v13440_v3  ;;  %v13671_v29 = vrot.slane %v13440_v3, %v22866_v58  ;;  %v13427_v9 = vadd.f32 %v24862_v43, %v24747_v40 }
 0x8b6   : > { %v14417_v41 = vsel %vm10788_vm6, %v14311_v25, %v14308_v39  ;;  %v14174_v6 = vmax.f32 %v14172_v27, %v14173_v1  ;;  %v14186_v32 = vmax.f32 %v14184_v47, %v14185_v62  ;;  %v14324_v34 = vsel %vm14245_vm12, %v14167_v33, -inf }
 0x8b7   : > { %14450 = vst.msk [vmem:[#allocation4 + $0x55] sm:$0x3] %vm13796_vm11, %v14417_v41  ;;  %v14181_v38 = vmax.f32 %v14179_v13, %v14180_v16  ;;  %v13678_v12 = vrot.slane %v13664_v17, %v22866_v58  ;;  %v13679_v57 = vcombine.high %v13671_v29, %v13671_v29  ;;  %v14133_v8 = vsel %vm13796_vm11, %v13671_v29, -inf }
 0x8b8   : > { %v14187_v61 = vrot.slane %v14186_v32, 1  ;;  %v14327_v53 = vsel %vm14245_vm12, %v14174_v6, -inf  ;;  %v14134_v36 = vrot.slane %v14133_v8, 4  ;;  %v13443_v52 = vmax.f32 %v13427_v9, 0.0 }
 0x8b9   : > { %v14325_v40 = vsel %vm14245_vm12, %v14181_v38, -inf  ;;  %v13680_v2 = vcombine.high %v13678_v12, %v13678_v12  ;;  %v14140_v51 = vsel %vm13796_vm11, %v13679_v57, -inf  ;;  %v14147_v44 = vsel %vm13796_vm11, %v13678_v12, -inf }
 0x8ba   : > { %v14188_v49 = vmax.f32 %v14186_v32, %v14187_v61  ;;  %v14326_v10 = vmax.f32 %v14324_v34, %v14325_v40  ;;  %v14135_v15 = vmax.f32 %v14133_v8, %v14134_v36  ;;  %v14141_v24 = vrot.slane %v14140_v51, 4  ;;  %v17445_v61 = vld [vmem:[%s25212_s5 + $0x20] sm:$0xff] }
 0x8bb   : > { %v14148_v55 = vrot.slane %v14147_v44, 4  ;;  %v14154_v19 = vsel %vm13796_vm11, %v13680_v2, -inf  ;;  %v13715_v20 = vcombine.high %v13443_v52, %v13443_v52  ;;  %v13722_v63 = vrot.slane %v13443_v52, %v22866_v58 }
 0x8bc   : > { %v14328_v42 = vsel %vm14245_vm12, %v14188_v49, -inf  ;;  %v14136_v54 = vrot.slane %v14135_v15, 2  ;;  %v14142_v26 = vmax.f32 %v14140_v51, %v14141_v24  ;;  %v14155_v22 = vrot.slane %v14154_v19, 4 }
 0x8bd   : > { %v14329_v50 = vmax.f32 %v14327_v53, %v14328_v42  ;;  %v14149_v0 = vmax.f32 %v14147_v44, %v14148_v55  ;;  %v13729_v35 = vrot.slane %v13715_v20, %v22866_v58  ;;  %v13730_v30 = vcombine.high %v13722_v63, %v13722_v63  ;;  %v17446_v53 = vld [vmem:[%s25212_s5 + $0x28] sm:$0xff]  ;;  %v20670_v55 = vld.sshfl [vmem:[#allocation4 + $0x1] sm:$0xf pattern:$0x76325410] }
 0x8be   : > { %v14137_v4 = vmax.f32 %v14135_v15, %v14136_v54  ;;  %v14143_v5 = vrot.slane %v14142_v26, 2  ;;  %v14156_v45 = vmax.f32 %v14154_v19, %v14155_v22  ;;  %v14217_v7 = vsel %vm13796_vm11, %v13722_v63, -inf }
 0x8bf   : > { %v14420_v18 = vsel %vm10788_vm6, %v14329_v50, %v14326_v10  ;;  %v14150_v31 = vrot.slane %v14149_v0, 2  ;;  %v13731_v60 = vcombine.high %v13729_v35, %v13729_v35  ;;  %v14218_v23 = vrot.slane %v14217_v7, 4 }
 0x8c0   : > { %14453 = vst.msk [vmem:[#allocation4 + $0x69] sm:$0x3] %vm13796_vm11, %v14420_v18  ;;  %v14138_v59 = vrot.slane %v14137_v4, 1  ;;  %v14144_v37 = vmax.f32 %v14142_v26, %v14143_v5  ;;  %v14157_v11 = vrot.slane %v14156_v45, 2  ;;  %v14224_v56 = vsel %vm13796_vm11, %v13730_v30, -inf }
 0x8c1   : > { %v14151_v28 = vmax.f32 %v14149_v0, %v14150_v31  ;;  %v14219_v21 = vmax.f32 %v14217_v7, %v14218_v23  ;;  %v14225_v27 = vrot.slane %v14224_v56, 4  ;;  %v14231_v47 = vsel %vm13796_vm11, %v13729_v35, -inf  ;;  %v20671_v5 = vld.sshfl [vmem:[#allocation4 + $0x11] sm:$0xf pattern:$0x76325410] }
 0x8c2   : > { %v14139_v39 = vmax.f32 %v14137_v4, %v14138_v59  ;;  %v14145_v14 = vrot.slane %v14144_v37, 1  ;;  %v14158_v13 = vmax.f32 %v14156_v45, %v14157_v11  ;;  %v14232_v3 = vrot.slane %v14231_v47, 4  ;;  %v17447_v31 = vld [vmem:[%s25212_s5 + $0x30] sm:$0xff] }
 0x8c3   : > { %v14152_v25 = vrot.slane %v14151_v28, 1  ;;  %v14220_v33 = vrot.slane %v14219_v21, 2  ;;  %v14226_v1 = vmax.f32 %v14224_v56, %v14225_v27  ;;  %v14238_v62 = vsel %vm13796_vm11, %v13731_v60, -inf  ;;  %v17448_v60 = vld [vmem:[%s25212_s5 + $0x38] sm:$0xff] }
 0x8c4   : > { %v14146_v16 = vmax.f32 %v14144_v37, %v14145_v14  ;;  %v14159_v17 = vrot.slane %v14158_v13, 1  ;;  %v14318_v29 = vsel %vm14245_vm12, %v14139_v39, -inf  ;;  %v14233_v9 = vmax.f32 %v14231_v47, %v14232_v3  ;;  %v20672_v56 = vld.sshfl [vmem:[#allocation4 + $0x21] sm:$0xf pattern:$0x76325410] }
 0x8c5   : > { %v14153_v41 = vmax.f32 %v14151_v28, %v14152_v25  ;;  %v14221_v6 = vmax.f32 %v14219_v21, %v14220_v33  ;;  %v14227_v32 = vrot.slane %v14226_v1, 2  ;;  %v14239_v34 = vrot.slane %v14238_v62, 4  ;;  %v20673_v39 = vld.sshfl [vmem:[#allocation4 + $0x31] sm:$0xf pattern:$0x76325410] }
 0x8c6   : > { %v14160_v38 = vmax.f32 %v14158_v13, %v14159_v17  ;;  %v14321_v12 = vsel %vm14245_vm12, %v14146_v16, -inf  ;;  %v14234_v57 = vrot.slane %v14233_v9, 2  ;;  %v13426_v8 = vadd.f32 %v24862_v43, %v24749_v48  ;;  %v20674_v25 = vld.sshfl [vmem:[#allocation4 + $0x41] sm:$0xf pattern:$0x76325410] }
 0x8c7   : > { %v14319_v36 = vsel %vm14245_vm12, %v14153_v41, -inf  ;;  %v14222_v52 = vrot.slane %v14221_v6, 1  ;;  %v14228_v40 = vmax.f32 %v14226_v1, %v14227_v32  ;;  %v14240_v2 = vmax.f32 %v14238_v62, %v14239_v34  ;;  %v20675_v33 = vld.sshfl [vmem:[#allocation4 + $0x51] sm:$0xf pattern:$0x76325410] }
 0x8c8   : > { %v14320_v51 = vmax.f32 %v14318_v29, %v14319_v36  ;;  %v14322_v44 = vsel %vm14245_vm12, %v14160_v38, -inf  ;;  %v14235_v49 = vmax.f32 %v14233_v9, %v14234_v57  ;;  %v13442_v10 = vmax.f32 %v13426_v8, 0.0  ;;  %v14473_v32 = vld [vmem:[%s25212_s5 + $0x8] sm:$0xff]  ;;  %v14474_v57 = vld [vmem:[%s25212_s5 + $0x10] sm:$0xff]  ;;  %v14475_v8 = vld [vmem:[%s25212_s5 + $0x18] sm:$0xff] }
 0x8c9   : > { %v14323_v15 = vmax.f32 %v14321_v12, %v14322_v44  ;;  %v14223_v48 = vmax.f32 %v14221_v6, %v14222_v52  ;;  %v14229_v43 = vrot.slane %v14228_v40, 1  ;;  %v14241_v24 = vrot.slane %v14240_v2, 2  ;;  %v14472_v6 = vld [vmem:[%s25212_s5] sm:$0xff] }
 0x8ca   : > { %v14236_v19 = vrot.slane %v14235_v49, 1  ;;  %v13698_v20 = vcombine.high %v13442_v10, %v13442_v10  ;;  %v13705_v63 = vrot.slane %v13442_v10, %v22866_v58  ;;  %v19652_v42 = vpack.c.bf16 %v17446_v53, %v17445_v61 }
 0x8cb   : > { %v14419_v54 = vsel %vm10788_vm6, %v14323_v15, %v14320_v51  ;;  %v14230_v26 = vmax.f32 %v14228_v40, %v14229_v43  ;;  %v14242_v22 = vmax.f32 %v14240_v2, %v14241_v24  ;;  %v14336_v50 = vsel %vm14245_vm12, %v14223_v48, -inf  ;;  %v17457_v43 = vld [vmem:[%s25212_s5 + $0x40] sm:$0xff]  ;;  %v17458_v24 = vld [vmem:[%s25212_s5 + $0x48] sm:$0xff] }
 0x8cc   : > { %14452 = vst.msk [vmem:[#allocation4 + $0x65] sm:$0x3] %vm13796_vm11, %v14419_v54  ;;  %v14237_v0 = vmax.f32 %v14235_v49, %v14236_v19  ;;  %v13712_v35 = vrot.slane %v13698_v20, %v22866_v58  ;;  %v13713_v30 = vcombine.high %v13705_v63, %v13705_v63  ;;  %v14189_v4 = vsel %vm13796_vm11, %v13705_v63, -inf  ;;  %19653 = vmatprep.subr.bf16.mxu1 %v19652_v42 }
 0x8cd   : > { %v14243_v45 = vrot.slane %v14242_v22, 1  ;;  %v14339_v7 = vsel %vm14245_vm12, %v14230_v26, -inf  ;;  %v14190_v18 = vrot.slane %v14189_v4, 4  ;;  %19655 = vmatpush3.bf16.msra.mxu1 %v19652_v42  ;;  %v19656_v3 = vpack.c.bf16 %v17448_v60, %v17447_v31 }
 0x8ce   : > { %v14337_v23 = vsel %vm14245_vm12, %v14237_v0, -inf  ;;  %v13714_v59 = vcombine.high %v13712_v35, %v13712_v35  ;;  %v14196_v37 = vsel %vm13796_vm11, %v13713_v30, -inf  ;;  %v14203_v11 = vsel %vm13796_vm11, %v13712_v35, -inf }
 0x8cf   : > { %v14244_v28 = vmax.f32 %v14242_v22, %v14243_v45  ;;  %v14338_v21 = vmax.f32 %v14336_v50, %v14337_v23  ;;  %v14191_v27 = vmax.f32 %v14189_v4, %v14190_v18  ;;  %v14197_v47 = vrot.slane %v14196_v37, 4  ;;  %19657 = vmatprep.subr.bf16.mxu1 %v19656_v3  ;;  %v20676_v45 = vld.sshfl [vmem:[#allocation4 + $0x10] sm:$0xf pattern:$0x76325410] }
 0x8d0   : > { %v14204_v14 = vrot.slane %v14203_v11, 4  ;;  %v14210_v13 = vsel %vm13796_vm11, %v13714_v59, -inf  ;;  %v14529_v41 = vcombine.low %v20670_v55, %v20671_v5  ;;  %v14546_v2 = vcombine.low %v20672_v56, %v20673_v39  ;;  %v20679_v18 = vld.sshfl [vmem:[#allocation4] sm:$0xf pattern:$0x76325410] }
 0x8d1   : > { %v14340_v1 = vsel %vm14245_vm12, %v14244_v28, -inf  ;;  %v14192_v62 = vrot.slane %v14191_v27, 2  ;;  %v14198_v16 = vmax.f32 %v14196_v37, %v14197_v47  ;;  %v14211_v17 = vrot.slane %v14210_v13, 4  ;;  %19659 = vmatpush3.bf16.msra.mxu1 %v19656_v3 }
 0x8d2   : > { %v14341_v29 = vmax.f32 %v14339_v7, %v14340_v1  ;;  %v14205_v9 = vmax.f32 %v14203_v11, %v14204_v14  ;;  %19487 = vmatprep.mubr.msk.f32.mxu1 %vm14245_vm12, %v14529_v41  ;;  %v14563_v44 = vcombine.low %v20674_v25, %v20675_v33  ;;  %v19660_v49 = vpack.c.bf16 %v14473_v32, %v14472_v6  ;;  %v20680_v31 = vld.sshfl [vmem:[#allocation4 + $0x30] sm:$0xf pattern:$0x76325410]  ;;  %v17465_v1 = vld [vmem:[%s25212_s5 + $0x60] sm:$0xff] }
 0x8d3   : > { %v14193_v34 = vmax.f32 %v14191_v27, %v14192_v62  ;;  %v14199_v38 = vrot.slane %v14198_v16, 2  ;;  %v14212_v12 = vmax.f32 %v14210_v13, %v14211_v17  ;;  %v19664_v10 = vpack.c.bf16 %v14475_v8, %v14474_v57  ;;  %v20677_v7 = vld.sshfl [vmem:[#allocation4 + $0x61] sm:$0xf pattern:$0x76325410]  ;;  %v17460_v27 = vld [vmem:[%s25212_s5 + $0x58] sm:$0xff] }
 0x8d4   : > { %v14422_v61 = vsel %vm10788_vm6, %v14341_v29, %v14338_v21  ;;  %v14206_v53 = vrot.slane %v14205_v9, 2  ;;  %19488 = vmatmul.mubr.msk.f32.vlgmr.msra.gmra.mrb[80].mxu1 %vm14245_vm12, %v14546_v2  ;;  %19661 = vmatprep.subr.bf16.mxu1 %v19660_v49  ;;  %v19668_v54 = vpack.c.bf16 %v17458_v24, %v17457_v43  ;;  %v20681_v23 = vld.sshfl [vmem:[#allocation4 + $0x50] sm:$0xf pattern:$0x76325410]  ;;  %v14706_v28 = vcombine.low %v20679_v18, %v20676_v45  ;;  %v17466_v62 = vld [vmem:[%s25212_s5 + $0x68] sm:$0xff] }
 0x8d5   : > { %14455 = vst.msk [vmem:[#allocation4 + $0x79] sm:$0x3] %vm13796_vm11, %v14422_v61  ;;  %v14194_v36 = vrot.slane %v14193_v34, 1  ;;  %v14200_v52 = vmax.f32 %v14198_v16, %v14199_v38  ;;  %v14213_v40 = vrot.slane %v14212_v12, 2  ;;  %19490 = vmatprep.mubr.msk.f32.mxu1 %vm14245_vm12, %v14563_v44  ;;  %19663 = vmatpush3.bf16.msra.mxu1 %v19660_v49  ;;  %v17459_v21 = vld [vmem:[%s25212_s5 + $0x50] sm:$0xff]  ;;  %v19676_v41 = vpack.c.bf16 %v17466_v62, %v17465_v1  ;;  %v17468_v38 = vld [vmem:[%s25212_s5 + $0x78] sm:$0xff] }
 0x8d6   : > { %v14207_v51 = vmax.f32 %v14205_v9, %v14206_v53  ;;  %19665 = vmatprep.subr.bf16.mxu1 %v19664_v10  ;;  %v20682_v59 = vld.sshfl [vmem:[#allocation4 + $0x20] sm:$0xf pattern:$0x76325410]  ;;  %v19672_v3 = vpack.c.bf16 %v17460_v27, %v17459_v21  ;;  %v17474_v2 = vld [vmem:[%s25212_s5 + $0x88] sm:$0xff]  ;;  %v17475_v24 = vld [vmem:[%s25212_s5 + $0x90] sm:$0xff] }
 0x8d7   : > { %v14201_v15 = vrot.slane %v14200_v52, 1  ;;  %v14214_v48 = vmax.f32 %v14212_v12, %v14213_v40  ;;  %v14195_v55 = vmax.f32 %v14193_v34, %v14194_v36  ;;  %v20683_v37 = vld.sshfl [vmem:[#allocation4 + $0x40] sm:$0xf pattern:$0x76325410]  ;;  %v14723_v13 = vcombine.low %v20682_v59, %v20680_v31  ;;  %v17467_v34 = vld [vmem:[%s25212_s5 + $0x70] sm:$0xff] }
 0x8d8   : > { %v14208_v19 = vrot.slane %v14207_v51, 1  ;;  %v20685_v47 = vld.sshfl [vmem:[#allocation4 + $0x12] sm:$0xf pattern:$0x76325410]  ;;  %v14740_v33 = vcombine.low %v20683_v37, %v20681_v23  ;;  %v19680_v53 = vpack.c.bf16 %v17468_v38, %v17467_v34  ;;  %v17473_v40 = vld [vmem:[%s25212_s5 + $0x80] sm:$0xff] }
 0x8d9   : > { %v14202_v20 = vmax.f32 %v14200_v52, %v14201_v15  ;;  %v14215_v63 = vrot.slane %v14214_v48, 1  ;;  %v14330_v22 = vsel %vm14245_vm12, %v14195_v55, -inf  ;;  %19667 = vmatpush3.bf16.msra.mxu1 %v19664_v10  ;;  %v20686_v39 = vld.sshfl [vmem:[#allocation4 + $0x60] sm:$0xf pattern:$0x76325410]  ;;  %v19684_v15 = vpack.c.bf16 %v17474_v2, %v17473_v40 }
 0x8da   : > { %v14209_v42 = vmax.f32 %v14207_v51, %v14208_v19  ;;  %19669 = vmatprep.subr.bf16.mxu1 %v19668_v54  ;;  %v20687_v14 = vld.sshfl [vmem:[#allocation4 + $0x2] sm:$0xf pattern:$0x76325410]  ;;  %v17476_v55 = vld [vmem:[%s25212_s5 + $0x98] sm:$0xff]  ;;  %v17483_v31 = vld [vmem:[%s25212_s5 + $0xb0] sm:$0xff] }
 0x8db   : > { %v14216_v26 = vmax.f32 %v14214_v48, %v14215_v63  ;;  %v14333_v0 = vsel %vm14245_vm12, %v14202_v20, -inf  ;;  %v20688_v25 = vld.sshfl [vmem:[#allocation4 + $0x32] sm:$0xf pattern:$0x76325410]  ;;  %v14904_v32 = vcombine.low %v20687_v14, %v20685_v47  ;;  %v17489_v27 = vld [vmem:[%s25212_s5 + $0xc0] sm:$0xff] }
 0x8dc   : > { %v14331_v50 = vsel %vm14245_vm12, %v14209_v42, -inf  ;;  %v20689_v16 = vld.sshfl [vmem:[#allocation4 + $0x52] sm:$0xf pattern:$0x76325410]  ;;  %v17490_v47 = vld [vmem:[%s25212_s5 + $0xc8] sm:$0xff] }
 0x8dd   : > { %v14334_v35 = vsel %vm14245_vm12, %v14216_v26, -inf  ;;  %v14332_v30 = vmax.f32 %v14330_v22, %v14331_v50  ;;  %v20690_v17 = vld.sshfl [vmem:[#allocation4 + $0x22] sm:$0xf pattern:$0x76325410]  ;;  %v17491_v62 = vld [vmem:[%s25212_s5 + $0xd0] sm:$0xff] }
 0x8de   : > { %v14335_v4 = vmax.f32 %v14333_v0, %v14334_v35  ;;  %v20691_v29 = vld.sshfl [vmem:[#allocation4 + $0x42] sm:$0xf pattern:$0x76325410]  ;;  %v14921_v61 = vcombine.low %v20690_v17, %v20688_v25  ;;  %v17482_v0 = vld [vmem:[%s25212_s5 + $0xa8] sm:$0xff]  ;;  %v19700_v25 = vpack.c.bf16 %v17490_v47, %v17489_v27  ;;  %v17499_v2 = vld [vmem:[%s25212_s5 + $0xf0] sm:$0xff] }
 0x8df   : > { %v20693_v12 = vld.sshfl [vmem:[#allocation4 + $0x14] sm:$0xf pattern:$0x76325410]  ;;  %v14938_v52 = vcombine.low %v20691_v29, %v20689_v16  ;;  %v17481_v50 = vld [vmem:[%s25212_s5 + $0xa0] sm:$0xff] }
 0x8e0   : > { %v14421_v5 = vsel %vm10788_vm6, %v14335_v4, %v14332_v30  ;;  %v20694_v57 = vld.sshfl [vmem:[#allocation4 + $0x62] sm:$0xf pattern:$0x76325410]  ;;  %v19692_v45 = vpack.c.bf16 %v17482_v0, %v17481_v50  ;;  %v17492_v16 = vld [vmem:[%s25212_s5 + $0xd8] sm:$0xff]  ;;  %v17507_v0 = vld [vmem:[%s25212_s5 + $0x110] sm:$0xff] }
 0x8e1   : > { %14454 = vst.msk [vmem:[#allocation4 + $0x75] sm:$0x3] %vm13796_vm11, %v14421_v5  ;;  %v20695_v8 = vld.sshfl [vmem:[#allocation4 + $0x4] sm:$0xf pattern:$0x76325410] }
 0x8e2   : > { %v20696_v36 = vld.sshfl [vmem:[#allocation4 + $0x34] sm:$0xf pattern:$0x76325410]  ;;  %v15106_v43 = vcombine.low %v20695_v8, %v20693_v12  ;;  %v17497_v38 = vld [vmem:[%s25212_s5 + $0xe0] sm:$0xff]  ;;  %v17498_v12 = vld [vmem:[%s25212_s5 + $0xe8] sm:$0xff] }
 0x8e3   : > { %v20697_v51 = vld.sshfl [vmem:[#allocation4 + $0x54] sm:$0xf pattern:$0x76325410] }
 0x8e4   : > { %v20698_v44 = vld.sshfl [vmem:[#allocation4 + $0x24] sm:$0xf pattern:$0x76325410] }
 0x8e5   : > { %v20699_v49 = vld.sshfl [vmem:[#allocation4 + $0x44] sm:$0xf pattern:$0x76325410]  ;;  %v15123_v42 = vcombine.low %v20698_v44, %v20696_v36  ;;  %v19708_v36 = vpack.c.bf16 %v17498_v12, %v17497_v38 }
 0x8e6   : > { %v20701_v19 = vld.sshfl [vmem:[#allocation4 + $0x15] sm:$0xf pattern:$0x76325410]  ;;  %v15140_v22 = vcombine.low %v20699_v49, %v20697_v51 }
 0x8e7   : > { %v20702_v20 = vld.sshfl [vmem:[#allocation4 + $0x64] sm:$0xf pattern:$0x76325410]  ;;  %v17500_v51 = vld [vmem:[%s25212_s5 + $0xf8] sm:$0xff] }
 0x8e8   : > { %v20678_v60 = vld.sshfl [vmem:[#allocation4 + $0x71] sm:$0xf pattern:$0x76325410] }
 0x8e9   : > { %v14580_v11 = vcombine.low %v20677_v7, %v20678_v60  ;;  %v20684_v56 = vld.sshfl [vmem:[#allocation4 + $0x70] sm:$0xf pattern:$0x76325410]  ;;  %v17484_v60 = vld [vmem:[%s25212_s5 + $0xb8] sm:$0xff] }
 0x8ea   : > { %v14757_v9 = vcombine.low %v20686_v39, %v20684_v56  ;;  %v20692_v6 = vld.sshfl [vmem:[#allocation4 + $0x72] sm:$0xf pattern:$0x76325410]  ;;  %v19696_v56 = vpack.c.bf16 %v17484_v60, %v17483_v31 }
 0x8eb   : > { %19491 = vmatmul.mubr.msk.f32.gmra.mrb[82].mxu1 %vm14245_vm12, %v14580_v11  ;;  %v14955_v10 = vcombine.low %v20694_v57, %v20692_v6  ;;  %v20700_v48 = vld.sshfl [vmem:[#allocation4 + $0x74] sm:$0xf pattern:$0x76325410]  ;;  %v19704_v6 = vpack.c.bf16 %v17492_v16, %v17491_v62  ;;  %v25104_v62 = vld [vmem:[%s25213_s6] ss:$0 sm:$0xff] }
 0x8ec   : > { %19501 = vmatprep.mubr.msk.f32.mxu1 %vm14245_vm12, %v14706_v28  ;;  %v20703_v63 = vld.sshfl [vmem:[#allocation4 + $0x5] sm:$0xf pattern:$0x76325410]  ;;  %v15157_v5 = vcombine.low %v20702_v20, %v20700_v48  ;;  %v19712_v48 = vpack.c.bf16 %v17500_v51, %v17499_v2 }
 0x8ed   : > { %v20704_v26 = vld.sshfl [vmem:[#allocation4 + $0x35] sm:$0xf pattern:$0x76325410]  ;;  %v15308_v18 = vcombine.low %v20703_v63, %v20701_v19  ;;  %v17506_v19 = vld [vmem:[%s25212_s5 + $0x108] sm:$0xff] }
 0x8ee   : > { %v20705_v35 = vld.sshfl [vmem:[#allocation4 + $0x55] sm:$0xf pattern:$0x76325410] }
 0x8ef   : > { %19502 = vmatmul.mubr.msk.f32.vlgmr.msra.gmra.mrb[80].mxu1 %vm14245_vm12, %v14723_v13  ;;  %v20706_v30 = vld.sshfl [vmem:[#allocation4 + $0x25] sm:$0xf pattern:$0x76325410] }
 0x8f0   : > { %19671 = vmatpush3.bf16.msra.mxu1 %v19668_v54  ;;  %19504 = vmatprep.mubr.msk.f32.mxu1 %vm14245_vm12, %v14740_v33  ;;  %v19688_v54 = vpack.c.bf16 %v17476_v55, %v17475_v24  ;;  %v20707_v4 = vld.sshfl [vmem:[#allocation4 + $0x45] sm:$0xf pattern:$0x76325410]  ;;  %v15325_v11 = vcombine.low %v20706_v30, %v20704_v26 }
 0x8f1   : > { %19673 = vmatprep.subr.bf16.mxu1 %v19672_v3  ;;  %v20708_v7 = vld.sshfl [vmem:[#allocation4 + $0x75] sm:$0xf pattern:$0x76325410]  ;;  %v15342_v21 = vcombine.low %v20707_v4, %v20705_v35  ;;  %v17505_v55 = vld [vmem:[%s25212_s5 + $0x100] sm:$0xff] }
 0x8f2   : > { %v20709_v23 = vld.sshfl [vmem:[#allocation4 + $0x16] sm:$0xf pattern:$0x76325410]  ;;  %v19716_v26 = vpack.c.bf16 %v17506_v19, %v17505_v55 }
 0x8f3   : > { %19505 = vmatmul.mubr.msk.f32.gmra.mrb[82].mxu1 %vm14245_vm12, %v14757_v9  ;;  %v20710_v59 = vld.sshfl [vmem:[#allocation4 + $0x65] sm:$0xf pattern:$0x76325410]  ;;  %v17508_v35 = vld [vmem:[%s25212_s5 + $0x118] sm:$0xff] }
 0x8f4   : > { %19675 = vmatpush3.bf16.msra.mxu1 %v19672_v3  ;;  %19515 = vmatprep.mubr.msk.f32.mxu1 %vm14245_vm12, %v14904_v32  ;;  %v20711_v37 = vld.sshfl [vmem:[#allocation4 + $0x6] sm:$0xf pattern:$0x76325410]  ;;  %v15359_v3 = vcombine.low %v20710_v59, %v20708_v7  ;;  %v19720_v7 = vpack.c.bf16 %v17508_v35, %v17507_v0 }
 0x8f5   : > { %19677 = vmatprep.subr.bf16.mxu1 %v19676_v41  ;;  %v20712_v28 = vld.sshfl [vmem:[#allocation4 + $0x36] sm:$0xf pattern:$0x76325410]  ;;  %v15510_v1 = vcombine.low %v20711_v37, %v20709_v23 }
 0x8f6   : > { %v20713_v39 = vld.sshfl [vmem:[#allocation4 + $0x56] sm:$0xf pattern:$0x76325410] }
 0x8f7   : > { %19516 = vmatmul.mubr.msk.f32.vlgmr.msra.gmra.mrb[80].mxu1 %vm14245_vm12, %v14921_v61  ;;  %v20714_v14 = vld.sshfl [vmem:[#allocation4 + $0x26] sm:$0xf pattern:$0x76325410] }
 0x8f8   : > { %19679 = vmatpush3.bf16.msra.mxu1 %v19676_v41  ;;  %19518 = vmatprep.mubr.msk.f32.mxu1 %vm14245_vm12, %v14938_v52  ;;  %v20715_v13 = vld.sshfl [vmem:[#allocation4 + $0x46] sm:$0xf pattern:$0x76325410]  ;;  %v15527_v41 = vcombine.low %v20714_v14, %v20712_v28 }
 0x8f9   : > { %19681 = vmatprep.subr.bf16.mxu1 %v19680_v53  ;;  %v20716_v33 = vld.sshfl [vmem:[#allocation4 + $0x76] sm:$0xf pattern:$0x76325410]  ;;  %v15544_v34 = vcombine.low %v20715_v13, %v20713_v39  ;;  %v16505_v39 = vld [vmem:[%s25214_s7] sm:$0xff]  ;;  %v16506_v14 = vld [vmem:[%s25214_s7 + $0x8] sm:$0xff] }
 0x8fa   : > { %v20717_v17 = vld.sshfl [vmem:[#allocation4 + $0x18] sm:$0xf pattern:$0x76325410]  ;;  %v16507_v13 = vld [vmem:[%s25214_s7 + $0x10] sm:$0xff] }
 0x8fb   : > { %19519 = vmatmul.mubr.msk.f32.gmra.mrb[82].mxu1 %vm14245_vm12, %v14955_v10  ;;  %v20718_v29 = vld.sshfl [vmem:[#allocation4 + $0x66] sm:$0xf pattern:$0x76325410] }
 0x8fc   : > { %19683 = vmatpush3.bf16.msra.mxu1 %v19680_v53  ;;  %19529 = vmatprep.mubr.msk.f32.mxu1 %vm14245_vm12, %v15106_v43  ;;  %v20719_v9 = vld.sshfl [vmem:[#allocation4 + $0x8] sm:$0xf pattern:$0x76325410]  ;;  %v15561_v53 = vcombine.low %v20718_v29, %v20716_v33  ;;  %v16508_v33 = vld [vmem:[%s25214_s7 + $0x18] sm:$0xff] }
 0x8fd   : > { %19685 = vmatprep.subr.bf16.mxu1 %v19684_v15  ;;  %v20720_v32 = vld.sshfl [vmem:[#allocation4 + $0x38] sm:$0xf pattern:$0x76325410]  ;;  %v15713_v40 = vcombine.low %v20719_v9, %v20717_v17 }
 0x8fe   : > { %v20721_v57 = vld.sshfl [vmem:[#allocation4 + $0x58] sm:$0xf pattern:$0x76325410] }
 0x8ff   : > { %19530 = vmatmul.mubr.msk.f32.vlgmr.msra.gmra.mrb[80].mxu1 %vm14245_vm12, %v15123_v42  ;;  %v20722_v8 = vld.sshfl [vmem:[#allocation4 + $0x28] sm:$0xf pattern:$0x76325410] }
 0x900   : > { %19687 = vmatpush3.bf16.msra.mxu1 %v19684_v15  ;;  %19532 = vmatprep.mubr.msk.f32.mxu1 %vm14245_vm12, %v15140_v22  ;;  %v20723_v61 = vld.sshfl [vmem:[#allocation4 + $0x48] sm:$0xf pattern:$0x76325410]  ;;  %v15730_v15 = vcombine.low %v20722_v8, %v20720_v32 }
 0x901   : > { %19689 = vmatprep.subr.bf16.mxu1 %v19688_v54  ;;  %v20724_v52 = vld.sshfl [vmem:[#allocation4 + $0x78] sm:$0xf pattern:$0x76325410]  ;;  %v15747_v24 = vcombine.low %v20723_v61, %v20721_v57 }
 0x902   : > { %v20725_v44 = vld.sshfl [vmem:[#allocation4 + $0x19] sm:$0xf pattern:$0x76325410] }
 0x903   : > { %19533 = vmatmul.mubr.msk.f32.gmra.mrb[82].mxu1 %vm14245_vm12, %v15157_v5  ;;  %v20726_v49 = vld.sshfl [vmem:[#allocation4 + $0x68] sm:$0xf pattern:$0x76325410] }
 0x904   : > { %19691 = vmatpush3.bf16.msra.mxu1 %v19688_v54  ;;  %19543 = vmatprep.mubr.msk.f32.mxu1 %vm14245_vm12, %v15308_v18  ;;  %v20727_v10 = vld.sshfl [vmem:[#allocation4 + $0x9] sm:$0xf pattern:$0x76325410]  ;;  %v15764_v54 = vcombine.low %v20726_v49, %v20724_v52 }
 0x905   : > { %19693 = vmatprep.subr.bf16.mxu1 %v19692_v45  ;;  %v20728_v43 = vld.sshfl [vmem:[#allocation4 + $0x39] sm:$0xf pattern:$0x76325410]  ;;  %v15915_v50 = vcombine.low %v20727_v10, %v20725_v44 }
 0x906   : > { %v20729_v20 = vld.sshfl [vmem:[#allocation4 + $0x59] sm:$0xf pattern:$0x76325410] }
 0x907   : > { %19544 = vmatmul.mubr.msk.f32.vlgmr.msra.gmra.mrb[80].mxu1 %vm14245_vm12, %v15325_v11  ;;  %v20730_v63 = vld.sshfl [vmem:[#allocation4 + $0x29] sm:$0xf pattern:$0x76325410] }
 0x908   : > { %19695 = vmatpush3.bf16.msra.mxu1 %v19692_v45  ;;  %19546 = vmatprep.mubr.msk.f32.mxu1 %vm14245_vm12, %v15342_v21  ;;  %v20731_v42 = vld.sshfl [vmem:[#allocation4 + $0x49] sm:$0xf pattern:$0x76325410]  ;;  %v15932_v45 = vcombine.low %v20730_v63, %v20728_v43 }
 0x909   : > { %19697 = vmatprep.subr.bf16.mxu1 %v19696_v56  ;;  %v20732_v22 = vld.sshfl [vmem:[#allocation4 + $0x79] sm:$0xf pattern:$0x76325410]  ;;  %v15949_v31 = vcombine.low %v20731_v42, %v20729_v20 }
 0x90a   : > { %v20733_v30 = vld.sshfl [vmem:[#allocation4 + $0x1a] sm:$0xf pattern:$0x76325410] }
 0x90b   : > { %19547 = vmatmul.mubr.msk.f32.gmra.mrb[82].mxu1 %vm14245_vm12, %v15359_v3  ;;  %v20734_v4 = vld.sshfl [vmem:[#allocation4 + $0x69] sm:$0xf pattern:$0x76325410]  ;;  %v20808_v3 = vmov 0.0|0.0  }
 0x90c   : > { %19699 = vmatpush3.bf16.msra.mxu1 %v19696_v56  ;;  %19557 = vmatprep.mubr.msk.f32.mxu1 %vm14245_vm12, %v15510_v1  ;;  %v20735_v5 = vld.sshfl [vmem:[#allocation4 + $0xa] sm:$0xf pattern:$0x76325410]  ;;  %v15966_v37 = vcombine.low %v20734_v4, %v20732_v22  ;;  %v19728_v1 = vpack.c.bf16 %v16508_v33, %v16507_v13 }
 0x90d   : > { %19701 = vmatprep.subr.bf16.mxu1 %v19700_v25  ;;  %v20736_v18 = vld.sshfl [vmem:[#allocation4 + $0x3a] sm:$0xf pattern:$0x76325410]  ;;  %v16117_v56 = vcombine.low %v20735_v5, %v20733_v30 }
 0x90e   : > { %v20737_v60 = vld.sshfl [vmem:[#allocation4 + $0x5a] sm:$0xf pattern:$0x76325410] }
 0x90f   : > { %19558 = vmatmul.mubr.msk.f32.vlgmr.msra.gmra.mrb[80].mxu1 %vm14245_vm12, %v15527_v41  ;;  %v20738_v23 = vld.sshfl [vmem:[#allocation4 + $0x2a] sm:$0xf pattern:$0x76325410] }
 0x910   : > { %19703 = vmatpush3.bf16.msra.mxu1 %v19700_v25  ;;  %19560 = vmatprep.mubr.msk.f32.mxu1 %vm14245_vm12, %v15544_v34  ;;  %v20739_v59 = vld.sshfl [vmem:[#allocation4 + $0x4a] sm:$0xf pattern:$0x76325410]  ;;  %v16134_v21 = vcombine.low %v20738_v23, %v20736_v18  ;;  %v19725_v25 = vpack.c.bf16 %v16506_v14, %v16505_v39 }
 0x911   : > { %19705 = vmatprep.subr.bf16.mxu1 %v19704_v6  ;;  %v20740_v11 = vld.sshfl [vmem:[#allocation4 + $0x7a] sm:$0xf pattern:$0x76325410]  ;;  %v16151_v27 = vcombine.low %v20739_v59, %v20737_v60 }
 0x912   : > { %v20741_v28 = vld.sshfl [vmem:[#allocation4 + $0x6a] sm:$0xf pattern:$0x76325410] }
 0x913   : > { %19561 = vmatmul.mubr.msk.f32.gmra.mrb[82].mxu1 %vm14245_vm12, %v15561_v53  ;;  %v16168_v47 = vcombine.low %v20741_v28, %v20740_v11 }
 0x914   : > { %19707 = vmatpush3.bf16.msra.mxu1 %v19704_v6  ;;  %19571 = vmatprep.mubr.msk.f32.mxu1 %vm14245_vm12, %v15713_v40 }
 0x915   : > { %19709 = vmatprep.subr.bf16.mxu1 %v19708_v36 }
 0x917   : > { %19572 = vmatmul.mubr.msk.f32.vlgmr.msra.gmra.mrb[80].mxu1 %vm14245_vm12, %v15730_v15 }
 0x918   : > { %19711 = vmatpush3.bf16.msra.mxu1 %v19708_v36  ;;  %19574 = vmatprep.mubr.msk.f32.mxu1 %vm14245_vm12, %v15747_v24 }
 0x919   : > { %19713 = vmatprep.subr.bf16.mxu1 %v19712_v48 }
 0x91b   : > { %19575 = vmatmul.mubr.msk.f32.gmra.mrb[82].mxu1 %vm14245_vm12, %v15764_v54 }
 0x91c   : > { %19715 = vmatpush3.bf16.msra.mxu1 %v19712_v48  ;;  %19585 = vmatprep.mubr.msk.f32.mxu1 %vm14245_vm12, %v15915_v50 }
 0x91d   : > { %19717 = vmatprep.subr.bf16.mxu1 %v19716_v26 }
 0x91f   : > { %19586 = vmatmul.mubr.msk.f32.vlgmr.msra.gmra.mrb[80].mxu1 %vm14245_vm12, %v15932_v45 }
 0x920   : > { %19719 = vmatpush3.bf16.msra.mxu1 %v19716_v26  ;;  %19588 = vmatprep.mubr.msk.f32.mxu1 %vm14245_vm12, %v15949_v31 }
 0x921   : > { %19721 = vmatprep.subr.bf16.mxu1 %v19720_v7 }
 0x923   : > { %19589 = vmatmul.mubr.msk.f32.gmra.mrb[82].mxu1 %vm14245_vm12, %v15966_v37 }
 0x924   : > { %19723 = vmatpush3.bf16.msra.mxu1 %v19720_v7  ;;  %19599 = vmatprep.mubr.msk.f32.mxu1 %vm14245_vm12, %v16117_v56 }
 0x925   : > { %19724 = vmatprep.subr.bf16.mxu1 %v20808_v3 }
 0x927   : > { %19600 = vmatmul.mubr.msk.f32.vlgmr.msra.gmra.mrb[80].mxu1 %vm14245_vm12, %v16134_v21 }
 0x928   : > { %19602 = vmatprep.mubr.msk.f32.mxu1 %vm14245_vm12, %v16151_v27  ;;  %19726 = vmatpush3.bf16.msra.mxu1 %v19725_v25 }
 0x929   : > { %19727 = vmatprep.subr.bf16.mxu1 %v20808_v3 }
 0x92b   : > { %19603 = vmatmul.mubr.msk.f32.gmra.mrb[82].mxu1 %vm14245_vm12, %v16168_v47 }
 0x92c   : > { %19613 = vmatprep.mubr.msk.f32.mxu1 %vm20809_vm13, %v25405_v46  ;;  %19729 = vmatpush3.bf16.msra.mxu1 %v19728_v1 }
 0x9fa   : > { %v19601_v16 = vpop.f32.mrb[80].mxu1 }
 0x9fb   : > { %v16274_v17 = vadd.f32 %v19601_v16, %v25104_v62  ;;  %v16243_v29 = vpop.f32.mrb[81].mxu1 }
 0x9fc   : > { %v16273_v9 = vadd.f32 %v25104_v62, %v16243_v29 }
 0x9fd   : > { %v16278_v41 = vmax.f32 %v16274_v17, 0.0 }
 0x9fe   : > { %v16277_v6 = vmax.f32 %v16273_v9, 0.0  ;;  %v19604_v32 = vpop.f32.mrb[82].mxu1 }
 0x9ff   : > { %v16302_v34 = vcombine.high %v16278_v41, %v16278_v41  ;;  %v16309_v46 = vrot.slane %v16278_v41, %v22866_v58  ;;  %v16253_v38 = vpop.f32.mrb[83].mxu1  ;;  %v16276_v36 = vadd.f32 %v19604_v32, %v25104_v62 }
 0xa00   : > { %v16285_v12 = vcombine.high %v16277_v6, %v16277_v6  ;;  %v16292_v57 = vrot.slane %v16277_v6, %v22866_v58  ;;  %v16275_v16 = vadd.f32 %v25104_v62, %v16253_v38 }
 0xa01   : > { %v16316_v8 = vrot.slane %v16302_v34, %v22866_v58  ;;  %v16317_v61 = vcombine.high %v16309_v46, %v16309_v46  ;;  %v16397_v53 = vsel %vm13796_vm11, %v16309_v46, -inf  ;;  %v16280_v39 = vmax.f32 %v16276_v36, 0.0 }
 0xa02   : > { %v16398_v52 = vrot.slane %v16397_v53, 4  ;;  %v16299_v40 = vrot.slane %v16285_v12, %v22866_v58  ;;  %v16300_v2 = vcombine.high %v16292_v57, %v16292_v57  ;;  %v16369_v51 = vsel %vm13796_vm11, %v16292_v57, -inf }
 0xa03   : > { %v16318_v44 = vcombine.high %v16316_v8, %v16316_v8  ;;  %v16404_v49 = vsel %vm13796_vm11, %v16317_v61, -inf  ;;  %v16411_v10 = vsel %vm13796_vm11, %v16316_v8, -inf  ;;  %v16370_v15 = vrot.slane %v16369_v51, 4 }
 0xa04   : > { %v16399_v48 = vmax.f32 %v16397_v53, %v16398_v52  ;;  %v16405_v43 = vrot.slane %v16404_v49, 4  ;;  %v16412_v24 = vrot.slane %v16411_v10, 4  ;;  %v16301_v55 = vcombine.high %v16299_v40, %v16299_v40 }
 0xa05   : > { %v16418_v19 = vsel %vm13796_vm11, %v16318_v44, -inf  ;;  %v16371_v20 = vmax.f32 %v16369_v51, %v16370_v15  ;;  %v16376_v63 = vsel %vm13796_vm11, %v16300_v2, -inf  ;;  %v16383_v42 = vsel %vm13796_vm11, %v16299_v40, -inf }
 0xa06   : > { %v16400_v54 = vrot.slane %v16399_v48, 2  ;;  %v16406_v26 = vmax.f32 %v16404_v49, %v16405_v43  ;;  %v16413_v22 = vmax.f32 %v16411_v10, %v16412_v24  ;;  %v16419_v50 = vrot.slane %v16418_v19, 4 }
 0xa07   : > { %v16372_v0 = vrot.slane %v16371_v20, 2  ;;  %v16377_v35 = vrot.slane %v16376_v63, 4  ;;  %v16384_v30 = vrot.slane %v16383_v42, 4  ;;  %v16390_v4 = vsel %vm13796_vm11, %v16301_v55, -inf }
 0xa08   : > { %v16401_v5 = vmax.f32 %v16399_v48, %v16400_v54  ;;  %v16407_v45 = vrot.slane %v16406_v26, 2  ;;  %v16414_v7 = vrot.slane %v16413_v22, 2  ;;  %v16420_v18 = vmax.f32 %v16418_v19, %v16419_v50 }
 0xa09   : > { %v16373_v31 = vmax.f32 %v16371_v20, %v16372_v0  ;;  %v16378_v60 = vmax.f32 %v16376_v63, %v16377_v35  ;;  %v16385_v23 = vmax.f32 %v16383_v42, %v16384_v30  ;;  %v16391_v59 = vrot.slane %v16390_v4, 4 }
 0xa0a   : > { %v16402_v37 = vrot.slane %v16401_v5, 1  ;;  %v16408_v11 = vmax.f32 %v16406_v26, %v16407_v45  ;;  %v16415_v56 = vmax.f32 %v16413_v22, %v16414_v7  ;;  %v16421_v28 = vrot.slane %v16420_v18, 2 }
 0xa0b   : > { %v16379_v21 = vrot.slane %v16378_v60, 2  ;;  %v16386_v27 = vrot.slane %v16385_v23, 2  ;;  %v16392_v47 = vmax.f32 %v16390_v4, %v16391_v59  ;;  %v16374_v13 = vrot.slane %v16373_v31, 1 }
 0xa0c   : > { %v16409_v14 = vrot.slane %v16408_v11, 1  ;;  %v16403_v33 = vmax.f32 %v16401_v5, %v16402_v37  ;;  %v16416_v17 = vrot.slane %v16415_v56, 1  ;;  %v16422_v29 = vmax.f32 %v16420_v18, %v16421_v28 }
 0xa0d   : > { %v16380_v3 = vmax.f32 %v16378_v60, %v16379_v21  ;;  %v16393_v25 = vrot.slane %v16392_v47, 2  ;;  %v16387_v1 = vmax.f32 %v16385_v23, %v16386_v27  ;;  %v16336_v6 = vcombine.high %v16280_v39, %v16280_v39 }
 0xa0e   : > { %v16410_v32 = vmax.f32 %v16408_v11, %v16409_v14  ;;  %v16375_v34 = vmax.f32 %v16373_v31, %v16374_v13  ;;  %v16343_v57 = vrot.slane %v16280_v39, %v22866_v58  ;;  %v16279_v61 = vmax.f32 %v16275_v16, 0.0 }
 0xa0f   : > { %v16381_v9 = vrot.slane %v16380_v3, 1  ;;  %v16394_v41 = vmax.f32 %v16392_v47, %v16393_v25  ;;  %v16388_v12 = vrot.slane %v16387_v1, 1  ;;  %v16350_v8 = vrot.slane %v16336_v6, %v22866_v58 }
 0xa10   : > { %v16417_v53 = vmax.f32 %v16415_v56, %v16416_v17  ;;  %v16423_v36 = vrot.slane %v16422_v29, 1  ;;  %v25125_v52 = vsel %vm14245_vm12, %v16403_v33, -inf  ;;  %v16351_v40 = vcombine.high %v16343_v57, %v16343_v57 }
 0xa11   : > { %v16395_v46 = vrot.slane %v16394_v41, 1  ;;  %v16382_v62 = vmax.f32 %v16380_v3, %v16381_v9  ;;  %v16352_v2 = vcombine.high %v16350_v8, %v16350_v8  ;;  %v16453_v51 = vsel %vm13796_vm11, %v16343_v57, -inf }
 0xa12   : > { %v16481_v44 = vsel %vm14245_vm12, %v16375_v34, -inf  ;;  %v16454_v49 = vrot.slane %v16453_v51, 4  ;;  %v16467_v10 = vsel %vm13796_vm11, %v16350_v8, -inf  ;;  %v16319_v15 = vcombine.high %v16279_v61, %v16279_v61 }
 0xa13   : > { %v16396_v38 = vmax.f32 %v16394_v41, %v16395_v46  ;;  %v16389_v48 = vmax.f32 %v16387_v1, %v16388_v12  ;;  %v16460_v43 = vsel %vm13796_vm11, %v16351_v40, -inf  ;;  %v16468_v24 = vrot.slane %v16467_v10, 4 }
 0xa14   : > { %v16474_v55 = vsel %vm13796_vm11, %v16352_v2, -inf  ;;  %v16424_v19 = vmax.f32 %v16422_v29, %v16423_v36  ;;  %v16461_v20 = vrot.slane %v16460_v43, 4  ;;  %v16326_v42 = vrot.slane %v16279_v61, %v22866_v58 }
 0xa15   : > { %v16475_v63 = vrot.slane %v16474_v55, 4  ;;  %v16482_v54 = vsel %vm14245_vm12, %v16382_v62, -inf  ;;  %v16485_v26 = vsel %vm14245_vm12, %v16396_v38, -inf  ;;  %v16455_v22 = vmax.f32 %v16453_v51, %v16454_v49 }
 0xa16   : > { %v16333_v50 = vrot.slane %v16319_v15, %v22866_v58  ;;  %v16462_v0 = vmax.f32 %v16460_v43, %v16461_v20  ;;  %v16469_v35 = vmax.f32 %v16467_v10, %v16468_v24  ;;  %v16334_v4 = vcombine.high %v16326_v42, %v16326_v42 }
 0xa17   : > { %v16476_v30 = vmax.f32 %v16474_v55, %v16475_v63  ;;  %v16484_v5 = vsel %vm14245_vm12, %v16389_v48, -inf  ;;  %v16425_v7 = vsel %vm13796_vm11, %v16326_v42, -inf  ;;  %v16456_v37 = vrot.slane %v16455_v22, 2 }
 0xa18   : > { %v16335_v45 = vcombine.high %v16333_v50, %v16333_v50  ;;  %v16439_v18 = vsel %vm13796_vm11, %v16333_v50, -inf  ;;  %v16486_v31 = vmax.f32 %v16484_v5, %v16485_v26  ;;  %v16463_v60 = vrot.slane %v16462_v0, 2 }
 0xa19   : > { %v16477_v23 = vrot.slane %v16476_v30, 2  ;;  %v16426_v59 = vrot.slane %v16425_v7, 4  ;;  %v16432_v11 = vsel %vm13796_vm11, %v16334_v4, -inf  ;;  %v16440_v56 = vrot.slane %v16439_v18, 4 }
 0xa1a   : > { %v16446_v58 = vsel %vm13796_vm11, %v16335_v45, -inf  ;;  %v16483_v28 = vmax.f32 %v16481_v44, %v16482_v54  ;;  %v16464_v21 = vmax.f32 %v16462_v0, %v16463_v60  ;;  %v16470_v27 = vrot.slane %v16469_v35, 2 }
 0xa1b   : > { %v16427_v47 = vmax.f32 %v16425_v7, %v16426_v59  ;;  %v16488_v39 = vsel %vm14245_vm12, %v16410_v32, -inf  ;;  %v16433_v14 = vrot.slane %v16432_v11, 4  ;;  %v16441_v13 = vmax.f32 %v16439_v18, %v16440_v56 }
 0xa1c   : > { %v16447_v3 = vrot.slane %v16446_v58, 4  ;;  %v16491_v25 = vsel %vm14245_vm12, %v16424_v19, -inf  ;;  %v16524_v33 = vsel %vm10788_vm6, %v16486_v31, %v16483_v28  ;;  %v16478_v1 = vmax.f32 %v16476_v30, %v16477_v23 }
 0xa1d   : > { %v16428_v16 = vrot.slane %v16427_v47, 2  ;;  %v16457_v17 = vmax.f32 %v16455_v22, %v16456_v37  ;;  %v16434_v29 = vmax.f32 %v16432_v11, %v16433_v14  ;;  %v16442_v9 = vrot.slane %v16441_v13, 2  ;;  %v17514_v37 = vld [vmem:[%s25215_s8] ss:$0 sm:$0xff] }
 0xa1e   : > { %v16448_v41 = vmax.f32 %v16446_v58, %v16447_v3  ;;  %v16489_v6 = vmax.f32 %v25125_v52, %v16488_v39  ;;  %v16465_v34 = vrot.slane %v16464_v21, 1  ;;  %v16471_v46 = vmax.f32 %v16469_v35, %v16470_v27 }
 0xa1f   : > { %v16429_v12 = vmax.f32 %v16427_v47, %v16428_v16  ;;  %v16490_v32 = vsel %vm14245_vm12, %v16417_v53, -inf  ;;  %v16435_v57 = vrot.slane %v16434_v29, 2  ;;  %v16443_v8 = vmax.f32 %v16441_v13, %v16442_v9 }
 0xa20   : > { %v16449_v61 = vrot.slane %v16448_v41, 2  ;;  %v16492_v36 = vmax.f32 %v16490_v32, %v16491_v25  ;;  %v16479_v62 = vrot.slane %v16478_v1, 1  ;;  %v16525_v40 = vsel %vm10790_vm7, %v16489_v6, %v16524_v33 }
 0xa21   : > { %v16430_v38 = vrot.slane %v16429_v12, 1  ;;  %v16458_v2 = vrot.slane %v16457_v17, 1  ;;  %v16436_v51 = vmax.f32 %v16434_v29, %v16435_v57  ;;  %v16444_v44 = vrot.slane %v16443_v8, 1 }
 0xa22   : > { %v16450_v49 = vmax.f32 %v16448_v41, %v16449_v61  ;;  %v16466_v10 = vmax.f32 %v16464_v21, %v16465_v34  ;;  %v16472_v15 = vrot.slane %v16471_v46, 1  ;;  %v16526_v52 = vsel %vm10792_vm8, %v16492_v36, %v16525_v40 }
 0xa23   : > { %v16431_v48 = vmax.f32 %v16429_v12, %v16430_v38  ;;  %v16437_v43 = vrot.slane %v16436_v51, 1  ;;  %v16445_v24 = vmax.f32 %v16443_v8, %v16444_v44  ;;  %v16480_v55 = vmax.f32 %v16478_v1, %v16479_v62 }
 0xa24   : > { %v16451_v53 = vrot.slane %v16450_v49, 1  ;;  %v16459_v19 = vmax.f32 %v16457_v17, %v16458_v2  ;;  %v16473_v42 = vmax.f32 %v16471_v46, %v16472_v15  ;;  %v16500_v54 = vsel %vm14245_vm12, %v16466_v10, -inf }
 0xa25   : > { %v16438_v20 = vmax.f32 %v16436_v51, %v16437_v43  ;;  %v16493_v26 = vsel %vm14245_vm12, %v16431_v48, -inf  ;;  %v16496_v50 = vsel %vm14245_vm12, %v16445_v24, -inf  ;;  %v16503_v4 = vsel %vm14245_vm12, %v16480_v55, -inf }
 0xa26   : > { %v16452_v63 = vmax.f32 %v16450_v49, %v16451_v53  ;;  %v16499_v5 = vsel %vm14245_vm12, %v16459_v19, -inf  ;;  %v16502_v7 = vsel %vm14245_vm12, %v16473_v42, -inf }
 0xa27   : > { %v16494_v22 = vsel %vm14245_vm12, %v16438_v20, -inf  ;;  %v16501_v45 = vmax.f32 %v16499_v5, %v16500_v54  ;;  %v16504_v31 = vmax.f32 %v16502_v7, %v16503_v4 }
 0xa28   : > { %v16497_v0 = vsel %vm14245_vm12, %v16452_v63, -inf  ;;  %v16495_v35 = vmax.f32 %v16493_v26, %v16494_v22 }
 0xa29   : > { %v16498_v30 = vmax.f32 %v16496_v50, %v16497_v0 }
 0xa2a   : > { %v16528_v18 = vsel %vm16527_vm14, %v16495_v35, %v16526_v52 }
 0xa2b   : > { %v16530_v60 = vsel %vm16529_vm15, %v16498_v30, %v16528_v18 }
 0xa2c   : > { %v16532_v23 = vsel %vm16531_vm0, %v16501_v45, %v16530_v60 }
 0xa2d   : > { %v16534_v59 = vsel %vm16533_vm1, %v16504_v31, %v16532_v23 }
 0xa2e   : > { %19614 = vmatmul.mubr.msk.f32.vlgmr.msra.gmra.mrb[84].mxu1 %vm14245_vm12, %v16534_v59 }
 0xb01   : > { %v16603_v11 = vpop.f32.mrb[84].mxu1 }
 0xb02   : > { %v16604_v56 = vadd.f32 %v17514_v37, %v16603_v11  ;;  %v19615_v58 = vpop.f32.mrb[85].mxu1 }
 0xb04   : > { %16608 = vst.msk [vmem:[%s328_s14] sm:$0xff] %vm16607_vm2, %v16604_v56 }
 0xb05   : > { %20755 = shalt.err (!%p20752_p3)
}
 0xb06   : > { %s20756_s25 = scalar_lea.hbm %s25165_s22, 128  ;;  %s20760_s14 = scalar_lea.hbm %s25216_s9, 256 }
 0xb07   : > { %p20757_p4 = scmp.ne.s32.totalorder %s25165_s22, %s20756_s25  ;;  %p20761_p9 = scmp.lt.u32.totalorder %s25165_s22, %s25216_s9 }
 0xb08   : > { %p20762_p10 = scmp.lt.u32.totalorder %s20760_s14, %s20756_s25  ;;  %p20764_p12 = scmp.lt.u32.totalorder %s20756_s25, %s25165_s22 }
 0xb09   : > { %p20758_p7 = pnand %p20757_p4, %p20899_p5 }
 0xb0a   : > { %p20763_p11 = por %p20762_p10, %p20761_p9 }
 0xb0b   : > { %p20759_p8 = pneg %p20758_p7 }
 0xb0c   : > { %p20765_p13 = por %p20764_p12, %p20763_p11 }
 0xb0e   : > { %p20766_p0 = pnand %p20765_p13, %p20759_p8 }
 0xb10   : > { %20769 = shalt.err (!%p20766_p0)
}
 0xb11   : > { %20404 = dma.vmem_to_hbm [thread:$0]  (%p20899_p5), %s25167_s16, 128, %s25165_s22, %s16610_s23  }
 0xb12 PF: > { %p20410_p1 = scmp.ge.s32.totalorder %s20804_s12, 2  ;;  %s16635_s24 = sand.u32 1, %s20792_s30  }
 0xb13   : > { %s16636_s13 = scalar_lea.sflag [#allocation6], %s16635_s24 }
 0xb14   : > { %p20407_p2 = pnand %p20410_p1, %p20903_p6 }
 0xb16   : > { %20787 = dma.done.wait (!%p20407_p2), %s16636_s13, 128  }
 0xb17   : > { %20789 = vsyncadd (!%p20407_p2), %s16636_s13, 4294967168  ;;  %p19_p3 = scmp.ge.s32.totalorder %s20886_s15, 4   ;;  %s25406_s30 = smov %s20796_s10 }
 0xb18   : > { %s25407_s10 = smov %s20800_s11  ;;  %s25408_s11 = smov %s20897_s18 }
 0xb19   : > { %s25409_s12 = smov %s20886_s15  ;;  %21 = sbr.rel (!%p19_p3) target bundleno = 3 (0x3), region = 121 }
 0xb20   :  { %16641 = vsyncpa [#allocation6], 1 }
 0xb21   :  { %16643 = vsyncpa [#allocation6 + $0x1], 1 }

</bundles_post_ra>
